<compile_context>
chip_gen: v6e
topology: v6e:2x2x1
jax: 0.10.0
libtpu: 0.0.40
codegen_flags: <defaults>
</compile_context>

<pallas_src>
import functools

import jax
import jax.numpy as jnp
from jax.experimental import pallas as pl
from jax.experimental.pallas import tpu as pltpu

EPS = 1e-5  # PyTorch InstanceNorm2d default eps


# ----------------------------- small helpers -----------------------------

def _round_up(v, m):
    return (v + m - 1) // m * m


def _in_row_tile(r, max_tile=1024):
    """Largest divisor of r that is a multiple of 8 and <= max_tile; r itself if
    r <= max_tile (full-dim blocks are always legal); None -> caller pads."""
    best = None
    for d in range(min(max_tile, r), 7, -1):
        if r % d == 0 and d % 8 == 0:
            best = d
            break
    if best is None and r <= max_tile:
        best = r
    return best


# ----------------------------- fused stride-1 conv -----------------------------

def _fused_conv_kernel(*refs, k, wo, tm, has_bias, relu):
    if has_bias:
        x_ref, w_ref, b_ref, o_ref = refs
    else:
        x_ref, w_ref, o_ref = refs
        b_ref = None
    # Vertical taps fused: k shifted matmuls over the VMEM-resident row band.
    acc = jnp.dot(x_ref[0, 0:tm, :], w_ref[0],
                  preferred_element_type=jnp.float32)
    for di in range(1, k):
        acc = acc + jnp.dot(x_ref[0, di * wo:di * wo + tm, :], w_ref[di],
                            preferred_element_type=jnp.float32)
    if b_ref is not None:
        acc = acc + b_ref[...]
    if relu:
        acc = jnp.maximum(acc, 0.0)
    o_ref[...] = acc.astype(o_ref.dtype)[None]


def fused_conv_s1(xp, w, bias=None, relu=False, out_dtype=jnp.bfloat16,
                  band_budget=4 * 1024 * 1024, max_tm=2048):
    """Stride-1 conv on an already (reflect-)padded NHWC input.

    The k horizontal taps are folded into lanes in XLA (rows of width k*Cin);
    the k vertical taps are accumulated inside the kernel over a VMEM-resident
    row band, so the activation is read ~(1 + halo) times instead of k*k times.
    """
    n, hp, wp, cin = xp.shape
    cout, _, k, _ = w.shape
    ho, wo = hp - k + 1, wp - k + 1
    kcin = k * cin
    if xp.dtype != jnp.bfloat16:
        xp = xp.astype(jnp.bfloat16)

    # Horizontal taps -> lanes (single XLA materialization, ~k x input bytes).
    xw = jnp.concatenate([xp[:, :, j:j + wo, :] for j in range(k)], axis=-1)

    # Vertical row bands with a (k-1)-row halo; the halo is the only duplication.
    d = 1
    for cand in range(1, ho + 1):
        if ho % cand:
            continue
        if cand * wo <= max_tm and (cand + k - 1) * wo * kcin * 2 <= band_budget:
            d = cand
    nb = ho // d
    tm = d * wo
    bh = (d + k - 1) * wo
    xb = jnp.stack([xw[:, b * d:b * d + d + k - 1] for b in range(nb)], axis=1)
    xb = xb.reshape(n * nb, bh, kcin)

    # Weight rows ordered (dj, ci) to match the lane layout of xw.
    wk = jnp.transpose(w, (2, 3, 1, 0)).reshape(k, kcin, cout).astype(jnp.bfloat16)

    args = [xb, wk]
    in_specs = [
        pl.BlockSpec((1, bh, kcin), lambda i: (i, 0, 0)),
        pl.BlockSpec((k, kcin, cout), lambda i: (0, 0, 0)),
    ]
    has_bias = bias is not None
    if has_bias:
        args.append(bias.astype(jnp.float32).reshape(1, cout))
        in_specs.append(pl.BlockSpec((1, cout), lambda i: (0, 0)))

    out = pl.pallas_call(
        functools.partial(_fused_conv_kernel, k=k, wo=wo, tm=tm,
                          has_bias=has_bias, relu=relu),
        grid=(n * nb,),
        out_shape=jax.ShapeDtypeStruct((n * nb, tm, cout), out_dtype),
        in_specs=in_specs,
        out_specs=pl.BlockSpec((1, tm, cout), lambda i: (i, 0, 0)),
        compiler_params=pltpu.CompilerParams(
            dimension_semantics=("parallel",)),
    )(*args)
    return out.reshape(n, ho, wo, cout)


# ----------------------------- generic GEMM (no K grid axis) -----------------------------

def _gemm_kernel(a_ref, w_ref, o_ref):
    o_ref[...] = jnp.dot(a_ref[...], w_ref[...],
                         preferred_element_type=jnp.float32).astype(o_ref.dtype)


def pallas_matmul(a, w, out_dtype=jnp.bfloat16):
    """(M, K) @ (K, Nc): full-K-resident weights (no K axis / scratch / pl.when),
    M padded up to the tile, unpadded output width when Nc < 128."""
    m, k = a.shape
    _, nc = w.shape
    tm = min(1024, _round_up(m, 8))
    mp = _round_up(m, tm)
    if nc % 256 == 0:
        tn = 256          # feed the full 256-wide MXU on v6e / v7x
    elif nc % 128 == 0:
        tn = 128
    else:
        tn = nc           # small output width: single full-dim (legal) block

    if a.dtype != jnp.bfloat16:
        a = a.astype(jnp.bfloat16)
    if mp != m:
        a = jnp.pad(a, ((0, mp - m), (0, 0)))      # zero rows, sliced off below
    w = w.astype(jnp.bfloat16)

    # TODO(synk): add pipeline_mode=pl.Buffered(3) on the A spec if profiling
    #             shows the A-tile DMA still exposed on the memory-bound layers.
    out = pl.pallas_call(
        _gemm_kernel,
        grid=(mp // tm, nc // tn),
        out_shape=jax.ShapeDtypeStruct((mp, nc), out_dtype),
        in_specs=[pl.BlockSpec((tm, k), lambda i, j: (i, 0)),
                  pl.BlockSpec((k, tn), lambda i, j: (0, j))],
        out_specs=pl.BlockSpec((tm, tn), lambda i, j: (i, j)),
        compiler_params=pltpu.CompilerParams(
            dimension_semantics=("parallel", "parallel")),
    )(a, w)
    return out[:m] if mp != m else out


# ----------------------------- tiled two-pass InstanceNorm -----------------------------

def _in_stats_kernel(x_ref, s_ref, q_ref):
    @pl.when(pl.program_id(1) == 0)
    def _():
        s_ref[...] = jnp.zeros_like(s_ref)
        q_ref[...] = jnp.zeros_like(q_ref)
    x = x_ref[...].astype(jnp.float32)
    s_ref[...] += jnp.sum(x, axis=1, keepdims=True)
    q_ref[...] += jnp.sum(x * x, axis=1, keepdims=True)


def _in_apply_kernel(*refs, relu, has_residual):
    if has_residual:
        x_ref, sc_ref, sh_ref, r_ref, o_ref = refs
    else:
        x_ref, sc_ref, sh_ref, o_ref = refs
        r_ref = None
    y = x_ref[...].astype(jnp.float32) * sc_ref[...] + sh_ref[...]
    if relu:
        y = jnp.maximum(y, 0.0)
    if r_ref is not None:
        y = y + r_ref[...].astype(jnp.float32)      # fused residual add
    o_ref[...] = y.astype(o_ref.dtype)


def instance_norm_grouped(xg, gamma, beta, g, relu=False, residual=None,
                          out_dtype=jnp.bfloat16):
    """InstanceNorm over (N, R, g*C): per-channel stats reduce over the R rows
    and g lane groups (lane layout group-major, channel-minor).  Two spatially
    tiled passes: (1) sum/sumsq accumulation, (2) scale/shift apply with fused
    ReLU / residual add.  Scales to any H*W without exceeding the VMEM budget
    of any TPU generation."""
    n, r, l = xg.shape
    c = l // g
    count = r * g
    has_res = residual is not None
    assert not (relu and has_res)   # never needed together in this network

    tr = _in_row_tile(r)
    if tr is None:
        tr = 512
        rp = _round_up(r, tr)
        pad = ((0, 0), (0, rp - r), (0, 0))
        xg = jnp.pad(xg, pad)            # zero rows are stats-neutral
        if has_res:
            residual = jnp.pad(residual, pad)
    else:
        rp = r

    sums, sqs = pl.pallas_call(
        _in_stats_kernel,
        grid=(n, rp // tr),
        out_shape=(jax.ShapeDtypeStruct((n, 1, l), jnp.float32),
                   jax.ShapeDtypeStruct((n, 1, l), jnp.float32)),
        in_specs=[pl.BlockSpec((1, tr, l), lambda i, t: (i, t, 0))],
        out_specs=(pl.BlockSpec((1, 1, l), lambda i, t: (i, 0, 0)),
                   pl.BlockSpec((1, 1, l), lambda i, t: (i, 0, 0))),
        compiler_params=pltpu.CompilerParams(
            dimension_semantics=("parallel", "arbitrary")),
    )(xg)

    # Tiny per-(n, c) stats math (N*C floats) in plain JAX.
    s_c = sums.reshape(n, g, c).sum(axis=1)
    q_c = sqs.reshape(n, g, c).sum(axis=1)
    mean = s_c / count
    var = jnp.maximum(q_c / count - mean * mean, 0.0)   # biased var (PyTorch IN)
    rstd = jax.lax.rsqrt(var + EPS)
    scale = gamma.astype(jnp.float32)[None, :] * rstd
    shift = beta.astype(jnp.float32)[None, :] - mean * scale
    scale_g = jnp.tile(scale, (1, g)).reshape(n, 1, l)
    shift_g = jnp.tile(shift, (1, g)).reshape(n, 1, l)

    args = [xg, scale_g, shift_g]
    in_specs = [pl.BlockSpec((1, tr, l), lambda i, t: (i, t, 0)),
                pl.BlockSpec((1, 1, l), lambda i, t: (i, 0, 0)),
                pl.BlockSpec((1, 1, l), lambda i, t: (i, 0, 0))]
    if has_res:
        args.append(residual)
        in_specs.append(pl.BlockSpec((1, tr, l), lambda i, t: (i, t, 0)))

    out = pl.pallas_call(
        functools.partial(_in_apply_kernel, relu=relu, has_residual=has_res),
        grid=(n, rp // tr),
        out_shape=jax.ShapeDtypeStruct((n, rp, l), out_dtype),
        in_specs=in_specs,
        out_specs=pl.BlockSpec((1, tr, l), lambda i, t: (i, t, 0)),
        compiler_params=pltpu.CompilerParams(
            dimension_semantics=("parallel", "parallel")),
    )(*args)
    return out[:, :r] if rp != r else out


def instance_norm_nhwc(x, gamma, beta, relu=False, residual=None,
                       out_dtype=jnp.bfloat16):
    """NHWC InstanceNorm2d(affine); groups spatial positions onto lanes when
    C < 128 so loads/stores stay lane-dense."""
    n, h, w, c = x.shape
    hw = h * w
    g = 1
    if c < 128 and 128 % c == 0 and hw % (128 // c) == 0:
        g = 128 // c
    xg = x.reshape(n, hw // g, g * c)
    rg = residual.reshape(n, hw // g, g * c) if residual is not None else None
    out = instance_norm_grouped(xg, gamma, beta, g, relu=relu, residual=rg,
                                out_dtype=out_dtype)
    return out.reshape(n, h, w, c)


# ----------------------------- conv / deconv layers (NHWC) -----------------------------

def _im2col_nhwc(x, k, stride):
    """x already padded, NHWC -> patches (N*Ho*Wo, k*k*C), (i, j)-major, c-minor.
    Only used for the two small stride-2 convs.
    TODO(synk): fuse the stride-2 patch gather into the GEMM as well."""
    n, h, w, c = x.shape
    ho = (h - k) // stride + 1
    wo = (w - k) // stride + 1
    cols = []
    for i in range(k):
        for j in range(k):
            cols.append(x[:, i:i + stride * ho:stride, j:j + stride * wo:stride, :])
    p = jnp.stack(cols, axis=3)                      # (N, Ho, Wo, k*k, C)
    return p.reshape(n * ho * wo, k * k * c), ho, wo


def conv_layer(x, params, kernel_size, stride, norm='instance', relu=False,
               residual=None):
    """ConvolutionalLayer: reflection pad -> conv -> (instance norm), with ReLU /
    residual add fused into the norm (or conv, if norm-free) epilogue."""
    k = kernel_size
    pad = k // 2
    w = params['w']
    cout, cin = w.shape[0], w.shape[1]
    n = x.shape[0]
    xp = jnp.pad(x, ((0, 0), (pad, pad), (pad, pad), (0, 0)), mode='reflect')

    if norm == 'instance':
        # Conv bias is an exact no-op under the following InstanceNorm -> dropped.
        if stride == 1:
            y = fused_conv_s1(xp, w)                                    # bf16
        else:
            patches, ho, wo = _im2col_nhwc(xp, k, stride)
            wmat = w.transpose(2, 3, 1, 0).reshape(k * k * cin, cout)
            y = pallas_matmul(patches, wmat).reshape(n, ho, wo, cout)   # bf16
        return instance_norm_nhwc(y, params['gamma'], params['beta'],
                                  relu=relu, residual=residual)

    # norm == 'None' (final layer): keep bias, fuse ReLU into the conv epilogue.
    if stride == 1:
        y = fused_conv_s1(xp, w, bias=params['b'], relu=relu,
                          out_dtype=jnp.float32)
    else:
        patches, ho, wo = _im2col_nhwc(xp, k, stride)
        wmat = w.transpose(2, 3, 1, 0).reshape(k * k * cin, cout)
        y = pallas_matmul(patches, wmat, out_dtype=jnp.float32)
        y = y.reshape(n, ho, wo, cout) + params['b']
        if relu:
            y = jnp.maximum(y, 0.0)
    if residual is not None:
        y = y + residual
    return y


def _deconv_phase_weight(w):
    """ConvTranspose2d weight (Cin, Cout, 3, 3), stride=2, padding=1, op=1 ->
    phase-GEMM matrix (4*Cin, 4*Cout): rows ordered by 2x2 input tap (a, b)
    then ci, columns by output phase (r, s) then co."""
    cin, cout = w.shape[0], w.shape[1]
    wph = jnp.zeros((2, 2, cin, 2, 2, cout), w.dtype)
    for a in range(2):
        for b in range(2):
            for r in range(2):
                for s in range(2):
                    i = r + 1 - 2 * a
                    j = s + 1 - 2 * b
                    if 0 <= i < 3 and 0 <= j < 3:
                        wph = wph.at[a, b, :, r, s, :].set(w[:, :, i, j])
    return wph.reshape(4 * cin, 4 * cout)


def deconv_layer(x, params, relu=True):
    """DeconvolutionalLayer: ConvTranspose2d(k=3, s=2, p=1, op=1) as a 2x2-phase
    GEMM (no zero-stuffed rows), InstanceNorm(+ReLU) directly on the lane-dense
    (HW, 4*Cout) phase layout, then one bf16 interleave to NHWC.
    TODO(synk): fold the phase interleave into the next layer's patch gather."""
    n, h, w_, cin = x.shape
    cout = params['w'].shape[1]
    xp = jnp.pad(x, ((0, 0), (0, 1), (0, 1), (0, 0)))            # zero edge row/col
    cols = [xp[:, a:a + h, b:b + w_, :] for a in range(2) for b in range(2)]
    patches = jnp.concatenate(cols, axis=-1).reshape(n * h * w_, 4 * cin)
    wph = _deconv_phase_weight(params['w'])
    y = pallas_matmul(patches, wph)                              # bias cancels in IN
    yg = y.reshape(n, h * w_, 4 * cout)
    yg = instance_norm_grouped(yg, params['gamma'], params['beta'], g=4,
                               relu=relu)
    y = yg.reshape(n, h, w_, 2, 2, cout).transpose(0, 1, 3, 2, 4, 5)
    return y.reshape(n, 2 * h, 2 * w_, cout)


# ----------------------------- parameters -----------------------------

def _conv_params(key, cin, cout, k, norm=True):
    kw, kb = jax.random.split(key)
    fan_in = cin * k * k
    p = {
        'w': jax.random.normal(kw, (cout, cin, k, k), jnp.float32) / jnp.sqrt(fan_in),
        'b': jax.random.normal(kb, (cout,), jnp.float32) * 0.01,
    }
    if norm:
        p['gamma'] = jnp.ones((cout,), jnp.float32)   # PyTorch IN affine init
        p['beta'] = jnp.zeros((cout,), jnp.float32)
    return p


def _deconv_params(key, cin, cout, k):
    kw, kb = jax.random.split(key)
    fan_in = cin * k * k
    return {
        'w': jax.random.normal(kw, (cin, cout, k, k), jnp.float32) / jnp.sqrt(fan_in),
        'b': jax.random.normal(kb, (cout,), jnp.float32) * 0.01,
        'gamma': jnp.ones((cout,), jnp.float32),
        'beta': jnp.zeros((cout,), jnp.float32),
    }


def init_transformer_network(key):
    keys = jax.random.split(key, 16)
    return {
        'conv1': _conv_params(keys[0], 3, 32, 9),
        'conv2': _conv_params(keys[1], 32, 64, 3),
        'conv3': _conv_params(keys[2], 64, 128, 3),
        'res': [
            {
                'conv1': _conv_params(keys[3 + 2 * r], 128, 128, 3),
                'conv2': _conv_params(keys[4 + 2 * r], 128, 128, 3),
            }
            for r in range(5)
        ],
        'deconv1': _deconv_params(keys[13], 128, 64, 3),
        'deconv2': _deconv_params(keys[14], 64, 32, 3),
        'conv_out': _conv_params(keys[15], 32, 3, 9, norm=False),
    }


# ----------------------------- forward -----------------------------

def transformer_network_forward(params, x):
    # NCHW (PyTorch interface) -> NHWC bf16 once; all layers run channels-last.
    x = jnp.transpose(x, (0, 2, 3, 1)).astype(jnp.bfloat16)
    # ConvBlock
    x = conv_layer(x, params['conv1'], 9, 1, relu=True)
    x = conv_layer(x, params['conv2'], 3, 2, relu=True)
    x = conv_layer(x, params['conv3'], 3, 2, relu=True)
    # ResidualBlock (x5): residual add fused into the second layer's IN epilogue.
    for r in params['res']:
        identity = x
        y = conv_layer(x, r['conv1'], 3, 1, relu=True)
        x = conv_layer(y, r['conv2'], 3, 1, relu=False, residual=identity)
    # DeconvBlock
    x = deconv_layer(x, params['deconv1'], relu=True)
    x = deconv_layer(x, params['deconv2'], relu=True)
    x = conv_layer(x, params['conv_out'], 9, 1, norm='None', relu=False)
    return jnp.transpose(x, (0, 3, 1, 2)).astype(jnp.float32)    # back to NCHW


if __name__ == "__main__":
    key = jax.random.PRNGKey(0)
    pkey, xkey = jax.random.split(key)
    params = init_transformer_network(pkey)
    x = jax.random.normal(xkey, (2, 3, 16, 16), jnp.float32)

    fwd = jax.jit(transformer_network_forward)
    out = jax.block_until_ready(fwd(params, x))

    assert out.shape == (2, 3, 16, 16), out.shape
    assert bool(jnp.all(jnp.isfinite(out)))
    print("KERNEL_OK")
</pallas_src>

<mosaic_0001>
module attributes {stable_mosaic.version = 11 : i64} {
  func.func @_fused_conv_kernel(%arg0: i32, %arg1: memref<1x384x27xbf16, #tpu.memory_space<vmem>>, %arg2: memref<9x27x32xbf16, #tpu.memory_space<vmem>>, %arg3: memref<1x256x32xbf16, #tpu.memory_space<vmem>>) attributes {dimension_semantics = [#tpu.dimension_semantics<parallel>], iteration_bounds = array<i64: 2>, scalar_prefetch = 0 : i64, scratch_operands = 0 : i64, tpu.core_type = #tpu.core_type<tc>, window_params = [{transform_indices = @transform_0, window_bounds = array<i64: 1, 384, 27>}, {pipeline_mode = #tpu.pipeline_mode<synchronous>, transform_indices = @transform_1, window_bounds = array<i64: 9, 27, 32>}, {transform_indices = @transform_2, window_bounds = array<i64: 1, 256, 32>}]} {
    %c0 = arith.constant 0 : index
    %c0_0 = arith.constant 0 : index
    %c0_1 = arith.constant 0 : index
    %0 = vector.load %arg1[%c0, %c0_0, %c0_1] : memref<1x384x27xbf16, #tpu.memory_space<vmem>>, vector<1x256x27xbf16>
    %1 = vector.shape_cast %0 : vector<1x256x27xbf16> to vector<256x27xbf16>
    %c0_2 = arith.constant 0 : index
    %c0_3 = arith.constant 0 : index
    %c0_4 = arith.constant 0 : index
    %2 = vector.load %arg2[%c0_2, %c0_3, %c0_4] : memref<9x27x32xbf16, #tpu.memory_space<vmem>>, vector<1x27x32xbf16>
    %3 = vector.shape_cast %2 : vector<1x27x32xbf16> to vector<27x32xbf16>
    %cst = arith.constant dense<0.000000e+00> : vector<256x32xf32>
    %4 = tpu.matmul %1, %3, %cst {dimension_numbers = #tpu.dot_dimension_numbers<[1], [0], [0], [1], [0, 0, 1, 1], [], []>} : vector<256x27xbf16>, vector<27x32xbf16>, vector<256x32xf32> -> vector<256x32xf32>
    %c0_5 = arith.constant 0 : index
    %c16 = arith.constant 16 : index
    %c0_6 = arith.constant 0 : index
    %5 = vector.load %arg1[%c0_5, %c16, %c0_6] : memref<1x384x27xbf16, #tpu.memory_space<vmem>>, vector<1x256x27xbf16>
    %6 = vector.shape_cast %5 : vector<1x256x27xbf16> to vector<256x27xbf16>
    %c1 = arith.constant 1 : index
    %c0_7 = arith.constant 0 : index
    %c0_8 = arith.constant 0 : index
    %7 = vector.load %arg2[%c1, %c0_7, %c0_8] : memref<9x27x32xbf16, #tpu.memory_space<vmem>>, vector<1x27x32xbf16>
    %8 = vector.shape_cast %7 : vector<1x27x32xbf16> to vector<27x32xbf16>
    %cst_9 = arith.constant dense<0.000000e+00> : vector<256x32xf32>
    %9 = tpu.matmul %6, %8, %cst_9 {dimension_numbers = #tpu.dot_dimension_numbers<[1], [0], [0], [1], [0, 0, 1, 1], [], []>} : vector<256x27xbf16>, vector<27x32xbf16>, vector<256x32xf32> -> vector<256x32xf32>
    %10 = arith.addf %4, %9 : vector<256x32xf32>
    %c0_10 = arith.constant 0 : index
    %c32 = arith.constant 32 : index
    %c0_11 = arith.constant 0 : index
    %11 = vector.load %arg1[%c0_10, %c32, %c0_11] : memref<1x384x27xbf16, #tpu.memory_space<vmem>>, vector<1x256x27xbf16>
    %12 = vector.shape_cast %11 : vector<1x256x27xbf16> to vector<256x27xbf16>
    %c2 = arith.constant 2 : index
    %c0_12 = arith.constant 0 : index
    %c0_13 = arith.constant 0 : index
    %13 = vector.load %arg2[%c2, %c0_12, %c0_13] : memref<9x27x32xbf16, #tpu.memory_space<vmem>>, vector<1x27x32xbf16>
    %14 = vector.shape_cast %13 : vector<1x27x32xbf16> to vector<27x32xbf16>
    %cst_14 = arith.constant dense<0.000000e+00> : vector<256x32xf32>
    %15 = tpu.matmul %12, %14, %cst_14 {dimension_numbers = #tpu.dot_dimension_numbers<[1], [0], [0], [1], [0, 0, 1, 1], [], []>} : vector<256x27xbf16>, vector<27x32xbf16>, vector<256x32xf32> -> vector<256x32xf32>
    %16 = arith.addf %10, %15 : vector<256x32xf32>
    %c0_15 = arith.constant 0 : index
    %c48 = arith.constant 48 : index
    %c0_16 = arith.constant 0 : index
    %17 = vector.load %arg1[%c0_15, %c48, %c0_16] : memref<1x384x27xbf16, #tpu.memory_space<vmem>>, vector<1x256x27xbf16>
    %18 = vector.shape_cast %17 : vector<1x256x27xbf16> to vector<256x27xbf16>
    %c3 = arith.constant 3 : index
    %c0_17 = arith.constant 0 : index
    %c0_18 = arith.constant 0 : index
    %19 = vector.load %arg2[%c3, %c0_17, %c0_18] : memref<9x27x32xbf16, #tpu.memory_space<vmem>>, vector<1x27x32xbf16>
    %20 = vector.shape_cast %19 : vector<1x27x32xbf16> to vector<27x32xbf16>
    %cst_19 = arith.constant dense<0.000000e+00> : vector<256x32xf32>
    %21 = tpu.matmul %18, %20, %cst_19 {dimension_numbers = #tpu.dot_dimension_numbers<[1], [0], [0], [1], [0, 0, 1, 1], [], []>} : vector<256x27xbf16>, vector<27x32xbf16>, vector<256x32xf32> -> vector<256x32xf32>
    %22 = arith.addf %16, %21 : vector<256x32xf32>
    %c0_20 = arith.constant 0 : index
    %c64 = arith.constant 64 : index
    %c0_21 = arith.constant 0 : index
    %23 = vector.load %arg1[%c0_20, %c64, %c0_21] : memref<1x384x27xbf16, #tpu.memory_space<vmem>>, vector<1x256x27xbf16>
    %24 = vector.shape_cast %23 : vector<1x256x27xbf16> to vector<256x27xbf16>
    %c4 = arith.constant 4 : index
    %c0_22 = arith.constant 0 : index
    %c0_23 = arith.constant 0 : index
    %25 = vector.load %arg2[%c4, %c0_22, %c0_23] : memref<9x27x32xbf16, #tpu.memory_space<vmem>>, vector<1x27x32xbf16>
    %26 = vector.shape_cast %25 : vector<1x27x32xbf16> to vector<27x32xbf16>
    %cst_24 = arith.constant dense<0.000000e+00> : vector<256x32xf32>
    %27 = tpu.matmul %24, %26, %cst_24 {dimension_numbers = #tpu.dot_dimension_numbers<[1], [0], [0], [1], [0, 0, 1, 1], [], []>} : vector<256x27xbf16>, vector<27x32xbf16>, vector<256x32xf32> -> vector<256x32xf32>
    %28 = arith.addf %22, %27 : vector<256x32xf32>
    %c0_25 = arith.constant 0 : index
    %c80 = arith.constant 80 : index
    %c0_26 = arith.constant 0 : index
    %29 = vector.load %arg1[%c0_25, %c80, %c0_26] : memref<1x384x27xbf16, #tpu.memory_space<vmem>>, vector<1x256x27xbf16>
    %30 = vector.shape_cast %29 : vector<1x256x27xbf16> to vector<256x27xbf16>
    %c5 = arith.constant 5 : index
    %c0_27 = arith.constant 0 : index
    %c0_28 = arith.constant 0 : index
    %31 = vector.load %arg2[%c5, %c0_27, %c0_28] : memref<9x27x32xbf16, #tpu.memory_space<vmem>>, vector<1x27x32xbf16>
    %32 = vector.shape_cast %31 : vector<1x27x32xbf16> to vector<27x32xbf16>
    %cst_29 = arith.constant dense<0.000000e+00> : vector<256x32xf32>
    %33 = tpu.matmul %30, %32, %cst_29 {dimension_numbers = #tpu.dot_dimension_numbers<[1], [0], [0], [1], [0, 0, 1, 1], [], []>} : vector<256x27xbf16>, vector<27x32xbf16>, vector<256x32xf32> -> vector<256x32xf32>
    %34 = arith.addf %28, %33 : vector<256x32xf32>
    %c0_30 = arith.constant 0 : index
    %c96 = arith.constant 96 : index
    %c0_31 = arith.constant 0 : index
    %35 = vector.load %arg1[%c0_30, %c96, %c0_31] : memref<1x384x27xbf16, #tpu.memory_space<vmem>>, vector<1x256x27xbf16>
    %36 = vector.shape_cast %35 : vector<1x256x27xbf16> to vector<256x27xbf16>
    %c6 = arith.constant 6 : index
    %c0_32 = arith.constant 0 : index
    %c0_33 = arith.constant 0 : index
    %37 = vector.load %arg2[%c6, %c0_32, %c0_33] : memref<9x27x32xbf16, #tpu.memory_space<vmem>>, vector<1x27x32xbf16>
    %38 = vector.shape_cast %37 : vector<1x27x32xbf16> to vector<27x32xbf16>
    %cst_34 = arith.constant dense<0.000000e+00> : vector<256x32xf32>
    %39 = tpu.matmul %36, %38, %cst_34 {dimension_numbers = #tpu.dot_dimension_numbers<[1], [0], [0], [1], [0, 0, 1, 1], [], []>} : vector<256x27xbf16>, vector<27x32xbf16>, vector<256x32xf32> -> vector<256x32xf32>
    %40 = arith.addf %34, %39 : vector<256x32xf32>
    %c0_35 = arith.constant 0 : index
    %c112 = arith.constant 112 : index
    %c0_36 = arith.constant 0 : index
    %41 = vector.load %arg1[%c0_35, %c112, %c0_36] : memref<1x384x27xbf16, #tpu.memory_space<vmem>>, vector<1x256x27xbf16>
    %42 = vector.shape_cast %41 : vector<1x256x27xbf16> to vector<256x27xbf16>
    %c7 = arith.constant 7 : index
    %c0_37 = arith.constant 0 : index
    %c0_38 = arith.constant 0 : index
    %43 = vector.load %arg2[%c7, %c0_37, %c0_38] : memref<9x27x32xbf16, #tpu.memory_space<vmem>>, vector<1x27x32xbf16>
    %44 = vector.shape_cast %43 : vector<1x27x32xbf16> to vector<27x32xbf16>
    %cst_39 = arith.constant dense<0.000000e+00> : vector<256x32xf32>
    %45 = tpu.matmul %42, %44, %cst_39 {dimension_numbers = #tpu.dot_dimension_numbers<[1], [0], [0], [1], [0, 0, 1, 1], [], []>} : vector<256x27xbf16>, vector<27x32xbf16>, vector<256x32xf32> -> vector<256x32xf32>
    %46 = arith.addf %40, %45 : vector<256x32xf32>
    %c0_40 = arith.constant 0 : index
    %c128 = arith.constant 128 : index
    %c0_41 = arith.constant 0 : index
    %47 = vector.load %arg1[%c0_40, %c128, %c0_41] : memref<1x384x27xbf16, #tpu.memory_space<vmem>>, vector<1x256x27xbf16>
    %48 = vector.shape_cast %47 : vector<1x256x27xbf16> to vector<256x27xbf16>
    %c8 = arith.constant 8 : index
    %c0_42 = arith.constant 0 : index
    %c0_43 = arith.constant 0 : index
    %49 = vector.load %arg2[%c8, %c0_42, %c0_43] : memref<9x27x32xbf16, #tpu.memory_space<vmem>>, vector<1x27x32xbf16>
    %50 = vector.shape_cast %49 : vector<1x27x32xbf16> to vector<27x32xbf16>
    %cst_44 = arith.constant dense<0.000000e+00> : vector<256x32xf32>
    %51 = tpu.matmul %48, %50, %cst_44 {dimension_numbers = #tpu.dot_dimension_numbers<[1], [0], [0], [1], [0, 0, 1, 1], [], []>} : vector<256x27xbf16>, vector<27x32xbf16>, vector<256x32xf32> -> vector<256x32xf32>
    %52 = arith.addf %46, %51 : vector<256x32xf32>
    %53 = arith.truncf %52 : vector<256x32xf32> to vector<256x32xbf16>
    %54 = vector.shape_cast %53 : vector<256x32xbf16> to vector<1x256x32xbf16>
    %c0_45 = arith.constant 0 : index
    %c0_46 = arith.constant 0 : index
    %c0_47 = arith.constant 0 : index
    %55 = vector.load %arg3[%c0_45, %c0_46, %c0_47] : memref<1x256x32xbf16, #tpu.memory_space<vmem>>, vector<1x256x32xbf16>
    tpu.vector_store %arg3[%c0_45, %c0_46, %c0_47], %54 {strides = array<i32>} : memref<1x256x32xbf16, #tpu.memory_space<vmem>>, vector<1x256x32xbf16>,
    return
  }
  func.func @transform_0(%arg0: i32) -> (i32, i32, i32) {
    %c0_i32 = arith.constant 0 : i32
    %c0_i32_0 = arith.constant 0 : i32
    %c0_i32_1 = arith.constant 0 : i32
    return %arg0, %c0_i32, %c0_i32_0 : i32, i32, i32
  }
  func.func @transform_1(%arg0: i32) -> (i32, i32, i32) {
    %c0_i32 = arith.constant 0 : i32
    %c0_i32_0 = arith.constant 0 : i32
    %c0_i32_1 = arith.constant 0 : i32
    %c0_i32_2 = arith.constant 0 : i32
    return %c0_i32, %c0_i32_0, %c0_i32_1 : i32, i32, i32
  }
  func.func @transform_2(%arg0: i32) -> (i32, i32, i32) {
    %c0_i32 = arith.constant 0 : i32
    %c0_i32_0 = arith.constant 0 : i32
    %c0_i32_1 = arith.constant 0 : i32
    return %arg0, %c0_i32, %c0_i32_0 : i32, i32, i32
  }
}

module attributes {stable_mosaic.version = 11 : i64} {
  func.func @_in_stats_kernel(%arg0: i32, %arg1: i32, %arg2: memref<1x64x128xbf16, #tpu.memory_space<vmem>>, %arg3: memref<1x1x128xf32, #tpu.memory_space<vmem>>, %arg4: memref<1x1x128xf32, #tpu.memory_space<vmem>>) attributes {dimension_semantics = [#tpu.dimension_semantics<parallel>, #tpu.dimension_semantics<arbitrary>], iteration_bounds = array<i64: 2, 1>, scalar_prefetch = 0 : i64, scratch_operands = 0 : i64, tpu.core_type = #tpu.core_type<tc>, window_params = [{transform_indices = @transform_0, window_bounds = array<i64: 1, 64, 128>}, {transform_indices = @transform_1, window_bounds = array<i64: 1, 1, 128>}, {transform_indices = @transform_2, window_bounds = array<i64: 1, 1, 128>}]} {
    %c0_i32 = arith.constant 0 : i32
    %0 = arith.cmpi eq, %arg1, %c0_i32 : i32
    %1 = arith.extui %0 : i1 to i32
    %c0_i32_0 = arith.constant 0 : i32
    %2 = arith.cmpi ne, %1, %c0_i32_0 : i32
    scf.if %2 {
      %cst_16 = arith.constant 0.000000e+00 : f32
      %16 = vector.broadcast %cst_16 : f32 to vector<1x1x128xf32>
      %c0_17 = arith.constant 0 : index
      %c0_18 = arith.constant 0 : index
      %c0_19 = arith.constant 0 : index
      %17 = vector.load %arg3[%c0_17, %c0_18, %c0_19] : memref<1x1x128xf32, #tpu.memory_space<vmem>>, vector<1x1x128xf32>
      tpu.vector_store %arg3[%c0_17, %c0_18, %c0_19], %16 {strides = array<i32>} : memref<1x1x128xf32, #tpu.memory_space<vmem>>, vector<1x1x128xf32>,
      %cst_20 = arith.constant 0.000000e+00 : f32
      %18 = vector.broadcast %cst_20 : f32 to vector<1x1x128xf32>
      %c0_21 = arith.constant 0 : index
      %c0_22 = arith.constant 0 : index
      %c0_23 = arith.constant 0 : index
      %19 = vector.load %arg4[%c0_21, %c0_22, %c0_23] : memref<1x1x128xf32, #tpu.memory_space<vmem>>, vector<1x1x128xf32>
      tpu.vector_store %arg4[%c0_21, %c0_22, %c0_23], %18 {strides = array<i32>} : memref<1x1x128xf32, #tpu.memory_space<vmem>>, vector<1x1x128xf32>,
    } else {
    }
    %c0 = arith.constant 0 : index
    %c0_1 = arith.constant 0 : index
    %c0_2 = arith.constant 0 : index
    %3 = vector.load %arg2[%c0, %c0_1, %c0_2] : memref<1x64x128xbf16, #tpu.memory_space<vmem>>, vector<1x64x128xbf16>
    %4 = arith.extf %3 : vector<1x64x128xbf16> to vector<1x64x128xf32>
    %c0_3 = arith.constant 0 : index
    %c0_4 = arith.constant 0 : index
    %c0_5 = arith.constant 0 : index
    %5 = vector.load %arg3[%c0_3, %c0_4, %c0_5] : memref<1x1x128xf32, #tpu.memory_space<vmem>>, vector<1x1x128xf32>
    %cst = arith.constant dense<0.000000e+00> : vector<1x128xf32>
    %6 = vector.multi_reduction <add>, %4, %cst [1] : vector<1x64x128xf32> to vector<1x128xf32>
    %7 = vector.shape_cast %6 : vector<1x128xf32> to vector<1x1x128xf32>
    %8 = arith.addf %5, %7 : vector<1x1x128xf32>
    %c0_6 = arith.constant 0 : index
    %c0_7 = arith.constant 0 : index
    %c0_8 = arith.constant 0 : index
    %9 = vector.load %arg3[%c0_6, %c0_7, %c0_8] : memref<1x1x128xf32, #tpu.memory_space<vmem>>, vector<1x1x128xf32>
    tpu.vector_store %arg3[%c0_6, %c0_7, %c0_8], %8 {strides = array<i32>} : memref<1x1x128xf32, #tpu.memory_space<vmem>>, vector<1x1x128xf32>,
    %c0_9 = arith.constant 0 : index
    %c0_10 = arith.constant 0 : index
    %c0_11 = arith.constant 0 : index
    %10 = vector.load %arg4[%c0_9, %c0_10, %c0_11] : memref<1x1x128xf32, #tpu.memory_space<vmem>>, vector<1x1x128xf32>
    %11 = arith.mulf %4, %4 : vector<1x64x128xf32>
    %cst_12 = arith.constant dense<0.000000e+00> : vector<1x128xf32>
    %12 = vector.multi_reduction <add>, %11, %cst_12 [1] : vector<1x64x128xf32> to vector<1x128xf32>
    %13 = vector.shape_cast %12 : vector<1x128xf32> to vector<1x1x128xf32>
    %14 = arith.addf %10, %13 : vector<1x1x128xf32>
    %c0_13 = arith.constant 0 : index
    %c0_14 = arith.constant 0 : index
    %c0_15 = arith.constant 0 : index
    %15 = vector.load %arg4[%c0_13, %c0_14, %c0_15] : memref<1x1x128xf32, #tpu.memory_space<vmem>>, vector<1x1x128xf32>
    tpu.vector_store %arg4[%c0_13, %c0_14, %c0_15], %14 {strides = array<i32>} : memref<1x1x128xf32, #tpu.memory_space<vmem>>, vector<1x1x128xf32>,
    return
  }
  func.func @transform_0(%arg0: i32, %arg1: i32) -> (i32, i32, i32) {
    %c0_i32 = arith.constant 0 : i32
    %c0_i32_0 = arith.constant 0 : i32
    return %arg0, %arg1, %c0_i32 : i32, i32, i32
  }
  func.func @transform_1(%arg0: i32, %arg1: i32) -> (i32, i32, i32) {
    %c0_i32 = arith.constant 0 : i32
    %c0_i32_0 = arith.constant 0 : i32
    %c0_i32_1 = arith.constant 0 : i32
    return %arg0, %c0_i32, %c0_i32_0 : i32, i32, i32
  }
  func.func @transform_2(%arg0: i32, %arg1: i32) -> (i32, i32, i32) {
    %c0_i32 = arith.constant 0 : i32
    %c0_i32_0 = arith.constant 0 : i32
    %c0_i32_1 = arith.constant 0 : i32
    return %arg0, %c0_i32, %c0_i32_0 : i32, i32, i32
  }
}

module attributes {stable_mosaic.version = 11 : i64} {
  func.func @_in_apply_kernel(%arg0: i32, %arg1: i32, %arg2: memref<1x64x128xbf16, #tpu.memory_space<vmem>>, %arg3: memref<1x1x128xf32, #tpu.memory_space<vmem>>, %arg4: memref<1x1x128xf32, #tpu.memory_space<vmem>>, %arg5: memref<1x64x128xbf16, #tpu.memory_space<vmem>>) attributes {dimension_semantics = [#tpu.dimension_semantics<parallel>, #tpu.dimension_semantics<parallel>], iteration_bounds = array<i64: 2, 1>, scalar_prefetch = 0 : i64, scratch_operands = 0 : i64, tpu.core_type = #tpu.core_type<tc>, window_params = [{transform_indices = @transform_0, window_bounds = array<i64: 1, 64, 128>}, {transform_indices = @transform_1, window_bounds = array<i64: 1, 1, 128>}, {transform_indices = @transform_2, window_bounds = array<i64: 1, 1, 128>}, {transform_indices = @transform_3, window_bounds = array<i64: 1, 64, 128>}]} {
    %c0 = arith.constant 0 : index
    %c0_0 = arith.constant 0 : index
    %c0_1 = arith.constant 0 : index
    %0 = vector.load %arg2[%c0, %c0_0, %c0_1] : memref<1x64x128xbf16, #tpu.memory_space<vmem>>, vector<1x64x128xbf16>
    %1 = arith.extf %0 : vector<1x64x128xbf16> to vector<1x64x128xf32>
    %c0_2 = arith.constant 0 : index
    %c0_3 = arith.constant 0 : index
    %c0_4 = arith.constant 0 : index
    %2 = vector.load %arg3[%c0_2, %c0_3, %c0_4] : memref<1x1x128xf32, #tpu.memory_space<vmem>>, vector<1x1x128xf32>
    %3 = vector.broadcast %2 : vector<1x1x128xf32> to vector<1x64x128xf32>
    %4 = arith.mulf %1, %3 : vector<1x64x128xf32>
    %c0_5 = arith.constant 0 : index
    %c0_6 = arith.constant 0 : index
    %c0_7 = arith.constant 0 : index
    %5 = vector.load %arg4[%c0_5, %c0_6, %c0_7] : memref<1x1x128xf32, #tpu.memory_space<vmem>>, vector<1x1x128xf32>
    %6 = vector.broadcast %5 : vector<1x1x128xf32> to vector<1x64x128xf32>
    %7 = arith.addf %4, %6 : vector<1x64x128xf32>
    %cst = arith.constant 0.000000e+00 : f32
    %8 = vector.broadcast %cst : f32 to vector<1x64x128xf32>
    %9 = arith.maximumf %7, %8 : vector<1x64x128xf32>
    %10 = arith.truncf %9 : vector<1x64x128xf32> to vector<1x64x128xbf16>
    %c0_8 = arith.constant 0 : index
    %c0_9 = arith.constant 0 : index
    %c0_10 = arith.constant 0 : index
    %11 = vector.load %arg5[%c0_8, %c0_9, %c0_10] : memref<1x64x128xbf16, #tpu.memory_space<vmem>>, vector<1x64x128xbf16>
    tpu.vector_store %arg5[%c0_8, %c0_9, %c0_10], %10 {strides = array<i32>} : memref<1x64x128xbf16, #tpu.memory_space<vmem>>, vector<1x64x128xbf16>,
    return
  }
  func.func @transform_0(%arg0: i32, %arg1: i32) -> (i32, i32, i32) {
    %c0_i32 = arith.constant 0 : i32
    %c0_i32_0 = arith.constant 0 : i32
    return %arg0, %arg1, %c0_i32 : i32, i32, i32
  }
  func.func @transform_1(%arg0: i32, %arg1: i32) -> (i32, i32, i32) {
    %c0_i32 = arith.constant 0 : i32
    %c0_i32_0 = arith.constant 0 : i32
    %c0_i32_1 = arith.constant 0 : i32
    return %arg0, %c0_i32, %c0_i32_0 : i32, i32, i32
  }
  func.func @transform_2(%arg0: i32, %arg1: i32) -> (i32, i32, i32) {
    %c0_i32 = arith.constant 0 : i32
    %c0_i32_0 = arith.constant 0 : i32
    %c0_i32_1 = arith.constant 0 : i32
    return %arg0, %c0_i32, %c0_i32_0 : i32, i32, i32
  }
  func.func @transform_3(%arg0: i32, %arg1: i32) -> (i32, i32, i32) {
    %c0_i32 = arith.constant 0 : i32
    %c0_i32_0 = arith.constant 0 : i32
    return %arg0, %arg1, %c0_i32 : i32, i32, i32
  }
}

module attributes {stable_mosaic.version = 11 : i64} {
  func.func @_gemm_kernel(%arg0: i32, %arg1: i32, %arg2: memref<128x288xbf16, #tpu.memory_space<vmem>>, %arg3: memref<288x64xbf16, #tpu.memory_space<vmem>>, %arg4: memref<128x64xbf16, #tpu.memory_space<vmem>>) attributes {dimension_semantics = [#tpu.dimension_semantics<parallel>, #tpu.dimension_semantics<parallel>], iteration_bounds = array<i64: 1, 1>, scalar_prefetch = 0 : i64, scratch_operands = 0 : i64, tpu.core_type = #tpu.core_type<tc>, window_params = [{transform_indices = @transform_0, window_bounds = array<i64: 128, 288>}, {transform_indices = @transform_1, window_bounds = array<i64: 288, 64>}, {transform_indices = @transform_2, window_bounds = array<i64: 128, 64>}]} {
    %c0 = arith.constant 0 : index
    %c0_0 = arith.constant 0 : index
    %0 = vector.load %arg2[%c0, %c0_0] : memref<128x288xbf16, #tpu.memory_space<vmem>>, vector<128x288xbf16>
    %c0_1 = arith.constant 0 : index
    %c0_2 = arith.constant 0 : index
    %1 = vector.load %arg3[%c0_1, %c0_2] : memref<288x64xbf16, #tpu.memory_space<vmem>>, vector<288x64xbf16>
    %cst = arith.constant dense<0.000000e+00> : vector<128x64xf32>
    %2 = tpu.matmul %0, %1, %cst {dimension_numbers = #tpu.dot_dimension_numbers<[1], [0], [0], [1], [0, 0, 1, 1], [], []>} : vector<128x288xbf16>, vector<288x64xbf16>, vector<128x64xf32> -> vector<128x64xf32>
    %3 = arith.truncf %2 : vector<128x64xf32> to vector<128x64xbf16>
    %c0_3 = arith.constant 0 : index
    %c0_4 = arith.constant 0 : index
    %4 = vector.load %arg4[%c0_3, %c0_4] : memref<128x64xbf16, #tpu.memory_space<vmem>>, vector<128x64xbf16>
    tpu.vector_store %arg4[%c0_3, %c0_4], %3 {strides = array<i32>} : memref<128x64xbf16, #tpu.memory_space<vmem>>, vector<128x64xbf16>,
    return
  }
  func.func @transform_0(%arg0: i32, %arg1: i32) -> (i32, i32) {
    %c0_i32 = arith.constant 0 : i32
    %c0_i32_0 = arith.constant 0 : i32
    return %arg0, %c0_i32 : i32, i32
  }
  func.func @transform_1(%arg0: i32, %arg1: i32) -> (i32, i32) {
    %c0_i32 = arith.constant 0 : i32
    %c0_i32_0 = arith.constant 0 : i32
    return %c0_i32, %arg1 : i32, i32
  }
  func.func @transform_2(%arg0: i32, %arg1: i32) -> (i32, i32) {
    %c0_i32 = arith.constant 0 : i32
    return %arg0, %arg1 : i32, i32
  }
}

module attributes {stable_mosaic.version = 11 : i64} {
  func.func @_in_stats_kernel(%arg0: i32, %arg1: i32, %arg2: memref<1x32x128xbf16, #tpu.memory_space<vmem>>, %arg3: memref<1x1x128xf32, #tpu.memory_space<vmem>>, %arg4: memref<1x1x128xf32, #tpu.memory_space<vmem>>) attributes {dimension_semantics = [#tpu.dimension_semantics<parallel>, #tpu.dimension_semantics<arbitrary>], iteration_bounds = array<i64: 2, 1>, scalar_prefetch = 0 : i64, scratch_operands = 0 : i64, tpu.core_type = #tpu.core_type<tc>, window_params = [{transform_indices = @transform_0, window_bounds = array<i64: 1, 32, 128>}, {transform_indices = @transform_1, window_bounds = array<i64: 1, 1, 128>}, {transform_indices = @transform_2, window_bounds = array<i64: 1, 1, 128>}]} {
    %c0_i32 = arith.constant 0 : i32
    %0 = arith.cmpi eq, %arg1, %c0_i32 : i32
    %1 = arith.extui %0 : i1 to i32
    %c0_i32_0 = arith.constant 0 : i32
    %2 = arith.cmpi ne, %1, %c0_i32_0 : i32
    scf.if %2 {
      %cst_16 = arith.constant 0.000000e+00 : f32
      %16 = vector.broadcast %cst_16 : f32 to vector<1x1x128xf32>
      %c0_17 = arith.constant 0 : index
      %c0_18 = arith.constant 0 : index
      %c0_19 = arith.constant 0 : index
      %17 = vector.load %arg3[%c0_17, %c0_18, %c0_19] : memref<1x1x128xf32, #tpu.memory_space<vmem>>, vector<1x1x128xf32>
      tpu.vector_store %arg3[%c0_17, %c0_18, %c0_19], %16 {strides = array<i32>} : memref<1x1x128xf32, #tpu.memory_space<vmem>>, vector<1x1x128xf32>,
      %cst_20 = arith.constant 0.000000e+00 : f32
      %18 = vector.broadcast %cst_20 : f32 to vector<1x1x128xf32>
      %c0_21 = arith.constant 0 : index
      %c0_22 = arith.constant 0 : index
      %c0_23 = arith.constant 0 : index
      %19 = vector.load %arg4[%c0_21, %c0_22, %c0_23] : memref<1x1x128xf32, #tpu.memory_space<vmem>>, vector<1x1x128xf32>
      tpu.vector_store %arg4[%c0_21, %c0_22, %c0_23], %18 {strides = array<i32>} : memref<1x1x128xf32, #tpu.memory_space<vmem>>, vector<1x1x128xf32>,
    } else {
    }
    %c0 = arith.constant 0 : index
    %c0_1 = arith.constant 0 : index
    %c0_2 = arith.constant 0 : index
    %3 = vector.load %arg2[%c0, %c0_1, %c0_2] : memref<1x32x128xbf16, #tpu.memory_space<vmem>>, vector<1x32x128xbf16>
    %4 = arith.extf %3 : vector<1x32x128xbf16> to vector<1x32x128xf32>
    %c0_3 = arith.constant 0 : index
    %c0_4 = arith.constant 0 : index
    %c0_5 = arith.constant 0 : index
    %5 = vector.load %arg3[%c0_3, %c0_4, %c0_5] : memref<1x1x128xf32, #tpu.memory_space<vmem>>, vector<1x1x128xf32>
    %cst = arith.constant dense<0.000000e+00> : vector<1x128xf32>
    %6 = vector.multi_reduction <add>, %4, %cst [1] : vector<1x32x128xf32> to vector<1x128xf32>
    %7 = vector.shape_cast %6 : vector<1x128xf32> to vector<1x1x128xf32>
    %8 = arith.addf %5, %7 : vector<1x1x128xf32>
    %c0_6 = arith.constant 0 : index
    %c0_7 = arith.constant 0 : index
    %c0_8 = arith.constant 0 : index
    %9 = vector.load %arg3[%c0_6, %c0_7, %c0_8] : memref<1x1x128xf32, #tpu.memory_space<vmem>>, vector<1x1x128xf32>
    tpu.vector_store %arg3[%c0_6, %c0_7, %c0_8], %8 {strides = array<i32>} : memref<1x1x128xf32, #tpu.memory_space<vmem>>, vector<1x1x128xf32>,
    %c0_9 = arith.constant 0 : index
    %c0_10 = arith.constant 0 : index
    %c0_11 = arith.constant 0 : index
    %10 = vector.load %arg4[%c0_9, %c0_10, %c0_11] : memref<1x1x128xf32, #tpu.memory_space<vmem>>, vector<1x1x128xf32>
    %11 = arith.mulf %4, %4 : vector<1x32x128xf32>
    %cst_12 = arith.constant dense<0.000000e+00> : vector<1x128xf32>
    %12 = vector.multi_reduction <add>, %11, %cst_12 [1] : vector<1x32x128xf32> to vector<1x128xf32>
    %13 = vector.shape_cast %12 : vector<1x128xf32> to vector<1x1x128xf32>
    %14 = arith.addf %10, %13 : vector<1x1x128xf32>
    %c0_13 = arith.constant 0 : index
    %c0_14 = arith.constant 0 : index
    %c0_15 = arith.constant 0 : index
    %15 = vector.load %arg4[%c0_13, %c0_14, %c0_15] : memref<1x1x128xf32, #tpu.memory_space<vmem>>, vector<1x1x128xf32>
    tpu.vector_store %arg4[%c0_13, %c0_14, %c0_15], %14 {strides = array<i32>} : memref<1x1x128xf32, #tpu.memory_space<vmem>>, vector<1x1x128xf32>,
    return
  }
  func.func @transform_0(%arg0: i32, %arg1: i32) -> (i32, i32, i32) {
    %c0_i32 = arith.constant 0 : i32
    %c0_i32_0 = arith.constant 0 : i32
    return %arg0, %arg1, %c0_i32 : i32, i32, i32
  }
  func.func @transform_1(%arg0: i32, %arg1: i32) -> (i32, i32, i32) {
    %c0_i32 = arith.constant 0 : i32
    %c0_i32_0 = arith.constant 0 : i32
    %c0_i32_1 = arith.constant 0 : i32
    return %arg0, %c0_i32, %c0_i32_0 : i32, i32, i32
  }
  func.func @transform_2(%arg0: i32, %arg1: i32) -> (i32, i32, i32) {
    %c0_i32 = arith.constant 0 : i32
    %c0_i32_0 = arith.constant 0 : i32
    %c0_i32_1 = arith.constant 0 : i32
    return %arg0, %c0_i32, %c0_i32_0 : i32, i32, i32
  }
}

module attributes {stable_mosaic.version = 11 : i64} {
  func.func @_in_apply_kernel(%arg0: i32, %arg1: i32, %arg2: memref<1x32x128xbf16, #tpu.memory_space<vmem>>, %arg3: memref<1x1x128xf32, #tpu.memory_space<vmem>>, %arg4: memref<1x1x128xf32, #tpu.memory_space<vmem>>, %arg5: memref<1x32x128xbf16, #tpu.memory_space<vmem>>) attributes {dimension_semantics = [#tpu.dimension_semantics<parallel>, #tpu.dimension_semantics<parallel>], iteration_bounds = array<i64: 2, 1>, scalar_prefetch = 0 : i64, scratch_operands = 0 : i64, tpu.core_type = #tpu.core_type<tc>, window_params = [{transform_indices = @transform_0, window_bounds = array<i64: 1, 32, 128>}, {transform_indices = @transform_1, window_bounds = array<i64: 1, 1, 128>}, {transform_indices = @transform_2, window_bounds = array<i64: 1, 1, 128>}, {transform_indices = @transform_3, window_bounds = array<i64: 1, 32, 128>}]} {
    %c0 = arith.constant 0 : index
    %c0_0 = arith.constant 0 : index
    %c0_1 = arith.constant 0 : index
    %0 = vector.load %arg2[%c0, %c0_0, %c0_1] : memref<1x32x128xbf16, #tpu.memory_space<vmem>>, vector<1x32x128xbf16>
    %1 = arith.extf %0 : vector<1x32x128xbf16> to vector<1x32x128xf32>
    %c0_2 = arith.constant 0 : index
    %c0_3 = arith.constant 0 : index
    %c0_4 = arith.constant 0 : index
    %2 = vector.load %arg3[%c0_2, %c0_3, %c0_4] : memref<1x1x128xf32, #tpu.memory_space<vmem>>, vector<1x1x128xf32>
    %3 = vector.broadcast %2 : vector<1x1x128xf32> to vector<1x32x128xf32>
    %4 = arith.mulf %1, %3 : vector<1x32x128xf32>
    %c0_5 = arith.constant 0 : index
    %c0_6 = arith.constant 0 : index
    %c0_7 = arith.constant 0 : index
    %5 = vector.load %arg4[%c0_5, %c0_6, %c0_7] : memref<1x1x128xf32, #tpu.memory_space<vmem>>, vector<1x1x128xf32>
    %6 = vector.broadcast %5 : vector<1x1x128xf32> to vector<1x32x128xf32>
    %7 = arith.addf %4, %6 : vector<1x32x128xf32>
    %cst = arith.constant 0.000000e+00 : f32
    %8 = vector.broadcast %cst : f32 to vector<1x32x128xf32>
    %9 = arith.maximumf %7, %8 : vector<1x32x128xf32>
    %10 = arith.truncf %9 : vector<1x32x128xf32> to vector<1x32x128xbf16>
    %c0_8 = arith.constant 0 : index
    %c0_9 = arith.constant 0 : index
    %c0_10 = arith.constant 0 : index
    %11 = vector.load %arg5[%c0_8, %c0_9, %c0_10] : memref<1x32x128xbf16, #tpu.memory_space<vmem>>, vector<1x32x128xbf16>
    tpu.vector_store %arg5[%c0_8, %c0_9, %c0_10], %10 {strides = array<i32>} : memref<1x32x128xbf16, #tpu.memory_space<vmem>>, vector<1x32x128xbf16>,
    return
  }
  func.func @transform_0(%arg0: i32, %arg1: i32) -> (i32, i32, i32) {
    %c0_i32 = arith.constant 0 : i32
    %c0_i32_0 = arith.constant 0 : i32
    return %arg0, %arg1, %c0_i32 : i32, i32, i32
  }
  func.func @transform_1(%arg0: i32, %arg1: i32) -> (i32, i32, i32) {
    %c0_i32 = arith.constant 0 : i32
    %c0_i32_0 = arith.constant 0 : i32
    %c0_i32_1 = arith.constant 0 : i32
    return %arg0, %c0_i32, %c0_i32_0 : i32, i32, i32
  }
  func.func @transform_2(%arg0: i32, %arg1: i32) -> (i32, i32, i32) {
    %c0_i32 = arith.constant 0 : i32
    %c0_i32_0 = arith.constant 0 : i32
    %c0_i32_1 = arith.constant 0 : i32
    return %arg0, %c0_i32, %c0_i32_0 : i32, i32, i32
  }
  func.func @transform_3(%arg0: i32, %arg1: i32) -> (i32, i32, i32) {
    %c0_i32 = arith.constant 0 : i32
    %c0_i32_0 = arith.constant 0 : i32
    return %arg0, %arg1, %c0_i32 : i32, i32, i32
  }
}

module attributes {stable_mosaic.version = 11 : i64} {
  func.func @_in_apply_kernel(%arg0: i32, %arg1: i32, %arg2: memref<1x16x128xbf16, #tpu.memory_space<vmem>>, %arg3: memref<1x1x128xf32, #tpu.memory_space<vmem>>, %arg4: memref<1x1x128xf32, #tpu.memory_space<vmem>>, %arg5: memref<1x16x128xbf16, #tpu.memory_space<vmem>>) attributes {dimension_semantics = [#tpu.dimension_semantics<parallel>, #tpu.dimension_semantics<parallel>], iteration_bounds = array<i64: 2, 1>, scalar_prefetch = 0 : i64, scratch_operands = 0 : i64, tpu.core_type = #tpu.core_type<tc>, window_params = [{transform_indices = @transform_0, window_bounds = array<i64: 1, 16, 128>}, {transform_indices = @transform_1, window_bounds = array<i64: 1, 1, 128>}, {transform_indices = @transform_2, window_bounds = array<i64: 1, 1, 128>}, {transform_indices = @transform_3, window_bounds = array<i64: 1, 16, 128>}]} {
    %c0 = arith.constant 0 : index
    %c0_0 = arith.constant 0 : index
    %c0_1 = arith.constant 0 : index
    %0 = vector.load %arg2[%c0, %c0_0, %c0_1] : memref<1x16x128xbf16, #tpu.memory_space<vmem>>, vector<1x16x128xbf16>
    %1 = arith.extf %0 : vector<1x16x128xbf16> to vector<1x16x128xf32>
    %c0_2 = arith.constant 0 : index
    %c0_3 = arith.constant 0 : index
    %c0_4 = arith.constant 0 : index
    %2 = vector.load %arg3[%c0_2, %c0_3, %c0_4] : memref<1x1x128xf32, #tpu.memory_space<vmem>>, vector<1x1x128xf32>
    %3 = vector.broadcast %2 : vector<1x1x128xf32> to vector<1x16x128xf32>
    %4 = arith.mulf %1, %3 : vector<1x16x128xf32>
    %c0_5 = arith.constant 0 : index
    %c0_6 = arith.constant 0 : index
    %c0_7 = arith.constant 0 : index
    %5 = vector.load %arg4[%c0_5, %c0_6, %c0_7] : memref<1x1x128xf32, #tpu.memory_space<vmem>>, vector<1x1x128xf32>
    %6 = vector.broadcast %5 : vector<1x1x128xf32> to vector<1x16x128xf32>
    %7 = arith.addf %4, %6 : vector<1x16x128xf32>
    %cst = arith.constant 0.000000e+00 : f32
    %8 = vector.broadcast %cst : f32 to vector<1x16x128xf32>
    %9 = arith.maximumf %7, %8 : vector<1x16x128xf32>
    %10 = arith.truncf %9 : vector<1x16x128xf32> to vector<1x16x128xbf16>
    %c0_8 = arith.constant 0 : index
    %c0_9 = arith.constant 0 : index
    %c0_10 = arith.constant 0 : index
    %11 = vector.load %arg5[%c0_8, %c0_9, %c0_10] : memref<1x16x128xbf16, #tpu.memory_space<vmem>>, vector<1x16x128xbf16>
    tpu.vector_store %arg5[%c0_8, %c0_9, %c0_10], %10 {strides = array<i32>} : memref<1x16x128xbf16, #tpu.memory_space<vmem>>, vector<1x16x128xbf16>,
    return
  }
  func.func @transform_0(%arg0: i32, %arg1: i32) -> (i32, i32, i32) {
    %c0_i32 = arith.constant 0 : i32
    %c0_i32_0 = arith.constant 0 : i32
    return %arg0, %arg1, %c0_i32 : i32, i32, i32
  }
  func.func @transform_1(%arg0: i32, %arg1: i32) -> (i32, i32, i32) {
    %c0_i32 = arith.constant 0 : i32
    %c0_i32_0 = arith.constant 0 : i32
    %c0_i32_1 = arith.constant 0 : i32
    return %arg0, %c0_i32, %c0_i32_0 : i32, i32, i32
  }
  func.func @transform_2(%arg0: i32, %arg1: i32) -> (i32, i32, i32) {
    %c0_i32 = arith.constant 0 : i32
    %c0_i32_0 = arith.constant 0 : i32
    %c0_i32_1 = arith.constant 0 : i32
    return %arg0, %c0_i32, %c0_i32_0 : i32, i32, i32
  }
  func.func @transform_3(%arg0: i32, %arg1: i32) -> (i32, i32, i32) {
    %c0_i32 = arith.constant 0 : i32
    %c0_i32_0 = arith.constant 0 : i32
    return %arg0, %arg1, %c0_i32 : i32, i32, i32
  }
}

module attributes {stable_mosaic.version = 11 : i64} {
  func.func @_in_stats_kernel(%arg0: i32, %arg1: i32, %arg2: memref<1x16x128xbf16, #tpu.memory_space<vmem>>, %arg3: memref<1x1x128xf32, #tpu.memory_space<vmem>>, %arg4: memref<1x1x128xf32, #tpu.memory_space<vmem>>) attributes {dimension_semantics = [#tpu.dimension_semantics<parallel>, #tpu.dimension_semantics<arbitrary>], iteration_bounds = array<i64: 2, 1>, scalar_prefetch = 0 : i64, scratch_operands = 0 : i64, tpu.core_type = #tpu.core_type<tc>, window_params = [{transform_indices = @transform_0, window_bounds = array<i64: 1, 16, 128>}, {transform_indices = @transform_1, window_bounds = array<i64: 1, 1, 128>}, {transform_indices = @transform_2, window_bounds = array<i64: 1, 1, 128>}]} {
    %c0_i32 = arith.constant 0 : i32
    %0 = arith.cmpi eq, %arg1, %c0_i32 : i32
    %1 = arith.extui %0 : i1 to i32
    %c0_i32_0 = arith.constant 0 : i32
    %2 = arith.cmpi ne, %1, %c0_i32_0 : i32
    scf.if %2 {
      %cst_16 = arith.constant 0.000000e+00 : f32
      %16 = vector.broadcast %cst_16 : f32 to vector<1x1x128xf32>
      %c0_17 = arith.constant 0 : index
      %c0_18 = arith.constant 0 : index
      %c0_19 = arith.constant 0 : index
      %17 = vector.load %arg3[%c0_17, %c0_18, %c0_19] : memref<1x1x128xf32, #tpu.memory_space<vmem>>, vector<1x1x128xf32>
      tpu.vector_store %arg3[%c0_17, %c0_18, %c0_19], %16 {strides = array<i32>} : memref<1x1x128xf32, #tpu.memory_space<vmem>>, vector<1x1x128xf32>,
      %cst_20 = arith.constant 0.000000e+00 : f32
      %18 = vector.broadcast %cst_20 : f32 to vector<1x1x128xf32>
      %c0_21 = arith.constant 0 : index
      %c0_22 = arith.constant 0 : index
      %c0_23 = arith.constant 0 : index
      %19 = vector.load %arg4[%c0_21, %c0_22, %c0_23] : memref<1x1x128xf32, #tpu.memory_space<vmem>>, vector<1x1x128xf32>
      tpu.vector_store %arg4[%c0_21, %c0_22, %c0_23], %18 {strides = array<i32>} : memref<1x1x128xf32, #tpu.memory_space<vmem>>, vector<1x1x128xf32>,
    } else {
    }
    %c0 = arith.constant 0 : index
    %c0_1 = arith.constant 0 : index
    %c0_2 = arith.constant 0 : index
    %3 = vector.load %arg2[%c0, %c0_1, %c0_2] : memref<1x16x128xbf16, #tpu.memory_space<vmem>>, vector<1x16x128xbf16>
    %4 = arith.extf %3 : vector<1x16x128xbf16> to vector<1x16x128xf32>
    %c0_3 = arith.constant 0 : index
    %c0_4 = arith.constant 0 : index
    %c0_5 = arith.constant 0 : index
    %5 = vector.load %arg3[%c0_3, %c0_4, %c0_5] : memref<1x1x128xf32, #tpu.memory_space<vmem>>, vector<1x1x128xf32>
    %cst = arith.constant dense<0.000000e+00> : vector<1x128xf32>
    %6 = vector.multi_reduction <add>, %4, %cst [1] : vector<1x16x128xf32> to vector<1x128xf32>
    %7 = vector.shape_cast %6 : vector<1x128xf32> to vector<1x1x128xf32>
    %8 = arith.addf %5, %7 : vector<1x1x128xf32>
    %c0_6 = arith.constant 0 : index
    %c0_7 = arith.constant 0 : index
    %c0_8 = arith.constant 0 : index
    %9 = vector.load %arg3[%c0_6, %c0_7, %c0_8] : memref<1x1x128xf32, #tpu.memory_space<vmem>>, vector<1x1x128xf32>
    tpu.vector_store %arg3[%c0_6, %c0_7, %c0_8], %8 {strides = array<i32>} : memref<1x1x128xf32, #tpu.memory_space<vmem>>, vector<1x1x128xf32>,
    %c0_9 = arith.constant 0 : index
    %c0_10 = arith.constant 0 : index
    %c0_11 = arith.constant 0 : index
    %10 = vector.load %arg4[%c0_9, %c0_10, %c0_11] : memref<1x1x128xf32, #tpu.memory_space<vmem>>, vector<1x1x128xf32>
    %11 = arith.mulf %4, %4 : vector<1x16x128xf32>
    %cst_12 = arith.constant dense<0.000000e+00> : vector<1x128xf32>
    %12 = vector.multi_reduction <add>, %11, %cst_12 [1] : vector<1x16x128xf32> to vector<1x128xf32>
    %13 = vector.shape_cast %12 : vector<1x128xf32> to vector<1x1x128xf32>
    %14 = arith.addf %10, %13 : vector<1x1x128xf32>
    %c0_13 = arith.constant 0 : index
    %c0_14 = arith.constant 0 : index
    %c0_15 = arith.constant 0 : index
    %15 = vector.load %arg4[%c0_13, %c0_14, %c0_15] : memref<1x1x128xf32, #tpu.memory_space<vmem>>, vector<1x1x128xf32>
    tpu.vector_store %arg4[%c0_13, %c0_14, %c0_15], %14 {strides = array<i32>} : memref<1x1x128xf32, #tpu.memory_space<vmem>>, vector<1x1x128xf32>,
    return
  }
  func.func @transform_0(%arg0: i32, %arg1: i32) -> (i32, i32, i32) {
    %c0_i32 = arith.constant 0 : i32
    %c0_i32_0 = arith.constant 0 : i32
    return %arg0, %arg1, %c0_i32 : i32, i32, i32
  }
  func.func @transform_1(%arg0: i32, %arg1: i32) -> (i32, i32, i32) {
    %c0_i32 = arith.constant 0 : i32
    %c0_i32_0 = arith.constant 0 : i32
    %c0_i32_1 = arith.constant 0 : i32
    return %arg0, %c0_i32, %c0_i32_0 : i32, i32, i32
  }
  func.func @transform_2(%arg0: i32, %arg1: i32) -> (i32, i32, i32) {
    %c0_i32 = arith.constant 0 : i32
    %c0_i32_0 = arith.constant 0 : i32
    %c0_i32_1 = arith.constant 0 : i32
    return %arg0, %c0_i32, %c0_i32_0 : i32, i32, i32
  }
}

module attributes {stable_mosaic.version = 11 : i64} {
  func.func @_gemm_kernel(%arg0: i32, %arg1: i32, %arg2: memref<32x576xbf16, #tpu.memory_space<vmem>>, %arg3: memref<576x128xbf16, #tpu.memory_space<vmem>>, %arg4: memref<32x128xbf16, #tpu.memory_space<vmem>>) attributes {dimension_semantics = [#tpu.dimension_semantics<parallel>, #tpu.dimension_semantics<parallel>], iteration_bounds = array<i64: 1, 1>, scalar_prefetch = 0 : i64, scratch_operands = 0 : i64, tpu.core_type = #tpu.core_type<tc>, window_params = [{transform_indices = @transform_0, window_bounds = array<i64: 32, 576>}, {transform_indices = @transform_1, window_bounds = array<i64: 576, 128>}, {transform_indices = @transform_2, window_bounds = array<i64: 32, 128>}]} {
    %c0 = arith.constant 0 : index
    %c0_0 = arith.constant 0 : index
    %0 = vector.load %arg2[%c0, %c0_0] : memref<32x576xbf16, #tpu.memory_space<vmem>>, vector<32x576xbf16>
    %c0_1 = arith.constant 0 : index
    %c0_2 = arith.constant 0 : index
    %1 = vector.load %arg3[%c0_1, %c0_2] : memref<576x128xbf16, #tpu.memory_space<vmem>>, vector<576x128xbf16>
    %cst = arith.constant dense<0.000000e+00> : vector<32x128xf32>
    %2 = tpu.matmul %0, %1, %cst {dimension_numbers = #tpu.dot_dimension_numbers<[1], [0], [0], [1], [0, 0, 1, 1], [], []>} : vector<32x576xbf16>, vector<576x128xbf16>, vector<32x128xf32> -> vector<32x128xf32>
    %3 = arith.truncf %2 : vector<32x128xf32> to vector<32x128xbf16>
    %c0_3 = arith.constant 0 : index
    %c0_4 = arith.constant 0 : index
    %4 = vector.load %arg4[%c0_3, %c0_4] : memref<32x128xbf16, #tpu.memory_space<vmem>>, vector<32x128xbf16>
    tpu.vector_store %arg4[%c0_3, %c0_4], %3 {strides = array<i32>} : memref<32x128xbf16, #tpu.memory_space<vmem>>, vector<32x128xbf16>,
    return
  }
  func.func @transform_0(%arg0: i32, %arg1: i32) -> (i32, i32) {
    %c0_i32 = arith.constant 0 : i32
    %c0_i32_0 = arith.constant 0 : i32
    return %arg0, %c0_i32 : i32, i32
  }
  func.func @transform_1(%arg0: i32, %arg1: i32) -> (i32, i32) {
    %c0_i32 = arith.constant 0 : i32
    %c0_i32_0 = arith.constant 0 : i32
    return %c0_i32, %arg1 : i32, i32
  }
  func.func @transform_2(%arg0: i32, %arg1: i32) -> (i32, i32) {
    %c0_i32 = arith.constant 0 : i32
    return %arg0, %arg1 : i32, i32
  }
}

module attributes {stable_mosaic.version = 11 : i64} {
  func.func @_fused_conv_kernel(%arg0: i32, %arg1: memref<1x24x384xbf16, #tpu.memory_space<vmem>>, %arg2: memref<3x384x128xbf16, #tpu.memory_space<vmem>>, %arg3: memref<1x16x128xbf16, #tpu.memory_space<vmem>>) attributes {dimension_semantics = [#tpu.dimension_semantics<parallel>], iteration_bounds = array<i64: 2>, scalar_prefetch = 0 : i64, scratch_operands = 0 : i64, tpu.core_type = #tpu.core_type<tc>, window_params = [{transform_indices = @transform_0, window_bounds = array<i64: 1, 24, 384>}, {pipeline_mode = #tpu.pipeline_mode<synchronous>, transform_indices = @transform_1, window_bounds = array<i64: 3, 384, 128>}, {transform_indices = @transform_2, window_bounds = array<i64: 1, 16, 128>}]} {
    %c0 = arith.constant 0 : index
    %c0_0 = arith.constant 0 : index
    %c0_1 = arith.constant 0 : index
    %0 = vector.load %arg1[%c0, %c0_0, %c0_1] : memref<1x24x384xbf16, #tpu.memory_space<vmem>>, vector<1x16x384xbf16>
    %1 = vector.shape_cast %0 : vector<1x16x384xbf16> to vector<16x384xbf16>
    %c0_2 = arith.constant 0 : index
    %c0_3 = arith.constant 0 : index
    %c0_4 = arith.constant 0 : index
    %2 = vector.load %arg2[%c0_2, %c0_3, %c0_4] : memref<3x384x128xbf16, #tpu.memory_space<vmem>>, vector<1x384x128xbf16>
    %3 = vector.shape_cast %2 : vector<1x384x128xbf16> to vector<384x128xbf16>
    %cst = arith.constant dense<0.000000e+00> : vector<16x128xf32>
    %4 = tpu.matmul %1, %3, %cst {dimension_numbers = #tpu.dot_dimension_numbers<[1], [0], [0], [1], [0, 0, 1, 1], [], []>} : vector<16x384xbf16>, vector<384x128xbf16>, vector<16x128xf32> -> vector<16x128xf32>
    %c0_5 = arith.constant 0 : index
    %c4 = arith.constant 4 : index
    %c0_6 = arith.constant 0 : index
    %5 = vector.load %arg1[%c0_5, %c4, %c0_6] : memref<1x24x384xbf16, #tpu.memory_space<vmem>>, vector<1x16x384xbf16>
    %6 = vector.shape_cast %5 : vector<1x16x384xbf16> to vector<16x384xbf16>
    %c1 = arith.constant 1 : index
    %c0_7 = arith.constant 0 : index
    %c0_8 = arith.constant 0 : index
    %7 = vector.load %arg2[%c1, %c0_7, %c0_8] : memref<3x384x128xbf16, #tpu.memory_space<vmem>>, vector<1x384x128xbf16>
    %8 = vector.shape_cast %7 : vector<1x384x128xbf16> to vector<384x128xbf16>
    %cst_9 = arith.constant dense<0.000000e+00> : vector<16x128xf32>
    %9 = tpu.matmul %6, %8, %cst_9 {dimension_numbers = #tpu.dot_dimension_numbers<[1], [0], [0], [1], [0, 0, 1, 1], [], []>} : vector<16x384xbf16>, vector<384x128xbf16>, vector<16x128xf32> -> vector<16x128xf32>
    %10 = arith.addf %4, %9 : vector<16x128xf32>
    %c0_10 = arith.constant 0 : index
    %c8 = arith.constant 8 : index
    %c0_11 = arith.constant 0 : index
    %11 = vector.load %arg1[%c0_10, %c8, %c0_11] : memref<1x24x384xbf16, #tpu.memory_space<vmem>>, vector<1x16x384xbf16>
    %12 = vector.shape_cast %11 : vector<1x16x384xbf16> to vector<16x384xbf16>
    %c2 = arith.constant 2 : index
    %c0_12 = arith.constant 0 : index
    %c0_13 = arith.constant 0 : index
    %13 = vector.load %arg2[%c2, %c0_12, %c0_13] : memref<3x384x128xbf16, #tpu.memory_space<vmem>>, vector<1x384x128xbf16>
    %14 = vector.shape_cast %13 : vector<1x384x128xbf16> to vector<384x128xbf16>
    %cst_14 = arith.constant dense<0.000000e+00> : vector<16x128xf32>
    %15 = tpu.matmul %12, %14, %cst_14 {dimension_numbers = #tpu.dot_dimension_numbers<[1], [0], [0], [1], [0, 0, 1, 1], [], []>} : vector<16x384xbf16>, vector<384x128xbf16>, vector<16x128xf32> -> vector<16x128xf32>
    %16 = arith.addf %10, %15 : vector<16x128xf32>
    %17 = arith.truncf %16 : vector<16x128xf32> to vector<16x128xbf16>
    %18 = vector.shape_cast %17 : vector<16x128xbf16> to vector<1x16x128xbf16>
    %c0_15 = arith.constant 0 : index
    %c0_16 = arith.constant 0 : index
    %c0_17 = arith.constant 0 : index
    %19 = vector.load %arg3[%c0_15, %c0_16, %c0_17] : memref<1x16x128xbf16, #tpu.memory_space<vmem>>, vector<1x16x128xbf16>
    tpu.vector_store %arg3[%c0_15, %c0_16, %c0_17], %18 {strides = array<i32>} : memref<1x16x128xbf16, #tpu.memory_space<vmem>>, vector<1x16x128xbf16>,
    return
  }
  func.func @transform_0(%arg0: i32) -> (i32, i32, i32) {
    %c0_i32 = arith.constant 0 : i32
    %c0_i32_0 = arith.constant 0 : i32
    %c0_i32_1 = arith.constant 0 : i32
    return %arg0, %c0_i32, %c0_i32_0 : i32, i32, i32
  }
  func.func @transform_1(%arg0: i32) -> (i32, i32, i32) {
    %c0_i32 = arith.constant 0 : i32
    %c0_i32_0 = arith.constant 0 : i32
    %c0_i32_1 = arith.constant 0 : i32
    %c0_i32_2 = arith.constant 0 : i32
    return %c0_i32, %c0_i32_0, %c0_i32_1 : i32, i32, i32
  }
  func.func @transform_2(%arg0: i32) -> (i32, i32, i32) {
    %c0_i32 = arith.constant 0 : i32
    %c0_i32_0 = arith.constant 0 : i32
    %c0_i32_1 = arith.constant 0 : i32
    return %arg0, %c0_i32, %c0_i32_0 : i32, i32, i32
  }
}

module attributes {stable_mosaic.version = 11 : i64} {
  func.func @_in_apply_kernel(%arg0: i32, %arg1: i32, %arg2: memref<1x16x128xbf16, #tpu.memory_space<vmem>>, %arg3: memref<1x1x128xf32, #tpu.memory_space<vmem>>, %arg4: memref<1x1x128xf32, #tpu.memory_space<vmem>>, %arg5: memref<1x16x128xbf16, #tpu.memory_space<vmem>>, %arg6: memref<1x16x128xbf16, #tpu.memory_space<vmem>>) attributes {dimension_semantics = [#tpu.dimension_semantics<parallel>, #tpu.dimension_semantics<parallel>], iteration_bounds = array<i64: 2, 1>, scalar_prefetch = 0 : i64, scratch_operands = 0 : i64, tpu.core_type = #tpu.core_type<tc>, window_params = [{transform_indices = @transform_0, window_bounds = array<i64: 1, 16, 128>}, {transform_indices = @transform_1, window_bounds = array<i64: 1, 1, 128>}, {transform_indices = @transform_2, window_bounds = array<i64: 1, 1, 128>}, {transform_indices = @transform_3, window_bounds = array<i64: 1, 16, 128>}, {transform_indices = @transform_4, window_bounds = array<i64: 1, 16, 128>}]} {
    %c0 = arith.constant 0 : index
    %c0_0 = arith.constant 0 : index
    %c0_1 = arith.constant 0 : index
    %0 = vector.load %arg2[%c0, %c0_0, %c0_1] : memref<1x16x128xbf16, #tpu.memory_space<vmem>>, vector<1x16x128xbf16>
    %1 = arith.extf %0 : vector<1x16x128xbf16> to vector<1x16x128xf32>
    %c0_2 = arith.constant 0 : index
    %c0_3 = arith.constant 0 : index
    %c0_4 = arith.constant 0 : index
    %2 = vector.load %arg3[%c0_2, %c0_3, %c0_4] : memref<1x1x128xf32, #tpu.memory_space<vmem>>, vector<1x1x128xf32>
    %3 = vector.broadcast %2 : vector<1x1x128xf32> to vector<1x16x128xf32>
    %4 = arith.mulf %1, %3 : vector<1x16x128xf32>
    %c0_5 = arith.constant 0 : index
    %c0_6 = arith.constant 0 : index
    %c0_7 = arith.constant 0 : index
    %5 = vector.load %arg4[%c0_5, %c0_6, %c0_7] : memref<1x1x128xf32, #tpu.memory_space<vmem>>, vector<1x1x128xf32>
    %6 = vector.broadcast %5 : vector<1x1x128xf32> to vector<1x16x128xf32>
    %7 = arith.addf %4, %6 : vector<1x16x128xf32>
    %c0_8 = arith.constant 0 : index
    %c0_9 = arith.constant 0 : index
    %c0_10 = arith.constant 0 : index
    %8 = vector.load %arg5[%c0_8, %c0_9, %c0_10] : memref<1x16x128xbf16, #tpu.memory_space<vmem>>, vector<1x16x128xbf16>
    %9 = arith.extf %8 : vector<1x16x128xbf16> to vector<1x16x128xf32>
    %10 = arith.addf %7, %9 : vector<1x16x128xf32>
    %11 = arith.truncf %10 : vector<1x16x128xf32> to vector<1x16x128xbf16>
    %c0_11 = arith.constant 0 : index
    %c0_12 = arith.constant 0 : index
    %c0_13 = arith.constant 0 : index
    %12 = vector.load %arg6[%c0_11, %c0_12, %c0_13] : memref<1x16x128xbf16, #tpu.memory_space<vmem>>, vector<1x16x128xbf16>
    tpu.vector_store %arg6[%c0_11, %c0_12, %c0_13], %11 {strides = array<i32>} : memref<1x16x128xbf16, #tpu.memory_space<vmem>>, vector<1x16x128xbf16>,
    return
  }
  func.func @transform_0(%arg0: i32, %arg1: i32) -> (i32, i32, i32) {
    %c0_i32 = arith.constant 0 : i32
    %c0_i32_0 = arith.constant 0 : i32
    return %arg0, %arg1, %c0_i32 : i32, i32, i32
  }
  func.func @transform_1(%arg0: i32, %arg1: i32) -> (i32, i32, i32) {
    %c0_i32 = arith.constant 0 : i32
    %c0_i32_0 = arith.constant 0 : i32
    %c0_i32_1 = arith.constant 0 : i32
    return %arg0, %c0_i32, %c0_i32_0 : i32, i32, i32
  }
  func.func @transform_2(%arg0: i32, %arg1: i32) -> (i32, i32, i32) {
    %c0_i32 = arith.constant 0 : i32
    %c0_i32_0 = arith.constant 0 : i32
    %c0_i32_1 = arith.constant 0 : i32
    return %arg0, %c0_i32, %c0_i32_0 : i32, i32, i32
  }
  func.func @transform_3(%arg0: i32, %arg1: i32) -> (i32, i32, i32) {
    %c0_i32 = arith.constant 0 : i32
    %c0_i32_0 = arith.constant 0 : i32
    return %arg0, %arg1, %c0_i32 : i32, i32, i32
  }
  func.func @transform_4(%arg0: i32, %arg1: i32) -> (i32, i32, i32) {
    %c0_i32 = arith.constant 0 : i32
    %c0_i32_0 = arith.constant 0 : i32
    return %arg0, %arg1, %c0_i32 : i32, i32, i32
  }
}

module attributes {stable_mosaic.version = 11 : i64} {
  func.func @_gemm_kernel(%arg0: i32, %arg1: i32, %arg2: memref<32x512xbf16, #tpu.memory_space<vmem>>, %arg3: memref<512x256xbf16, #tpu.memory_space<vmem>>, %arg4: memref<32x256xbf16, #tpu.memory_space<vmem>>) attributes {dimension_semantics = [#tpu.dimension_semantics<parallel>, #tpu.dimension_semantics<parallel>], iteration_bounds = array<i64: 1, 1>, scalar_prefetch = 0 : i64, scratch_operands = 0 : i64, tpu.core_type = #tpu.core_type<tc>, window_params = [{transform_indices = @transform_0, window_bounds = array<i64: 32, 512>}, {transform_indices = @transform_1, window_bounds = array<i64: 512, 256>}, {transform_indices = @transform_2, window_bounds = array<i64: 32, 256>}]} {
    %c0 = arith.constant 0 : index
    %c0_0 = arith.constant 0 : index
    %0 = vector.load %arg2[%c0, %c0_0] : memref<32x512xbf16, #tpu.memory_space<vmem>>, vector<32x512xbf16>
    %c0_1 = arith.constant 0 : index
    %c0_2 = arith.constant 0 : index
    %1 = vector.load %arg3[%c0_1, %c0_2] : memref<512x256xbf16, #tpu.memory_space<vmem>>, vector<512x256xbf16>
    %cst = arith.constant dense<0.000000e+00> : vector<32x256xf32>
    %2 = tpu.matmul %0, %1, %cst {dimension_numbers = #tpu.dot_dimension_numbers<[1], [0], [0], [1], [0, 0, 1, 1], [], []>} : vector<32x512xbf16>, vector<512x256xbf16>, vector<32x256xf32> -> vector<32x256xf32>
    %3 = arith.truncf %2 : vector<32x256xf32> to vector<32x256xbf16>
    %c0_3 = arith.constant 0 : index
    %c0_4 = arith.constant 0 : index
    %4 = vector.load %arg4[%c0_3, %c0_4] : memref<32x256xbf16, #tpu.memory_space<vmem>>, vector<32x256xbf16>
    tpu.vector_store %arg4[%c0_3, %c0_4], %3 {strides = array<i32>} : memref<32x256xbf16, #tpu.memory_space<vmem>>, vector<32x256xbf16>,
    return
  }
  func.func @transform_0(%arg0: i32, %arg1: i32) -> (i32, i32) {
    %c0_i32 = arith.constant 0 : i32
    %c0_i32_0 = arith.constant 0 : i32
    return %arg0, %c0_i32 : i32, i32
  }
  func.func @transform_1(%arg0: i32, %arg1: i32) -> (i32, i32) {
    %c0_i32 = arith.constant 0 : i32
    %c0_i32_0 = arith.constant 0 : i32
    return %c0_i32, %arg1 : i32, i32
  }
  func.func @transform_2(%arg0: i32, %arg1: i32) -> (i32, i32) {
    %c0_i32 = arith.constant 0 : i32
    return %arg0, %arg1 : i32, i32
  }
}

module attributes {stable_mosaic.version = 11 : i64} {
  func.func @_in_stats_kernel(%arg0: i32, %arg1: i32, %arg2: memref<1x16x256xbf16, #tpu.memory_space<vmem>>, %arg3: memref<1x1x256xf32, #tpu.memory_space<vmem>>, %arg4: memref<1x1x256xf32, #tpu.memory_space<vmem>>) attributes {dimension_semantics = [#tpu.dimension_semantics<parallel>, #tpu.dimension_semantics<arbitrary>], iteration_bounds = array<i64: 2, 1>, scalar_prefetch = 0 : i64, scratch_operands = 0 : i64, tpu.core_type = #tpu.core_type<tc>, window_params = [{transform_indices = @transform_0, window_bounds = array<i64: 1, 16, 256>}, {transform_indices = @transform_1, window_bounds = array<i64: 1, 1, 256>}, {transform_indices = @transform_2, window_bounds = array<i64: 1, 1, 256>}]} {
    %c0_i32 = arith.constant 0 : i32
    %0 = arith.cmpi eq, %arg1, %c0_i32 : i32
    %1 = arith.extui %0 : i1 to i32
    %c0_i32_0 = arith.constant 0 : i32
    %2 = arith.cmpi ne, %1, %c0_i32_0 : i32
    scf.if %2 {
      %cst_16 = arith.constant 0.000000e+00 : f32
      %16 = vector.broadcast %cst_16 : f32 to vector<1x1x256xf32>
      %c0_17 = arith.constant 0 : index
      %c0_18 = arith.constant 0 : index
      %c0_19 = arith.constant 0 : index
      %17 = vector.load %arg3[%c0_17, %c0_18, %c0_19] : memref<1x1x256xf32, #tpu.memory_space<vmem>>, vector<1x1x256xf32>
      tpu.vector_store %arg3[%c0_17, %c0_18, %c0_19], %16 {strides = array<i32>} : memref<1x1x256xf32, #tpu.memory_space<vmem>>, vector<1x1x256xf32>,
      %cst_20 = arith.constant 0.000000e+00 : f32
      %18 = vector.broadcast %cst_20 : f32 to vector<1x1x256xf32>
      %c0_21 = arith.constant 0 : index
      %c0_22 = arith.constant 0 : index
      %c0_23 = arith.constant 0 : index
      %19 = vector.load %arg4[%c0_21, %c0_22, %c0_23] : memref<1x1x256xf32, #tpu.memory_space<vmem>>, vector<1x1x256xf32>
      tpu.vector_store %arg4[%c0_21, %c0_22, %c0_23], %18 {strides = array<i32>} : memref<1x1x256xf32, #tpu.memory_space<vmem>>, vector<1x1x256xf32>,
    } else {
    }
    %c0 = arith.constant 0 : index
    %c0_1 = arith.constant 0 : index
    %c0_2 = arith.constant 0 : index
    %3 = vector.load %arg2[%c0, %c0_1, %c0_2] : memref<1x16x256xbf16, #tpu.memory_space<vmem>>, vector<1x16x256xbf16>
    %4 = arith.extf %3 : vector<1x16x256xbf16> to vector<1x16x256xf32>
    %c0_3 = arith.constant 0 : index
    %c0_4 = arith.constant 0 : index
    %c0_5 = arith.constant 0 : index
    %5 = vector.load %arg3[%c0_3, %c0_4, %c0_5] : memref<1x1x256xf32, #tpu.memory_space<vmem>>, vector<1x1x256xf32>
    %cst = arith.constant dense<0.000000e+00> : vector<1x256xf32>
    %6 = vector.multi_reduction <add>, %4, %cst [1] : vector<1x16x256xf32> to vector<1x256xf32>
    %7 = vector.shape_cast %6 : vector<1x256xf32> to vector<1x1x256xf32>
    %8 = arith.addf %5, %7 : vector<1x1x256xf32>
    %c0_6 = arith.constant 0 : index
    %c0_7 = arith.constant 0 : index
    %c0_8 = arith.constant 0 : index
    %9 = vector.load %arg3[%c0_6, %c0_7, %c0_8] : memref<1x1x256xf32, #tpu.memory_space<vmem>>, vector<1x1x256xf32>
    tpu.vector_store %arg3[%c0_6, %c0_7, %c0_8], %8 {strides = array<i32>} : memref<1x1x256xf32, #tpu.memory_space<vmem>>, vector<1x1x256xf32>,
    %c0_9 = arith.constant 0 : index
    %c0_10 = arith.constant 0 : index
    %c0_11 = arith.constant 0 : index
    %10 = vector.load %arg4[%c0_9, %c0_10, %c0_11] : memref<1x1x256xf32, #tpu.memory_space<vmem>>, vector<1x1x256xf32>
    %11 = arith.mulf %4, %4 : vector<1x16x256xf32>
    %cst_12 = arith.constant dense<0.000000e+00> : vector<1x256xf32>
    %12 = vector.multi_reduction <add>, %11, %cst_12 [1] : vector<1x16x256xf32> to vector<1x256xf32>
    %13 = vector.shape_cast %12 : vector<1x256xf32> to vector<1x1x256xf32>
    %14 = arith.addf %10, %13 : vector<1x1x256xf32>
    %c0_13 = arith.constant 0 : index
    %c0_14 = arith.constant 0 : index
    %c0_15 = arith.constant 0 : index
    %15 = vector.load %arg4[%c0_13, %c0_14, %c0_15] : memref<1x1x256xf32, #tpu.memory_space<vmem>>, vector<1x1x256xf32>
    tpu.vector_store %arg4[%c0_13, %c0_14, %c0_15], %14 {strides = array<i32>} : memref<1x1x256xf32, #tpu.memory_space<vmem>>, vector<1x1x256xf32>,
    return
  }
  func.func @transform_0(%arg0: i32, %arg1: i32) -> (i32, i32, i32) {
    %c0_i32 = arith.constant 0 : i32
    %c0_i32_0 = arith.constant 0 : i32
    return %arg0, %arg1, %c0_i32 : i32, i32, i32
  }
  func.func @transform_1(%arg0: i32, %arg1: i32) -> (i32, i32, i32) {
    %c0_i32 = arith.constant 0 : i32
    %c0_i32_0 = arith.constant 0 : i32
    %c0_i32_1 = arith.constant 0 : i32
    return %arg0, %c0_i32, %c0_i32_0 : i32, i32, i32
  }
  func.func @transform_2(%arg0: i32, %arg1: i32) -> (i32, i32, i32) {
    %c0_i32 = arith.constant 0 : i32
    %c0_i32_0 = arith.constant 0 : i32
    %c0_i32_1 = arith.constant 0 : i32
    return %arg0, %c0_i32, %c0_i32_0 : i32, i32, i32
  }
}

module attributes {stable_mosaic.version = 11 : i64} {
  func.func @_in_apply_kernel(%arg0: i32, %arg1: i32, %arg2: memref<1x16x256xbf16, #tpu.memory_space<vmem>>, %arg3: memref<1x1x256xf32, #tpu.memory_space<vmem>>, %arg4: memref<1x1x256xf32, #tpu.memory_space<vmem>>, %arg5: memref<1x16x256xbf16, #tpu.memory_space<vmem>>) attributes {dimension_semantics = [#tpu.dimension_semantics<parallel>, #tpu.dimension_semantics<parallel>], iteration_bounds = array<i64: 2, 1>, scalar_prefetch = 0 : i64, scratch_operands = 0 : i64, tpu.core_type = #tpu.core_type<tc>, window_params = [{transform_indices = @transform_0, window_bounds = array<i64: 1, 16, 256>}, {transform_indices = @transform_1, window_bounds = array<i64: 1, 1, 256>}, {transform_indices = @transform_2, window_bounds = array<i64: 1, 1, 256>}, {transform_indices = @transform_3, window_bounds = array<i64: 1, 16, 256>}]} {
    %c0 = arith.constant 0 : index
    %c0_0 = arith.constant 0 : index
    %c0_1 = arith.constant 0 : index
    %0 = vector.load %arg2[%c0, %c0_0, %c0_1] : memref<1x16x256xbf16, #tpu.memory_space<vmem>>, vector<1x16x256xbf16>
    %1 = arith.extf %0 : vector<1x16x256xbf16> to vector<1x16x256xf32>
    %c0_2 = arith.constant 0 : index
    %c0_3 = arith.constant 0 : index
    %c0_4 = arith.constant 0 : index
    %2 = vector.load %arg3[%c0_2, %c0_3, %c0_4] : memref<1x1x256xf32, #tpu.memory_space<vmem>>, vector<1x1x256xf32>
    %3 = vector.broadcast %2 : vector<1x1x256xf32> to vector<1x16x256xf32>
    %4 = arith.mulf %1, %3 : vector<1x16x256xf32>
    %c0_5 = arith.constant 0 : index
    %c0_6 = arith.constant 0 : index
    %c0_7 = arith.constant 0 : index
    %5 = vector.load %arg4[%c0_5, %c0_6, %c0_7] : memref<1x1x256xf32, #tpu.memory_space<vmem>>, vector<1x1x256xf32>
    %6 = vector.broadcast %5 : vector<1x1x256xf32> to vector<1x16x256xf32>
    %7 = arith.addf %4, %6 : vector<1x16x256xf32>
    %cst = arith.constant 0.000000e+00 : f32
    %8 = vector.broadcast %cst : f32 to vector<1x16x256xf32>
    %9 = arith.maximumf %7, %8 : vector<1x16x256xf32>
    %10 = arith.truncf %9 : vector<1x16x256xf32> to vector<1x16x256xbf16>
    %c0_8 = arith.constant 0 : index
    %c0_9 = arith.constant 0 : index
    %c0_10 = arith.constant 0 : index
    %11 = vector.load %arg5[%c0_8, %c0_9, %c0_10] : memref<1x16x256xbf16, #tpu.memory_space<vmem>>, vector<1x16x256xbf16>
    tpu.vector_store %arg5[%c0_8, %c0_9, %c0_10], %10 {strides = array<i32>} : memref<1x16x256xbf16, #tpu.memory_space<vmem>>, vector<1x16x256xbf16>,
    return
  }
  func.func @transform_0(%arg0: i32, %arg1: i32) -> (i32, i32, i32) {
    %c0_i32 = arith.constant 0 : i32
    %c0_i32_0 = arith.constant 0 : i32
    return %arg0, %arg1, %c0_i32 : i32, i32, i32
  }
  func.func @transform_1(%arg0: i32, %arg1: i32) -> (i32, i32, i32) {
    %c0_i32 = arith.constant 0 : i32
    %c0_i32_0 = arith.constant 0 : i32
    %c0_i32_1 = arith.constant 0 : i32
    return %arg0, %c0_i32, %c0_i32_0 : i32, i32, i32
  }
  func.func @transform_2(%arg0: i32, %arg1: i32) -> (i32, i32, i32) {
    %c0_i32 = arith.constant 0 : i32
    %c0_i32_0 = arith.constant 0 : i32
    %c0_i32_1 = arith.constant 0 : i32
    return %arg0, %c0_i32, %c0_i32_0 : i32, i32, i32
  }
  func.func @transform_3(%arg0: i32, %arg1: i32) -> (i32, i32, i32) {
    %c0_i32 = arith.constant 0 : i32
    %c0_i32_0 = arith.constant 0 : i32
    return %arg0, %arg1, %c0_i32 : i32, i32, i32
  }
}

module attributes {stable_mosaic.version = 11 : i64} {
  func.func @_gemm_kernel(%arg0: i32, %arg1: i32, %arg2: memref<128x256xbf16, #tpu.memory_space<vmem>>, %arg3: memref<256x128xbf16, #tpu.memory_space<vmem>>, %arg4: memref<128x128xbf16, #tpu.memory_space<vmem>>) attributes {dimension_semantics = [#tpu.dimension_semantics<parallel>, #tpu.dimension_semantics<parallel>], iteration_bounds = array<i64: 1, 1>, scalar_prefetch = 0 : i64, scratch_operands = 0 : i64, tpu.core_type = #tpu.core_type<tc>, window_params = [{transform_indices = @transform_0, window_bounds = array<i64: 128, 256>}, {transform_indices = @transform_1, window_bounds = array<i64: 256, 128>}, {transform_indices = @transform_2, window_bounds = array<i64: 128, 128>}]} {
    %c0 = arith.constant 0 : index
    %c0_0 = arith.constant 0 : index
    %0 = vector.load %arg2[%c0, %c0_0] : memref<128x256xbf16, #tpu.memory_space<vmem>>, vector<128x256xbf16>
    %c0_1 = arith.constant 0 : index
    %c0_2 = arith.constant 0 : index
    %1 = vector.load %arg3[%c0_1, %c0_2] : memref<256x128xbf16, #tpu.memory_space<vmem>>, vector<256x128xbf16>
    %cst = arith.constant dense<0.000000e+00> : vector<128x128xf32>
    %2 = tpu.matmul %0, %1, %cst {dimension_numbers = #tpu.dot_dimension_numbers<[1], [0], [0], [1], [0, 0, 1, 1], [], []>} : vector<128x256xbf16>, vector<256x128xbf16>, vector<128x128xf32> -> vector<128x128xf32>
    %3 = arith.truncf %2 : vector<128x128xf32> to vector<128x128xbf16>
    %c0_3 = arith.constant 0 : index
    %c0_4 = arith.constant 0 : index
    %4 = vector.load %arg4[%c0_3, %c0_4] : memref<128x128xbf16, #tpu.memory_space<vmem>>, vector<128x128xbf16>
    tpu.vector_store %arg4[%c0_3, %c0_4], %3 {strides = array<i32>} : memref<128x128xbf16, #tpu.memory_space<vmem>>, vector<128x128xbf16>,
    return
  }
  func.func @transform_0(%arg0: i32, %arg1: i32) -> (i32, i32) {
    %c0_i32 = arith.constant 0 : i32
    %c0_i32_0 = arith.constant 0 : i32
    return %arg0, %c0_i32 : i32, i32
  }
  func.func @transform_1(%arg0: i32, %arg1: i32) -> (i32, i32) {
    %c0_i32 = arith.constant 0 : i32
    %c0_i32_0 = arith.constant 0 : i32
    return %c0_i32, %arg1 : i32, i32
  }
  func.func @transform_2(%arg0: i32, %arg1: i32) -> (i32, i32) {
    %c0_i32 = arith.constant 0 : i32
    return %arg0, %arg1 : i32, i32
  }
}

module attributes {stable_mosaic.version = 11 : i64} {
  func.func @_fused_conv_kernel(%arg0: i32, %arg1: memref<1x384x288xbf16, #tpu.memory_space<vmem>>, %arg2: memref<9x288x3xbf16, #tpu.memory_space<vmem>>, %arg3: memref<1x3xf32, #tpu.memory_space<vmem>>, %arg4: memref<1x256x3xf32, #tpu.memory_space<vmem>>) attributes {dimension_semantics = [#tpu.dimension_semantics<parallel>], iteration_bounds = array<i64: 2>, scalar_prefetch = 0 : i64, scratch_operands = 0 : i64, tpu.core_type = #tpu.core_type<tc>, window_params = [{transform_indices = @transform_0, window_bounds = array<i64: 1, 384, 288>}, {pipeline_mode = #tpu.pipeline_mode<synchronous>, transform_indices = @transform_1, window_bounds = array<i64: 9, 288, 3>}, {pipeline_mode = #tpu.pipeline_mode<synchronous>, transform_indices = @transform_2, window_bounds = array<i64: 1, 3>}, {transform_indices = @transform_3, window_bounds = array<i64: 1, 256, 3>}]} {
    %c0 = arith.constant 0 : index
    %c0_0 = arith.constant 0 : index
    %c0_1 = arith.constant 0 : index
    %0 = vector.load %arg1[%c0, %c0_0, %c0_1] : memref<1x384x288xbf16, #tpu.memory_space<vmem>>, vector<1x256x288xbf16>
    %1 = vector.shape_cast %0 : vector<1x256x288xbf16> to vector<256x288xbf16>
    %c0_2 = arith.constant 0 : index
    %c0_3 = arith.constant 0 : index
    %c0_4 = arith.constant 0 : index
    %2 = vector.load %arg2[%c0_2, %c0_3, %c0_4] : memref<9x288x3xbf16, #tpu.memory_space<vmem>>, vector<1x288x3xbf16>
    %3 = vector.shape_cast %2 : vector<1x288x3xbf16> to vector<288x3xbf16>
    %cst = arith.constant dense<0.000000e+00> : vector<256x3xf32>
    %4 = tpu.matmul %1, %3, %cst {dimension_numbers = #tpu.dot_dimension_numbers<[1], [0], [0], [1], [0, 0, 1, 1], [], []>} : vector<256x288xbf16>, vector<288x3xbf16>, vector<256x3xf32> -> vector<256x3xf32>
    %c0_5 = arith.constant 0 : index
    %c16 = arith.constant 16 : index
    %c0_6 = arith.constant 0 : index
    %5 = vector.load %arg1[%c0_5, %c16, %c0_6] : memref<1x384x288xbf16, #tpu.memory_space<vmem>>, vector<1x256x288xbf16>
    %6 = vector.shape_cast %5 : vector<1x256x288xbf16> to vector<256x288xbf16>
    %c1 = arith.constant 1 : index
    %c0_7 = arith.constant 0 : index
    %c0_8 = arith.constant 0 : index
    %7 = vector.load %arg2[%c1, %c0_7, %c0_8] : memref<9x288x3xbf16, #tpu.memory_space<vmem>>, vector<1x288x3xbf16>
    %8 = vector.shape_cast %7 : vector<1x288x3xbf16> to vector<288x3xbf16>
    %cst_9 = arith.constant dense<0.000000e+00> : vector<256x3xf32>
    %9 = tpu.matmul %6, %8, %cst_9 {dimension_numbers = #tpu.dot_dimension_numbers<[1], [0], [0], [1], [0, 0, 1, 1], [], []>} : vector<256x288xbf16>, vector<288x3xbf16>, vector<256x3xf32> -> vector<256x3xf32>
    %10 = arith.addf %4, %9 : vector<256x3xf32>
    %c0_10 = arith.constant 0 : index
    %c32 = arith.constant 32 : index
    %c0_11 = arith.constant 0 : index
    %11 = vector.load %arg1[%c0_10, %c32, %c0_11] : memref<1x384x288xbf16, #tpu.memory_space<vmem>>, vector<1x256x288xbf16>
    %12 = vector.shape_cast %11 : vector<1x256x288xbf16> to vector<256x288xbf16>
    %c2 = arith.constant 2 : index
    %c0_12 = arith.constant 0 : index
    %c0_13 = arith.constant 0 : index
    %13 = vector.load %arg2[%c2, %c0_12, %c0_13] : memref<9x288x3xbf16, #tpu.memory_space<vmem>>, vector<1x288x3xbf16>
    %14 = vector.shape_cast %13 : vector<1x288x3xbf16> to vector<288x3xbf16>
    %cst_14 = arith.constant dense<0.000000e+00> : vector<256x3xf32>
    %15 = tpu.matmul %12, %14, %cst_14 {dimension_numbers = #tpu.dot_dimension_numbers<[1], [0], [0], [1], [0, 0, 1, 1], [], []>} : vector<256x288xbf16>, vector<288x3xbf16>, vector<256x3xf32> -> vector<256x3xf32>
    %16 = arith.addf %10, %15 : vector<256x3xf32>
    %c0_15 = arith.constant 0 : index
    %c48 = arith.constant 48 : index
    %c0_16 = arith.constant 0 : index
    %17 = vector.load %arg1[%c0_15, %c48, %c0_16] : memref<1x384x288xbf16, #tpu.memory_space<vmem>>, vector<1x256x288xbf16>
    %18 = vector.shape_cast %17 : vector<1x256x288xbf16> to vector<256x288xbf16>
    %c3 = arith.constant 3 : index
    %c0_17 = arith.constant 0 : index
    %c0_18 = arith.constant 0 : index
    %19 = vector.load %arg2[%c3, %c0_17, %c0_18] : memref<9x288x3xbf16, #tpu.memory_space<vmem>>, vector<1x288x3xbf16>
    %20 = vector.shape_cast %19 : vector<1x288x3xbf16> to vector<288x3xbf16>
    %cst_19 = arith.constant dense<0.000000e+00> : vector<256x3xf32>
    %21 = tpu.matmul %18, %20, %cst_19 {dimension_numbers = #tpu.dot_dimension_numbers<[1], [0], [0], [1], [0, 0, 1, 1], [], []>} : vector<256x288xbf16>, vector<288x3xbf16>, vector<256x3xf32> -> vector<256x3xf32>
    %22 = arith.addf %16, %21 : vector<256x3xf32>
    %c0_20 = arith.constant 0 : index
    %c64 = arith.constant 64 : index
    %c0_21 = arith.constant 0 : index
    %23 = vector.load %arg1[%c0_20, %c64, %c0_21] : memref<1x384x288xbf16, #tpu.memory_space<vmem>>, vector<1x256x288xbf16>
    %24 = vector.shape_cast %23 : vector<1x256x288xbf16> to vector<256x288xbf16>
    %c4 = arith.constant 4 : index
    %c0_22 = arith.constant 0 : index
    %c0_23 = arith.constant 0 : index
    %25 = vector.load %arg2[%c4, %c0_22, %c0_23] : memref<9x288x3xbf16, #tpu.memory_space<vmem>>, vector<1x288x3xbf16>
    %26 = vector.shape_cast %25 : vector<1x288x3xbf16> to vector<288x3xbf16>
    %cst_24 = arith.constant dense<0.000000e+00> : vector<256x3xf32>
    %27 = tpu.matmul %24, %26, %cst_24 {dimension_numbers = #tpu.dot_dimension_numbers<[1], [0], [0], [1], [0, 0, 1, 1], [], []>} : vector<256x288xbf16>, vector<288x3xbf16>, vector<256x3xf32> -> vector<256x3xf32>
    %28 = arith.addf %22, %27 : vector<256x3xf32>
    %c0_25 = arith.constant 0 : index
    %c80 = arith.constant 80 : index
    %c0_26 = arith.constant 0 : index
    %29 = vector.load %arg1[%c0_25, %c80, %c0_26] : memref<1x384x288xbf16, #tpu.memory_space<vmem>>, vector<1x256x288xbf16>
    %30 = vector.shape_cast %29 : vector<1x256x288xbf16> to vector<256x288xbf16>
    %c5 = arith.constant 5 : index
    %c0_27 = arith.constant 0 : index
    %c0_28 = arith.constant 0 : index
    %31 = vector.load %arg2[%c5, %c0_27, %c0_28] : memref<9x288x3xbf16, #tpu.memory_space<vmem>>, vector<1x288x3xbf16>
    %32 = vector.shape_cast %31 : vector<1x288x3xbf16> to vector<288x3xbf16>
    %cst_29 = arith.constant dense<0.000000e+00> : vector<256x3xf32>
    %33 = tpu.matmul %30, %32, %cst_29 {dimension_numbers = #tpu.dot_dimension_numbers<[1], [0], [0], [1], [0, 0, 1, 1], [], []>} : vector<256x288xbf16>, vector<288x3xbf16>, vector<256x3xf32> -> vector<256x3xf32>
    %34 = arith.addf %28, %33 : vector<256x3xf32>
    %c0_30 = arith.constant 0 : index
    %c96 = arith.constant 96 : index
    %c0_31 = arith.constant 0 : index
    %35 = vector.load %arg1[%c0_30, %c96, %c0_31] : memref<1x384x288xbf16, #tpu.memory_space<vmem>>, vector<1x256x288xbf16>
    %36 = vector.shape_cast %35 : vector<1x256x288xbf16> to vector<256x288xbf16>
    %c6 = arith.constant 6 : index
    %c0_32 = arith.constant 0 : index
    %c0_33 = arith.constant 0 : index
    %37 = vector.load %arg2[%c6, %c0_32, %c0_33] : memref<9x288x3xbf16, #tpu.memory_space<vmem>>, vector<1x288x3xbf16>
    %38 = vector.shape_cast %37 : vector<1x288x3xbf16> to vector<288x3xbf16>
    %cst_34 = arith.constant dense<0.000000e+00> : vector<256x3xf32>
    %39 = tpu.matmul %36, %38, %cst_34 {dimension_numbers = #tpu.dot_dimension_numbers<[1], [0], [0], [1], [0, 0, 1, 1], [], []>} : vector<256x288xbf16>, vector<288x3xbf16>, vector<256x3xf32> -> vector<256x3xf32>
    %40 = arith.addf %34, %39 : vector<256x3xf32>
    %c0_35 = arith.constant 0 : index
    %c112 = arith.constant 112 : index
    %c0_36 = arith.constant 0 : index
    %41 = vector.load %arg1[%c0_35, %c112, %c0_36] : memref<1x384x288xbf16, #tpu.memory_space<vmem>>, vector<1x256x288xbf16>
    %42 = vector.shape_cast %41 : vector<1x256x288xbf16> to vector<256x288xbf16>
    %c7 = arith.constant 7 : index
    %c0_37 = arith.constant 0 : index
    %c0_38 = arith.constant 0 : index
    %43 = vector.load %arg2[%c7, %c0_37, %c0_38] : memref<9x288x3xbf16, #tpu.memory_space<vmem>>, vector<1x288x3xbf16>
    %44 = vector.shape_cast %43 : vector<1x288x3xbf16> to vector<288x3xbf16>
    %cst_39 = arith.constant dense<0.000000e+00> : vector<256x3xf32>
    %45 = tpu.matmul %42, %44, %cst_39 {dimension_numbers = #tpu.dot_dimension_numbers<[1], [0], [0], [1], [0, 0, 1, 1], [], []>} : vector<256x288xbf16>, vector<288x3xbf16>, vector<256x3xf32> -> vector<256x3xf32>
    %46 = arith.addf %40, %45 : vector<256x3xf32>
    %c0_40 = arith.constant 0 : index
    %c128 = arith.constant 128 : index
    %c0_41 = arith.constant 0 : index
    %47 = vector.load %arg1[%c0_40, %c128, %c0_41] : memref<1x384x288xbf16, #tpu.memory_space<vmem>>, vector<1x256x288xbf16>
    %48 = vector.shape_cast %47 : vector<1x256x288xbf16> to vector<256x288xbf16>
    %c8 = arith.constant 8 : index
    %c0_42 = arith.constant 0 : index
    %c0_43 = arith.constant 0 : index
    %49 = vector.load %arg2[%c8, %c0_42, %c0_43] : memref<9x288x3xbf16, #tpu.memory_space<vmem>>, vector<1x288x3xbf16>
    %50 = vector.shape_cast %49 : vector<1x288x3xbf16> to vector<288x3xbf16>
    %cst_44 = arith.constant dense<0.000000e+00> : vector<256x3xf32>
    %51 = tpu.matmul %48, %50, %cst_44 {dimension_numbers = #tpu.dot_dimension_numbers<[1], [0], [0], [1], [0, 0, 1, 1], [], []>} : vector<256x288xbf16>, vector<288x3xbf16>, vector<256x3xf32> -> vector<256x3xf32>
    %52 = arith.addf %46, %51 : vector<256x3xf32>
    %c0_45 = arith.constant 0 : index
    %c0_46 = arith.constant 0 : index
    %53 = vector.load %arg3[%c0_45, %c0_46] : memref<1x3xf32, #tpu.memory_space<vmem>>, vector<1x3xf32>
    %54 = vector.broadcast %53 : vector<1x3xf32> to vector<256x3xf32>
    %55 = arith.addf %52, %54 : vector<256x3xf32>
    %56 = vector.shape_cast %55 : vector<256x3xf32> to vector<1x256x3xf32>
    %c0_47 = arith.constant 0 : index
    %c0_48 = arith.constant 0 : index
    %c0_49 = arith.constant 0 : index
    %57 = vector.load %arg4[%c0_47, %c0_48, %c0_49] : memref<1x256x3xf32, #tpu.memory_space<vmem>>, vector<1x256x3xf32>
    tpu.vector_store %arg4[%c0_47, %c0_48, %c0_49], %56 {strides = array<i32>} : memref<1x256x3xf32, #tpu.memory_space<vmem>>, vector<1x256x3xf32>,
    return
  }
  func.func @transform_0(%arg0: i32) -> (i32, i32, i32) {
    %c0_i32 = arith.constant 0 : i32
    %c0_i32_0 = arith.constant 0 : i32
    %c0_i32_1 = arith.constant 0 : i32
    return %arg0, %c0_i32, %c0_i32_0 : i32, i32, i32
  }
  func.func @transform_1(%arg0: i32) -> (i32, i32, i32) {
    %c0_i32 = arith.constant 0 : i32
    %c0_i32_0 = arith.constant 0 : i32
    %c0_i32_1 = arith.constant 0 : i32
    %c0_i32_2 = arith.constant 0 : i32
    return %c0_i32, %c0_i32_0, %c0_i32_1 : i32, i32, i32
  }
  func.func @transform_2(%arg0: i32) -> (i32, i32) {
    %c0_i32 = arith.constant 0 : i32
    %c0_i32_0 = arith.constant 0 : i32
    %c0_i32_1 = arith.constant 0 : i32
    return %c0_i32, %c0_i32_0 : i32, i32
  }
  func.func @transform_3(%arg0: i32) -> (i32, i32, i32) {
    %c0_i32 = arith.constant 0 : i32
    %c0_i32_0 = arith.constant 0 : i32
    %c0_i32_1 = arith.constant 0 : i32
    return %arg0, %c0_i32, %c0_i32_0 : i32, i32, i32
  }
}

</mosaic_0001>

<bundles_post_ra>
// kernel: transformer_network_forward.48
= control target key start
LH: loop header
LB: loop body
LE: loop exit
PB: predicated region body
PF: predicated region fallthrough
CT: control target
= control target key end

     0   :  { %s578_s12 = smov 0   ;;  %s580_s13 = smov 0   ;;  %s626_s0 = inlined_call_operand.vmem [shape: bf16[2,64,128], index: 0, kind: input, shape index: {}]   ;;  %s627_s1 = inlined_call_operand.vmem [shape: f32[2,1,128], index: 1, kind: input, shape index: {}]   ;;  %s628_s2 = inlined_call_operand.vmem [shape: f32[2,1,128], index: 2, kind: input, shape index: {}]   ;;  %s629_s3 = inlined_call_operand.vmem [shape: bf16[2,64,128], index: 3, kind: output, shape index: {}]  }
   0x1   :  { %s582_s14 = smov 0  }
   0x2 LB: > { %s25_s15 = sadd.s32 1, %s552_s13  ;;  %p441_p0 = scmp.ge.s32.totalorder %s556_s14, 1  ;;  %s556_s14 = sphi %s582_s14, %s13_s14   ;;  %s552_s13 = sphi %s580_s13, %s631_s13   ;;  %s548_s12 = sphi %s578_s12, %s630_s12  }
   0x3   : > { %p27_p1 = scmp.ge.s32.totalorder %s25_s15, 2  ;;  %p174_p2 = scmp.lt.s32.totalorder %s556_s14, 3 }
   0x5   : > { %s633_s15 = smov (%p27_p1, %s25_s15), 0  ;;  %p175_p3 = pnand %p441_p0, %p174_p2 }
   0x6   : > { %p213_p4 = scmp.lt.s32.totalorder (!%p175_p3), %s548_s12, 1 }
   0x7   : > { %178 = sbr.rel (%p175_p3) target bundleno = 28 (0x1c), region = 32 }
   0xc   : > { %s635_s12 = smov (!%p213_p4, %s548_s12), 1 }
   0xd   : > { %s458_s16 = sshll.u32 %s635_s12, 5  ;;  %s224_s19 = scalar_lea.vmem %s627_s1, %s635_s12 }
   0xe   : > { %s220_s22 = scalar_lea.vmem %s626_s0, %s458_s16  ;;  %s227_s25 = scalar_lea.vmem %s628_s2, %s635_s12  ;;  %v446_v1 = vld [vmem:[%s224_s19] ss:$0 sm:$0xff] }
   0xf   : > { %v469_v0 = vld [vmem:[%s220_s22] sm:$0xff]   ;;  %v504_v2 = vld [vmem:[%s220_s22 + $0x8] sm:$0xff]   ;;  %v505_v7 = vld [vmem:[%s220_s22 + $0x10] sm:$0xff]   ;;  %s236_s28 = scalar_lea.vmem %s629_s3, %s458_s16 }
  0x10   : > { %v470_v3 = vunpack.c.l.bf16 %v469_v0  ;;  %v471_v4 = vunpack.c.h.bf16 %v469_v0  ;;  %v474_v5 = vunpack.c.l.bf16 %v504_v2  ;;  %v475_v6 = vunpack.c.h.bf16 %v504_v2  ;;  %v506_v8 = vld [vmem:[%s220_s22 + $0x18] sm:$0xff]   ;;  %v447_v9 = vld [vmem:[%s227_s25] ss:$0 sm:$0xff] }
  0x11   : > { %v478_v10 = vunpack.c.l.bf16 %v505_v7  ;;  %v479_v11 = vunpack.c.h.bf16 %v505_v7  ;;  %v482_v12 = vunpack.c.l.bf16 %v506_v8  ;;  %v483_v13 = vunpack.c.h.bf16 %v506_v8 }
  0x12   : > { %v261_v14 = vmul.f32 %v470_v3, %v446_v1  ;;  %v262_v15 = vmul.f32 %v471_v4, %v446_v1  ;;  %v263_v16 = vmul.f32 %v474_v5, %v446_v1  ;;  %v264_v17 = vmul.f32 %v475_v6, %v446_v1 }
  0x13   : > { %v265_v18 = vmul.f32 %v478_v10, %v446_v1  ;;  %v266_v19 = vmul.f32 %v479_v11, %v446_v1  ;;  %v267_v20 = vmul.f32 %v482_v12, %v446_v1  ;;  %v268_v21 = vmul.f32 %v483_v13, %v446_v1 }
  0x14   : > { %v276_v22 = vadd.f32 %v447_v9, %v261_v14  ;;  %v277_v23 = vadd.f32 %v447_v9, %v262_v15  ;;  %v278_v24 = vadd.f32 %v447_v9, %v263_v16  ;;  %v279_v25 = vadd.f32 %v447_v9, %v264_v17 }
  0x15   : > { %v280_v26 = vadd.f32 %v447_v9, %v265_v18  ;;  %v281_v27 = vadd.f32 %v447_v9, %v266_v19  ;;  %v282_v28 = vadd.f32 %v447_v9, %v267_v20  ;;  %v283_v29 = vadd.f32 %v447_v9, %v268_v21 }
  0x16   : > { %v284_v30 = vmax.f32 %v276_v22, 0.0  ;;  %v285_v31 = vmax.f32 %v277_v23, 0.0  ;;  %v286_v32 = vmax.f32 %v278_v24, 0.0  ;;  %v287_v33 = vmax.f32 %v279_v25, 0.0 }
  0x17   : > { %v288_v34 = vmax.f32 %v280_v26, 0.0  ;;  %v289_v35 = vmax.f32 %v281_v27, 0.0  ;;  %v290_v36 = vmax.f32 %v282_v28, 0.0  ;;  %v291_v37 = vmax.f32 %v283_v29, 0.0 }
  0x18   : > { %v487_v38 = vpack.c.bf16 %v285_v31, %v284_v30  ;;  %v492_v39 = vpack.c.bf16 %v287_v33, %v286_v32 }
  0x19   : > { %v497_v40 = vpack.c.bf16 %v289_v35, %v288_v34  ;;  %v502_v41 = vpack.c.bf16 %v291_v37, %v290_v36 }
  0x1a   : > { %488 = vst [vmem:[%s236_s28] sm:$0xff] %v487_v38   ;;  %507 = vst [vmem:[%s236_s28 + $0x8] sm:$0xff] %v492_v39  }
  0x1b   : > { %508 = vst [vmem:[%s236_s28 + $0x10] sm:$0xff] %v497_v40   ;;  %509 = vst [vmem:[%s236_s28 + $0x18] sm:$0xff] %v502_v41  }
  0x1c PF: > { %s13_s14 = sadd.s32 1, %s556_s14   ;;  %s630_s12 = smov %s552_s13 }
  0x1d   : > { %p10_p5 = scmp.ge.s32.totalorder %s13_s14, 4   ;;  %s631_s13 = smov %s633_s15 }
  0x1f   :  { %12 = sbr.rel (!%p10_p5) target bundleno = 2 (0x2), region = 68 }

// kernel: transformer_network_forward.47
= control target key start
LH: loop header
LB: loop body
LE: loop exit
PB: predicated region body
PF: predicated region fallthrough
CT: control target
= control target key end

     0   :  { %s419_s9 = smov 0   ;;  %s421_s10 = smov 0   ;;  %s465_s0 = inlined_call_operand.vmem [shape: bf16[2,64,128], index: 0, kind: input, shape index: {}]   ;;  %s466_s1 = inlined_call_operand.vmem [shape: f32[2,1,128], index: 1, kind: output, shape index: {0}]   ;;  %s467_s2 = inlined_call_operand.vmem [shape: f32[2,1,128], index: 2, kind: output, shape index: {1}]  }
   0x1   :  { %s423_s11 = smov 0  }
   0x2 LB: > { %s25_s12 = sadd.s32 1, %s397_s10  ;;  %p329_p0 = scmp.ge.s32.totalorder %s401_s11, 1  ;;  %s401_s11 = sphi %s423_s11, %s13_s11   ;;  %s397_s10 = sphi %s421_s10, %s469_s10   ;;  %s393_s9 = sphi %s419_s9, %s468_s9  }
   0x3   : > { %p27_p1 = scmp.ge.s32.totalorder %s25_s12, 2  ;;  %p134_p2 = scmp.lt.s32.totalorder %s401_s11, 3 }
   0x5   : > { %s471_s12 = smov (%p27_p1, %s25_s12), 0  ;;  %p135_p3 = pnand %p329_p0, %p134_p2 }
   0x6   : > { %p162_p4 = scmp.lt.s32.totalorder (!%p135_p3), %s393_s9, 1 }
   0x7   : > { %138 = sbr.rel (%p135_p3) target bundleno = 49 (0x31), region = 24 }
   0xc   : > { %s473_s9 = smov (!%p162_p4, %s393_s9), 1  ;;  %v403_v0 = vmov 0.0  }
   0xd   : > { %s334_s13 = sshll.u32 %s473_s9, 5  ;;  %s440_s16 = scalar_lea.vmem %s466_s1, %s473_s9 }
   0xe   : > { %s169_s19 = scalar_lea.vmem %s465_s0, %s334_s13  ;;  %181 = vst [vmem:[%s440_s16] sm:$0x1] %v403_v0  ;;  %s449_s22 = scalar_lea.vmem %s467_s2, %s473_s9 }
   0xf   : > { %v336_v1 = vld [vmem:[%s169_s19] sm:$0xff]   ;;  %v351_v2 = vld [vmem:[%s169_s19 + $0x8] sm:$0xff]   ;;  %v352_v3 = vld [vmem:[%s169_s19 + $0x10] sm:$0xff]   ;;  %182 = vst [vmem:[%s449_s22] sm:$0x1] %v403_v0 }
  0x10   : > { %v337_v4 = vunpack.c.l.bf16 %v336_v1  ;;  %v338_v5 = vunpack.c.h.bf16 %v336_v1  ;;  %v341_v6 = vunpack.c.l.bf16 %v351_v2  ;;  %v342_v7 = vunpack.c.h.bf16 %v351_v2  ;;  %v353_v13 = vld [vmem:[%s169_s19 + $0x18] sm:$0xff]  }
  0x11   : > { %v345_v8 = vunpack.c.l.bf16 %v352_v3  ;;  %v346_v14 = vunpack.c.h.bf16 %v352_v3  ;;  %v349_v18 = vunpack.c.l.bf16 %v353_v13  ;;  %v350_v25 = vunpack.c.h.bf16 %v353_v13 }
  0x12   : > { %v200_v9 = vadd.f32 %v338_v5, %v337_v4  ;;  %v216_v10 = vmul.f32 %v337_v4, %v337_v4  ;;  %v217_v11 = vmul.f32 %v338_v5, %v338_v5  ;;  %v218_v12 = vmul.f32 %v341_v6, %v341_v6 }
  0x13   : > { %v219_v16 = vmul.f32 %v342_v7, %v342_v7  ;;  %v220_v20 = vmul.f32 %v345_v8, %v345_v8  ;;  %v221_v23 = vmul.f32 %v346_v14, %v346_v14  ;;  %v222_v27 = vmul.f32 %v349_v18, %v349_v18 }
  0x14   : > { %v201_v15 = vadd.f32 %v341_v6, %v200_v9  ;;  %v224_v17 = vadd.f32 %v217_v11, %v216_v10  ;;  %v223_v30 = vmul.f32 %v350_v25, %v350_v25 }
  0x15   : > { %v199_v44 = vld [vmem:[%s440_s16] sm:$0x1] }
  0x16   : > { %v202_v19 = vadd.f32 %v342_v7, %v201_v15  ;;  %v225_v21 = vadd.f32 %v224_v17, %v218_v12  ;;  %v215_v47 = vld [vmem:[%s449_s22] sm:$0x1] }
  0x18   : > { %v203_v22 = vadd.f32 %v345_v8, %v202_v19  ;;  %v226_v24 = vadd.f32 %v225_v21, %v219_v16 }
  0x1a   : > { %v204_v26 = vadd.f32 %v346_v14, %v203_v22  ;;  %v227_v28 = vadd.f32 %v226_v24, %v220_v20 }
  0x1c   : > { %v205_v29 = vadd.f32 %v349_v18, %v204_v26  ;;  %v228_v31 = vadd.f32 %v227_v28, %v221_v23 }
  0x1e   : > { %v206_v32 = vadd.f32 %v350_v25, %v205_v29  ;;  %v229_v33 = vadd.f32 %v228_v31, %v222_v27 }
  0x20   : > { %v207_v34 = vrot.slane %v206_v32, 4  ;;  %v230_v35 = vadd.f32 %v229_v33, %v223_v30 }
  0x22   : > { %v208_v36 = vadd.f32 %v207_v34, %v206_v32  ;;  %v231_v37 = vrot.slane %v230_v35, 4 }
  0x24   : > { %v209_v38 = vrot.slane %v208_v36, 2  ;;  %v232_v39 = vadd.f32 %v231_v37, %v230_v35 }
  0x26   : > { %v210_v40 = vadd.f32 %v209_v38, %v208_v36  ;;  %v233_v41 = vrot.slane %v232_v39, 2 }
  0x28   : > { %v211_v42 = vrot.slane %v210_v40, 1  ;;  %v234_v43 = vadd.f32 %v233_v41, %v232_v39 }
  0x2a   : > { %v212_v45 = vadd.f32 %v211_v42, %v210_v40  ;;  %v235_v46 = vrot.slane %v234_v43, 1 }
  0x2c   : > { %v213_v48 = vadd.f32 %v212_v45, %v199_v44  ;;  %v236_v49 = vadd.f32 %v235_v46, %v234_v43 }
  0x2e   : > { %214 = vst [vmem:[%s440_s16] sm:$0x1] %v213_v48  ;;  %v237_v50 = vadd.f32 %v236_v49, %v215_v47 }
  0x30   : > { %238 = vst [vmem:[%s449_s22] sm:$0x1] %v237_v50 }
  0x31 PF: > { %s13_s11 = sadd.s32 1, %s401_s11   ;;  %s468_s9 = smov %s397_s10 }
  0x32   : > { %p10_p5 = scmp.ge.s32.totalorder %s13_s11, 4   ;;  %s469_s10 = smov %s471_s12 }
  0x34   :  { %12 = sbr.rel (!%p10_p5) target bundleno = 2 (0x2), region = 70 }

// kernel: transformer_network_forward.46
= control target key start
LH: loop header
LB: loop body
LE: loop exit
PB: predicated region body
PF: predicated region fallthrough
CT: control target
= control target key end

     0   :  { %s4568_s9 = smov 0   ;;  %s5509_s0 = inlined_call_operand.vmem [shape: bf16[2,384,27], index: 0, kind: input, shape index: {}]   ;;  %s5510_s1 = inlined_call_operand.vmem [shape: bf16[9,27,32], index: 1, kind: input, shape index: {}]   ;;  %s5511_s2 = inlined_call_operand.vmem [shape: bf16[2,256,32], index: 2, kind: output, shape index: {}]  }
   0x1 LB: > { %s3499_s10 = sadd.s32 4294967295, %s4550_s9   ;;  %p3503_p0 = scmp.ge.s32.totalorder %s4550_s9, 1  ;;  %s4550_s9 = sphi %s4568_s9, %s12_s9  }
   0x2   : > { %p112_p1 = scmp.lt.s32.totalorder %s4550_s9, 3 }
   0x4   : > { %p113_p2 = pnand %p3503_p0, %p112_p1 }
   0x6   : > { %116 = sbr.rel (%p113_p2) target bundleno = 510 (0x1fe), region = 28 }
   0xb   : > { %v4397_v0 = vld [vmem:[%s5510_s1 + $0x18] sm:$0x3f]   ;;  %vm328_vm0 = vcmask 1044480   ;;  %vm329_vm1 = vcmask 1045504   ;;  %v4552_v1 = vmov 65535   ;;  %p134_p3 = scmp.lt.s32.totalorder %s3499_s10, 1 }
   0xc   : > { %v330_v2 = vsel %vm328_vm0, 4294967295, %v4552_v1  ;;  %v4398_v5 = vld [vmem:[%s5510_s1 + $0x10] sm:$0xff]   ;;  %v4403_v6 = vld [vmem:[%s5510_s1 + $0x8] sm:$0x3f]   ;;  %vm279_vm2 = vcmask 220160   ;;  %v4413_v14 = vld [vmem:[%s5510_s1] sm:$0xff]  }
   0xd   : > { %v4579_v3 = vsel %vm329_vm1, %v330_v2, 0  ;;  %s5595_s10 = smov (!%p134_p3, %s3499_s10), 1  ;;  %v4404_v7 = vld [vmem:[%s5510_s1 + $0x28] sm:$0x3f]   ;;  %v4422_v12 = vld [vmem:[%s5510_s1 + $0x38] sm:$0x3f]  }
   0xe   : > { %v333_v4 = vand.u32 %v4397_v0, %v4579_v3  ;;  %s4387_s19 = smul.u32 192, %s5595_s10  ;;  %v516_v9 = vand.u32 %v4403_v6, %v4579_v3  ;;  %v856_v10 = vand.u32 %v4404_v7, %v4579_v3  ;;  %v4414_v15 = vld [vmem:[%s5510_s1 + $0x20] sm:$0xff]   ;;  %v1228_v20 = vand.u32 %v4422_v12, %v4579_v3  ;;  %v4423_v28 = vld [vmem:[%s5510_s1 + $0x48] sm:$0x3f]   ;;  %v4432_v35 = vld [vmem:[%s5510_s1 + $0x30] sm:$0xff]  }
   0xf   : > { %v1600_v29 = vand.u32 %v4423_v28, %v4579_v3  ;;  %v4433_v37 = vld [vmem:[%s5510_s1 + $0x40] sm:$0xff]   ;;  %v4444_v38 = vld [vmem:[%s5510_s1 + $0x58] sm:$0x3f]   ;;  %v4445_v39 = vld [vmem:[%s5510_s1 + $0x68] sm:$0x3f]   ;;  %vm3411_vm3 = vcmask 257024  }
  0x10   : > { %4059 = vmatprep.subr.bf16.mxu0 %v333_v4  ;;  %4383 = vmatprep.subr.bf16.mxu1 %v333_v4  ;;  %s4597_s22 = scalar_lea.vmem %s5509_s0, %s4387_s19  ;;  %v1972_v41 = vand.u32 %v4444_v38, %v4579_v3  ;;  %v2344_v43 = vand.u32 %v4445_v39, %v4579_v3  ;;  %v4462_v61 = vld [vmem:[%s5510_s1 + $0x50] sm:$0xff]   ;;  %v4480_v62 = vld [vmem:[%s5510_s1 + $0x78] sm:$0x3f]   ;;  %v4481_v63 = vld [vmem:[%s5510_s1 + $0x88] sm:$0x3f]  }
  0x11   : > { %4060 = vmatpush3.bf16.msra.mxu0 %v333_v4  ;;  %4385 = vmatpush3.bf16.msra.mxu1 %v333_v4  ;;  %v4399_v8 = vld [vmem:[%s4597_s22 + $0x8] sm:$0xff]   ;;  %v4401_v13 = vld [vmem:[%s4597_s22 + $0x10] sm:$0xff]   ;;  %v4622_v17 = vld [vmem:[%s4597_s22 + $0x18] sm:$0xff]   ;;  %v4768_v2 = vand.u32 %v4480_v62, %v4579_v3  ;;  %v4771_v4 = vand.u32 %v4481_v63, %v4579_v3 }
  0x12   : > { %4061 = vmatprep.subr.bf16.mxu0 %v4398_v5  ;;  %4384 = vmatprep.subr.bf16.mxu1 %v4398_v5  ;;  %v4603_v11 = vld [vmem:[%s4597_s22 + $0x48] sm:$0xff]   ;;  %v4619_v16 = vld [vmem:[%s4597_s22 + $0x50] sm:$0xff]   ;;  %v4628_v18 = vld [vmem:[%s4597_s22 + $0x58] sm:$0xff]  }
  0x13   : > { %4063 = vmatprep.mubr.msk.bf16.mxu0 %vm279_vm2, %v4399_v8  ;;  %4079 = vmatprep.mubr.msk.bf16.mxu1 %vm279_vm2, %v4603_v11  ;;  %v4407_v19 = vld [vmem:[%s4597_s22 + $0x20] sm:$0xff]   ;;  %v4409_v22 = vld [vmem:[%s4597_s22 + $0x28] sm:$0xff]   ;;  %v4411_v24 = vld [vmem:[%s4597_s22 + $0x30] sm:$0xff]  }
  0x14   : > { %v4637_v21 = vld [vmem:[%s4597_s22 + $0x60] sm:$0xff]   ;;  %v4641_v23 = vld [vmem:[%s4597_s22 + $0x68] sm:$0xff]   ;;  %v4651_v25 = vld [vmem:[%s4597_s22 + $0x70] sm:$0xff]  }
  0x15   : > { %4062 = vmatpush3.bf16.msra.mxu0 %v4398_v5  ;;  %4386 = vmatpush3.bf16.msra.mxu1 %v4398_v5  ;;  %v4415_v26 = vld [vmem:[%s4597_s22 + $0x38] sm:$0xff]   ;;  %v4417_v30 = vld [vmem:[%s4597_s22 + $0x40] sm:$0xff]   ;;  %v4420_v33 = vld [vmem:[%s4597_s22 + $0x10] sm:$0xff]  }
  0x16   : > { %4095 = vmatprep.subr.bf16.mxu1 %v516_v9  ;;  %4131 = vmatprep.subr.bf16.mxu0 %v856_v10  ;;  %v4655_v27 = vld [vmem:[%s4597_s22 + $0x78] sm:$0xff]   ;;  %v4418_v31 = vld [vmem:[%s4597_s22 + $0x80] sm:$0xff]   ;;  %v4425_v40 = vld [vmem:[%s4597_s22 + $0x28] sm:$0xff]  }
  0x17   : > { %v4419_v32 = vld [vmem:[%s4597_s22] sm:$0xff]   ;;  %v4421_v34 = vld [vmem:[%s4597_s22 + $0x18] sm:$0xff]   ;;  %v4426_v42 = vld [vmem:[%s4597_s22 + $0x30] sm:$0xff]  }
  0x18   : > { %4064 = vmatmul.mubr.msk.bf16.vlgmr.msra.gmra.mxu0 %vm279_vm2, %v4401_v13  ;;  %4080 = vmatmul.mubr.msk.bf16.vlgmr.msra.gmra.mxu1 %vm279_vm2, %v4619_v16  ;;  %v4424_v36 = vld [vmem:[%s4597_s22 + $0x20] sm:$0xff]   ;;  %v4427_v44 = vld [vmem:[%s4597_s22 + $0x38] sm:$0xff]   ;;  %v4429_v46 = vld [vmem:[%s4597_s22 + $0x48] sm:$0xff]  }
  0x19   : > { %4096 = vmatpush3.bf16.msra.mxu1 %v516_v9  ;;  %4132 = vmatpush3.bf16.msra.mxu0 %v856_v10  ;;  %v4428_v45 = vld [vmem:[%s4597_s22 + $0x40] sm:$0xff]   ;;  %v4430_v47 = vld [vmem:[%s4597_s22 + $0x50] sm:$0xff]   ;;  %v4431_v48 = vld [vmem:[%s4597_s22 + $0x58] sm:$0xff]  }
  0x1a   : > { %4067 = vmatprep.mubr.msk.bf16.mxu0 %vm279_vm2, %v4622_v17  ;;  %4083 = vmatprep.mubr.msk.bf16.mxu1 %vm279_vm2, %v4628_v18  ;;  %v4434_v49 = vld [vmem:[%s4597_s22 + $0x60] sm:$0xff]   ;;  %v4435_v50 = vld [vmem:[%s4597_s22 + $0x68] sm:$0xff]   ;;  %v4436_v51 = vld [vmem:[%s4597_s22 + $0x70] sm:$0xff]  }
  0x1b   : > { %4097 = vmatprep.subr.bf16.mxu1 %v4413_v14  ;;  %4133 = vmatprep.subr.bf16.mxu0 %v4414_v15  ;;  %v4437_v52 = vld [vmem:[%s4597_s22 + $0x78] sm:$0xff]   ;;  %v4438_v53 = vld [vmem:[%s4597_s22 + $0x80] sm:$0xff]   ;;  %v4439_v54 = vld [vmem:[%s4597_s22 + $0x88] sm:$0xff]  }
  0x1c   : > { %v4440_v55 = vld [vmem:[%s4597_s22 + $0x18] sm:$0xff]   ;;  %v4441_v56 = vld [vmem:[%s4597_s22 + $0x20] sm:$0xff]   ;;  %v4443_v58 = vld [vmem:[%s4597_s22 + $0x28] sm:$0xff]  }
  0x1d   : > { %4098 = vmatpush3.bf16.msra.mxu1 %v4413_v14  ;;  %4134 = vmatpush3.bf16.msra.mxu0 %v4414_v15  ;;  %v4442_v57 = vld [vmem:[%s4597_s22 + $0x20] sm:$0xff]   ;;  %v4446_v59 = vld [vmem:[%s4597_s22 + $0x28] sm:$0xff]   ;;  %v4447_v60 = vld [vmem:[%s4597_s22 + $0x30] sm:$0xff]  }
  0x1e   : > { %4167 = vmatprep.subr.bf16.mxu1 %v1228_v20  ;;  %4203 = vmatprep.subr.bf16.mxu0 %v1600_v29  ;;  %v4463_v0 = vld [vmem:[%s5510_s1 + $0x60] sm:$0xff]   ;;  %v4448_v1 = vld [vmem:[%s4597_s22 + $0x30] sm:$0xff]   ;;  %v4449_v5 = vld [vmem:[%s4597_s22 + $0x38] sm:$0xff]  }
  0x1f   : > { %v4450_v6 = vld [vmem:[%s4597_s22 + $0x38] sm:$0xff]   ;;  %v4451_v7 = vld [vmem:[%s4597_s22 + $0x40] sm:$0xff]   ;;  %v4454_v9 = vld [vmem:[%s4597_s22 + $0x48] sm:$0xff]  }
  0x20   : > { %4068 = vmatmul.mubr.msk.bf16.gmra.mxu0 %vm279_vm2, %v4407_v19  ;;  %4084 = vmatmul.mubr.msk.bf16.gmra.mxu1 %vm279_vm2, %v4637_v21  ;;  %v4452_v3 = vld [vmem:[%s4597_s22 + $0x40] sm:$0xff]   ;;  %v4455_v10 = vld [vmem:[%s4597_s22 + $0x50] sm:$0xff]   ;;  %v4457_v12 = vld [vmem:[%s4597_s22 + $0x58] sm:$0xff]  }
  0x21   : > { %4071 = vmatprep.mubr.msk.bf16.mxu0 %vm279_vm2, %v4409_v22  ;;  %4087 = vmatprep.mubr.msk.bf16.mxu1 %vm279_vm2, %v4641_v23  ;;  %v4459_v14 = vld [vmem:[%s4597_s22 + $0x60] sm:$0xff]   ;;  %v4475_v28 = vld [vmem:[%s4597_s22 + $0x98] sm:$0xff]   ;;  %v4485_v38 = vld [vmem:[%s4597_s22 + $0x48] sm:$0xff]  }
  0x22   : > { %v4460_v15 = vld [vmem:[%s4597_s22 + $0x60] sm:$0xff]   ;;  %v4486_v39 = vld [vmem:[%s4597_s22 + $0x48] sm:$0xff]   ;;  %v4505_v62 = vld [vmem:[%s4597_s22 + $0x90] sm:$0xff]  }
  0x28   : > { %4072 = vmatmul.mubr.msk.bf16.gmra.mxu0 %vm279_vm2, %v4411_v24  ;;  %4088 = vmatmul.mubr.msk.bf16.gmra.mxu1 %vm279_vm2, %v4651_v25 }
  0x29   : > { %4075 = vmatprep.mubr.msk.bf16.mxu0 %vm279_vm2, %v4415_v26  ;;  %4091 = vmatprep.mubr.msk.bf16.mxu1 %vm279_vm2, %v4655_v27 }
  0x30   : > { %4076 = vmatmul.mubr.msk.bf16.gmra.mxu0 %vm279_vm2, %v4417_v30  ;;  %4092 = vmatmul.mubr.msk.bf16.gmra.mxu1 %vm279_vm2, %v4418_v31  ;;  %v4478_v31 = vld [vmem:[%s4597_s22 + $0x30] sm:$0xff]  }
  0x31   : > { %4099 = vmatprep.mubr.msk.bf16.mxu1 %vm279_vm2, %v4419_v32  ;;  %4135 = vmatprep.mubr.msk.bf16.mxu0 %vm279_vm2, %v4420_v33  ;;  %v4479_v32 = vld [vmem:[%s4597_s22 + $0x38] sm:$0xff]  }
  0x32   : > { %v4482_v33 = vld [vmem:[%s4597_s22 + $0x38] sm:$0xff]  }
  0x38   : > { %4100 = vmatmul.mubr.msk.bf16.vlgmr.msra.gmra.mxu1 %vm279_vm2, %v4399_v8  ;;  %4136 = vmatmul.mubr.msk.bf16.vlgmr.msra.gmra.mxu0 %vm279_vm2, %v4421_v34  ;;  %v4453_v8 = vld [vmem:[%s4597_s22 + $0x48] sm:$0xff]   ;;  %v4483_v34 = vld [vmem:[%s4597_s22 + $0x40] sm:$0xff]  }
  0x39   : > { %4168 = vmatpush3.bf16.msra.mxu1 %v1228_v20  ;;  %4204 = vmatpush3.bf16.msra.mxu0 %v1600_v29  ;;  %v4467_v20 = vld [vmem:[%s4597_s22 + $0x78] sm:$0xff]   ;;  %v4476_v29 = vld [vmem:[%s4597_s22 + $0x28] sm:$0xff]  }
  0x3a   : > { %4103 = vmatprep.mubr.msk.bf16.mxu1 %vm279_vm2, %v4401_v13  ;;  %4139 = vmatprep.mubr.msk.bf16.mxu0 %vm279_vm2, %v4424_v36  ;;  %v4458_v13 = vld [vmem:[%s4597_s22 + $0x58] sm:$0xff]   ;;  %v4499_v36 = vld [vmem:[%s5510_s1 + $0x80] sm:$0xff]  }
  0x3b   : > { %4169 = vmatprep.subr.bf16.mxu1 %v4432_v35  ;;  %4205 = vmatprep.subr.bf16.mxu0 %v4433_v37 }
  0x3d   : > { %4170 = vmatpush3.bf16.msra.mxu1 %v4432_v35  ;;  %4206 = vmatpush3.bf16.msra.mxu0 %v4433_v37  ;;  %v4498_v35 = vld [vmem:[%s5510_s1 + $0x70] sm:$0xff]   ;;  %v4484_v37 = vld [vmem:[%s4597_s22 + $0x40] sm:$0xff]  }
  0x3e   : > { %4239 = vmatprep.subr.bf16.mxu1 %v1972_v41  ;;  %4275 = vmatprep.subr.bf16.mxu0 %v2344_v43 }
  0x40   : > { %4104 = vmatmul.mubr.msk.bf16.gmra.mxu1 %vm279_vm2, %v4622_v17  ;;  %4140 = vmatmul.mubr.msk.bf16.gmra.mxu0 %vm279_vm2, %v4425_v40  ;;  %v4464_v17 = vld [vmem:[%s4597_s22 + $0x68] sm:$0xff]   ;;  %v4487_v40 = vld [vmem:[%s4597_s22 + $0x50] sm:$0xff]  }
  0x41   : > { %4107 = vmatprep.mubr.msk.bf16.mxu1 %vm279_vm2, %v4407_v19  ;;  %4143 = vmatprep.mubr.msk.bf16.mxu0 %vm279_vm2, %v4426_v42  ;;  %v4466_v19 = vld [vmem:[%s4597_s22 + $0x70] sm:$0xff]   ;;  %v4489_v42 = vld [vmem:[%s4597_s22 + $0x58] sm:$0xff]  }
  0x48   : > { %4108 = vmatmul.mubr.msk.bf16.gmra.mxu1 %vm279_vm2, %v4409_v22  ;;  %4144 = vmatmul.mubr.msk.bf16.gmra.mxu0 %vm279_vm2, %v4427_v44  ;;  %v4469_v22 = vld [vmem:[%s4597_s22 + $0x80] sm:$0xff]  }
  0x49   : > { %4111 = vmatprep.mubr.msk.bf16.mxu1 %vm279_vm2, %v4411_v24  ;;  %4147 = vmatprep.mubr.msk.bf16.mxu0 %vm279_vm2, %v4428_v45  ;;  %v4471_v24 = vld [vmem:[%s4597_s22 + $0x88] sm:$0xff]   ;;  %v4491_v44 = vld [vmem:[%s4597_s22 + $0x60] sm:$0xff]  }
  0x4a   : > { %v4492_v45 = vld [vmem:[%s4597_s22 + $0x60] sm:$0xff]  }
  0x50   : > { %4112 = vmatmul.mubr.msk.bf16.gmra.mxu1 %vm279_vm2, %v4415_v26  ;;  %4148 = vmatmul.mubr.msk.bf16.gmra.mxu0 %vm279_vm2, %v4429_v46  ;;  %v4473_v26 = vld [vmem:[%s4597_s22 + $0x90] sm:$0xff]   ;;  %v4493_v46 = vld [vmem:[%s4597_s22 + $0x68] sm:$0xff]  }
  0x51   : > { %4115 = vmatprep.mubr.msk.bf16.mxu1 %vm279_vm2, %v4417_v30  ;;  %4151 = vmatprep.mubr.msk.bf16.mxu0 %vm279_vm2, %v4430_v47  ;;  %v4477_v30 = vld [vmem:[%s4597_s22 + $0x30] sm:$0xff]   ;;  %v4494_v47 = vld [vmem:[%s4597_s22 + $0x68] sm:$0xff]  }
  0x58   : > { %4116 = vmatmul.mubr.msk.bf16.gmra.mxu1 %vm279_vm2, %v4603_v11  ;;  %4152 = vmatmul.mubr.msk.bf16.gmra.mxu0 %vm279_vm2, %v4431_v48  ;;  %v4456_v11 = vld [vmem:[%s4597_s22 + $0x50] sm:$0xff]  }
  0x59   : > { %4119 = vmatprep.mubr.msk.bf16.mxu1 %vm279_vm2, %v4619_v16  ;;  %4155 = vmatprep.mubr.msk.bf16.mxu0 %vm279_vm2, %v4434_v49  ;;  %v4461_v16 = vld [vmem:[%s4597_s22 + $0x68] sm:$0xff]   ;;  %v4495_v48 = vld [vmem:[%s4597_s22 + $0x70] sm:$0xff]  }
  0x5a   : > { %v4496_v49 = vld [vmem:[%s4597_s22 + $0x70] sm:$0xff]  }
  0x60   : > { %4120 = vmatmul.mubr.msk.bf16.gmra.mxu1 %vm279_vm2, %v4628_v18  ;;  %4156 = vmatmul.mubr.msk.bf16.gmra.mxu0 %vm279_vm2, %v4435_v50  ;;  %v4465_v18 = vld [vmem:[%s4597_s22 + $0x70] sm:$0xff]   ;;  %v4497_v50 = vld [vmem:[%s4597_s22 + $0x78] sm:$0xff]  }
  0x61   : > { %4123 = vmatprep.mubr.msk.bf16.mxu1 %vm279_vm2, %v4637_v21  ;;  %4159 = vmatprep.mubr.msk.bf16.mxu0 %vm279_vm2, %v4436_v51  ;;  %v4468_v21 = vld [vmem:[%s4597_s22 + $0x78] sm:$0xff]  }
  0x62   : > { %v4500_v51 = vld [vmem:[%s4597_s22 + $0x78] sm:$0xff]  }
  0x68   : > { %4124 = vmatmul.mubr.msk.bf16.gmra.mxu1 %vm279_vm2, %v4641_v23  ;;  %4160 = vmatmul.mubr.msk.bf16.gmra.mxu0 %vm279_vm2, %v4437_v52  ;;  %v4470_v23 = vld [vmem:[%s4597_s22 + $0x80] sm:$0xff]  }
  0x69   : > { %4127 = vmatprep.mubr.msk.bf16.mxu1 %vm279_vm2, %v4651_v25  ;;  %4163 = vmatprep.mubr.msk.bf16.mxu0 %vm279_vm2, %v4438_v53  ;;  %v4472_v25 = vld [vmem:[%s4597_s22 + $0x88] sm:$0xff]   ;;  %v4501_v52 = vld [vmem:[%s4597_s22 + $0x80] sm:$0xff]  }
  0x70   : > { %4128 = vmatmul.mubr.msk.bf16.gmra.mxu1 %vm279_vm2, %v4655_v27  ;;  %4164 = vmatmul.mubr.msk.bf16.gmra.mxu0 %vm279_vm2, %v4439_v54  ;;  %v4474_v27 = vld [vmem:[%s4597_s22 + $0x90] sm:$0xff]  }
  0x71   : > { %4171 = vmatprep.mubr.msk.bf16.mxu1 %vm279_vm2, %v4440_v55  ;;  %4207 = vmatprep.mubr.msk.bf16.mxu0 %vm279_vm2, %v4441_v56 }
  0x78   : > { %4172 = vmatmul.mubr.msk.bf16.vlgmr.msra.gmra.mxu1 %vm279_vm2, %v4442_v57  ;;  %4208 = vmatmul.mubr.msk.bf16.vlgmr.msra.gmra.mxu0 %vm279_vm2, %v4443_v58 }
  0x79   : > { %4240 = vmatpush3.bf16.msra.mxu1 %v1972_v41  ;;  %4276 = vmatpush3.bf16.msra.mxu0 %v2344_v43  ;;  %v4488_v41 = vld [vmem:[%s4597_s22 + $0x50] sm:$0xff]   ;;  %v4490_v43 = vld [vmem:[%s4597_s22 + $0x58] sm:$0xff]  }
  0x7a   : > { %4175 = vmatprep.mubr.msk.bf16.mxu1 %vm279_vm2, %v4446_v59  ;;  %4211 = vmatprep.mubr.msk.bf16.mxu0 %vm279_vm2, %v4447_v60  ;;  %v4502_v59 = vld [vmem:[%s4597_s22 + $0x80] sm:$0xff]   ;;  %v4503_v60 = vld [vmem:[%s4597_s22 + $0x88] sm:$0xff]  }
  0x7b   : > { %4241 = vmatprep.subr.bf16.mxu1 %v4462_v61  ;;  %4277 = vmatprep.subr.bf16.mxu0 %v4463_v0 }
  0x7d   : > { %4242 = vmatpush3.bf16.msra.mxu1 %v4462_v61  ;;  %4278 = vmatpush3.bf16.msra.mxu0 %v4463_v0  ;;  %v4504_v61 = vld [vmem:[%s4597_s22 + $0x88] sm:$0xff]  }
  0x7e   : > { %4311 = vmatprep.subr.bf16.mxu1 %v4768_v2  ;;  %4347 = vmatprep.subr.bf16.mxu0 %v4771_v4 }
  0x80   : > { %4176 = vmatmul.mubr.msk.bf16.gmra.mxu1 %vm279_vm2, %v4448_v1  ;;  %4212 = vmatmul.mubr.msk.bf16.gmra.mxu0 %vm279_vm2, %v4449_v5 }
  0x81   : > { %4179 = vmatprep.mubr.msk.bf16.mxu1 %vm279_vm2, %v4450_v6  ;;  %4215 = vmatprep.mubr.msk.bf16.mxu0 %vm279_vm2, %v4451_v7 }
  0x88   : > { %4180 = vmatmul.mubr.msk.bf16.gmra.mxu1 %vm279_vm2, %v4452_v3  ;;  %4216 = vmatmul.mubr.msk.bf16.gmra.mxu0 %vm279_vm2, %v4453_v8  ;;  %v4506_v3 = vld [vmem:[%s4597_s22 + $0x90] sm:$0xff]   ;;  %v4507_v8 = vld [vmem:[%s4597_s22 + $0x98] sm:$0xff]  }
  0x89   : > { %4183 = vmatprep.mubr.msk.bf16.mxu1 %vm279_vm2, %v4454_v9  ;;  %4219 = vmatprep.mubr.msk.bf16.mxu0 %vm279_vm2, %v4455_v10  ;;  %v4508_v9 = vld [vmem:[%s4597_s22 + $0x98] sm:$0xff]   ;;  %v4509_v10 = vld [vmem:[%s4597_s22 + $0xa0] sm:$0xff]  }
  0x90   : > { %4184 = vmatmul.mubr.msk.bf16.gmra.mxu1 %vm279_vm2, %v4456_v11  ;;  %4220 = vmatmul.mubr.msk.bf16.gmra.mxu0 %vm279_vm2, %v4457_v12 }
  0x91   : > { %4187 = vmatprep.mubr.msk.bf16.mxu1 %vm279_vm2, %v4458_v13  ;;  %4223 = vmatprep.mubr.msk.bf16.mxu0 %vm279_vm2, %v4459_v14 }
  0x98   : > { %4188 = vmatmul.mubr.msk.bf16.gmra.mxu1 %vm279_vm2, %v4460_v15  ;;  %4224 = vmatmul.mubr.msk.bf16.gmra.mxu0 %vm279_vm2, %v4461_v16 }
  0x99   : > { %4191 = vmatprep.mubr.msk.bf16.mxu1 %vm279_vm2, %v4464_v17  ;;  %4227 = vmatprep.mubr.msk.bf16.mxu0 %vm279_vm2, %v4465_v18 }
  0xa0   : > { %4192 = vmatmul.mubr.msk.bf16.gmra.mxu1 %vm279_vm2, %v4466_v19  ;;  %4228 = vmatmul.mubr.msk.bf16.gmra.mxu0 %vm279_vm2, %v4467_v20  ;;  %v4510_v19 = vld [vmem:[%s4597_s22 + $0xa0] sm:$0xff]   ;;  %v4511_v20 = vld [vmem:[%s4597_s22 + $0xa8] sm:$0xff]  }
  0xa1   : > { %4195 = vmatprep.mubr.msk.bf16.mxu1 %vm279_vm2, %v4468_v21  ;;  %4231 = vmatprep.mubr.msk.bf16.mxu0 %vm279_vm2, %v4469_v22  ;;  %v4512_v21 = vld [vmem:[%s4597_s22 + $0x38] sm:$0xff]   ;;  %v4513_v22 = vld [vmem:[%s4597_s22 + $0x40] sm:$0xff]  }
  0xa8   : > { %4196 = vmatmul.mubr.msk.bf16.gmra.mxu1 %vm279_vm2, %v4470_v23  ;;  %4232 = vmatmul.mubr.msk.bf16.gmra.mxu0 %vm279_vm2, %v4471_v24 }
  0xa9   : > { %4199 = vmatprep.mubr.msk.bf16.mxu1 %vm279_vm2, %v4472_v25  ;;  %4235 = vmatprep.mubr.msk.bf16.mxu0 %vm279_vm2, %v4473_v26 }
  0xb0   : > { %4200 = vmatmul.mubr.msk.bf16.gmra.mxu1 %vm279_vm2, %v4474_v27  ;;  %4236 = vmatmul.mubr.msk.bf16.gmra.mxu0 %vm279_vm2, %v4475_v28 }
  0xb1   : > { %4243 = vmatprep.mubr.msk.bf16.mxu1 %vm279_vm2, %v4476_v29  ;;  %4279 = vmatprep.mubr.msk.bf16.mxu0 %vm279_vm2, %v4477_v30 }
  0xb8   : > { %4244 = vmatmul.mubr.msk.bf16.vlgmr.msra.gmra.mxu1 %vm279_vm2, %v4478_v31  ;;  %4280 = vmatmul.mubr.msk.bf16.vlgmr.msra.gmra.mxu0 %vm279_vm2, %v4479_v32  ;;  %v4514_v31 = vld [vmem:[%s4597_s22 + $0x40] sm:$0xff]   ;;  %v4515_v32 = vld [vmem:[%s4597_s22 + $0x48] sm:$0xff]  }
  0xb9   : > { %4312 = vmatpush3.bf16.msra.mxu1 %v4768_v2  ;;  %4348 = vmatpush3.bf16.msra.mxu0 %v4771_v4 }
  0xba   : > { %4247 = vmatprep.mubr.msk.bf16.mxu1 %vm279_vm2, %v4482_v33  ;;  %4283 = vmatprep.mubr.msk.bf16.mxu0 %vm279_vm2, %v4483_v34  ;;  %v4516_v33 = vld [vmem:[%s4597_s22 + $0x48] sm:$0xff]   ;;  %v4517_v34 = vld [vmem:[%s4597_s22 + $0x50] sm:$0xff]  }
  0xbb   : > { %4313 = vmatprep.subr.bf16.mxu1 %v4498_v35  ;;  %4349 = vmatprep.subr.bf16.mxu0 %v4499_v36 }
  0xbd   : > { %4314 = vmatpush3.bf16.msra.mxu1 %v4498_v35  ;;  %4350 = vmatpush3.bf16.msra.mxu0 %v4499_v36 }
  0xc0   : > { %4248 = vmatmul.mubr.msk.bf16.gmra.mxu1 %vm279_vm2, %v4484_v37  ;;  %4284 = vmatmul.mubr.msk.bf16.gmra.mxu0 %vm279_vm2, %v4485_v38 }
  0xc1   : > { %4251 = vmatprep.mubr.msk.bf16.mxu1 %vm279_vm2, %v4486_v39  ;;  %4287 = vmatprep.mubr.msk.bf16.mxu0 %vm279_vm2, %v4487_v40 }
  0xc8   : > { %4252 = vmatmul.mubr.msk.bf16.gmra.mxu1 %vm279_vm2, %v4488_v41  ;;  %4288 = vmatmul.mubr.msk.bf16.gmra.mxu0 %vm279_vm2, %v4489_v42 }
  0xc9   : > { %4255 = vmatprep.mubr.msk.bf16.mxu1 %vm279_vm2, %v4490_v43  ;;  %4291 = vmatprep.mubr.msk.bf16.mxu0 %vm279_vm2, %v4491_v44 }
  0xd0   : > { %4256 = vmatmul.mubr.msk.bf16.gmra.mxu1 %vm279_vm2, %v4492_v45  ;;  %4292 = vmatmul.mubr.msk.bf16.gmra.mxu0 %vm279_vm2, %v4493_v46  ;;  %v4518_v46 = vld [vmem:[%s4597_s22 + $0x50] sm:$0xff]  }
  0xd1   : > { %4259 = vmatprep.mubr.msk.bf16.mxu1 %vm279_vm2, %v4494_v47  ;;  %4295 = vmatprep.mubr.msk.bf16.mxu0 %vm279_vm2, %v4495_v48  ;;  %v4519_v47 = vld [vmem:[%s4597_s22 + $0x58] sm:$0xff]  }
  0xd8   : > { %v4874_v53 = vpop.f32.mrf.mxu0  ;;  %v4876_v54 = vpop.f32.mrf.mxu1  ;;  %4260 = vmatmul.mubr.msk.bf16.gmra.mxu1 %vm279_vm2, %v4496_v49  ;;  %4296 = vmatmul.mubr.msk.bf16.gmra.mxu0 %vm279_vm2, %v4497_v50  ;;  %v4520_v50 = vld [vmem:[%s4597_s22 + $0x58] sm:$0xff]  }
  0xd9   : > { %4263 = vmatprep.mubr.msk.bf16.mxu1 %vm279_vm2, %v4500_v51  ;;  %4299 = vmatprep.mubr.msk.bf16.mxu0 %vm279_vm2, %v4501_v52  ;;  %v4521_v51 = vld [vmem:[%s4597_s22 + $0x60] sm:$0xff]  }
  0xda   : > { %v4882_v55 = vpop.f32.mrf.mxu0  ;;  %v4884_v56 = vpop.f32.mrf.mxu1 }
  0xdc   : > { %v4886_v57 = vpop.f32.mrf.mxu0  ;;  %v4888_v58 = vpop.f32.mrf.mxu1 }
  0xde   : > { %v4894_v63 = vpop.f32.mrf.mxu0  ;;  %v4896_v0 = vpop.f32.mrf.mxu1 }
  0xe0   : > { %v4898_v1 = vpop.f32.mrf.mxu0  ;;  %v4900_v2 = vpop.f32.mrf.mxu1  ;;  %4264 = vmatmul.mubr.msk.bf16.gmra.mxu1 %vm279_vm2, %v4502_v59  ;;  %4300 = vmatmul.mubr.msk.bf16.gmra.mxu0 %vm279_vm2, %v4503_v60 }
  0xe1   : > { %4267 = vmatprep.mubr.msk.bf16.mxu1 %vm279_vm2, %v4504_v61  ;;  %4303 = vmatprep.mubr.msk.bf16.mxu0 %vm279_vm2, %v4505_v62 }
  0xe2   : > { %v4906_v4 = vpop.f32.mrf.mxu0  ;;  %v4908_v5 = vpop.f32.mrf.mxu1 }
  0xe4   : > { %v4910_v6 = vpop.f32.mrf.mxu0  ;;  %v4912_v7 = vpop.f32.mrf.mxu1 }
  0xe6   : > { %v4918_v11 = vpop.f32.mrf.mxu0  ;;  %v4920_v12 = vpop.f32.mrf.mxu1 }
  0xe8   : > { %v4922_v13 = vpop.f32.mrf.mxu0  ;;  %v4924_v14 = vpop.f32.mrf.mxu1  ;;  %4268 = vmatmul.mubr.msk.bf16.gmra.mxu1 %vm279_vm2, %v4506_v3  ;;  %4304 = vmatmul.mubr.msk.bf16.gmra.mxu0 %vm279_vm2, %v4507_v8 }
  0xe9   : > { %4271 = vmatprep.mubr.msk.bf16.mxu1 %vm279_vm2, %v4508_v9  ;;  %4307 = vmatprep.mubr.msk.bf16.mxu0 %vm279_vm2, %v4509_v10 }
  0xea   : > { %v4930_v15 = vpop.f32.mrf.mxu0  ;;  %v4932_v16 = vpop.f32.mrf.mxu1 }
  0xec   : > { %v4934_v17 = vpop.f32.mrf.mxu0  ;;  %v4936_v18 = vpop.f32.mrf.mxu1 }
  0xee   : > { %v4942_v23 = vpop.f32.mrf.mxu0  ;;  %v4944_v24 = vpop.f32.mrf.mxu1 }
  0xf0   : > { %v4946_v25 = vpop.f32.mrf.mxu0  ;;  %v4948_v26 = vpop.f32.mrf.mxu1  ;;  %4272 = vmatmul.mubr.msk.bf16.gmra.mxu1 %vm279_vm2, %v4510_v19  ;;  %4308 = vmatmul.mubr.msk.bf16.gmra.mxu0 %vm279_vm2, %v4511_v20  ;;  %v4522_v20 = vld [vmem:[%s4597_s22 + $0x60] sm:$0xff]  }
  0xf1   : > { %4315 = vmatprep.mubr.msk.bf16.mxu1 %vm279_vm2, %v4512_v21  ;;  %4351 = vmatprep.mubr.msk.bf16.mxu0 %vm279_vm2, %v4513_v22  ;;  %v4523_v21 = vld [vmem:[%s4597_s22 + $0x68] sm:$0xff]  }
  0xf2   : > { %v4954_v27 = vpop.f32.mrf.mxu0  ;;  %v4956_v28 = vpop.f32.mrf.mxu1 }
  0xf4   : > { %v4958_v29 = vpop.f32.mrf.mxu0  ;;  %v4960_v30 = vpop.f32.mrf.mxu1 }
  0xf6   : > { %v4966_v35 = vpop.f32.mrf.mxu0  ;;  %v4968_v36 = vpop.f32.mrf.mxu1 }
  0xf8   : > { %v4101_v37 = vpop.f32.mrf.mxu1  ;;  %v4137_v38 = vpop.f32.mrf.mxu0  ;;  %4316 = vmatmul.mubr.msk.bf16.vlgmr.msra.gmra.mxu1 %vm279_vm2, %v4514_v31  ;;  %4352 = vmatmul.mubr.msk.bf16.vlgmr.msra.gmra.mxu0 %vm279_vm2, %v4515_v32  ;;  %v4524_v32 = vld [vmem:[%s4597_s22 + $0x68] sm:$0xff]  }
  0xf9   : > { %v561_v39 = vadd.f32 %v4101_v37, %v4874_v53  ;;  %4319 = vmatprep.mubr.msk.bf16.mxu1 %vm279_vm2, %v4516_v33  ;;  %4355 = vmatprep.mubr.msk.bf16.mxu0 %vm279_vm2, %v4517_v34 }
  0xfa   : > { %v552_v40 = vpop.f32.mrf.mxu1  ;;  %v892_v41 = vpop.f32.mrf.mxu0 }
  0xfb   : > { %v4975_v42 = vadd.f32 %v4137_v38, %v561_v39  ;;  %v553_v43 = vadd.f32 %v552_v40, %v4882_v55 }
  0xfc   : > { %v4102_v44 = vpop.f32.mrf.mxu1  ;;  %v4138_v45 = vpop.f32.mrf.mxu0 }
  0xfd   : > { %v4980_v48 = vadd.f32 %v892_v41, %v553_v43  ;;  %v564_v49 = vadd.f32 %v4102_v44, %v4886_v57 }
  0xfe   : > { %v555_v52 = vpop.f32.mrf.mxu1  ;;  %v895_v53 = vpop.f32.mrf.mxu0 }
  0xff   : > { %v4985_v59 = vadd.f32 %v4138_v45, %v564_v49  ;;  %v556_v60 = vadd.f32 %v555_v52, %v4894_v63  ;;  %v4527_v49 = vld [vmem:[%s4597_s22 + $0x78] sm:$0xff]  }
 0x100   : > { %v4105_v61 = vpop.f32.mrf.mxu1  ;;  %v4141_v55 = vpop.f32.mrf.mxu0  ;;  %4320 = vmatmul.mubr.msk.bf16.gmra.mxu1 %vm279_vm2, %v4518_v46  ;;  %4356 = vmatmul.mubr.msk.bf16.gmra.mxu0 %vm279_vm2, %v4519_v47  ;;  %v4526_v47 = vld [vmem:[%s4597_s22 + $0x70] sm:$0xff]   ;;  %v4528_v52 = vld [vmem:[%s4597_s22 + $0x78] sm:$0xff]  }
 0x101   : > { %v4990_v62 = vadd.f32 %v895_v53, %v556_v60  ;;  %v577_v57 = vadd.f32 %v4105_v61, %v4898_v1  ;;  %4323 = vmatprep.mubr.msk.bf16.mxu1 %vm279_vm2, %v4520_v50  ;;  %4359 = vmatprep.mubr.msk.bf16.mxu0 %vm279_vm2, %v4521_v51  ;;  %v4525_v1 = vld [vmem:[%s4597_s22 + $0x70] sm:$0xff]  }
 0x102   : > { %v568_v3 = vpop.f32.mrf.mxu1  ;;  %v908_v8 = vpop.f32.mrf.mxu0 }
 0x103   : > { %v4995_v63 = vadd.f32 %v4141_v55, %v577_v57  ;;  %v569_v9 = vadd.f32 %v568_v3, %v4906_v4 }
 0x104   : > { %v4106_v10 = vpop.f32.mrf.mxu1  ;;  %v4142_v19 = vpop.f32.mrf.mxu0 }
 0x105   : > { %v5000_v22 = vadd.f32 %v908_v8, %v569_v9  ;;  %v580_v31 = vadd.f32 %v4106_v10, %v4910_v6 }
 0x106   : > { %v571_v33 = vpop.f32.mrf.mxu1  ;;  %v911_v34 = vpop.f32.mrf.mxu0 }
 0x107   : > { %v5005_v37 = vadd.f32 %v4142_v19, %v580_v31  ;;  %v572_v38 = vadd.f32 %v571_v33, %v4918_v11  ;;  %v4531_v31 = vld [vmem:[%s4597_s22 + $0x88] sm:$0xff]  }
 0x108   : > { %v4109_v39 = vpop.f32.mrf.mxu1  ;;  %v4145_v4 = vpop.f32.mrf.mxu0  ;;  %4324 = vmatmul.mubr.msk.bf16.gmra.mxu1 %vm279_vm2, %v4522_v20  ;;  %4360 = vmatmul.mubr.msk.bf16.gmra.mxu0 %vm279_vm2, %v4523_v21  ;;  %v4530_v21 = vld [vmem:[%s4597_s22 + $0x80] sm:$0xff]   ;;  %v4532_v33 = vld [vmem:[%s4597_s22 + $0x88] sm:$0xff]  }
 0x109   : > { %v5010_v40 = vadd.f32 %v911_v34, %v572_v38  ;;  %v593_v6 = vadd.f32 %v4109_v39, %v4922_v13  ;;  %4327 = vmatprep.mubr.msk.bf16.mxu1 %vm279_vm2, %v4524_v32  ;;  %4363 = vmatprep.mubr.msk.bf16.mxu0 %vm279_vm2, %v4525_v1  ;;  %v4529_v13 = vld [vmem:[%s4597_s22 + $0x80] sm:$0xff]  }
 0x10a   : > { %v584_v41 = vpop.f32.mrf.mxu1  ;;  %v924_v43 = vpop.f32.mrf.mxu0 }
 0x10b   : > { %v5015_v11 = vadd.f32 %v4145_v4, %v593_v6  ;;  %v585_v44 = vadd.f32 %v584_v41, %v4930_v15 }
 0x10c   : > { %v4110_v45 = vpop.f32.mrf.mxu1  ;;  %v4146_v46 = vpop.f32.mrf.mxu0 }
 0x10d   : > { %v5020_v50 = vadd.f32 %v924_v43, %v585_v44  ;;  %v596_v51 = vadd.f32 %v4110_v45, %v4934_v17 }
 0x10e   : > { %v587_v53 = vpop.f32.mrf.mxu1  ;;  %v927_v60 = vpop.f32.mrf.mxu0 }
 0x10f   : > { %v5025_v61 = vadd.f32 %v4146_v46, %v596_v51  ;;  %v588_v55 = vadd.f32 %v587_v53, %v4942_v23  ;;  %v4535_v51 = vld [vmem:[%s4597_s22 + $0x98] sm:$0xff]  }
 0x110   : > { %v4113_v57 = vpop.f32.mrf.mxu1  ;;  %v4149_v15 = vpop.f32.mrf.mxu0  ;;  %4328 = vmatmul.mubr.msk.bf16.gmra.mxu1 %vm279_vm2, %v4526_v47  ;;  %4364 = vmatmul.mubr.msk.bf16.gmra.mxu0 %vm279_vm2, %v4527_v49  ;;  %v4534_v49 = vld [vmem:[%s4597_s22 + $0x90] sm:$0xff]   ;;  %v4536_v53 = vld [vmem:[%s4597_s22 + $0x98] sm:$0xff]  }
 0x111   : > { %v5030_v3 = vadd.f32 %v927_v60, %v588_v55  ;;  %v609_v17 = vadd.f32 %v4113_v57, %v4946_v25  ;;  %4331 = vmatprep.mubr.msk.bf16.mxu1 %vm279_vm2, %v4528_v52  ;;  %4367 = vmatprep.mubr.msk.bf16.mxu0 %vm279_vm2, %v4529_v13  ;;  %v4533_v25 = vld [vmem:[%s4597_s22 + $0x90] sm:$0xff]  }
 0x112   : > { %v600_v8 = vpop.f32.mrf.mxu1  ;;  %v940_v9 = vpop.f32.mrf.mxu0 }
 0x113   : > { %v5035_v23 = vadd.f32 %v4149_v15, %v609_v17  ;;  %v601_v10 = vadd.f32 %v600_v8, %v4954_v27 }
 0x114   : > { %v4114_v19 = vpop.f32.mrf.mxu1  ;;  %v4150_v20 = vpop.f32.mrf.mxu0 }
 0x115   : > { %v5040_v32 = vadd.f32 %v940_v9, %v601_v10  ;;  %v612_v1 = vadd.f32 %v4114_v19, %v4958_v29 }
 0x116   : > { %v603_v34 = vpop.f32.mrf.mxu1  ;;  %v943_v38 = vpop.f32.mrf.mxu0 }
 0x117   : > { %v5045_v39 = vadd.f32 %v4150_v20, %v612_v1  ;;  %v604_v4 = vadd.f32 %v603_v34, %v4966_v35  ;;  %v4539_v1 = vld [vmem:[%s4597_s22 + $0xa8] sm:$0xff]  }
 0x118   : > { %v4117_v6 = vpop.f32.mrf.mxu1  ;;  %v4153_v27 = vpop.f32.mrf.mxu0  ;;  %4332 = vmatmul.mubr.msk.bf16.gmra.mxu1 %vm279_vm2, %v4530_v21  ;;  %4368 = vmatmul.mubr.msk.bf16.gmra.mxu0 %vm279_vm2, %v4531_v31  ;;  %v4538_v31 = vld [vmem:[%s4597_s22 + $0xa0] sm:$0xff]   ;;  %v4540_v34 = vld [vmem:[%s4597_s22 + $0xa8] sm:$0xff]  }
 0x119   : > { %v5050_v41 = vadd.f32 %v943_v38, %v604_v4  ;;  %v625_v29 = vadd.f32 %v4117_v6, %v4876_v54  ;;  %4335 = vmatprep.mubr.msk.bf16.mxu1 %vm279_vm2, %v4532_v33  ;;  %4371 = vmatprep.mubr.msk.bf16.mxu0 %vm279_vm2, %v4533_v25  ;;  %v4537_v54 = vld [vmem:[%s4597_s22 + $0xa0] sm:$0xff]  }
 0x11a   : > { %v616_v43 = vpop.f32.mrf.mxu1  ;;  %v956_v44 = vpop.f32.mrf.mxu0 }
 0x11b   : > { %v5055_v35 = vadd.f32 %v4153_v27, %v625_v29  ;;  %v617_v45 = vadd.f32 %v616_v43, %v4884_v56 }
 0x11c   : > { %v4118_v46 = vpop.f32.mrf.mxu1  ;;  %v4154_v47 = vpop.f32.mrf.mxu0 }
 0x11d   : > { %v5060_v52 = vadd.f32 %v956_v44, %v617_v45  ;;  %v628_v13 = vadd.f32 %v4118_v46, %v4888_v58 }
 0x11e   : > { %v619_v60 = vpop.f32.mrf.mxu1  ;;  %v959_v55 = vpop.f32.mrf.mxu0 }
 0x11f   : > { %v5065_v57 = vadd.f32 %v4154_v47, %v628_v13  ;;  %v620_v15 = vadd.f32 %v619_v60, %v4896_v0  ;;  %v4543_v13 = vld [vmem:[%s4597_s22 + $0xb8] sm:$0xff]  }
 0x120   : > { %v4121_v17 = vpop.f32.mrf.mxu1  ;;  %v4157_v56 = vpop.f32.mrf.mxu0  ;;  %4336 = vmatmul.mubr.msk.bf16.gmra.mxu1 %vm279_vm2, %v4534_v49  ;;  %4372 = vmatmul.mubr.msk.bf16.gmra.mxu0 %vm279_vm2, %v4535_v51  ;;  %v4542_v51 = vld [vmem:[%s4597_s22 + $0xb0] sm:$0xff]  }
 0x121   : > { %v5070_v8 = vadd.f32 %v959_v55, %v620_v15  ;;  %v641_v58 = vadd.f32 %v4121_v17, %v4900_v2  ;;  %4339 = vmatprep.mubr.msk.bf16.mxu1 %vm279_vm2, %v4536_v53  ;;  %4375 = vmatprep.mubr.msk.bf16.mxu0 %vm279_vm2, %v4537_v54  ;;  %v4541_v2 = vld [vmem:[%s4597_s22 + $0xb0] sm:$0xff]   ;;  %s3864_s22 = sshll.u32 %s5595_s10, 7 }
 0x122   : > { %v632_v9 = vpop.f32.mrf.mxu1  ;;  %v972_v10 = vpop.f32.mrf.mxu0  ;;  %s5359_s28 = scalar_lea.vmem %s5511_s2, %s3864_s22 }
 0x123   : > { %v5075_v0 = vadd.f32 %v4157_v56, %v641_v58  ;;  %v633_v19 = vadd.f32 %v632_v9, %v4908_v5 }
 0x124   : > { %v4122_v20 = vpop.f32.mrf.mxu1  ;;  %v4158_v21 = vpop.f32.mrf.mxu0 }
 0x125   : > { %v5080_v33 = vadd.f32 %v972_v10, %v633_v19  ;;  %v644_v25 = vadd.f32 %v4122_v20, %v4912_v7 }
 0x126   : > { %v635_v38 = vpop.f32.mrf.mxu1  ;;  %v975_v4 = vpop.f32.mrf.mxu0 }
 0x127   : > { %v5085_v6 = vadd.f32 %v4158_v21, %v644_v25  ;;  %v636_v27 = vadd.f32 %v635_v38, %v4920_v12 }
 0x128   : > { %v4125_v29 = vpop.f32.mrf.mxu1  ;;  %v4161_v5 = vpop.f32.mrf.mxu0  ;;  %4340 = vmatmul.mubr.msk.bf16.gmra.mxu1 %vm279_vm2, %v4538_v31  ;;  %4376 = vmatmul.mubr.msk.bf16.gmra.mxu0 %vm279_vm2, %v4539_v1 }
 0x129   : > { %v5090_v43 = vadd.f32 %v975_v4, %v636_v27  ;;  %v657_v7 = vadd.f32 %v4125_v29, %v4924_v14  ;;  %4343 = vmatprep.mubr.msk.bf16.mxu1 %vm279_vm2, %v4540_v34  ;;  %4379 = vmatprep.mubr.msk.bf16.mxu0 %vm279_vm2, %v4541_v2 }
 0x12a   : > { %v648_v44 = vpop.f32.mrf.mxu1  ;;  %v988_v45 = vpop.f32.mrf.mxu0 }
 0x12b   : > { %v5095_v46 = vadd.f32 %v4161_v5, %v657_v7  ;;  %v649_v12 = vadd.f32 %v648_v44, %v4932_v16 }
 0x12c   : > { %v4126_v47 = vpop.f32.mrf.mxu1  ;;  %v4162_v49 = vpop.f32.mrf.mxu0 }
 0x12d   : > { %v5100_v53 = vadd.f32 %v988_v45, %v649_v12  ;;  %v660_v54 = vadd.f32 %v4126_v47, %v4936_v18 }
 0x12e   : > { %v651_v60 = vpop.f32.mrf.mxu1  ;;  %v991_v14 = vpop.f32.mrf.mxu0 }
 0x12f   : > { %v5103_v55 = vadd.f32 %v4162_v49, %v660_v54  ;;  %v652_v15 = vadd.f32 %v651_v60, %v4944_v24 }
 0x130   : > { %v4129_v17 = vpop.f32.mrf.mxu1  ;;  %v4165_v56 = vpop.f32.mrf.mxu0  ;;  %4344 = vmatmul.mubr.msk.bf16.gmra.mxu1 %vm279_vm2, %v4542_v51  ;;  %4380 = vmatmul.mubr.msk.bf16.gmra.mxu0 %vm279_vm2, %v4543_v13 }
 0x131   : > { %v5108_v16 = vadd.f32 %v991_v14, %v652_v15  ;;  %v673_v58 = vadd.f32 %v4129_v17, %v4948_v26 }
 0x132   : > { %v664_v9 = vpop.f32.mrf.mxu1  ;;  %v1004_v10 = vpop.f32.mrf.mxu0 }
 0x133   : > { %v5111_v19 = vadd.f32 %v4165_v56, %v673_v58  ;;  %v665_v18 = vadd.f32 %v664_v9, %v4956_v28 }
 0x134   : > { %v4130_v20 = vpop.f32.mrf.mxu1  ;;  %v4166_v21 = vpop.f32.mrf.mxu0 }
 0x135   : > { %v5114_v31 = vadd.f32 %v1004_v10, %v665_v18  ;;  %v676_v24 = vadd.f32 %v4130_v20, %v4960_v30 }
 0x136   : > { %v667_v1 = vpop.f32.mrf.mxu1  ;;  %v1007_v25 = vpop.f32.mrf.mxu0 }
 0x137   : > { %v5117_v34 = vadd.f32 %v4166_v21, %v676_v24  ;;  %v668_v2 = vadd.f32 %v667_v1, %v4968_v36 }
 0x138   : > { %v4173_v38 = vpop.f32.mrf.mxu1  ;;  %v4209_v26 = vpop.f32.mrf.mxu0 }
 0x139   : > { %v5120_v4 = vadd.f32 %v1007_v25, %v668_v2  ;;  %v1393_v27 = vadd.f32 %v4173_v38, %v4975_v42 }
 0x13a   : > { %v1264_v29 = vpop.f32.mrf.mxu1  ;;  %v1636_v28 = vpop.f32.mrf.mxu0 }
 0x13b   : > { %v5123_v5 = vadd.f32 %v4209_v26, %v1393_v27  ;;  %v1391_v7 = vadd.f32 %v1264_v29, %v4980_v48 }
 0x13c   : > { %v4174_v44 = vpop.f32.mrf.mxu1  ;;  %v4210_v30 = vpop.f32.mrf.mxu0 }
 0x13d   : > { %v5126_v45 = vadd.f32 %v1636_v28, %v1391_v7  ;;  %v1394_v12 = vadd.f32 %v4174_v44, %v4985_v59 }
 0x13e   : > { %v1267_v47 = vpop.f32.mrf.mxu1  ;;  %v1639_v36 = vpop.f32.mrf.mxu0 }
 0x13f   : > { %v5129_v49 = vadd.f32 %v4210_v30, %v1394_v12  ;;  %v1392_v51 = vadd.f32 %v1267_v47, %v4990_v62 }
 0x140   : > { %v4177_v13 = vpop.f32.mrf.mxu1  ;;  %v4213_v42 = vpop.f32.mrf.mxu0 }
 0x141   : > { %v5132_v54 = vadd.f32 %v1639_v36, %v1392_v51  ;;  %v1397_v60 = vadd.f32 %v4177_v13, %v4995_v63 }
 0x142   : > { %v1280_v14 = vpop.f32.mrf.mxu1  ;;  %v1652_v48 = vpop.f32.mrf.mxu0 }
 0x143   : > { %v5135_v15 = vadd.f32 %v4213_v42, %v1397_v60  ;;  %v1395_v17 = vadd.f32 %v1280_v14, %v5000_v22 }
 0x144   : > { %v4178_v56 = vpop.f32.mrf.mxu1  ;;  %v4214_v59 = vpop.f32.mrf.mxu0 }
 0x145   : > { %v5138_v58 = vadd.f32 %v1652_v48, %v1395_v17  ;;  %v1398_v9 = vadd.f32 %v4178_v56, %v5005_v37 }
 0x146   : > { %v1283_v10 = vpop.f32.mrf.mxu1  ;;  %v1655_v62 = vpop.f32.mrf.mxu0 }
 0x147   : > { %v5141_v18 = vadd.f32 %v4214_v59, %v1398_v9  ;;  %v1396_v20 = vadd.f32 %v1283_v10, %v5010_v40 }
 0x148   : > { %v4181_v21 = vpop.f32.mrf.mxu1  ;;  %v4217_v63 = vpop.f32.mrf.mxu0 }
 0x149   : > { %v5144_v24 = vadd.f32 %v1655_v62, %v1396_v20  ;;  %v1401_v1 = vadd.f32 %v4181_v21, %v5015_v11 }
 0x14a   : > { %v1296_v25 = vpop.f32.mrf.mxu1  ;;  %v1668_v22 = vpop.f32.mrf.mxu0 }
 0x14b   : > { %v5147_v2 = vadd.f32 %v4217_v63, %v1401_v1  ;;  %v1399_v38 = vadd.f32 %v1296_v25, %v5020_v50 }
 0x14c   : > { %v4182_v26 = vpop.f32.mrf.mxu1  ;;  %v4218_v37 = vpop.f32.mrf.mxu0 }
 0x14d   : > { %v5150_v27 = vadd.f32 %v1668_v22, %v1399_v38  ;;  %v1402_v29 = vadd.f32 %v4182_v26, %v5025_v61 }
 0x14e   : > { %v1299_v28 = vpop.f32.mrf.mxu1  ;;  %v1671_v40 = vpop.f32.mrf.mxu0 }
 0x14f   : > { %v5153_v7 = vadd.f32 %v4218_v37, %v1402_v29  ;;  %v1400_v44 = vadd.f32 %v1299_v28, %v5030_v3 }
 0x150   : > { %v4185_v30 = vpop.f32.mrf.mxu1  ;;  %v4221_v11 = vpop.f32.mrf.mxu0 }
 0x151   : > { %v5156_v12 = vadd.f32 %v1671_v40, %v1400_v44  ;;  %v1405_v47 = vadd.f32 %v4185_v30, %v5035_v23 }
 0x152   : > { %v1312_v36 = vpop.f32.mrf.mxu1  ;;  %v1684_v50 = vpop.f32.mrf.mxu0 }
 0x153   : > { %v5159_v51 = vadd.f32 %v4221_v11, %v1405_v47  ;;  %v1403_v13 = vadd.f32 %v1312_v36, %v5040_v32 }
 0x154   : > { %v4186_v42 = vpop.f32.mrf.mxu1  ;;  %v4222_v61 = vpop.f32.mrf.mxu0 }
 0x155   : > { %v5162_v60 = vadd.f32 %v1684_v50, %v1403_v13  ;;  %v1406_v14 = vadd.f32 %v4186_v42, %v5045_v39 }
 0x156   : > { %v1315_v48 = vpop.f32.mrf.mxu1  ;;  %v1687_v3 = vpop.f32.mrf.mxu0 }
 0x157   : > { %v5165_v17 = vadd.f32 %v4222_v61, %v1406_v14  ;;  %v1404_v56 = vadd.f32 %v1315_v48, %v5050_v41 }
 0x158   : > { %v4189_v59 = vpop.f32.mrf.mxu1  ;;  %v4225_v23 = vpop.f32.mrf.mxu0 }
 0x159   : > { %v5168_v9 = vadd.f32 %v1687_v3, %v1404_v56  ;;  %v1409_v10 = vadd.f32 %v4189_v59, %v5055_v35 }
 0x15a   : > { %v1328_v62 = vpop.f32.mrf.mxu1  ;;  %v1700_v32 = vpop.f32.mrf.mxu0 }
 0x15b   : > { %v5171_v20 = vadd.f32 %v4225_v23, %v1409_v10  ;;  %v1407_v21 = vadd.f32 %v1328_v62, %v5060_v52 }
 0x15c   : > { %v4190_v63 = vpop.f32.mrf.mxu1  ;;  %v4226_v39 = vpop.f32.mrf.mxu0 }
 0x15d   : > { %v5174_v1 = vadd.f32 %v1700_v32, %v1407_v21  ;;  %v1410_v25 = vadd.f32 %v4190_v63, %v5065_v57 }
 0x15e   : > { %v1331_v22 = vpop.f32.mrf.mxu1  ;;  %v1703_v41 = vpop.f32.mrf.mxu0 }
 0x15f   : > { %v5177_v38 = vadd.f32 %v4226_v39, %v1410_v25  ;;  %v1408_v26 = vadd.f32 %v1331_v22, %v5070_v8 }
 0x160   : > { %v4193_v37 = vpop.f32.mrf.mxu1  ;;  %v4229_v35 = vpop.f32.mrf.mxu0 }
 0x161   : > { %5512 = vst [vmem:[#allocation2_spill] sm:$0xff] %v5177_v38  ;;  %v5180_v29 = vadd.f32 %v1703_v41, %v1408_v26  ;;  %v1413_v28 = vadd.f32 %v4193_v37, %v5075_v0 }
 0x162   : > { %v1344_v40 = vpop.f32.mrf.mxu1  ;;  %v1716_v52 = vpop.f32.mrf.mxu0 }
 0x163   : > { %5513 = vst [vmem:[#allocation3_spill] sm:$0xff] %v5180_v29  ;;  %v5183_v44 = vadd.f32 %v4229_v35, %v1413_v28  ;;  %v1411_v30 = vadd.f32 %v1344_v40, %v5080_v33 }
 0x164   : > { %v4194_v11 = vpop.f32.mrf.mxu1  ;;  %v4230_v57 = vpop.f32.mrf.mxu0 }
 0x165   : > { %5514 = vst [vmem:[#allocation4_spill] sm:$0xff] %v5183_v44  ;;  %v5186_v47 = vadd.f32 %v1716_v52, %v1411_v30  ;;  %v1414_v36 = vadd.f32 %v4194_v11, %v5085_v6 }
 0x166   : > { %v1347_v50 = vpop.f32.mrf.mxu1  ;;  %v1719_v8 = vpop.f32.mrf.mxu0 }
 0x167   : > { %5515 = vst [vmem:[#allocation5_spill] sm:$0xff] %v5186_v47  ;;  %v5189_v13 = vadd.f32 %v4230_v57, %v1414_v36  ;;  %v1412_v42 = vadd.f32 %v1347_v50, %v5090_v43 }
 0x168   : > { %v4197_v61 = vpop.f32.mrf.mxu1  ;;  %v4233_v0 = vpop.f32.mrf.mxu0 }
 0x169   : > { %5516 = vst [vmem:[#allocation6_spill] sm:$0xff] %v5189_v13  ;;  %v5192_v14 = vadd.f32 %v1719_v8, %v1412_v42  ;;  %v1417_v48 = vadd.f32 %v4197_v61, %v5095_v46 }
 0x16a   : > { %v1360_v3 = vpop.f32.mrf.mxu1  ;;  %v1732_v33 = vpop.f32.mrf.mxu0 }
 0x16b   : > { %5517 = vst [vmem:[#allocation7_spill] sm:$0xff] %v5192_v14  ;;  %v5195_v56 = vadd.f32 %v4233_v0, %v1417_v48  ;;  %v1415_v59 = vadd.f32 %v1360_v3, %v5100_v53 }
 0x16c   : > { %v4198_v23 = vpop.f32.mrf.mxu1  ;;  %v4234_v6 = vpop.f32.mrf.mxu0 }
 0x16d   : > { %5518 = vst [vmem:[#allocation8_spill] sm:$0xff] %v5195_v56  ;;  %v5198_v10 = vadd.f32 %v1732_v33, %v1415_v59  ;;  %v1418_v62 = vadd.f32 %v4198_v23, %v5103_v55 }
 0x16e   : > { %v1363_v32 = vpop.f32.mrf.mxu1  ;;  %v1735_v43 = vpop.f32.mrf.mxu0 }
 0x16f   : > { %5519 = vst [vmem:[#allocation9_spill] sm:$0xff] %v5198_v10  ;;  %v5201_v21 = vadd.f32 %v4234_v6, %v1418_v62  ;;  %v1416_v63 = vadd.f32 %v1363_v32, %v5108_v16 }
 0x170   : > { %v4201_v39 = vpop.f32.mrf.mxu1  ;;  %v4237_v46 = vpop.f32.mrf.mxu0 }
 0x171   : > { %5520 = vst [vmem:[#allocation10_spill] sm:$0xff] %v5201_v21  ;;  %v5204_v25 = vadd.f32 %v1735_v43, %v1416_v63  ;;  %v1421_v22 = vadd.f32 %v4201_v39, %v5111_v19 }
 0x172   : > { %v1376_v41 = vpop.f32.mrf.mxu1  ;;  %v1748_v53 = vpop.f32.mrf.mxu0 }
 0x173   : > { %5521 = vst [vmem:[#allocation11_spill] sm:$0xff] %v5204_v25  ;;  %v5207_v26 = vadd.f32 %v4237_v46, %v1421_v22  ;;  %v1419_v37 = vadd.f32 %v1376_v41, %v5114_v31 }
 0x174   : > { %v4202_v35 = vpop.f32.mrf.mxu1  ;;  %v4238_v55 = vpop.f32.mrf.mxu0 }
 0x175   : > { %5522 = vst [vmem:[#allocation12_spill] sm:$0xff] %v5207_v26  ;;  %v5210_v28 = vadd.f32 %v1748_v53, %v1419_v37  ;;  %v1422_v40 = vadd.f32 %v4202_v35, %v5117_v34 }
 0x176   : > { %v1379_v52 = vpop.f32.mrf.mxu1  ;;  %v1751_v16 = vpop.f32.mrf.mxu0 }
 0x177   : > { %5523 = vst [vmem:[#allocation13_spill] sm:$0xff] %v5210_v28  ;;  %v5213_v30 = vadd.f32 %v4238_v55, %v1422_v40  ;;  %v1420_v11 = vadd.f32 %v1379_v52, %v5120_v4 }
 0x178   : > { %v4245_v57 = vpop.f32.mrf.mxu1  ;;  %v5216_v19 = vpop.f32.mrf.mxu0 }
 0x179   : > { %5524 = vst [vmem:[#allocation14_spill] sm:$0xff] %v5213_v30  ;;  %v5218_v36 = vadd.f32 %v1751_v16, %v1420_v11 }
 0x17a   : > { %v2008_v50 = vpop.f32.mrf.mxu1  ;;  %v5220_v8 = vpop.f32.mrf.mxu0 }
 0x17b   : > { %5525 = vst [vmem:[#allocation15_spill] sm:$0xff] %v5218_v36 }
 0x17c   : > { %v5222_v31 = vpop.f32.mrf.mxu1  ;;  %v5224_v42 = vpop.f32.mrf.mxu0 }
 0x17e   : > { %v5226_v61 = vpop.f32.mrf.mxu1  ;;  %v5228_v34 = vpop.f32.mrf.mxu0 }
 0x180   : > { %v5230_v0 = vpop.f32.mrf.mxu1  ;;  %v5232_v48 = vpop.f32.mrf.mxu0 }
 0x182   : > { %v5234_v4 = vpop.f32.mrf.mxu1  ;;  %v5236_v3 = vpop.f32.mrf.mxu0 }
 0x184   : > { %v5238_v33 = vpop.f32.mrf.mxu1  ;;  %v5240_v59 = vpop.f32.mrf.mxu0 }
 0x186   : > { %v5242_v23 = vpop.f32.mrf.mxu1  ;;  %v5244_v6 = vpop.f32.mrf.mxu0 }
 0x188   : > { %v5246_v62 = vpop.f32.mrf.mxu1  ;;  %v5248_v32 = vpop.f32.mrf.mxu0 }
 0x18a   : > { %v5250_v43 = vpop.f32.mrf.mxu1  ;;  %v5252_v63 = vpop.f32.mrf.mxu0 }
 0x18c   : > { %v5254_v39 = vpop.f32.mrf.mxu1  ;;  %v5256_v46 = vpop.f32.mrf.mxu0 }
 0x18e   : > { %v5258_v22 = vpop.f32.mrf.mxu1  ;;  %v5260_v41 = vpop.f32.mrf.mxu0 }
 0x190   : > { %v5262_v53 = vpop.f32.mrf.mxu1  ;;  %v5264_v37 = vpop.f32.mrf.mxu0 }
 0x192   : > { %v5266_v35 = vpop.f32.mrf.mxu1  ;;  %v5268_v55 = vpop.f32.mrf.mxu0 }
 0x194   : > { %v5270_v40 = vpop.f32.mrf.mxu1  ;;  %v5272_v52 = vpop.f32.mrf.mxu0 }
 0x196   : > { %v5274_v16 = vpop.f32.mrf.mxu1  ;;  %v5276_v11 = vpop.f32.mrf.mxu0 }
 0x198   : > { %v5278_v36 = vpop.f32.mrf.mxu1  ;;  %v5280_v30 = vpop.f32.mrf.mxu0 }
 0x19a   : > { %v5282_v28 = vpop.f32.mrf.mxu1  ;;  %v5284_v26 = vpop.f32.mrf.mxu0 }
 0x19b   : > { %5526 = vst [vmem:[#allocation16_spill] sm:$0xff] %v5284_v26 }
 0x19c   : > { %v5286_v25 = vpop.f32.mrf.mxu1  ;;  %v5288_v21 = vpop.f32.mrf.mxu0 }
 0x19d   : > { %5527 = vst [vmem:[#allocation17_spill] sm:$0xff] %v5286_v25  ;;  %5528 = vst [vmem:[#allocation18_spill] sm:$0xff] %v5288_v21 }
 0x19e   : > { %v5290_v10 = vpop.f32.mrf.mxu1  ;;  %v5292_v56 = vpop.f32.mrf.mxu0 }
 0x19f   : > { %5529 = vst [vmem:[#allocation19_spill] sm:$0xff] %v5290_v10  ;;  %5530 = vst [vmem:[#allocation20_spill] sm:$0xff] %v5292_v56 }
 0x1a0   : > { %v5294_v14 = vpop.f32.mrf.mxu1  ;;  %v5296_v13 = vpop.f32.mrf.mxu0 }
 0x1a1   : > { %5531 = vst [vmem:[#allocation21_spill] sm:$0xff] %v5294_v14  ;;  %5532 = vst [vmem:[#allocation22_spill] sm:$0xff] %v5296_v13 }
 0x1a2   : > { %v5298_v47 = vpop.f32.mrf.mxu1  ;;  %v5300_v44 = vpop.f32.mrf.mxu0 }
 0x1a3   : > { %5533 = vst [vmem:[#allocation23_spill] sm:$0xff] %v5298_v47  ;;  %5534 = vst [vmem:[#allocation24_spill] sm:$0xff] %v5300_v44 }
 0x1a4   : > { %v5302_v29 = vpop.f32.mrf.mxu1  ;;  %v5304_v38 = vpop.f32.mrf.mxu0 }
 0x1a5   : > { %5535 = vst [vmem:[#allocation25_spill] sm:$0xff] %v5302_v29  ;;  %5536 = vst [vmem:[#allocation26_spill] sm:$0xff] %v5304_v38 }
 0x1a6   : > { %v5306_v26 = vpop.f32.mrf.mxu1  ;;  %v5308_v25 = vpop.f32.mrf.mxu0 }
 0x1a7   : > { %5537 = vst [vmem:[#allocation27_spill] sm:$0xff] %v5306_v26  ;;  %5538 = vst [vmem:[#allocation28_spill] sm:$0xff] %v5308_v25 }
 0x1a8   : > { %v5310_v21 = vpop.f32.mrf.mxu1  ;;  %v5312_v10 = vpop.f32.mrf.mxu0 }
 0x1a9   : > { %5539 = vst [vmem:[#allocation29_spill] sm:$0xff] %v5310_v21  ;;  %5540 = vst [vmem:[#allocation30_spill] sm:$0xff] %v5312_v10 }
 0x1aa   : > { %v5314_v56 = vpop.f32.mrf.mxu1  ;;  %v5316_v14 = vpop.f32.mrf.mxu0 }
 0x1ab   : > { %5541 = vst [vmem:[#allocation31_spill] sm:$0xff] %v5314_v56  ;;  %5542 = vst [vmem:[#allocation32_spill] sm:$0xff] %v5316_v14  ;;  %v2137_v56 = vadd.f32 %v4245_v57, %v5123_v5  ;;  %v2136_v5 = vadd.f32 %v5226_v61, %v5132_v54 }
 0x1ac   : > { %v5318_v13 = vpop.f32.mrf.mxu1  ;;  %v5320_v47 = vpop.f32.mrf.mxu0 }
 0x1ad   : > { %5543 = vst [vmem:[#allocation33_spill] sm:$0xff] %v5318_v13  ;;  %5544 = vst [vmem:[#allocation34_spill] sm:$0xff] %v5320_v47  ;;  %v2135_v47 = vadd.f32 %v2008_v50, %v5126_v45  ;;  %v2141_v45 = vadd.f32 %v5230_v0, %v5135_v15  ;;  %v2508_v15 = vadd.f32 %v5228_v34, %v2136_v5 }
 0x1ae   : > { %v5322_v44 = vpop.f32.mrf.mxu1  ;;  %v5324_v29 = vpop.f32.mrf.mxu0 }
 0x1af   : > { %5545 = vst [vmem:[#allocation35_spill] sm:$0xff] %v5322_v44  ;;  %5546 = vst [vmem:[#allocation36_spill] sm:$0xff] %v5324_v29 }
 0x1b0   : > { %v5326_v38 = vpop.f32.mrf.mxu1  ;;  %v5328_v26 = vpop.f32.mrf.mxu0 }
 0x1b1   : > { %5547 = vst [vmem:[#allocation37_spill] sm:$0xff] %v5326_v38  ;;  %5548 = vst [vmem:[#allocation38_spill] sm:$0xff] %v5328_v26  ;;  %v2509_v38 = vadd.f32 %v5216_v19, %v2137_v56  ;;  %v2138_v26 = vadd.f32 %v5222_v31, %v5129_v49  ;;  %v2139_v49 = vadd.f32 %v5234_v4, %v5138_v58 }
 0x1b2   : > { %v5330_v25 = vpop.f32.mrf.mxu1  ;;  %v5332_v10 = vpop.f32.mrf.mxu0  ;;  %v2142_v58 = vadd.f32 %v5238_v33, %v5141_v18  ;;  %v2145_v18 = vadd.f32 %v5246_v62, %v5147_v2 }
 0x1b3   : > { %5549 = vst [vmem:[#allocation39_spill] sm:$0xff] %v5330_v25  ;;  %5550 = vst [vmem:[#allocation40_spill] sm:$0xff] %v5332_v10  ;;  %v2507_v10 = vadd.f32 %v5220_v8, %v2135_v47  ;;  %v2511_v0 = vadd.f32 %v5236_v3, %v2139_v49 }
 0x1b4   : > { %v5335_v14 = vpop.f32.mrf.mxu1  ;;  %v5337_v13 = vpop.f32.mrf.mxu0 }
 0x1b5   : > { %5551 = vst [vmem:[#allocation41_spill] sm:$0xff] %v5337_v13 }
 0x1b6   : > { %v5340_v44 = vpop.f32.mrf.mxu1  ;;  %v5342_v29 = vpop.f32.mrf.mxu0 }
 0x1b7   : > { %5552 = vst [vmem:[#allocation42_spill] sm:$0xff] %v5342_v29  ;;  %v2510_v29 = vadd.f32 %v5224_v42, %v2138_v26 }
 0x1b8   : > { %v4317_v25 = vpop.f32.mrf.mxu1  ;;  %v4353_v21 = vpop.f32.mrf.mxu0 }
 0x1b9   : > { %v2881_v57 = vadd.f32 %v4317_v25, %v2509_v38 }
 0x1ba   : > { %v2752_v50 = vpop.f32.mrf.mxu1  ;;  %v3124_v13 = vpop.f32.mrf.mxu0 }
 0x1bb   : > { %v3253_v56 = vadd.f32 %v4353_v21, %v2881_v57  ;;  %v2879_v19 = vadd.f32 %v2752_v50, %v2507_v10  ;;  %v2513_v10 = vadd.f32 %v5232_v48, %v2141_v45  ;;  %v2514_v45 = vadd.f32 %v5240_v59, %v2142_v58 }
 0x1bc   : > { %v4318_v54 = vpop.f32.mrf.mxu1  ;;  %v4354_v38 = vpop.f32.mrf.mxu0  ;;  %v2517_v59 = vadd.f32 %v5248_v32, %v2145_v18 }
 0x1bd   : > { %v3867_v47 = vpack.c.bf16 %v3253_v56, %v3253_v56  ;;  %v3251_v25 = vadd.f32 %v3124_v13, %v2879_v19  ;;  %v2882_v26 = vadd.f32 %v4318_v54, %v2510_v29  ;;  %v2140_v29 = vadd.f32 %v5242_v23, %v5144_v24 }
 0x1be   : > { %v2755_v21 = vpop.f32.mrf.mxu1  ;;  %v3127_v8 = vpop.f32.mrf.mxu0  ;;  %v2143_v24 = vadd.f32 %v5250_v43, %v5150_v27 }
 0x1bf   : > { %3414 = vst.msk [vmem:[%s5359_s28 + $0x8] sm:$0xf] %vm3411_vm3, %v3867_v47  ;;  %v3865_v31 = vpack.c.bf16 %v3251_v25, %v3251_v25  ;;  %v3254_v42 = vadd.f32 %v4354_v38, %v2882_v26  ;;  %v2880_v61 = vadd.f32 %v2755_v21, %v2508_v15  ;;  %v2512_v49 = vadd.f32 %v5244_v6, %v2140_v29 }
 0x1c0   : > { %v4321_v34 = vpop.f32.mrf.mxu1  ;;  %v4357_v4 = vpop.f32.mrf.mxu0  ;;  %v2146_v47 = vadd.f32 %v5254_v39, %v5153_v7  ;;  %v2515_v6 = vadd.f32 %v5252_v63, %v2143_v24  ;;  %v2144_v21 = vadd.f32 %v5258_v22, %v5156_v12  ;;  %v2149_v7 = vadd.f32 %v5262_v53, %v5159_v51 }
 0x1c1   : > { %3412 = vst.msk [vmem:[%s5359_s28] sm:$0xf] %vm3411_vm3, %v3865_v31  ;;  %v3868_v13 = vpack.c.bf16 %v3254_v42, %v3254_v42  ;;  %v3252_v48 = vadd.f32 %v3127_v8, %v2880_v61  ;;  %v2885_v5 = vadd.f32 %v4321_v34, %v2513_v10  ;;  %v2147_v12 = vadd.f32 %v5266_v35, %v5162_v60 }
 0x1c2   : > { %v2768_v33 = vpop.f32.mrf.mxu1  ;;  %v3140_v57 = vpop.f32.mrf.mxu0  ;;  %v2518_v42 = vadd.f32 %v5256_v46, %v2146_v47  ;;  %v2521_v46 = vadd.f32 %v5264_v37, %v2149_v7  ;;  %v5559_v7 = vld [vmem:[#allocation21_spill] sm:$0xff] }
 0x1c3   : > { %3415 = vst.msk [vmem:[%s5359_s28 + $0xc] sm:$0xf] %vm3411_vm3, %v3868_v13  ;;  %v3866_v3 = vpack.c.bf16 %v3252_v48, %v3252_v48  ;;  %v3257_v50 = vadd.f32 %v4357_v4, %v2885_v5  ;;  %v2883_v56 = vadd.f32 %v2768_v33, %v2511_v0  ;;  %v2516_v4 = vadd.f32 %v5260_v41, %v2144_v21 }
 0x1c4   : > { %v4322_v23 = vpop.f32.mrf.mxu1  ;;  %v4358_v19 = vpop.f32.mrf.mxu0  ;;  %v2150_v5 = vadd.f32 %v5270_v40, %v5165_v17  ;;  %v2519_v41 = vadd.f32 %v5268_v55, %v2147_v12  ;;  %v2153_v17 = vadd.f32 %v5278_v36, %v5171_v20 }
 0x1c5   : > { %3413 = vst.msk [vmem:[%s5359_s28 + $0x4] sm:$0xf] %vm3411_vm3, %v3866_v3  ;;  %v3871_v2 = vpack.c.bf16 %v3257_v50, %v3257_v50  ;;  %v3255_v62 = vadd.f32 %v3140_v57, %v2883_v56  ;;  %v2886_v54 = vadd.f32 %v4322_v23, %v2514_v45  ;;  %v2148_v45 = vadd.f32 %v5274_v16, %v5168_v9 }
 0x1c6   : > { %v2771_v38 = vpop.f32.mrf.mxu1  ;;  %v3143_v15 = vpop.f32.mrf.mxu0  ;;  %v2522_v24 = vadd.f32 %v5272_v52, %v2150_v5  ;;  %v2151_v9 = vadd.f32 %v5282_v28, %v5174_v1  ;;  %v2525_v52 = vadd.f32 %v5280_v30, %v2153_v17 }
 0x1c7   : > { %3418 = vst.msk [vmem:[%s5359_s28 + $0x18] sm:$0xf] %vm3411_vm3, %v3871_v2  ;;  %v3869_v27 = vpack.c.bf16 %v3255_v62, %v3255_v62  ;;  %v3258_v43 = vadd.f32 %v4358_v19, %v2886_v54  ;;  %v2884_v25 = vadd.f32 %v2771_v38, %v2512_v49  ;;  %v2520_v2 = vadd.f32 %v5276_v11, %v2148_v45  ;;  %v5553_v38 = vld [vmem:[#allocation2_spill] sm:$0xff]  ;;  %v5555_v11 = vld [vmem:[#allocation16_spill] sm:$0xff]  ;;  %v5566_v45 = vld [vmem:[#allocation25_spill] sm:$0xff] }
 0x1c8   : > { %v4325_v26 = vpop.f32.mrf.mxu1  ;;  %v4361_v10 = vpop.f32.mrf.mxu0 }
 0x1c9   : > { %3416 = vst.msk [vmem:[%s5359_s28 + $0x10] sm:$0xf] %vm3411_vm3, %v3869_v27  ;;  %v3872_v32 = vpack.c.bf16 %v3258_v43, %v3258_v43  ;;  %v3256_v8 = vadd.f32 %v3143_v15, %v2884_v25  ;;  %v2889_v58 = vadd.f32 %v4325_v26, %v2517_v59  ;;  %v5554_v15 = vld [vmem:[#allocation17_spill] sm:$0xff]  ;;  %v2523_v43 = vadd.f32 %v5555_v11, %v2151_v9  ;;  %v5556_v26 = vld [vmem:[#allocation3_spill] sm:$0xff] }
 0x1ca   : > { %v2784_v39 = vpop.f32.mrf.mxu1  ;;  %v3156_v31 = vpop.f32.mrf.mxu0  ;;  %v2154_v47 = vadd.f32 %v5554_v15, %v5553_v38 }
 0x1cb   : > { %3419 = vst.msk [vmem:[%s5359_s28 + $0x1c] sm:$0xf] %vm3411_vm3, %v3872_v32  ;;  %v3870_v63 = vpack.c.bf16 %v3256_v8, %v3256_v8  ;;  %v3261_v61 = vadd.f32 %v4361_v10, %v2889_v58  ;;  %v2887_v0 = vadd.f32 %v2784_v39, %v2515_v6  ;;  %v5557_v10 = vld [vmem:[#allocation19_spill] sm:$0xff]  ;;  %v5558_v58 = vld [vmem:[#allocation4_spill] sm:$0xff] }
 0x1cc   : > { %v4326_v22 = vpop.f32.mrf.mxu1  ;;  %v4362_v34 = vpop.f32.mrf.mxu0  ;;  %v2152_v21 = vadd.f32 %v5557_v10, %v5556_v26  ;;  %v2157_v39 = vadd.f32 %v5559_v7, %v5558_v58 }
 0x1cd   : > { %3417 = vst.msk [vmem:[%s5359_s28 + $0x14] sm:$0xf] %vm3411_vm3, %v3870_v63  ;;  %v3875_v51 = vpack.c.bf16 %v3261_v61, %v3261_v61  ;;  %v3259_v53 = vadd.f32 %v3156_v31, %v2887_v0  ;;  %v2890_v29 = vadd.f32 %v4326_v22, %v2518_v42  ;;  %v5560_v63 = vld [vmem:[#allocation18_spill] sm:$0xff] }
 0x1ce   : > { %v2787_v13 = vpop.f32.mrf.mxu1  ;;  %v3159_v48 = vpop.f32.mrf.mxu0  ;;  %v2526_v61 = vadd.f32 %v5560_v63, %v2154_v47 }
 0x1cf   : > { %3422 = vst.msk [vmem:[%s5359_s28 + $0x28] sm:$0xf] %vm3411_vm3, %v3875_v51  ;;  %v3873_v60 = vpack.c.bf16 %v3259_v53, %v3259_v53  ;;  %v3262_v35 = vadd.f32 %v4362_v34, %v2890_v29  ;;  %v2888_v18 = vadd.f32 %v2787_v13, %v2516_v4  ;;  %v5561_v34 = vld [vmem:[#allocation5_spill] sm:$0xff]  ;;  %v5562_v4 = vld [vmem:[#allocation23_spill] sm:$0xff] }
 0x1d0   : > { %v4329_v33 = vpop.f32.mrf.mxu1  ;;  %v4365_v57 = vpop.f32.mrf.mxu0  ;;  %v2155_v51 = vadd.f32 %v5562_v4, %v5561_v34 }
 0x1d1   : > { %3420 = vst.msk [vmem:[%s5359_s28 + $0x20] sm:$0xf] %vm3411_vm3, %v3873_v60  ;;  %v3876_v37 = vpack.c.bf16 %v3262_v35, %v3262_v35  ;;  %v3260_v3 = vadd.f32 %v3159_v48, %v2888_v18  ;;  %v2893_v50 = vadd.f32 %v4329_v33, %v2521_v46  ;;  %v5563_v46 = vld [vmem:[#allocation20_spill] sm:$0xff]  ;;  %v5564_v35 = vld [vmem:[#allocation22_spill] sm:$0xff] }
 0x1d2   : > { %v2800_v40 = vpop.f32.mrf.mxu1  ;;  %v3172_v56 = vpop.f32.mrf.mxu0  ;;  %v2524_v13 = vadd.f32 %v5563_v46, %v2152_v21  ;;  %v2529_v18 = vadd.f32 %v5564_v35, %v2157_v39  ;;  %v5577_v39 = vld [vmem:[#allocation10_spill] sm:$0xff] }
 0x1d3   : > { %3423 = vst.msk [vmem:[%s5359_s28 + $0x2c] sm:$0xf] %vm3411_vm3, %v3876_v37  ;;  %v3874_v55 = vpack.c.bf16 %v3260_v3, %v3260_v3  ;;  %v3265_v23 = vadd.f32 %v4365_v57, %v2893_v50  ;;  %v2891_v19 = vadd.f32 %v2800_v40, %v2519_v41  ;;  %v5565_v57 = vld [vmem:[#allocation6_spill] sm:$0xff]  ;;  %v5567_v40 = vld [vmem:[#allocation24_spill] sm:$0xff] }
 0x1d4   : > { %v4330_v16 = vpop.f32.mrf.mxu1  ;;  %v4366_v49 = vpop.f32.mrf.mxu0  ;;  %v2158_v37 = vadd.f32 %v5566_v45, %v5565_v57 }
 0x1d5   : > { %3421 = vst.msk [vmem:[%s5359_s28 + $0x24] sm:$0xf] %vm3411_vm3, %v3874_v55  ;;  %v3879_v20 = vpack.c.bf16 %v3265_v23, %v3265_v23  ;;  %v3263_v36 = vadd.f32 %v3172_v56, %v2891_v19  ;;  %v2894_v62 = vadd.f32 %v4330_v16, %v2522_v24  ;;  %v2527_v56 = vadd.f32 %v5567_v40, %v2155_v51  ;;  %v5568_v23 = vld [vmem:[#allocation7_spill] sm:$0xff] }
 0x1d6   : > { %v2803_v54 = vpop.f32.mrf.mxu1  ;;  %v3175_v59 = vpop.f32.mrf.mxu0  ;;  %v5569_v19 = vld [vmem:[#allocation27_spill] sm:$0xff] }
 0x1d7   : > { %3426 = vst.msk [vmem:[%s5359_s28 + $0x38] sm:$0xf] %vm3411_vm3, %v3879_v20  ;;  %v3877_v1 = vpack.c.bf16 %v3263_v36, %v3263_v36  ;;  %v3266_v28 = vadd.f32 %v4366_v49, %v2894_v62  ;;  %v2892_v27 = vadd.f32 %v2803_v54, %v2520_v2  ;;  %v2156_v9 = vadd.f32 %v5569_v19, %v5568_v23  ;;  %v5570_v20 = vld [vmem:[#allocation8_spill] sm:$0xff]  ;;  %v5571_v36 = vld [vmem:[#allocation29_spill] sm:$0xff]  ;;  %v5580_v51 = vld [vmem:[#allocation11_spill] sm:$0xff] }
 0x1d8   : > { %v4333_v25 = vpop.f32.mrf.mxu1  ;;  %v4369_v6 = vpop.f32.mrf.mxu0  ;;  %v2161_v62 = vadd.f32 %v5571_v36, %v5570_v20 }
 0x1d9   : > { %3424 = vst.msk [vmem:[%s5359_s28 + $0x30] sm:$0xf] %vm3411_vm3, %v3877_v1  ;;  %v3880_v30 = vpack.c.bf16 %v3266_v28, %v3266_v28  ;;  %v3264_v32 = vadd.f32 %v3175_v59, %v2892_v27  ;;  %v2897_v8 = vadd.f32 %v4333_v25, %v2525_v52  ;;  %v5572_v59 = vld [vmem:[#allocation26_spill] sm:$0xff]  ;;  %v5573_v28 = vld [vmem:[#allocation9_spill] sm:$0xff]  ;;  %v5574_v27 = vld [vmem:[#allocation31_spill] sm:$0xff] }
 0x1da   : > { %v2816_v31 = vpop.f32.mrf.mxu1  ;;  %v3188_v42 = vpop.f32.mrf.mxu0  ;;  %v2530_v38 = vadd.f32 %v5572_v59, %v2158_v37  ;;  %v2159_v11 = vadd.f32 %v5574_v27, %v5573_v28  ;;  %v5591_v27 = vld [vmem:[#allocation15_spill] sm:$0xff] }
 0x1db   : > { %3427 = vst.msk [vmem:[%s5359_s28 + $0x3c] sm:$0xf] %vm3411_vm3, %v3880_v30  ;;  %v3878_v0 = vpack.c.bf16 %v3264_v32, %v3264_v32  ;;  %v3269_v12 = vadd.f32 %v4369_v6, %v2897_v8  ;;  %v2895_v22 = vadd.f32 %v2816_v31, %v2523_v43  ;;  %v5575_v6 = vld [vmem:[#allocation28_spill] sm:$0xff]  ;;  %v5576_v32 = vld [vmem:[#allocation30_spill] sm:$0xff]  ;;  %v5578_v31 = vld [vmem:[#allocation33_spill] sm:$0xff] }
 0x1dc   : > { %v4334_v53 = vpop.f32.mrf.mxu1  ;;  %v4370_v29 = vpop.f32.mrf.mxu0  ;;  %v2528_v26 = vadd.f32 %v5575_v6, %v2156_v9  ;;  %v2533_v8 = vadd.f32 %v5576_v32, %v2161_v62  ;;  %v5589_v62 = vld [vmem:[#allocation14_spill] sm:$0xff] }
 0x1dd   : > { %3425 = vst.msk [vmem:[%s5359_s28 + $0x34] sm:$0xf] %vm3411_vm3, %v3878_v0  ;;  %v3883_v48 = vpack.c.bf16 %v3269_v12, %v3269_v12  ;;  %v3267_v5 = vadd.f32 %v3188_v42, %v2895_v22  ;;  %v2898_v60 = vadd.f32 %v4334_v53, %v2526_v61  ;;  %v2162_v42 = vadd.f32 %v5578_v31, %v5577_v39  ;;  %v5579_v12 = vld [vmem:[#allocation32_spill] sm:$0xff]  ;;  %v5581_v53 = vld [vmem:[#allocation35_spill] sm:$0xff] }
 0x1de   : > { %v2819_v41 = vpop.f32.mrf.mxu1  ;;  %v3191_v33 = vpop.f32.mrf.mxu0  ;;  %v2531_v22 = vadd.f32 %v5579_v12, %v2159_v11  ;;  %v2164_v11 = vadd.f32 %v5340_v44, %v5591_v27  ;;  %v5593_v44 = vld [vmem:[#allocation42_spill] sm:$0xff] }
 0x1df   : > { %3430 = vst.msk [vmem:[%s5359_s28 + $0x48] sm:$0xf] %vm3411_vm3, %v3883_v48  ;;  %v3881_v3 = vpack.c.bf16 %v3267_v5, %v3267_v5  ;;  %v3270_v50 = vadd.f32 %v4370_v29, %v2898_v60  ;;  %v2896_v17 = vadd.f32 %v2819_v41, %v2524_v13  ;;  %v2160_v29 = vadd.f32 %v5581_v53, %v5580_v51  ;;  %v5582_v5 = vld [vmem:[#allocation12_spill] sm:$0xff]  ;;  %v5583_v60 = vld [vmem:[#allocation37_spill] sm:$0xff] }
 0x1e0   : > { %v4337_v24 = vpop.f32.mrf.mxu1  ;;  %v4373_v55 = vpop.f32.mrf.mxu0  ;;  %v2165_v35 = vadd.f32 %v5583_v60, %v5582_v5  ;;  %v2536_v39 = vadd.f32 %v5593_v44, %v2164_v11 }
 0x1e1   : > { %3428 = vst.msk [vmem:[%s5359_s28 + $0x40] sm:$0xf] %vm3411_vm3, %v3881_v3  ;;  %v3884_v16 = vpack.c.bf16 %v3270_v50, %v3270_v50  ;;  %v3268_v49 = vadd.f32 %v3191_v33, %v2896_v17  ;;  %v2901_v2 = vadd.f32 %v4337_v24, %v2529_v18  ;;  %v5584_v33 = vld [vmem:[#allocation34_spill] sm:$0xff]  ;;  %v5585_v50 = vld [vmem:[#allocation13_spill] sm:$0xff]  ;;  %v5586_v17 = vld [vmem:[#allocation39_spill] sm:$0xff] }
 0x1e2   : > { %v2832_v52 = vpop.f32.mrf.mxu1  ;;  %v3204_v54 = vpop.f32.mrf.mxu0  ;;  %v2534_v57 = vadd.f32 %v5584_v33, %v2162_v42  ;;  %v2163_v40 = vadd.f32 %v5586_v17, %v5585_v50 }
 0x1e3   : > { %3431 = vst.msk [vmem:[%s5359_s28 + $0x4c] sm:$0xf] %vm3411_vm3, %v3884_v16  ;;  %v3882_v15 = vpack.c.bf16 %v3268_v49, %v3268_v49  ;;  %v3273_v47 = vadd.f32 %v4373_v55, %v2901_v2  ;;  %v2899_v1 = vadd.f32 %v2832_v52, %v2527_v56  ;;  %v5587_v55 = vld [vmem:[#allocation36_spill] sm:$0xff]  ;;  %v5588_v49 = vld [vmem:[#allocation38_spill] sm:$0xff]  ;;  %v2166_v52 = vadd.f32 %v5335_v14, %v5589_v62 }
 0x1e4   : > { %v4338_v43 = vpop.f32.mrf.mxu1  ;;  %v4374_v25 = vpop.f32.mrf.mxu0  ;;  %v2532_v23 = vadd.f32 %v5587_v55, %v2160_v29  ;;  %v2537_v2 = vadd.f32 %v5588_v49, %v2165_v35 }
 0x1e5   : > { %3429 = vst.msk [vmem:[%s5359_s28 + $0x44] sm:$0xf] %vm3411_vm3, %v3882_v15  ;;  %v3887_v10 = vpack.c.bf16 %v3273_v47, %v3273_v47  ;;  %v3271_v21 = vadd.f32 %v3204_v54, %v2899_v1  ;;  %v2902_v30 = vadd.f32 %v4338_v43, %v2530_v38  ;;  %v5590_v15 = vld [vmem:[#allocation40_spill] sm:$0xff] }
 0x1e6   : > { %v2835_v58 = vpop.f32.mrf.mxu1  ;;  %v3207_v7 = vpop.f32.mrf.mxu0  ;;  %v2535_v47 = vadd.f32 %v5590_v15, %v2163_v40 }
 0x1e7   : > { %3434 = vst.msk [vmem:[%s5359_s28 + $0x58] sm:$0xf] %vm3411_vm3, %v3887_v10  ;;  %v3885_v63 = vpack.c.bf16 %v3271_v21, %v3271_v21  ;;  %v3274_v61 = vadd.f32 %v4374_v25, %v2902_v30  ;;  %v2900_v0 = vadd.f32 %v2835_v58, %v2528_v26  ;;  %v5592_v10 = vld [vmem:[#allocation41_spill] sm:$0xff] }
 0x1e8   : > { %v4341_v34 = vpop.f32.mrf.mxu1  ;;  %v4377_v4 = vpop.f32.mrf.mxu0  ;;  %v2538_v21 = vadd.f32 %v5592_v10, %v2166_v52 }
 0x1e9   : > { %3432 = vst.msk [vmem:[%s5359_s28 + $0x50] sm:$0xf] %vm3411_vm3, %v3885_v63  ;;  %v3888_v46 = vpack.c.bf16 %v3274_v61, %v3274_v61  ;;  %v3272_v13 = vadd.f32 %v3207_v7, %v2900_v0  ;;  %v2905_v48 = vadd.f32 %v4341_v34, %v2533_v8 }
 0x1ea   : > { %v2848_v18 = vpop.f32.mrf.mxu1  ;;  %v3220_v41 = vpop.f32.mrf.mxu0 }
 0x1eb   : > { %3435 = vst.msk [vmem:[%s5359_s28 + $0x5c] sm:$0xf] %vm3411_vm3, %v3888_v46  ;;  %v3886_v45 = vpack.c.bf16 %v3272_v13, %v3272_v13  ;;  %v3277_v37 = vadd.f32 %v4377_v4, %v2905_v48  ;;  %v2903_v3 = vadd.f32 %v2848_v18, %v2531_v22 }
 0x1ec   : > { %v4342_v56 = vpop.f32.mrf.mxu1  ;;  %v4378_v24 = vpop.f32.mrf.mxu0 }
 0x1ed   : > { %3433 = vst.msk [vmem:[%s5359_s28 + $0x54] sm:$0xf] %vm3411_vm3, %v3886_v45  ;;  %v3891_v19 = vpack.c.bf16 %v3277_v37, %v3277_v37  ;;  %v3275_v9 = vadd.f32 %v3220_v41, %v2903_v3  ;;  %v2906_v16 = vadd.f32 %v4342_v56, %v2534_v57 }
 0x1ee   : > { %v2851_v20 = vpop.f32.mrf.mxu1  ;;  %v3223_v36 = vpop.f32.mrf.mxu0 }
 0x1ef   : > { %3438 = vst.msk [vmem:[%s5359_s28 + $0x68] sm:$0xf] %vm3411_vm3, %v3891_v19  ;;  %v3889_v54 = vpack.c.bf16 %v3275_v9, %v3275_v9  ;;  %v3278_v59 = vadd.f32 %v4378_v24, %v2906_v16  ;;  %v2904_v38 = vadd.f32 %v2851_v20, %v2532_v23 }
 0x1f0   : > { %v4345_v1 = vpop.f32.mrf.mxu1  ;;  %v4381_v28 = vpop.f32.mrf.mxu0 }
 0x1f1   : > { %3436 = vst.msk [vmem:[%s5359_s28 + $0x60] sm:$0xf] %vm3411_vm3, %v3889_v54  ;;  %v3892_v43 = vpack.c.bf16 %v3278_v59, %v3278_v59  ;;  %v3276_v25 = vadd.f32 %v3223_v36, %v2904_v38  ;;  %v2909_v6 = vadd.f32 %v4345_v1, %v2537_v2 }
 0x1f2   : > { %v2864_v14 = vpop.f32.mrf.mxu1  ;;  %v3236_v26 = vpop.f32.mrf.mxu0 }
 0x1f3   : > { %3439 = vst.msk [vmem:[%s5359_s28 + $0x6c] sm:$0xf] %vm3411_vm3, %v3892_v43  ;;  %v3890_v30 = vpack.c.bf16 %v3276_v25, %v3276_v25  ;;  %v3281_v32 = vadd.f32 %v4381_v28, %v2909_v6  ;;  %v2907_v8 = vadd.f32 %v2864_v14, %v2535_v47 }
 0x1f4   : > { %v4346_v58 = vpop.f32.mrf.mxu1  ;;  %v4382_v7 = vpop.f32.mrf.mxu0 }
 0x1f5   : > { %3437 = vst.msk [vmem:[%s5359_s28 + $0x64] sm:$0xf] %vm3411_vm3, %v3890_v30  ;;  %v3895_v31 = vpack.c.bf16 %v3281_v32, %v3281_v32  ;;  %v3279_v42 = vadd.f32 %v3236_v26, %v2907_v8  ;;  %v2910_v63 = vadd.f32 %v4346_v58, %v2538_v21 }
 0x1f6   : > { %v2867_v61 = vpop.f32.mrf.mxu1  ;;  %v3239_v34 = vpop.f32.mrf.mxu0 }
 0x1f7   : > { %3442 = vst.msk [vmem:[%s5359_s28 + $0x78] sm:$0xf] %vm3411_vm3, %v3895_v31  ;;  %v3893_v0 = vpack.c.bf16 %v3279_v42, %v3279_v42  ;;  %v3282_v12 = vadd.f32 %v4382_v7, %v2910_v63  ;;  %v2908_v22 = vadd.f32 %v2867_v61, %v2536_v39 }
 0x1f9   : > { %3440 = vst.msk [vmem:[%s5359_s28 + $0x70] sm:$0xf] %vm3411_vm3, %v3893_v0  ;;  %v3896_v4 = vpack.c.bf16 %v3282_v12, %v3282_v12  ;;  %v3280_v51 = vadd.f32 %v3239_v34, %v2908_v22 }
 0x1fb   : > { %3443 = vst.msk [vmem:[%s5359_s28 + $0x7c] sm:$0xf] %vm3411_vm3, %v3896_v4  ;;  %v3894_v53 = vpack.c.bf16 %v3280_v51, %v3280_v51 }
 0x1fd   : > { %3441 = vst.msk [vmem:[%s5359_s28 + $0x74] sm:$0xf] %vm3411_vm3, %v3894_v53 }
 0x1fe PF: > { %s12_s9 = sadd.s32 1, %s4550_s9  }
 0x1ff   : > { %p9_p4 = scmp.ge.s32.totalorder %s12_s9, 4  }
 0x201   :  { %11 = sbr.rel (!%p9_p4) target bundleno = 1 (0x1), region = 66 }

// kernel: transformer_network_forward.49
= control target key start
LH: loop header
LB: loop body
LE: loop exit
PB: predicated region body
PF: predicated region fallthrough
CT: control target
= control target key end

     0   :  { %vm308_vm0 = vcmask 261120   ;;  %vm591_vm1 = vcmask 519168   ;;  %s1091_s1 = inlined_call_operand.vmem [shape: bf16[288,64], index: 1, kind: input, shape index: {}]   ;;  %s1092_s0 = inlined_call_operand.vmem [shape: bf16[128,288], index: 0, kind: input, shape index: {}]   ;;  %s1093_s2 = inlined_call_operand.vmem [shape: bf16[128,64], index: 2, kind: output, shape index: {}]  }
   0x1   :  { %v804_v0 = vld [vmem:[%s1091_s1 + $0x78] sm:$0xff]   ;;  %v806_v2 = vld [vmem:[%s1091_s1 + $0x70] sm:$0xff]   ;;  %v808_v4 = vld [vmem:[%s1091_s1 + $0x68] sm:$0xff]  }
   0x2   :  { %v805_v1 = vld [vmem:[%s1091_s1 + $0x38] sm:$0xff]   ;;  %694 = vmatprep.subr.bf16.mxu0 %v804_v0  ;;  %788 = vmatprep.subr.bf16.mxu1 %v804_v0  ;;  %v807_v3 = vld [vmem:[%s1091_s1 + $0x30] sm:$0xff]   ;;  %v809_v5 = vld [vmem:[%s1091_s1 + $0x28] sm:$0xff]  }
   0x3   :  { %695 = vmatpush3.bf16.msra.mxu0 %v805_v1  ;;  %796 = vmatpush3.bf16.msra.mxu1 %v805_v1  ;;  %v810_v6 = vld [vmem:[%s1091_s1 + $0x60] sm:$0xff]   ;;  %v812_v8 = vld [vmem:[%s1091_s1 + $0x58] sm:$0xff]   ;;  %v814_v10 = vld [vmem:[%s1091_s1 + $0x50] sm:$0xff]  }
   0x4   :  { %696 = vmatprep.subr.bf16.mxu0 %v806_v2  ;;  %789 = vmatprep.subr.bf16.mxu1 %v806_v2  ;;  %v811_v7 = vld [vmem:[%s1091_s1 + $0x20] sm:$0xff]   ;;  %v813_v9 = vld [vmem:[%s1091_s1 + $0x18] sm:$0xff]   ;;  %v815_v13 = vld [vmem:[%s1091_s1 + $0x10] sm:$0xff]  }
   0x5   :  { %v822_v11 = vld [vmem:[%s1092_s0 + $0x4] ss:$12 sps:$4 sm:$0xff]   ;;  %v825_v12 = vld [vmem:[%s1092_s0 + $0x94] ss:$12 sps:$4 sm:$0xff]   ;;  %v816_v14 = vld [vmem:[%s1091_s1 + $0x48] sm:$0xff]  }
   0x6   :  { %365 = vmatprep.mubr.bf16.mxu0 %v822_v11  ;;  %413 = vmatprep.mubr.bf16.mxu1 %v825_v12  ;;  %v817_v15 = vld [vmem:[%s1091_s1 + $0x8] sm:$0xff]   ;;  %v818_v16 = vld [vmem:[%s1091_s1 + $0x40] sm:$0xff]   ;;  %v823_v20 = vld [vmem:[%s1092_s0 + $0x90] ss:$12 sps:$4 sm:$0xff]  }
   0x7   :  { %697 = vmatpush3.bf16.msra.mxu0 %v807_v3  ;;  %797 = vmatpush3.bf16.msra.mxu1 %v807_v3  ;;  %v819_v17 = vld [vmem:[%s1091_s1] sm:$0xff]   ;;  %v826_v19 = vld [vmem:[%s1091_s1 + $0x88] sm:$0xff]   ;;  %v837_v28 = vld [vmem:[%s1092_s0 + $0x30] ss:$12 sps:$4 sm:$0xff]  }
   0x8   :  { %698 = vmatprep.subr.bf16.mxu0 %v808_v4  ;;  %790 = vmatprep.subr.bf16.mxu1 %v808_v4  ;;  %v820_v18 = vld [vmem:[%s1092_s0] ss:$12 sps:$4 sm:$0xff]   ;;  %v827_v21 = vld [vmem:[%s1092_s0 + $0x1c] ss:$12 sps:$4 sm:$0xff]   ;;  %v831_v24 = vld [vmem:[%s1092_s0 + $0x18] ss:$12 sps:$4 sm:$0xff]  }
   0x9   :  { %v829_v22 = vld [vmem:[%s1092_s0 + $0xac] ss:$12 sps:$4 sm:$0xff]   ;;  %v833_v23 = vld [vmem:[%s1091_s1 + $0x80] sm:$0xff]   ;;  %v832_v25 = vld [vmem:[%s1092_s0 + $0xa8] ss:$12 sps:$4 sm:$0xff]  }
   0xa   :  { %v834_v26 = vld [vmem:[%s1092_s0 + $0x34] ss:$12 sps:$4 sm:$0xff]   ;;  %v839_v30 = vld [vmem:[%s1092_s0 + $0x4c] ss:$12 sps:$4 sm:$0xff]   ;;  %v843_v33 = vld [vmem:[%s1092_s0 + $0x50] ss:$12 sps:$4 sm:$0xff]  }
   0xb   :  { %699 = vmatpush3.bf16.msra.mxu0 %v809_v5  ;;  %798 = vmatpush3.bf16.msra.mxu1 %v809_v5  ;;  %v836_v27 = vld [vmem:[%s1092_s0 + $0x8] ss:$12 sps:$4 sm:$0xff]   ;;  %v838_v29 = vld [vmem:[%s1092_s0 + $0x20] ss:$12 sps:$4 sm:$0xff]   ;;  %v841_v31 = vld [vmem:[%s1092_s0 + $0x38] ss:$12 sps:$4 sm:$0xff]  }
   0xc   :  { %700 = vmatprep.subr.bf16.mxu0 %v810_v6  ;;  %791 = vmatprep.subr.bf16.mxu1 %v810_v6  ;;  %v842_v32 = vld [vmem:[%s1092_s0 + $0x48] ss:$12 sps:$4 sm:$0xff]   ;;  %v844_v34 = vld [vmem:[%s1092_s0 + $0x64] ss:$12 sps:$4 sm:$0xff]   ;;  %v847_v36 = vld [vmem:[%s1092_s0 + $0x60] ss:$12 sps:$4 sm:$0xff]  }
   0xd   :  { %v846_v35 = vld [vmem:[%s1092_s0 + $0x68] ss:$12 sps:$4 sm:$0xff]   ;;  %v848_v37 = vld [vmem:[%s1092_s0 + $0x80] ss:$12 sps:$4 sm:$0xff]   ;;  %v851_v39 = vld [vmem:[%s1092_s0 + $0x98] ss:$12 sps:$4 sm:$0xff]  }
   0xe   :  { %v849_v38 = vld [vmem:[%s1092_s0 + $0x7c] ss:$12 sps:$4 sm:$0xff]   ;;  %v852_v40 = vld [vmem:[%s1092_s0 + $0x78] ss:$12 sps:$4 sm:$0xff]  }
   0xf   :  { %701 = vmatpush3.bf16.msra.mxu0 %v811_v7  ;;  %799 = vmatpush3.bf16.msra.mxu1 %v811_v7  ;;  %v853_v41 = vld [vmem:[%s1092_s0 + $0xb0] ss:$12 sps:$4 sm:$0xff]  }
  0x10   :  { %702 = vmatprep.subr.bf16.mxu0 %v812_v8  ;;  %792 = vmatprep.subr.bf16.mxu1 %v812_v8 }
  0x13   :  { %703 = vmatpush3.bf16.msra.mxu0 %v813_v9  ;;  %800 = vmatpush3.bf16.msra.mxu1 %v813_v9 }
  0x14   :  { %704 = vmatprep.subr.bf16.mxu0 %v814_v10  ;;  %793 = vmatprep.subr.bf16.mxu1 %v814_v10 }
  0x17   :  { %705 = vmatpush3.bf16.msra.mxu0 %v815_v13  ;;  %801 = vmatpush3.bf16.msra.mxu1 %v815_v13 }
  0x18   :  { %706 = vmatprep.subr.bf16.mxu0 %v816_v14  ;;  %794 = vmatprep.subr.bf16.mxu1 %v816_v14 }
  0x1b   :  { %707 = vmatpush3.bf16.msra.mxu0 %v817_v15  ;;  %802 = vmatpush3.bf16.msra.mxu1 %v817_v15 }
  0x1c   :  { %708 = vmatprep.subr.bf16.mxu0 %v818_v16  ;;  %795 = vmatprep.subr.bf16.mxu1 %v818_v16 }
  0x1f   :  { %709 = vmatpush3.bf16.msra.mxu0 %v819_v17  ;;  %803 = vmatpush3.bf16.msra.mxu1 %v819_v17 }
  0x20   :  { %768 = vmatprep.subr.bf16.mxu1 %v826_v19 }
  0x22   :  { %366 = vmatmul.mubr.bf16.vlgmr.msra.gmra.mxu0 %v820_v18  ;;  %414 = vmatmul.mubr.bf16.vlgmr.msra.gmra.mxu1 %v823_v20 }
  0x23   :  { %769 = vmatpush3.bf16.msra.mxu1 %v826_v19  ;;  %373 = vmatprep.mubr.bf16.mxu0 %v827_v21 }
  0x24   :  { %421 = vmatprep.mubr.bf16.mxu1 %v829_v22  ;;  %770 = vmatprep.subr.bf16.mxu1 %v833_v23 }
  0x27   :  { %771 = vmatpush3.bf16.msra.mxu1 %v833_v23 }
  0x2a   :  { %374 = vmatmul.mubr.bf16.gmra.mxu0 %v831_v24  ;;  %422 = vmatmul.mubr.bf16.gmra.mxu1 %v832_v25 }
  0x2b   :  { %381 = vmatprep.mubr.bf16.mxu0 %v834_v26  ;;  %772 = vmatprep.mubr.msk.bf16.mxu1 %vm308_vm0, %v836_v27 }
  0x32   :  { %382 = vmatmul.mubr.bf16.gmra.mxu0 %v837_v28  ;;  %773 = vmatmul.mubr.msk.bf16.vlgmr.msra.gmra.mxu1 %vm308_vm0, %v838_v29 }
  0x33   :  { %389 = vmatprep.mubr.bf16.mxu0 %v839_v30  ;;  %776 = vmatprep.mubr.msk.bf16.mxu1 %vm308_vm0, %v841_v31 }
  0x3a   :  { %390 = vmatmul.mubr.bf16.gmra.mxu0 %v842_v32  ;;  %777 = vmatmul.mubr.msk.bf16.gmra.mxu1 %vm308_vm0, %v843_v33 }
  0x3b   :  { %397 = vmatprep.mubr.bf16.mxu0 %v844_v34  ;;  %780 = vmatprep.mubr.msk.bf16.mxu1 %vm308_vm0, %v846_v35 }
  0x42   :  { %398 = vmatmul.mubr.bf16.gmra.mxu0 %v847_v36  ;;  %781 = vmatmul.mubr.msk.bf16.gmra.mxu1 %vm308_vm0, %v848_v37 }
  0x43   :  { %405 = vmatprep.mubr.bf16.mxu0 %v849_v38  ;;  %784 = vmatprep.mubr.msk.bf16.mxu1 %vm308_vm0, %v851_v39 }
  0x4a   :  { %406 = vmatmul.mubr.bf16.gmra.mxu0 %v852_v40  ;;  %785 = vmatmul.mubr.msk.bf16.gmra.mxu1 %vm308_vm0, %v853_v41 }
  0xe2   :  { %v710_v42 = vpop.f32.mrf.mxu0  ;;  %v1003_v43 = vpop.f32.mrf.mxu1 }
  0xe4   :  { %v711_v44 = vpop.f32.mrf.mxu0  ;;  %v1005_v45 = vpop.f32.mrf.mxu1 }
  0xe5   :  { %v712_v61 = vadd.f32 %v711_v44, %v710_v42 }
  0xe6   :  { %v713_v46 = vpop.f32.mrf.mxu0  ;;  %v1007_v47 = vpop.f32.mrf.mxu1 }
  0xe8   :  { %v714_v48 = vpop.f32.mrf.mxu0  ;;  %v1009_v49 = vpop.f32.mrf.mxu1 }
  0xe9   :  { %v715_v6 = vadd.f32 %v714_v48, %v713_v46 }
  0xea   :  { %v716_v50 = vpop.f32.mrf.mxu0  ;;  %v1011_v51 = vpop.f32.mrf.mxu1 }
  0xec   :  { %v717_v52 = vpop.f32.mrf.mxu0  ;;  %v1013_v53 = vpop.f32.mrf.mxu1 }
  0xed   :  { %v718_v58 = vadd.f32 %v717_v52, %v716_v50  ;;  %v754_v46 = vadd.f32 %v1013_v53, %v1011_v51 }
  0xee   :  { %v719_v54 = vpop.f32.mrf.mxu0  ;;  %v1015_v55 = vpop.f32.mrf.mxu1 }
  0xf0   :  { %v720_v56 = vpop.f32.mrf.mxu0  ;;  %v1017_v57 = vpop.f32.mrf.mxu1 }
  0xf1   :  { %v721_v1 = vadd.f32 %v720_v56, %v719_v54  ;;  %v748_v56 = vadd.f32 %v1005_v45, %v1003_v43  ;;  %v751_v43 = vadd.f32 %v1009_v49, %v1007_v47 }
  0xf2   :  { %v722_v59 = vpop.f32.mrf.mxu0  ;;  %v774_v60 = vpop.f32.mrf.mxu1 }
  0xf3   :  { %v473_v62 = vadd.f32 %v774_v60, %v718_v58  ;;  %v757_v60 = vadd.f32 %v1017_v57, %v1015_v55 }
  0xf4   :  { %v723_v63 = vpop.f32.mrf.mxu0  ;;  %v464_v0 = vpop.f32.mrf.mxu1 }
  0xf5   :  { %v680_v2 = vpack.c.bf16 %v473_v62, %v473_v62  ;;  %v465_v3 = vadd.f32 %v712_v61, %v464_v0  ;;  %v724_v15 = vadd.f32 %v723_v63, %v722_v59 }
  0xf6   :  { %v725_v4 = vpop.f32.mrf.mxu0  ;;  %v775_v5 = vpop.f32.mrf.mxu1 }
  0xf7   :  { %594 = vst.msk [vmem:[%s1093_s2 + $0x8] sm:$0xf] %vm591_vm1, %v680_v2  ;;  %v678_v7 = vpack.c.bf16 %v465_v3, %v465_v3  ;;  %v476_v8 = vadd.f32 %v775_v5, %v721_v1 }
  0xf8   :  { %v726_v9 = vpop.f32.mrf.mxu0  ;;  %v467_v10 = vpop.f32.mrf.mxu1 }
  0xf9   :  { %592 = vst.msk [vmem:[%s1093_s2] sm:$0xf] %vm591_vm1, %v678_v7  ;;  %v681_v11 = vpack.c.bf16 %v476_v8, %v476_v8  ;;  %v468_v12 = vadd.f32 %v715_v6, %v467_v10  ;;  %v727_v23 = vadd.f32 %v726_v9, %v725_v4 }
  0xfa   :  { %v728_v13 = vpop.f32.mrf.mxu0  ;;  %v778_v14 = vpop.f32.mrf.mxu1 }
  0xfb   :  { %595 = vst.msk [vmem:[%s1093_s2 + $0xc] sm:$0xf] %vm591_vm1, %v681_v11  ;;  %v679_v16 = vpack.c.bf16 %v468_v12, %v468_v12 }
  0xfc   :  { %v729_v17 = vpop.f32.mrf.mxu0  ;;  %v480_v18 = vpop.f32.mrf.mxu1 }
  0xfd   :  { %593 = vst.msk [vmem:[%s1093_s2 + $0x4] sm:$0xf] %vm591_vm1, %v679_v16  ;;  %v730_v19 = vadd.f32 %v729_v17, %v728_v13  ;;  %v481_v20 = vadd.f32 %v724_v15, %v480_v18 }
  0xfe   :  { %v731_v21 = vpop.f32.mrf.mxu0  ;;  %v779_v22 = vpop.f32.mrf.mxu1 }
  0xff   :  { %v489_v24 = vadd.f32 %v778_v14, %v730_v19  ;;  %v682_v25 = vpack.c.bf16 %v481_v20, %v481_v20 }
 0x100   :  { %v732_v26 = vpop.f32.mrf.mxu0  ;;  %v483_v27 = vpop.f32.mrf.mxu1 }
 0x101   :  { %v684_v28 = vpack.c.bf16 %v489_v24, %v489_v24  ;;  %596 = vst.msk [vmem:[%s1093_s2 + $0x10] sm:$0xf] %vm591_vm1, %v682_v25  ;;  %v733_v29 = vadd.f32 %v732_v26, %v731_v21  ;;  %v484_v30 = vadd.f32 %v727_v23, %v483_v27 }
 0x102   :  { %v734_v31 = vpop.f32.mrf.mxu0  ;;  %v782_v32 = vpop.f32.mrf.mxu1 }
 0x103   :  { %598 = vst.msk [vmem:[%s1093_s2 + $0x18] sm:$0xf] %vm591_vm1, %v684_v28  ;;  %v492_v33 = vadd.f32 %v779_v22, %v733_v29  ;;  %v683_v34 = vpack.c.bf16 %v484_v30, %v484_v30 }
 0x104   :  { %v735_v35 = vpop.f32.mrf.mxu0  ;;  %v496_v36 = vpop.f32.mrf.mxu1 }
 0x105   :  { %v685_v37 = vpack.c.bf16 %v492_v33, %v492_v33  ;;  %597 = vst.msk [vmem:[%s1093_s2 + $0x14] sm:$0xf] %vm591_vm1, %v683_v34  ;;  %v736_v38 = vadd.f32 %v735_v35, %v734_v31 }
 0x106   :  { %v737_v39 = vpop.f32.mrf.mxu0  ;;  %v783_v40 = vpop.f32.mrf.mxu1 }
 0x107   :  { %599 = vst.msk [vmem:[%s1093_s2 + $0x1c] sm:$0xf] %vm591_vm1, %v685_v37  ;;  %v497_v41 = vadd.f32 %v736_v38, %v496_v36 }
 0x108   :  { %v738_v42 = vpop.f32.mrf.mxu0  ;;  %v499_v44 = vpop.f32.mrf.mxu1 }
 0x109   :  { %v686_v48 = vpack.c.bf16 %v497_v41, %v497_v41  ;;  %v739_v50 = vadd.f32 %v738_v42, %v737_v39 }
 0x10a   :  { %v740_v52 = vpop.f32.mrf.mxu0  ;;  %v786_v54 = vpop.f32.mrf.mxu1 }
 0x10b   :  { %600 = vst.msk [vmem:[%s1093_s2 + $0x20] sm:$0xf] %vm591_vm1, %v686_v48  ;;  %v500_v58 = vadd.f32 %v739_v50, %v499_v44  ;;  %v521_v59 = vadd.f32 %v786_v54, %v754_v46 }
 0x10c   :  { %v741_v61 = vpop.f32.mrf.mxu0  ;;  %v512_v62 = vpop.f32.mrf.mxu1 }
 0x10d   :  { %v687_v51 = vpack.c.bf16 %v500_v58, %v500_v58  ;;  %v692_v53 = vpack.c.bf16 %v521_v59, %v521_v59  ;;  %v742_v63 = vadd.f32 %v741_v61, %v740_v52  ;;  %v513_v0 = vadd.f32 %v748_v56, %v512_v62 }
 0x10e   :  { %v743_v1 = vpop.f32.mrf.mxu0  ;;  %v787_v2 = vpop.f32.mrf.mxu1 }
 0x10f   :  { %601 = vst.msk [vmem:[%s1093_s2 + $0x24] sm:$0xf] %vm591_vm1, %v687_v51  ;;  %606 = vst.msk [vmem:[%s1093_s2 + $0x38] sm:$0xf] %vm591_vm1, %v692_v53  ;;  %v505_v45 = vadd.f32 %v782_v32, %v742_v63  ;;  %v690_v55 = vpack.c.bf16 %v513_v0, %v513_v0  ;;  %v524_v57 = vadd.f32 %v787_v2, %v757_v60 }
 0x110   :  { %v744_v3 = vpop.f32.mrf.mxu0  ;;  %v515_v4 = vpop.f32.mrf.mxu1 }
 0x111   :  { %v688_v5 = vpack.c.bf16 %v505_v45, %v505_v45  ;;  %604 = vst.msk [vmem:[%s1093_s2 + $0x30] sm:$0xf] %vm591_vm1, %v690_v55  ;;  %v693_v47 = vpack.c.bf16 %v524_v57, %v524_v57  ;;  %v745_v49 = vadd.f32 %v744_v3, %v743_v1  ;;  %v516_v6 = vadd.f32 %v751_v43, %v515_v4 }
 0x113   :  { %602 = vst.msk [vmem:[%s1093_s2 + $0x28] sm:$0xf] %vm591_vm1, %v688_v5  ;;  %607 = vst.msk [vmem:[%s1093_s2 + $0x3c] sm:$0xf] %vm591_vm1, %v693_v47  ;;  %v508_v7 = vadd.f32 %v783_v40, %v745_v49  ;;  %v691_v8 = vpack.c.bf16 %v516_v6, %v516_v6 }
 0x115   :  { %v689_v9 = vpack.c.bf16 %v508_v7, %v508_v7  ;;  %605 = vst.msk [vmem:[%s1093_s2 + $0x34] sm:$0xf] %vm591_vm1, %v691_v8 }
 0x117   :  { %603 = vst.msk [vmem:[%s1093_s2 + $0x2c] sm:$0xf] %vm591_vm1, %v689_v9 }

// kernel: transformer_network_forward.50
= control target key start
LH: loop header
LB: loop body
LE: loop exit
PB: predicated region body
PF: predicated region fallthrough
CT: control target
= control target key end

     0   :  { %s389_s9 = smov 0   ;;  %s391_s10 = smov 0   ;;  %s435_s0 = inlined_call_operand.vmem [shape: bf16[2,32,128], index: 0, kind: input, shape index: {}]   ;;  %s436_s1 = inlined_call_operand.vmem [shape: f32[2,1,128], index: 1, kind: output, shape index: {0}]   ;;  %s437_s2 = inlined_call_operand.vmem [shape: f32[2,1,128], index: 2, kind: output, shape index: {1}]  }
   0x1   :  { %s393_s11 = smov 0  }
   0x2 LB: > { %s25_s12 = sadd.s32 1, %s367_s10  ;;  %p309_p0 = scmp.ge.s32.totalorder %s371_s11, 1  ;;  %s371_s11 = sphi %s393_s11, %s13_s11   ;;  %s367_s10 = sphi %s391_s10, %s439_s10   ;;  %s363_s9 = sphi %s389_s9, %s438_s9  }
   0x3   : > { %p27_p1 = scmp.ge.s32.totalorder %s25_s12, 2  ;;  %p134_p2 = scmp.lt.s32.totalorder %s371_s11, 3 }
   0x5   : > { %s441_s12 = smov (%p27_p1, %s25_s12), 0  ;;  %p135_p3 = pnand %p309_p0, %p134_p2 }
   0x6   : > { %p162_p4 = scmp.lt.s32.totalorder (!%p135_p3), %s363_s9, 1 }
   0x7   : > { %138 = sbr.rel (%p135_p3) target bundleno = 41 (0x29), region = 24 }
   0xc   : > { %s443_s9 = smov (!%p162_p4, %s363_s9), 1  ;;  %v373_v0 = vmov 0.0  }
   0xd   : > { %s314_s13 = sshll.u32 %s443_s9, 4  ;;  %s410_s16 = scalar_lea.vmem %s436_s1, %s443_s9 }
   0xe   : > { %s169_s19 = scalar_lea.vmem %s435_s0, %s314_s13  ;;  %181 = vst [vmem:[%s410_s16] sm:$0x1] %v373_v0  ;;  %s419_s22 = scalar_lea.vmem %s437_s2, %s443_s9 }
   0xf   : > { %v316_v1 = vld [vmem:[%s169_s19] sm:$0xff]   ;;  %v323_v2 = vld [vmem:[%s169_s19 + $0x8] sm:$0xff]   ;;  %182 = vst [vmem:[%s419_s22] sm:$0x1] %v373_v0 }
  0x10   : > { %v317_v3 = vunpack.c.l.bf16 %v316_v1  ;;  %v318_v4 = vunpack.c.h.bf16 %v316_v1  ;;  %v321_v5 = vunpack.c.l.bf16 %v323_v2  ;;  %v322_v6 = vunpack.c.h.bf16 %v323_v2 }
  0x12   : > { %v192_v7 = vadd.f32 %v318_v4, %v317_v3  ;;  %v204_v8 = vmul.f32 %v317_v3, %v317_v3  ;;  %v205_v9 = vmul.f32 %v318_v4, %v318_v4  ;;  %v206_v10 = vmul.f32 %v321_v5, %v321_v5 }
  0x13   : > { %v207_v12 = vmul.f32 %v322_v6, %v322_v6 }
  0x14   : > { %v193_v11 = vadd.f32 %v321_v5, %v192_v7  ;;  %v208_v13 = vadd.f32 %v205_v9, %v204_v8 }
  0x15   : > { %v191_v26 = vld [vmem:[%s410_s16] sm:$0x1] }
  0x16   : > { %v194_v14 = vadd.f32 %v322_v6, %v193_v11  ;;  %v209_v15 = vadd.f32 %v208_v13, %v206_v10  ;;  %v203_v29 = vld [vmem:[%s419_s22] sm:$0x1] }
  0x18   : > { %v195_v16 = vrot.slane %v194_v14, 4  ;;  %v210_v17 = vadd.f32 %v209_v15, %v207_v12 }
  0x1a   : > { %v196_v18 = vadd.f32 %v195_v16, %v194_v14  ;;  %v211_v19 = vrot.slane %v210_v17, 4 }
  0x1c   : > { %v197_v20 = vrot.slane %v196_v18, 2  ;;  %v212_v21 = vadd.f32 %v211_v19, %v210_v17 }
  0x1e   : > { %v198_v22 = vadd.f32 %v197_v20, %v196_v18  ;;  %v213_v23 = vrot.slane %v212_v21, 2 }
  0x20   : > { %v199_v24 = vrot.slane %v198_v22, 1  ;;  %v214_v25 = vadd.f32 %v213_v23, %v212_v21 }
  0x22   : > { %v200_v27 = vadd.f32 %v199_v24, %v198_v22  ;;  %v215_v28 = vrot.slane %v214_v25, 1 }
  0x24   : > { %v201_v30 = vadd.f32 %v200_v27, %v191_v26  ;;  %v216_v31 = vadd.f32 %v215_v28, %v214_v25 }
  0x26   : > { %202 = vst [vmem:[%s410_s16] sm:$0x1] %v201_v30  ;;  %v217_v32 = vadd.f32 %v216_v31, %v203_v29 }
  0x28   : > { %218 = vst [vmem:[%s419_s22] sm:$0x1] %v217_v32 }
  0x29 PF: > { %s13_s11 = sadd.s32 1, %s371_s11   ;;  %s438_s9 = smov %s367_s10 }
  0x2a   : > { %p10_p5 = scmp.ge.s32.totalorder %s13_s11, 4   ;;  %s439_s10 = smov %s441_s12 }
  0x2c   :  { %12 = sbr.rel (!%p10_p5) target bundleno = 2 (0x2), region = 70 }

// kernel: transformer_network_forward.51
= control target key start
LH: loop header
LB: loop body
LE: loop exit
PB: predicated region body
PF: predicated region fallthrough
CT: control target
= control target key end

     0   :  { %s508_s12 = smov 0   ;;  %s510_s13 = smov 0   ;;  %s547_s0 = inlined_call_operand.vmem [shape: bf16[2,32,128], index: 0, kind: input, shape index: {}]   ;;  %s548_s1 = inlined_call_operand.vmem [shape: f32[2,1,128], index: 1, kind: input, shape index: {}]   ;;  %s549_s2 = inlined_call_operand.vmem [shape: f32[2,1,128], index: 2, kind: input, shape index: {}]   ;;  %s550_s3 = inlined_call_operand.vmem [shape: bf16[2,32,128], index: 3, kind: output, shape index: {}]  }
   0x1   :  { %s512_s14 = smov 0  }
   0x2 LB: > { %s25_s15 = sadd.s32 1, %s482_s13  ;;  %p401_p0 = scmp.ge.s32.totalorder %s486_s14, 1  ;;  %s486_s14 = sphi %s512_s14, %s13_s14   ;;  %s482_s13 = sphi %s510_s13, %s552_s13   ;;  %s478_s12 = sphi %s508_s12, %s551_s12  }
   0x3   : > { %p27_p1 = scmp.ge.s32.totalorder %s25_s15, 2  ;;  %p174_p2 = scmp.lt.s32.totalorder %s486_s14, 3 }
   0x5   : > { %s554_s15 = smov (%p27_p1, %s25_s15), 0  ;;  %p175_p3 = pnand %p401_p0, %p174_p2 }
   0x6   : > { %p213_p4 = scmp.lt.s32.totalorder (!%p175_p3), %s478_s12, 1 }
   0x7   : > { %178 = sbr.rel (%p175_p3) target bundleno = 27 (0x1b), region = 32 }
   0xc   : > { %s556_s12 = smov (!%p213_p4, %s478_s12), 1 }
   0xd   : > { %s414_s16 = sshll.u32 %s556_s12, 4  ;;  %s224_s19 = scalar_lea.vmem %s548_s1, %s556_s12 }
   0xe   : > { %s220_s22 = scalar_lea.vmem %s547_s0, %s414_s16  ;;  %s227_s25 = scalar_lea.vmem %s549_s2, %s556_s12  ;;  %v406_v2 = vld [vmem:[%s224_s19] ss:$0 sm:$0xff] }
   0xf   : > { %v421_v0 = vld [vmem:[%s220_s22] sm:$0xff]   ;;  %v438_v1 = vld [vmem:[%s220_s22 + $0x8] sm:$0xff]   ;;  %s236_s28 = scalar_lea.vmem %s550_s3, %s414_s16 }
  0x10   : > { %v422_v3 = vunpack.c.l.bf16 %v421_v0  ;;  %v423_v4 = vunpack.c.h.bf16 %v421_v0  ;;  %v426_v5 = vunpack.c.l.bf16 %v438_v1  ;;  %v427_v6 = vunpack.c.h.bf16 %v438_v1  ;;  %v407_v7 = vld [vmem:[%s227_s25] ss:$0 sm:$0xff] }
  0x12   : > { %v253_v8 = vmul.f32 %v422_v3, %v406_v2  ;;  %v254_v9 = vmul.f32 %v423_v4, %v406_v2  ;;  %v255_v10 = vmul.f32 %v426_v5, %v406_v2  ;;  %v256_v11 = vmul.f32 %v427_v6, %v406_v2 }
  0x14   : > { %v264_v12 = vadd.f32 %v407_v7, %v253_v8  ;;  %v265_v13 = vadd.f32 %v407_v7, %v254_v9  ;;  %v266_v14 = vadd.f32 %v407_v7, %v255_v10  ;;  %v267_v15 = vadd.f32 %v407_v7, %v256_v11 }
  0x16   : > { %v268_v16 = vmax.f32 %v264_v12, 0.0  ;;  %v269_v17 = vmax.f32 %v265_v13, 0.0  ;;  %v270_v18 = vmax.f32 %v266_v14, 0.0  ;;  %v271_v19 = vmax.f32 %v267_v15, 0.0 }
  0x18   : > { %v431_v20 = vpack.c.bf16 %v269_v17, %v268_v16  ;;  %v436_v21 = vpack.c.bf16 %v271_v19, %v270_v18 }
  0x1a   : > { %432 = vst [vmem:[%s236_s28] sm:$0xff] %v431_v20   ;;  %439 = vst [vmem:[%s236_s28 + $0x8] sm:$0xff] %v436_v21  }
  0x1b PF: > { %s13_s14 = sadd.s32 1, %s486_s14   ;;  %s551_s12 = smov %s482_s13 }
  0x1c   : > { %p10_p5 = scmp.ge.s32.totalorder %s13_s14, 4   ;;  %s552_s13 = smov %s554_s15 }
  0x1e   :  { %12 = sbr.rel (!%p10_p5) target bundleno = 2 (0x2), region = 68 }

// kernel: transformer_network_forward.54
= control target key start
LH: loop header
LB: loop body
LE: loop exit
PB: predicated region body
PF: predicated region fallthrough
CT: control target
= control target key end

     0   :  { %s473_s12 = smov 0   ;;  %s475_s13 = smov 0   ;;  %s509_s0 = inlined_call_operand.vmem [shape: bf16[2,16,128], index: 0, kind: input, shape index: {}]   ;;  %s510_s1 = inlined_call_operand.vmem [shape: f32[2,1,128], index: 1, kind: input, shape index: {}]   ;;  %s511_s2 = inlined_call_operand.vmem [shape: f32[2,1,128], index: 2, kind: input, shape index: {}]   ;;  %s512_s3 = inlined_call_operand.vmem [shape: bf16[2,16,128], index: 3, kind: output, shape index: {}]  }
   0x1   :  { %s477_s14 = smov 0  }
   0x2 LB: > { %s25_s15 = sadd.s32 1, %s447_s13  ;;  %p381_p0 = scmp.ge.s32.totalorder %s451_s14, 1  ;;  %s451_s14 = sphi %s477_s14, %s13_s14   ;;  %s447_s13 = sphi %s475_s13, %s514_s13   ;;  %s443_s12 = sphi %s473_s12, %s513_s12  }
   0x3   : > { %p27_p1 = scmp.ge.s32.totalorder %s25_s15, 2  ;;  %p174_p2 = scmp.lt.s32.totalorder %s451_s14, 3 }
   0x5   : > { %s516_s15 = smov (%p27_p1, %s25_s15), 0  ;;  %p175_p3 = pnand %p381_p0, %p174_p2 }
   0x6   : > { %p213_p4 = scmp.lt.s32.totalorder (!%p175_p3), %s443_s12, 1 }
   0x7   : > { %178 = sbr.rel (%p175_p3) target bundleno = 27 (0x1b), region = 32 }
   0xc   : > { %s518_s12 = smov (!%p213_p4, %s443_s12), 1 }
   0xd   : > { %s392_s16 = sshll.u32 %s518_s12, 3  ;;  %s224_s19 = scalar_lea.vmem %s510_s1, %s518_s12 }
   0xe   : > { %s220_s22 = scalar_lea.vmem %s509_s0, %s392_s16  ;;  %s227_s25 = scalar_lea.vmem %s511_s2, %s518_s12  ;;  %v386_v1 = vld [vmem:[%s224_s19] ss:$0 sm:$0xff] }
   0xf   : > { %v397_v0 = vld [vmem:[%s220_s22] sm:$0xff]   ;;  %s236_s28 = scalar_lea.vmem %s512_s3, %s392_s16 }
  0x10   : > { %v398_v2 = vunpack.c.l.bf16 %v397_v0  ;;  %v399_v3 = vunpack.c.h.bf16 %v397_v0  ;;  %v387_v4 = vld [vmem:[%s227_s25] ss:$0 sm:$0xff] }
  0x12   : > { %v249_v5 = vmul.f32 %v398_v2, %v386_v1  ;;  %v250_v6 = vmul.f32 %v399_v3, %v386_v1 }
  0x14   : > { %v258_v7 = vadd.f32 %v387_v4, %v249_v5  ;;  %v259_v8 = vadd.f32 %v387_v4, %v250_v6 }
  0x16   : > { %v260_v9 = vmax.f32 %v258_v7, 0.0  ;;  %v261_v10 = vmax.f32 %v259_v8, 0.0 }
  0x18   : > { %v403_v11 = vpack.c.bf16 %v261_v10, %v260_v9 }
  0x1a   : > { %404 = vst [vmem:[%s236_s28] sm:$0xff] %v403_v11  }
  0x1b PF: > { %s13_s14 = sadd.s32 1, %s451_s14   ;;  %s513_s12 = smov %s447_s13 }
  0x1c   : > { %p10_p5 = scmp.ge.s32.totalorder %s13_s14, 4   ;;  %s514_s13 = smov %s516_s15 }
  0x1e   :  { %12 = sbr.rel (!%p10_p5) target bundleno = 2 (0x2), region = 68 }

// kernel: transformer_network_forward.53
= control target key start
LH: loop header
LB: loop body
LE: loop exit
PB: predicated region body
PF: predicated region fallthrough
CT: control target
= control target key end

     0   :  { %s374_s9 = smov 0   ;;  %s376_s10 = smov 0   ;;  %s410_s0 = inlined_call_operand.vmem [shape: bf16[2,16,128], index: 0, kind: input, shape index: {}]   ;;  %s411_s1 = inlined_call_operand.vmem [shape: f32[2,1,128], index: 1, kind: output, shape index: {0}]   ;;  %s412_s2 = inlined_call_operand.vmem [shape: f32[2,1,128], index: 2, kind: output, shape index: {1}]  }
   0x1   :  { %s378_s11 = smov 0  }
   0x2 LB: > { %s25_s12 = sadd.s32 1, %s352_s10  ;;  %p299_p0 = scmp.ge.s32.totalorder %s356_s11, 1  ;;  %s356_s11 = sphi %s378_s11, %s13_s11   ;;  %s352_s10 = sphi %s376_s10, %s414_s10   ;;  %s348_s9 = sphi %s374_s9, %s413_s9  }
   0x3   : > { %p27_p1 = scmp.ge.s32.totalorder %s25_s12, 2  ;;  %p134_p2 = scmp.lt.s32.totalorder %s356_s11, 3 }
   0x5   : > { %s416_s12 = smov (%p27_p1, %s25_s12), 0  ;;  %p135_p3 = pnand %p299_p0, %p134_p2 }
   0x6   : > { %p162_p4 = scmp.lt.s32.totalorder (!%p135_p3), %s348_s9, 1 }
   0x7   : > { %138 = sbr.rel (%p135_p3) target bundleno = 37 (0x25), region = 24 }
   0xc   : > { %s418_s9 = smov (!%p162_p4, %s348_s9), 1  ;;  %v358_v0 = vmov 0.0  }
   0xd   : > { %s304_s13 = sshll.u32 %s418_s9, 3  ;;  %s173_s16 = scalar_lea.vmem %s411_s1, %s418_s9 }
   0xe   : > { %s169_s19 = scalar_lea.vmem %s410_s0, %s304_s13  ;;  %181 = vst [vmem:[%s173_s16] sm:$0x1] %v358_v0  ;;  %s176_s22 = scalar_lea.vmem %s412_s2, %s418_s9 }
   0xf   : > { %v306_v1 = vld [vmem:[%s169_s19] sm:$0xff]   ;;  %182 = vst [vmem:[%s176_s22] sm:$0x1] %v358_v0 }
  0x10   : > { %v307_v2 = vunpack.c.l.bf16 %v306_v1  ;;  %v308_v3 = vunpack.c.h.bf16 %v306_v1 }
  0x12   : > { %v198_v4 = vmul.f32 %v307_v2, %v307_v2  ;;  %v199_v5 = vmul.f32 %v308_v3, %v308_v3  ;;  %v188_v6 = vadd.f32 %v308_v3, %v307_v2 }
  0x14   : > { %v189_v7 = vrot.slane %v188_v6, 4  ;;  %v200_v8 = vadd.f32 %v199_v5, %v198_v4 }
  0x15   : > { %v187_v17 = vld [vmem:[%s173_s16] sm:$0x1] }
  0x16   : > { %v190_v9 = vadd.f32 %v189_v7, %v188_v6  ;;  %v201_v10 = vrot.slane %v200_v8, 4  ;;  %v197_v20 = vld [vmem:[%s176_s22] sm:$0x1] }
  0x18   : > { %v191_v11 = vrot.slane %v190_v9, 2  ;;  %v202_v12 = vadd.f32 %v201_v10, %v200_v8 }
  0x1a   : > { %v192_v13 = vadd.f32 %v191_v11, %v190_v9  ;;  %v203_v14 = vrot.slane %v202_v12, 2 }
  0x1c   : > { %v193_v15 = vrot.slane %v192_v13, 1  ;;  %v204_v16 = vadd.f32 %v203_v14, %v202_v12 }
  0x1e   : > { %v194_v18 = vadd.f32 %v193_v15, %v192_v13  ;;  %v205_v19 = vrot.slane %v204_v16, 1 }
  0x20   : > { %v195_v21 = vadd.f32 %v194_v18, %v187_v17  ;;  %v206_v22 = vadd.f32 %v205_v19, %v204_v16 }
  0x22   : > { %196 = vst [vmem:[%s173_s16] sm:$0x1] %v195_v21  ;;  %v207_v23 = vadd.f32 %v206_v22, %v197_v20 }
  0x24   : > { %208 = vst [vmem:[%s176_s22] sm:$0x1] %v207_v23 }
  0x25 PF: > { %s13_s11 = sadd.s32 1, %s356_s11   ;;  %s413_s9 = smov %s352_s10 }
  0x26   : > { %p10_p5 = scmp.ge.s32.totalorder %s13_s11, 4   ;;  %s414_s10 = smov %s416_s12 }
  0x28   :  { %12 = sbr.rel (!%p10_p5) target bundleno = 2 (0x2), region = 70 }

// kernel: transformer_network_forward.52
= control target key start
LH: loop header
LB: loop body
LE: loop exit
PB: predicated region body
PF: predicated region fallthrough
CT: control target
= control target key end

     0   :  { %vm362_vm0 = vcmask 523264   ;;  %s890_s1 = inlined_call_operand.vmem [shape: bf16[576,128], index: 1, kind: input, shape index: {}]   ;;  %s891_s0 = inlined_call_operand.vmem [shape: bf16[32,576], index: 0, kind: input, shape index: {}]   ;;  %s892_s2 = inlined_call_operand.vmem [shape: bf16[32,128], index: 2, kind: output, shape index: {}]  }
   0x1   :  { %v681_v0 = vld [vmem:[%s890_s1 + $0x78] sm:$0xff]   ;;  %v685_v4 = vld [vmem:[%s890_s1 + $0x70] sm:$0xff]   ;;  %v689_v8 = vld [vmem:[%s890_s1 + $0x68] sm:$0xff]  }
   0x2   :  { %v682_v1 = vld [vmem:[%s890_s1 + $0xf8] sm:$0xff]   ;;  %607 = vmatprep.subr.bf16.mxu0 %v681_v0  ;;  %v686_v5 = vld [vmem:[%s890_s1 + $0xf0] sm:$0xff]   ;;  %v690_v9 = vld [vmem:[%s890_s1 + $0xe8] sm:$0xff]  }
   0x3   :  { %v683_v2 = vld [vmem:[%s890_s1 + $0x38] sm:$0xff]   ;;  %635 = vmatprep.subr.bf16.mxu1 %v682_v1  ;;  %v687_v6 = vld [vmem:[%s890_s1 + $0x30] sm:$0xff]   ;;  %v691_v10 = vld [vmem:[%s890_s1 + $0x28] sm:$0xff]  }
   0x4   :  { %v684_v3 = vld [vmem:[%s890_s1 + $0xb8] sm:$0xff]   ;;  %608 = vmatpush3.bf16.msra.mxu0 %v683_v2  ;;  %v688_v7 = vld [vmem:[%s890_s1 + $0xb0] sm:$0xff]   ;;  %v692_v11 = vld [vmem:[%s890_s1 + $0xa8] sm:$0xff]  }
   0x5   :  { %636 = vmatpush3.bf16.msra.mxu1 %v684_v3  ;;  %609 = vmatprep.subr.bf16.mxu0 %v685_v4  ;;  %v693_v12 = vld [vmem:[%s890_s1 + $0x60] sm:$0xff]   ;;  %v697_v16 = vld [vmem:[%s890_s1 + $0x58] sm:$0xff]   ;;  %v701_v20 = vld [vmem:[%s890_s1 + $0x50] sm:$0xff]  }
   0x6   :  { %637 = vmatprep.subr.bf16.mxu1 %v686_v5  ;;  %v694_v13 = vld [vmem:[%s890_s1 + $0xe0] sm:$0xff]   ;;  %v698_v17 = vld [vmem:[%s890_s1 + $0xd8] sm:$0xff]   ;;  %v702_v21 = vld [vmem:[%s890_s1 + $0xd0] sm:$0xff]  }
   0x7   :  { %v695_v14 = vld [vmem:[%s890_s1 + $0x20] sm:$0xff]   ;;  %v699_v18 = vld [vmem:[%s890_s1 + $0x18] sm:$0xff]   ;;  %v703_v22 = vld [vmem:[%s890_s1 + $0x10] sm:$0xff]  }
   0x8   :  { %610 = vmatpush3.bf16.msra.mxu0 %v687_v6  ;;  %v696_v15 = vld [vmem:[%s890_s1 + $0xa0] sm:$0xff]   ;;  %v700_v19 = vld [vmem:[%s890_s1 + $0x98] sm:$0xff]   ;;  %v704_v23 = vld [vmem:[%s890_s1 + $0x90] sm:$0xff]  }
   0x9   :  { %638 = vmatpush3.bf16.msra.mxu1 %v688_v7  ;;  %611 = vmatprep.subr.bf16.mxu0 %v689_v8  ;;  %v705_v24 = vld [vmem:[%s890_s1 + $0x48] sm:$0xff]   ;;  %v709_v28 = vld [vmem:[%s890_s1 + $0x40] sm:$0xff]   ;;  %v719_v36 = vld [vmem:[%s890_s1 + $0x118] sm:$0xff]  }
   0xa   :  { %639 = vmatprep.subr.bf16.mxu1 %v690_v9  ;;  %v706_v25 = vld [vmem:[%s890_s1 + $0xc8] sm:$0xff]   ;;  %v710_v29 = vld [vmem:[%s890_s1 + $0xc0] sm:$0xff]   ;;  %v720_v37 = vld [vmem:[%s890_s1 + $0x110] sm:$0xff]  }
   0xb   :  { %v707_v26 = vld [vmem:[%s890_s1 + $0x8] sm:$0xff]   ;;  %v711_v30 = vld [vmem:[%s890_s1] sm:$0xff]  }
   0xc   :  { %612 = vmatpush3.bf16.msra.mxu0 %v691_v10  ;;  %v708_v27 = vld [vmem:[%s890_s1 + $0x88] sm:$0xff]   ;;  %v712_v31 = vld [vmem:[%s890_s1 + $0x80] sm:$0xff]  }
   0xd   :  { %640 = vmatpush3.bf16.msra.mxu1 %v692_v11  ;;  %613 = vmatprep.subr.bf16.mxu0 %v693_v12  ;;  %v713_v32 = vld [vmem:[%s891_s0] ss:$20 sps:$4 sm:$0xff]   ;;  %v715_v33 = vld [vmem:[%s891_s0 + $0x4] ss:$20 sps:$4 sm:$0xff]   ;;  %v716_v34 = vld [vmem:[%s891_s0 + $0x8] ss:$20 sps:$4 sm:$0xff]  }
   0xe   :  { %641 = vmatprep.subr.bf16.mxu1 %v694_v13  ;;  %v718_v35 = vld [vmem:[%s891_s0 + $0xc] ss:$20 sps:$4 sm:$0xff]   ;;  %401 = vmatprep.mubr.bf16.mxu0 %v715_v33  ;;  %v723_v39 = vld [vmem:[%s891_s0 + $0x34] ss:$20 sps:$4 sm:$0xff]   ;;  %v726_v42 = vld [vmem:[%s891_s0 + $0x30] ss:$20 sps:$4 sm:$0xff]  }
   0xf   :  { %450 = vmatprep.mubr.bf16.mxu1 %v718_v35  ;;  %v721_v38 = vld [vmem:[%s891_s0 + $0x2c] ss:$20 sps:$4 sm:$0xff]   ;;  %v725_v40 = vld [vmem:[%s891_s0 + $0x28] ss:$20 sps:$4 sm:$0xff]   ;;  %v729_v43 = vld [vmem:[%s891_s0 + $0x10] ss:$20 sps:$4 sm:$0xff]  }
  0x10   :  { %614 = vmatpush3.bf16.msra.mxu0 %v695_v14  ;;  %v727_v41 = vld [vmem:[%s890_s1 + $0x108] sm:$0xff]   ;;  %v728_v44 = vld [vmem:[%s890_s1 + $0x100] sm:$0xff]  }
  0x11   :  { %642 = vmatpush3.bf16.msra.mxu1 %v696_v15  ;;  %615 = vmatprep.subr.bf16.mxu0 %v697_v16  ;;  %v730_v45 = vld [vmem:[%s891_s0 + $0x38] ss:$20 sps:$4 sm:$0xff]  }
  0x12   :  { %643 = vmatprep.subr.bf16.mxu1 %v698_v17 }
  0x14   :  { %616 = vmatpush3.bf16.msra.mxu0 %v699_v18 }
  0x15   :  { %644 = vmatpush3.bf16.msra.mxu1 %v700_v19  ;;  %617 = vmatprep.subr.bf16.mxu0 %v701_v20 }
  0x16   :  { %645 = vmatprep.subr.bf16.mxu1 %v702_v21 }
  0x18   :  { %618 = vmatpush3.bf16.msra.mxu0 %v703_v22 }
  0x19   :  { %646 = vmatpush3.bf16.msra.mxu1 %v704_v23  ;;  %619 = vmatprep.subr.bf16.mxu0 %v705_v24 }
  0x1a   :  { %647 = vmatprep.subr.bf16.mxu1 %v706_v25 }
  0x1c   :  { %620 = vmatpush3.bf16.msra.mxu0 %v707_v26 }
  0x1d   :  { %648 = vmatpush3.bf16.msra.mxu1 %v708_v27  ;;  %621 = vmatprep.subr.bf16.mxu0 %v709_v28 }
  0x1e   :  { %649 = vmatprep.subr.bf16.mxu1 %v710_v29 }
  0x20   :  { %622 = vmatpush3.bf16.msra.mxu0 %v711_v30 }
  0x21   :  { %650 = vmatpush3.bf16.msra.mxu1 %v712_v31  ;;  %669 = vmatprep.subr.bf16.mxu0 %v719_v36 }
  0x23   :  { %402 = vmatmul.mubr.bf16.vlgmr.msra.gmra.mxu0 %v713_v32 }
  0x24   :  { %451 = vmatmul.mubr.bf16.vlgmr.msra.gmra.mxu1 %v716_v34  ;;  %670 = vmatpush3.bf16.msra.mxu0 %v719_v36 }
  0x25   :  { %671 = vmatprep.subr.bf16.mxu0 %v720_v37  ;;  %409 = vmatprep.mubr.bf16.mxu0 %v721_v38 }
  0x26   :  { %458 = vmatprep.mubr.bf16.mxu1 %v723_v39 }
  0x28   :  { %672 = vmatpush3.bf16.msra.mxu0 %v720_v37 }
  0x29   :  { %673 = vmatprep.subr.bf16.mxu0 %v727_v41 }
  0x2b   :  { %410 = vmatmul.mubr.bf16.gmra.mxu0 %v725_v40 }
  0x2c   :  { %459 = vmatmul.mubr.bf16.gmra.mxu1 %v726_v42  ;;  %677 = vmatprep.mubr.msk.bf16.mxu0 %vm362_vm0, %v729_v43 }
  0x2d   :  { %674 = vmatpush3.bf16.msra.mxu0 %v727_v41 }
  0x2e   :  { %675 = vmatprep.subr.bf16.mxu0 %v728_v44 }
  0x31   :  { %676 = vmatpush3.bf16.msra.mxu0 %v728_v44 }
  0x34   :  { %678 = vmatmul.mubr.msk.bf16.vlgmr.msra.gmra.mxu0 %vm362_vm0, %v730_v45 }
  0xe3   :  { %v623_v46 = vpop.f32.mrf.mxu0 }
  0xe4   :  { %v651_v47 = vpop.f32.mrf.mxu1 }
  0xe5   :  { %v624_v48 = vpop.f32.mrf.mxu0 }
  0xe6   :  { %v652_v49 = vpop.f32.mrf.mxu1  ;;  %v625_v3 = vadd.f32 %v624_v48, %v623_v46 }
  0xe7   :  { %v626_v50 = vpop.f32.mrf.mxu0  ;;  %v653_v4 = vadd.f32 %v652_v49, %v651_v47 }
  0xe8   :  { %v654_v51 = vpop.f32.mrf.mxu1 }
  0xe9   :  { %v627_v52 = vpop.f32.mrf.mxu0  ;;  %v453_v12 = vadd.f32 %v653_v4, %v625_v3 }
  0xea   :  { %v655_v53 = vpop.f32.mrf.mxu1  ;;  %v628_v5 = vadd.f32 %v627_v52, %v626_v50 }
  0xeb   :  { %v629_v54 = vpop.f32.mrf.mxu0  ;;  %v656_v6 = vadd.f32 %v655_v53, %v654_v51 }
  0xec   :  { %v657_v55 = vpop.f32.mrf.mxu1 }
  0xed   :  { %v630_v56 = vpop.f32.mrf.mxu0  ;;  %v456_v14 = vadd.f32 %v656_v6, %v628_v5 }
  0xee   :  { %v658_v57 = vpop.f32.mrf.mxu1  ;;  %v631_v62 = vadd.f32 %v630_v56, %v629_v54 }
  0xef   :  { %v632_v58 = vpop.f32.mrf.mxu0  ;;  %v659_v63 = vadd.f32 %v658_v57, %v657_v55 }
  0xf0   :  { %v660_v59 = vpop.f32.mrf.mxu1 }
  0xf1   :  { %v633_v60 = vpop.f32.mrf.mxu0  ;;  %v461_v8 = vadd.f32 %v659_v63, %v631_v62 }
  0xf2   :  { %v661_v61 = vpop.f32.mrf.mxu1  ;;  %v634_v0 = vadd.f32 %v633_v60, %v632_v58 }
  0xf3   :  { %v662_v1 = vadd.f32 %v661_v61, %v660_v59 }
  0xf4   :  { %v679_v2 = vpop.f32.mrf.mxu0 }
  0xf5   :  { %v464_v9 = vadd.f32 %v662_v1, %v634_v0  ;;  %v510_v11 = vadd.f32 %v679_v2, %v461_v8 }
  0xf6   :  { %v501_v7 = vpop.f32.mrf.mxu0 }
  0xf7   :  { %v502_v16 = vadd.f32 %v501_v7, %v453_v12 }
  0xf8   :  { %v680_v10 = vpop.f32.mrf.mxu0 }
  0xf9   :  { %v513_v13 = vadd.f32 %v680_v10, %v464_v9 }
  0xfa   :  { %v504_v15 = vpop.f32.mrf.mxu0 }
  0xfb   :  { %v604_v17 = vpack.c.bf16 %v513_v13, %v510_v11  ;;  %v505_v18 = vadd.f32 %v504_v15, %v456_v14 }
  0xfd   :  { %606 = vst [vmem:[%s892_s2 + $0x8] sm:$0xff] %v604_v17   ;;  %v599_v19 = vpack.c.bf16 %v505_v18, %v502_v16 }
  0xff   :  { %600 = vst [vmem:[%s892_s2] sm:$0xff] %v599_v19  }

// kernel: transformer_network_forward.60
= control target key start
LH: loop header
LB: loop body
LE: loop exit
PB: predicated region body
PF: predicated region fallthrough
CT: control target
= control target key end

     0   :  { %s570_s15 = smov 0   ;;  %s572_s16 = smov 0   ;;  %s612_s0 = inlined_call_operand.vmem [shape: bf16[2,16,128], index: 0, kind: input, shape index: {}]   ;;  %s613_s1 = inlined_call_operand.vmem [shape: f32[2,1,128], index: 1, kind: input, shape index: {}]   ;;  %s614_s2 = inlined_call_operand.vmem [shape: f32[2,1,128], index: 2, kind: input, shape index: {}]   ;;  %s615_s3 = inlined_call_operand.vmem [shape: bf16[2,16,128], index: 3, kind: input, shape index: {}]   ;;  %s616_s4 = inlined_call_operand.vmem [shape: bf16[2,16,128], index: 4, kind: output, shape index: {}]  }
   0x1   :  { %s574_s17 = smov 0  }
   0x2 LB: > { %s26_s18 = sadd.s32 1, %s539_s16  ;;  %p466_p0 = scmp.ge.s32.totalorder %s543_s17, 1  ;;  %s543_s17 = sphi %s574_s17, %s14_s17   ;;  %s539_s16 = sphi %s572_s16, %s618_s16   ;;  %s535_s15 = sphi %s570_s15, %s617_s15  }
   0x3   : > { %p28_p1 = scmp.ge.s32.totalorder %s26_s18, 2  ;;  %p216_p2 = scmp.lt.s32.totalorder %s543_s17, 3 }
   0x5   : > { %s620_s18 = smov (%p28_p1, %s26_s18), 0  ;;  %p217_p3 = pnand %p466_p0, %p216_p2 }
   0x6   : > { %p266_p4 = scmp.lt.s32.totalorder (!%p217_p3), %s535_s15, 1 }
   0x7   : > { %220 = sbr.rel (%p217_p3) target bundleno = 27 (0x1b), region = 36 }
   0xc   : > { %s622_s15 = smov (!%p266_p4, %s535_s15), 1 }
   0xd   : > { %s479_s19 = sshll.u32 %s622_s15, 3  ;;  %s277_s22 = scalar_lea.vmem %s613_s1, %s622_s15 }
   0xe   : > { %s273_s25 = scalar_lea.vmem %s612_s0, %s479_s19  ;;  %s280_s28 = scalar_lea.vmem %s614_s2, %s622_s15  ;;  %v473_v1 = vld [vmem:[%s277_s22] ss:$0 sm:$0xff] }
   0xf   : > { %s289_s5 = scalar_lea.vmem %s615_s3, %s479_s19  ;;  %v485_v0 = vld [vmem:[%s273_s25] sm:$0xff]   ;;  %s299_s8 = scalar_lea.vmem %s616_s4, %s479_s19 }
  0x10   : > { %v486_v2 = vunpack.c.l.bf16 %v485_v0  ;;  %v487_v3 = vunpack.c.h.bf16 %v485_v0  ;;  %v489_v4 = vld [vmem:[%s289_s5] sm:$0xff]  }
  0x11   : > { %v474_v5 = vld [vmem:[%s280_s28] ss:$0 sm:$0xff]  ;;  %v490_v8 = vunpack.c.l.bf16 %v489_v4  ;;  %v491_v9 = vunpack.c.h.bf16 %v489_v4 }
  0x12   : > { %v312_v6 = vmul.f32 %v486_v2, %v473_v1  ;;  %v313_v7 = vmul.f32 %v487_v3, %v473_v1 }
  0x14   : > { %v321_v10 = vadd.f32 %v474_v5, %v312_v6  ;;  %v322_v11 = vadd.f32 %v474_v5, %v313_v7 }
  0x16   : > { %v327_v12 = vadd.f32 %v490_v8, %v321_v10  ;;  %v328_v13 = vadd.f32 %v491_v9, %v322_v11 }
  0x18   : > { %v495_v14 = vpack.c.bf16 %v328_v13, %v327_v12 }
  0x1a   : > { %496 = vst [vmem:[%s299_s8] sm:$0xff] %v495_v14  }
  0x1b PF: > { %s14_s17 = sadd.s32 1, %s543_s17   ;;  %s617_s15 = smov %s539_s16 }
  0x1c   : > { %p11_p5 = scmp.ge.s32.totalorder %s14_s17, 4   ;;  %s618_s16 = smov %s620_s18 }
  0x1e   :  { %13 = sbr.rel (!%p11_p5) target bundleno = 2 (0x2), region = 75 }

// kernel: transformer_network_forward.55
= control target key start
LH: loop header
LB: loop body
LE: loop exit
PB: predicated region body
PF: predicated region fallthrough
CT: control target
= control target key end

     0   :  { %s1582_s9 = smov 0   ;;  %s1880_s0 = inlined_call_operand.vmem [shape: bf16[2,24,384], index: 0, kind: input, shape index: {}]   ;;  %s1881_s1 = inlined_call_operand.vmem [shape: bf16[3,384,128], index: 1, kind: input, shape index: {}]   ;;  %s1882_s2 = inlined_call_operand.vmem [shape: bf16[2,16,128], index: 2, kind: output, shape index: {}]  }
   0x1 LB: > { %s1109_s10 = sadd.s32 4294967295, %s1563_s9   ;;  %p1113_p0 = scmp.ge.s32.totalorder %s1563_s9, 1  ;;  %s1563_s9 = sphi %s1582_s9, %s12_s9  }
   0x2   : > { %p112_p1 = scmp.lt.s32.totalorder %s1563_s9, 3 }
   0x4   : > { %p113_p2 = pnand %p1113_p0, %p112_p1 }
   0x5   : > { %p134_p3 = scmp.lt.s32.totalorder (!%p113_p2), %s1109_s10, 1 }
   0x6   : > { %116 = sbr.rel (%p113_p2) target bundleno = 317 (0x13d), region = 28 }
   0xb   : > { %v1473_v0 = vld [vmem:[%s1881_s1 + $0x138] sm:$0xff]   ;;  %v1565_v1 = vmov 0.0   ;;  %vm1566_vm0 = vmmov 0   ;;  %v1476_v4 = vld [vmem:[%s1881_s1 + $0x130] sm:$0xff]   ;;  %v1479_v7 = vld [vmem:[%s1881_s1 + $0x128] sm:$0xff]   ;;  %s1884_s10 = smov (!%p134_p3, %s1109_s10), 1 }
   0xc   : > { %1402 = vmatprep.subr.bf16.mxu1 %v1565_v1  ;;  %v1474_v2 = vld [vmem:[%s1881_s1 + $0x178] sm:$0xff]   ;;  %1309 = vmatprep.subr.bf16.mxu0 %v1473_v0  ;;  %v1477_v5 = vld [vmem:[%s1881_s1 + $0x170] sm:$0xff]   ;;  %v1480_v8 = vld [vmem:[%s1881_s1 + $0x168] sm:$0xff]   ;;  %s1462_s17 = smul.u32 36, %s1884_s10  ;;  %vm273_vm1 = vcmask 1045504   ;;  %s1301_s4 = sshll.u32 %s1884_s10, 3 }
   0xd   : > { %v1475_v3 = vld [vmem:[%s1881_s1 + $0xf8] sm:$0xff]   ;;  %1418 = vmatprep.mubr.msk.bf16.mxu1 %vm1566_vm0, %v1565_v1  ;;  %1403 = vmatpush3.bf16.msra.mxu1 %v1474_v2  ;;  %v1478_v6 = vld [vmem:[%s1881_s1 + $0xf0] sm:$0xff]   ;;  %v1481_v9 = vld [vmem:[%s1881_s1 + $0xe8] sm:$0xff]   ;;  %s143_s7 = scalar_lea.vmem %s1882_s2, %s1301_s4 }
   0xe   : > { %1310 = vmatpush3.bf16.msra.mxu0 %v1475_v3  ;;  %1404 = vmatprep.subr.bf16.mxu1 %v1565_v1  ;;  %v1482_v10 = vld [vmem:[%s1881_s1 + $0x120] sm:$0xff]   ;;  %v1485_v13 = vld [vmem:[%s1881_s1 + $0x118] sm:$0xff]   ;;  %v1488_v16 = vld [vmem:[%s1881_s1 + $0x110] sm:$0xff]   ;;  %s1668_s28 = scalar_lea.vmem %s1880_s0, %s1462_s17 }
   0xf   : > { %1311 = vmatprep.subr.bf16.mxu0 %v1476_v4  ;;  %v1483_v11 = vld [vmem:[%s1881_s1 + $0x160] sm:$0xff]   ;;  %v1486_v14 = vld [vmem:[%s1881_s1 + $0x158] sm:$0xff]   ;;  %v1489_v17 = vld [vmem:[%s1881_s1 + $0x150] sm:$0xff]  }
  0x10   : > { %v1484_v12 = vld [vmem:[%s1881_s1 + $0xe0] sm:$0xff]   ;;  %v1487_v15 = vld [vmem:[%s1881_s1 + $0xd8] sm:$0xff]   ;;  %v1490_v18 = vld [vmem:[%s1881_s1 + $0xd0] sm:$0xff]  }
  0x11   : > { %1405 = vmatpush3.bf16.msra.mxu1 %v1477_v5  ;;  %v1491_v19 = vld [vmem:[%s1881_s1 + $0x108] sm:$0xff]   ;;  %v1494_v22 = vld [vmem:[%s1881_s1 + $0x100] sm:$0xff]   ;;  %v201_v25 = vld [vmem:[%s1668_s28 + $0x18] sm:$0x33] }
  0x12   : > { %1312 = vmatpush3.bf16.msra.mxu0 %v1478_v6  ;;  %1406 = vmatprep.subr.bf16.mxu1 %v1565_v1  ;;  %v1492_v20 = vld [vmem:[%s1881_s1 + $0x148] sm:$0xff]   ;;  %v197_v23 = vld [vmem:[%s1668_s28] sm:$0xcc]  ;;  %v1169_v28 = vcombine.high %v201_v25, %v201_v25  ;;  %v1688_v30 = vld [vmem:[%s1668_s28 + $0x14] sm:$0xf]  ;;  %v1168_v32 = vcombine.low %v201_v25, %v201_v25 }
  0x13   : > { %1313 = vmatprep.subr.bf16.mxu0 %v1479_v7  ;;  %v1493_v21 = vld [vmem:[%s1881_s1 + $0xc8] sm:$0xff]   ;;  %v1495_v26 = vld [vmem:[%s1881_s1 + $0x140] sm:$0xff]   ;;  %v1503_v43 = vld [vmem:[%s1881_s1 + $0x78] sm:$0xff]  }
  0x14   : > { %v1679_v24 = vld [vmem:[%s1668_s28 + $0xc] sm:$0xff]  ;;  %v198_v29 = vld [vmem:[%s1668_s28 + $0x8] sm:$0xc]  ;;  %v1496_v33 = vld [vmem:[%s1881_s1 + $0xc0] sm:$0xff]   ;;  %v278_v37 = vrot.slane %v1169_v28, 2  ;;  %v275_v39 = vrot.slane %v1168_v32, 2 }
  0x15   : > { %1407 = vmatpush3.bf16.msra.mxu1 %v1480_v8  ;;  %v1166_v27 = vcombine.high %v197_v23, %v1679_v24  ;;  %v1165_v31 = vcombine.low %v197_v23, %v1679_v24  ;;  %v1167_v34 = vcombine.low %v198_v29, %v1688_v30  ;;  %v1500_v35 = vld [vmem:[%s1668_s28 + $0x20] ss:$0 sps:$4 sm:$0x33]   ;;  %v1504_v45 = vld [vmem:[%s1881_s1 + $0xb8] sm:$0xff]   ;;  %v1506_v48 = vld [vmem:[%s1881_s1 + $0x70] sm:$0xff]  }
  0x16   : > { %1314 = vmatpush3.bf16.msra.mxu0 %v1481_v9  ;;  %1408 = vmatprep.subr.bf16.mxu1 %v1565_v1  ;;  %v281_v41 = vrot.slane %v1500_v35, 2  ;;  %v1505_v47 = vld [vmem:[%s1881_s1 + $0x38] sm:$0xff]   ;;  %v1507_v49 = vld [vmem:[%s1881_s1 + $0xb0] sm:$0xff]   ;;  %v1509_v51 = vld [vmem:[%s1881_s1 + $0x68] sm:$0xff]  }
  0x17   : > { %1315 = vmatprep.subr.bf16.mxu0 %v1482_v10  ;;  %v277_v36 = vrot.slane %v1166_v27, 2  ;;  %v274_v38 = vrot.slane %v1165_v31, 2  ;;  %v280_v40 = vrot.slane %v1167_v34, 2  ;;  %v1508_v50 = vld [vmem:[%s1881_s1 + $0x30] sm:$0xff]   ;;  %v1510_v52 = vld [vmem:[%s1881_s1 + $0xa8] sm:$0xff]   ;;  %v1512_v54 = vld [vmem:[%s1881_s1 + $0x60] sm:$0xff]  }
  0x18   : > { %v1511_v53 = vld [vmem:[%s1881_s1 + $0x28] sm:$0xff]   ;;  %v1513_v55 = vld [vmem:[%s1881_s1 + $0xa0] sm:$0xff]   ;;  %v1515_v57 = vld [vmem:[%s1881_s1 + $0x58] sm:$0xff]  }
  0x19   : > { %1409 = vmatpush3.bf16.msra.mxu1 %v1483_v11  ;;  %v279_v42 = vsel %vm273_vm1, %v277_v36, %v278_v37  ;;  %v282_v44 = vsel %vm273_vm1, %v280_v40, %v281_v41  ;;  %v276_v46 = vsel %vm273_vm1, %v274_v38, %v275_v39  ;;  %v1514_v56 = vld [vmem:[%s1881_s1 + $0x20] sm:$0xff]   ;;  %v1516_v58 = vld [vmem:[%s1881_s1 + $0x98] sm:$0xff]   ;;  %v1518_v60 = vld [vmem:[%s1881_s1 + $0x50] sm:$0xff]  }
  0x1a   : > { %1316 = vmatpush3.bf16.msra.mxu0 %v1484_v12  ;;  %1410 = vmatprep.subr.bf16.mxu1 %v1565_v1  ;;  %v1517_v59 = vld [vmem:[%s1881_s1 + $0x18] sm:$0xff]   ;;  %v1519_v61 = vld [vmem:[%s1881_s1 + $0x90] sm:$0xff]   ;;  %v145_v62 = vld [vmem:[%s1668_s28] sm:$0xff] }
  0x1b   : > { %1317 = vmatprep.subr.bf16.mxu0 %v1485_v13  ;;  %462 = vmatprep.mubr.bf16.mxu0 %v279_v42  ;;  %v1520_v63 = vld [vmem:[%s1881_s1 + $0x10] sm:$0xff]   ;;  %v1196_v0 = vcombine.high %v145_v62, %v1679_v24  ;;  %v1521_v2 = vld [vmem:[%s1881_s1 + $0x48] sm:$0xff]   ;;  %v1524_v5 = vld [vmem:[%s1881_s1 + $0x40] sm:$0xff]   ;;  %v1195_v10 = vcombine.low %v145_v62, %v1679_v24 }
  0x1c   : > { %v1522_v3 = vld [vmem:[%s1881_s1 + $0x88] sm:$0xff]   ;;  %v1525_v6 = vld [vmem:[%s1881_s1 + $0x80] sm:$0xff]   ;;  %v1530_v8 = vld [vmem:[%s1881_s1 + $0x1f8] sm:$0xff]  }
  0x1d   : > { %1411 = vmatpush3.bf16.msra.mxu1 %v1486_v14  ;;  %v1523_v4 = vld [vmem:[%s1881_s1 + $0x8] sm:$0xff]   ;;  %v1526_v7 = vld [vmem:[%s1881_s1] sm:$0xff]   ;;  %v1531_v11 = vld [vmem:[%s1881_s1 + $0x238] sm:$0xff]  }
  0x1e   : > { %1318 = vmatpush3.bf16.msra.mxu0 %v1487_v15  ;;  %1412 = vmatprep.subr.bf16.mxu1 %v1565_v1  ;;  %v1529_v9 = vld [vmem:[%s1668_s28 + $0x8] ss:$12 sps:$4 sm:$0xff]   ;;  %v1532_v12 = vld [vmem:[%s1881_s1 + $0x1b8] sm:$0xff]   ;;  %v1551_v36 = vld [vmem:[%s1881_s1 + $0x1c0] sm:$0xff]  }
  0x1f   : > { %1319 = vmatprep.subr.bf16.mxu0 %v1488_v16  ;;  %v1533_v13 = vld [vmem:[%s1881_s1 + $0x1f0] sm:$0xff]   ;;  %v1536_v16 = vld [vmem:[%s1881_s1 + $0x1e8] sm:$0xff]   ;;  %v1542_v23 = vld [vmem:[%s1881_s1 + $0x1d8] sm:$0xff]  }
  0x20   : > { %v1534_v14 = vld [vmem:[%s1881_s1 + $0x230] sm:$0xff]   ;;  %v1543_v28 = vld [vmem:[%s1881_s1 + $0x218] sm:$0xff]   ;;  %v1549_v34 = vld [vmem:[%s1881_s1 + $0x208] sm:$0xff]  }
  0x21   : > { %1413 = vmatpush3.bf16.msra.mxu1 %v1489_v17  ;;  %v1535_v15 = vld [vmem:[%s1881_s1 + $0x1b0] sm:$0xff]   ;;  %v1537_v17 = vld [vmem:[%s1881_s1 + $0x228] sm:$0xff]   ;;  %v1544_v29 = vld [vmem:[%s1881_s1 + $0x198] sm:$0xff]  }
  0x22   : > { %1320 = vmatpush3.bf16.msra.mxu0 %v1490_v18  ;;  %1414 = vmatprep.subr.bf16.mxu1 %v1565_v1  ;;  %v1538_v18 = vld [vmem:[%s1881_s1 + $0x1a8] sm:$0xff]   ;;  %v1545_v31 = vld [vmem:[%s1881_s1 + $0x1d0] sm:$0xff]   ;;  %v1552_v37 = vld [vmem:[%s1881_s1 + $0x200] sm:$0xff]  }
  0x23   : > { %1321 = vmatprep.subr.bf16.mxu0 %v1491_v19  ;;  %v1539_v19 = vld [vmem:[%s1881_s1 + $0x1e0] sm:$0xff]   ;;  %v1547_v32 = vld [vmem:[%s1881_s1 + $0x190] sm:$0xff]   ;;  %v1550_v35 = vld [vmem:[%s1881_s1 + $0x188] sm:$0xff]  }
  0x24   : > { %v1553_v38 = vld [vmem:[%s1881_s1 + $0x180] sm:$0xff]  }
  0x25   : > { %1415 = vmatpush3.bf16.msra.mxu1 %v1492_v20  ;;  %v1540_v20 = vld [vmem:[%s1881_s1 + $0x220] sm:$0xff]  }
  0x26   : > { %1322 = vmatpush3.bf16.msra.mxu0 %v1493_v21  ;;  %1416 = vmatprep.subr.bf16.mxu1 %v1565_v1  ;;  %v1541_v21 = vld [vmem:[%s1881_s1 + $0x1a0] sm:$0xff]  }
  0x27   : > { %1323 = vmatprep.subr.bf16.mxu0 %v1494_v22  ;;  %v754_v22 = vld [vmem:[%s1668_s28 + $0x18] sm:$0xff] }
  0x28   : > { %v1271_v25 = vcombine.high %v1679_v24, %v754_v22  ;;  %v1270_v39 = vcombine.low %v1679_v24, %v754_v22 }
  0x29   : > { %1417 = vmatpush3.bf16.msra.mxu1 %v1495_v26  ;;  %v755_v26 = vld [vmem:[%s1668_s28 + $0x20] sm:$0xf] }
  0x2a   : > { %1324 = vmatpush3.bf16.msra.mxu0 %v1496_v33  ;;  %1422 = vmatprep.subr.bf16.mxu1 %v1565_v1  ;;  %v1272_v27 = vcombine.low %v1688_v30, %v755_v26  ;;  %v1546_v30 = vld [vmem:[%s1881_s1 + $0x210] sm:$0xff]   ;;  %v1548_v33 = vld [vmem:[%s1881_s1 + $0x1c8] sm:$0xff]  }
  0x2b   : > { %1340 = vmatprep.subr.bf16.mxu0 %v1503_v43 }
  0x2c   : > { %1419 = vmatmul.mubr.bf16.vlgmr.msra.gmra.mxu1 %v282_v44 }
  0x2d   : > { %463 = vmatmul.mubr.bf16.vlgmr.msra.gmra.mxu0 %v276_v46  ;;  %1423 = vmatpush3.bf16.msra.mxu1 %v1504_v45 }
  0x2e   : > { %1341 = vmatpush3.bf16.msra.mxu0 %v1505_v47  ;;  %1424 = vmatprep.subr.bf16.mxu1 %v1565_v1 }
  0x2f   : > { %1342 = vmatprep.subr.bf16.mxu0 %v1506_v48  ;;  %1438 = vmatprep.mubr.msk.bf16.mxu1 %vm1566_vm0, %v1565_v1 }
  0x30   : > { %704 = vmatprep.mubr.bf16.mxu0 %v1196_v0 }
  0x31   : > { %1425 = vmatpush3.bf16.msra.mxu1 %v1507_v49 }
  0x32   : > { %1343 = vmatpush3.bf16.msra.mxu0 %v1508_v50  ;;  %1426 = vmatprep.subr.bf16.mxu1 %v1565_v1 }
  0x33   : > { %1344 = vmatprep.subr.bf16.mxu0 %v1509_v51 }
  0x35   : > { %1427 = vmatpush3.bf16.msra.mxu1 %v1510_v52 }
  0x36   : > { %1345 = vmatpush3.bf16.msra.mxu0 %v1511_v53  ;;  %1428 = vmatprep.subr.bf16.mxu1 %v1565_v1 }
  0x37   : > { %1346 = vmatprep.subr.bf16.mxu0 %v1512_v54 }
  0x39   : > { %1429 = vmatpush3.bf16.msra.mxu1 %v1513_v55 }
  0x3a   : > { %1347 = vmatpush3.bf16.msra.mxu0 %v1514_v56  ;;  %1430 = vmatprep.subr.bf16.mxu1 %v1565_v1 }
  0x3b   : > { %1348 = vmatprep.subr.bf16.mxu0 %v1515_v57 }
  0x3d   : > { %1431 = vmatpush3.bf16.msra.mxu1 %v1516_v58 }
  0x3e   : > { %1349 = vmatpush3.bf16.msra.mxu0 %v1517_v59  ;;  %1432 = vmatprep.subr.bf16.mxu1 %v1565_v1 }
  0x3f   : > { %1350 = vmatprep.subr.bf16.mxu0 %v1518_v60 }
  0x41   : > { %1433 = vmatpush3.bf16.msra.mxu1 %v1519_v61 }
  0x42   : > { %1351 = vmatpush3.bf16.msra.mxu0 %v1520_v63  ;;  %1434 = vmatprep.subr.bf16.mxu1 %v1565_v1 }
  0x43   : > { %1352 = vmatprep.subr.bf16.mxu0 %v1521_v2 }
  0x45   : > { %1435 = vmatpush3.bf16.msra.mxu1 %v1522_v3 }
  0x46   : > { %1353 = vmatpush3.bf16.msra.mxu0 %v1523_v4  ;;  %1436 = vmatprep.subr.bf16.mxu1 %v1565_v1 }
  0x47   : > { %1354 = vmatprep.subr.bf16.mxu0 %v1524_v5 }
  0x49   : > { %1437 = vmatpush3.bf16.msra.mxu1 %v1525_v6 }
  0x4a   : > { %1355 = vmatpush3.bf16.msra.mxu0 %v1526_v7  ;;  %1442 = vmatprep.subr.bf16.mxu1 %v1565_v1 }
  0x4b   : > { %1371 = vmatprep.subr.bf16.mxu0 %v1530_v8 }
  0x4c   : > { %1439 = vmatmul.mubr.bf16.vlgmr.msra.gmra.mxu1 %v1529_v9 }
  0x4d   : > { %705 = vmatmul.mubr.bf16.vlgmr.msra.gmra.mxu0 %v1195_v10  ;;  %1443 = vmatpush3.bf16.msra.mxu1 %v1531_v11 }
  0x4e   : > { %1372 = vmatpush3.bf16.msra.mxu0 %v1532_v12  ;;  %1444 = vmatprep.subr.bf16.mxu1 %v1565_v1 }
  0x4f   : > { %1373 = vmatprep.subr.bf16.mxu0 %v1533_v13  ;;  %1458 = vmatprep.mubr.msk.bf16.mxu1 %vm1566_vm0, %v1565_v1 }
  0x50   : > { %992 = vmatprep.mubr.bf16.mxu0 %v1271_v25 }
  0x51   : > { %1445 = vmatpush3.bf16.msra.mxu1 %v1534_v14 }
  0x52   : > { %1374 = vmatpush3.bf16.msra.mxu0 %v1535_v15  ;;  %1446 = vmatprep.subr.bf16.mxu1 %v1565_v1 }
  0x53   : > { %1375 = vmatprep.subr.bf16.mxu0 %v1536_v16 }
  0x55   : > { %1447 = vmatpush3.bf16.msra.mxu1 %v1537_v17 }
  0x56   : > { %1376 = vmatpush3.bf16.msra.mxu0 %v1538_v18  ;;  %1448 = vmatprep.subr.bf16.mxu1 %v1565_v1 }
  0x57   : > { %1377 = vmatprep.subr.bf16.mxu0 %v1539_v19 }
  0x59   : > { %1449 = vmatpush3.bf16.msra.mxu1 %v1540_v20 }
  0x5a   : > { %1378 = vmatpush3.bf16.msra.mxu0 %v1541_v21  ;;  %1450 = vmatprep.subr.bf16.mxu1 %v1565_v1 }
  0x5b   : > { %1379 = vmatprep.subr.bf16.mxu0 %v1542_v23 }
  0x5d   : > { %1451 = vmatpush3.bf16.msra.mxu1 %v1543_v28 }
  0x5e   : > { %1380 = vmatpush3.bf16.msra.mxu0 %v1544_v29  ;;  %1452 = vmatprep.subr.bf16.mxu1 %v1565_v1 }
  0x5f   : > { %1381 = vmatprep.subr.bf16.mxu0 %v1545_v31 }
  0x61   : > { %1453 = vmatpush3.bf16.msra.mxu1 %v1546_v30 }
  0x62   : > { %1382 = vmatpush3.bf16.msra.mxu0 %v1547_v32  ;;  %1454 = vmatprep.subr.bf16.mxu1 %v1565_v1 }
  0x63   : > { %1383 = vmatprep.subr.bf16.mxu0 %v1548_v33 }
  0x65   : > { %1455 = vmatpush3.bf16.msra.mxu1 %v1549_v34 }
  0x66   : > { %1384 = vmatpush3.bf16.msra.mxu0 %v1550_v35  ;;  %1456 = vmatprep.subr.bf16.mxu1 %v1565_v1 }
  0x67   : > { %1385 = vmatprep.subr.bf16.mxu0 %v1551_v36 }
  0x69   : > { %1457 = vmatpush3.bf16.msra.mxu1 %v1552_v37 }
  0x6a   : > { %1386 = vmatpush3.bf16.msra.mxu0 %v1553_v38 }
  0x6c   : > { %1459 = vmatmul.mubr.bf16.vlgmr.msra.gmra.mxu1 %v1272_v27 }
  0x6d   : > { %993 = vmatmul.mubr.bf16.vlgmr.msra.gmra.mxu0 %v1270_v39 }
  0xec   : > { %v505_v40 = vpop.f32.mrf.mxu1 }
  0xed   : > { %v1325_v47 = vpop.f32.mrf.mxu0 }
  0xee   : > { %v1420_v41 = vpop.f32.mrf.mxu1 }
  0xef   : > { %v1326_v48 = vpop.f32.mrf.mxu0 }
  0xf0   : > { %v508_v42 = vpop.f32.mrf.mxu1  ;;  %v1327_v24 = vadd.f32 %v1326_v48, %v1325_v47 }
  0xf1   : > { %v1328_v49 = vpop.f32.mrf.mxu0 }
  0xf2   : > { %v1421_v43 = vpop.f32.mrf.mxu1  ;;  %v506_v62 = vadd.f32 %v1327_v24, %v505_v40 }
  0xf3   : > { %v1329_v50 = vpop.f32.mrf.mxu0 }
  0xf4   : > { %v1330_v55 = vadd.f32 %v1329_v50, %v1328_v49 }
  0xf6   : > { %v509_v63 = vadd.f32 %v1330_v55, %v508_v42 }
 0x10c   : > { %v747_v44 = vpop.f32.mrf.mxu1 }
 0x10d   : > { %v1356_v51 = vpop.f32.mrf.mxu0 }
 0x10e   : > { %v1440_v45 = vpop.f32.mrf.mxu1 }
 0x10f   : > { %v1357_v52 = vpop.f32.mrf.mxu0 }
 0x110   : > { %v750_v46 = vpop.f32.mrf.mxu1  ;;  %v1358_v58 = vadd.f32 %v1357_v52, %v1356_v51 }
 0x111   : > { %v1359_v53 = vpop.f32.mrf.mxu0 }
 0x112   : > { %v1441_v1 = vpop.f32.mrf.mxu1  ;;  %v707_v4 = vadd.f32 %v1358_v58, %v506_v62 }
 0x113   : > { %v1360_v54 = vpop.f32.mrf.mxu0 }
 0x114   : > { %v1361_v59 = vadd.f32 %v1360_v54, %v1359_v53  ;;  %v748_v10 = vadd.f32 %v747_v44, %v707_v4 }
 0x116   : > { %v710_v5 = vadd.f32 %v1361_v59, %v509_v63 }
 0x118   : > { %v751_v11 = vadd.f32 %v750_v46, %v710_v5 }
 0x12c   : > { %v1035_v56 = vpop.f32.mrf.mxu1 }
 0x12d   : > { %v1387_v57 = vpop.f32.mrf.mxu0 }
 0x12e   : > { %v1460_v60 = vpop.f32.mrf.mxu1 }
 0x12f   : > { %v1388_v61 = vpop.f32.mrf.mxu0 }
 0x130   : > { %v1389_v0 = vadd.f32 %v1388_v61, %v1387_v57  ;;  %v1038_v2 = vpop.f32.mrf.mxu1 }
 0x131   : > { %v1390_v3 = vpop.f32.mrf.mxu0 }
 0x132   : > { %v1461_v6 = vpop.f32.mrf.mxu1  ;;  %v1036_v8 = vadd.f32 %v1389_v0, %v1035_v56 }
 0x133   : > { %v1391_v7 = vpop.f32.mrf.mxu0 }
 0x134   : > { %v1392_v9 = vadd.f32 %v1391_v7, %v1390_v3  ;;  %v1042_v13 = vadd.f32 %v1036_v8, %v748_v10 }
 0x136   : > { %v1039_v12 = vadd.f32 %v1392_v9, %v1038_v2 }
 0x138   : > { %v1043_v14 = vadd.f32 %v1039_v12, %v751_v11 }
 0x13a   : > { %v1307_v15 = vpack.c.bf16 %v1043_v14, %v1042_v13 }
 0x13c   : > { %1308 = vst [vmem:[%s143_s7] sm:$0xff] %v1307_v15  }
 0x13d PF: > { %s12_s9 = sadd.s32 1, %s1563_s9  }
 0x13e   : > { %p9_p4 = scmp.ge.s32.totalorder %s12_s9, 4  }
 0x140   :  { %11 = sbr.rel (!%p9_p4) target bundleno = 1 (0x1), region = 60 }

// kernel: transformer_network_forward.86
= control target key start
LH: loop header
LB: loop body
LE: loop exit
PB: predicated region body
PF: predicated region fallthrough
CT: control target
= control target key end

     0   :  { %s458_s9 = smov 0   ;;  %s460_s10 = smov 0   ;;  %s516_s0 = inlined_call_operand.vmem [shape: bf16[2,16,256], index: 0, kind: input, shape index: {}]   ;;  %s517_s1 = inlined_call_operand.vmem [shape: f32[2,1,256], index: 1, kind: output, shape index: {0}]   ;;  %s518_s2 = inlined_call_operand.vmem [shape: f32[2,1,256], index: 2, kind: output, shape index: {1}]  }
   0x1   :  { %s462_s11 = smov 0  }
   0x2 LB: > { %s25_s12 = sadd.s32 1, %s435_s10  ;;  %p383_p0 = scmp.ge.s32.totalorder %s439_s11, 1  ;;  %s439_s11 = sphi %s462_s11, %s13_s11   ;;  %s435_s10 = sphi %s460_s10, %s522_s10   ;;  %s431_s9 = sphi %s458_s9, %s521_s9  }
   0x3   : > { %p27_p1 = scmp.ge.s32.totalorder %s25_s12, 2  ;;  %p135_p2 = scmp.lt.s32.totalorder %s439_s11, 3 }
   0x5   : > { %s524_s12 = smov (%p27_p1, %s25_s12), 0  ;;  %p136_p3 = pnand %p383_p0, %p135_p2 }
   0x6   : > { %p166_p4 = scmp.lt.s32.totalorder (!%p136_p3), %s431_s9, 1 }
   0x7   : > { %139 = sbr.rel (%p136_p3) target bundleno = 44 (0x2c), region = 24 }
   0xc   : > { %v188_v0 = vlaneseq  ;;  %s526_s9 = smov (!%p166_p4, %s431_s9), 1  ;;  %v441_v2 = vmov 0.0   ;;  %v442_v21 = vmov 1966171168  }
   0xd   : > { %s390_s13 = sshll.u32 %s526_s9, 4  ;;  %s386_s14 = sshll.u32 %s526_s9, 1  ;;  %v219_v22 = vunpack.c.l.s4 %v442_v21 }
   0xe   : > { %vm476_vm0 = vcmp.lt.s32.totalorder %v188_v0, 256  ;;  %s174_s17 = scalar_lea.vmem %s516_s0, %s390_s13  ;;  %s486_s20 = scalar_lea.vmem %s517_s1, %s386_s14  ;;  %v222_v32 = vshrl.u32 %v188_v0, 7 }
   0xf   : > { %192 = vst.msk [vmem:[%s486_s20] sm:$0x3] %vm476_vm0, %v441_v2  ;;  %v194_v3 = vld [vmem:[%s174_s17] sm:$0xff]  ;;  %v195_v4 = vld [vmem:[%s174_s17 + $0x8] sm:$0xff]  ;;  %s494_s23 = scalar_lea.vmem %s518_s2, %s386_s14  ;;  %v220_v31 = vunpack.c.0.s8 %v219_v22 }
  0x10   : > { %v196_v5 = vunpack.c.l.bf16 %v194_v3  ;;  %v197_v6 = vunpack.c.h.bf16 %v194_v3  ;;  %v198_v7 = vunpack.c.l.bf16 %v195_v4  ;;  %v199_v8 = vunpack.c.h.bf16 %v195_v4  ;;  %193 = vst.msk [vmem:[%s494_s23] sm:$0x3] %vm476_vm0, %v441_v2 }
  0x11   : > { %v223_v41 = vsub.s32 %v220_v31, %v222_v32 }
  0x12   : > { %v201_v9 = vadd.f32 %v198_v7, %v196_v5  ;;  %v208_v10 = vadd.f32 %v199_v8, %v197_v6  ;;  %v240_v11 = vmul.f32 %v196_v5, %v196_v5  ;;  %v241_v12 = vmul.f32 %v197_v6, %v197_v6 }
  0x13   : > { %v242_v13 = vmul.f32 %v198_v7, %v198_v7  ;;  %v243_v14 = vmul.f32 %v199_v8, %v199_v8 }
  0x14   : > { %v202_v15 = vrot.slane %v201_v9, 4  ;;  %v209_v16 = vrot.slane %v208_v10, 4 }
  0x15   : > { %v244_v17 = vadd.f32 %v242_v13, %v240_v11  ;;  %v251_v18 = vadd.f32 %v243_v14, %v241_v12 }
  0x16   : > { %v203_v19 = vadd.f32 %v202_v15, %v201_v9  ;;  %v210_v20 = vadd.f32 %v209_v16, %v208_v10  ;;  %v200_v48 = vld [vmem:[%s486_s20] sm:$0x3] }
  0x17   : > { %v245_v23 = vrot.slane %v244_v17, 4  ;;  %v252_v24 = vrot.slane %v251_v18, 4  ;;  %v239_v53 = vld [vmem:[%s494_s23] sm:$0x3] }
  0x18   : > { %v204_v25 = vrot.slane %v203_v19, 2  ;;  %v211_v26 = vrot.slane %v210_v20, 2 }
  0x19   : > { %v246_v27 = vadd.f32 %v245_v23, %v244_v17  ;;  %v253_v28 = vadd.f32 %v252_v24, %v251_v18 }
  0x1a   : > { %v205_v29 = vadd.f32 %v204_v25, %v203_v19  ;;  %v212_v30 = vadd.f32 %v211_v26, %v210_v20 }
  0x1b   : > { %v247_v33 = vrot.slane %v246_v27, 2  ;;  %v254_v34 = vrot.slane %v253_v28, 2 }
  0x1c   : > { %v206_v35 = vrot.slane %v205_v29, 1  ;;  %v213_v36 = vrot.slane %v212_v30, 1 }
  0x1d   : > { %v248_v37 = vadd.f32 %v247_v33, %v246_v27  ;;  %v255_v38 = vadd.f32 %v254_v34, %v253_v28 }
  0x1e   : > { %v207_v39 = vadd.f32 %v206_v35, %v205_v29  ;;  %v214_v40 = vadd.f32 %v213_v36, %v212_v30 }
  0x1f   : > { %v249_v42 = vrot.slane %v248_v37, 1  ;;  %v256_v43 = vrot.slane %v255_v38, 1 }
  0x20   : > { %v217_v44 = vcombine.low %v207_v39, %v214_v40 }
  0x21   : > { %v250_v45 = vadd.f32 %v249_v42, %v248_v37  ;;  %v257_v46 = vadd.f32 %v256_v43, %v255_v38 }
  0x22   : > { %v224_v47 = vrot.slane %v217_v44, %v223_v41 }
  0x23   : > { %v260_v49 = vcombine.low %v250_v45, %v257_v46 }
  0x24   : > { %v231_v50 = vrot.slane %v224_v47, %v223_v41 }
  0x25   : > { %v267_v51 = vrot.slane %v260_v49, %v223_v41 }
  0x26   : > { %v233_v52 = vadd.f32 %v231_v50, %v200_v48 }
  0x27   : > { %v274_v54 = vrot.slane %v267_v51, %v223_v41 }
  0x28   : > { %238 = vst.msk [vmem:[%s486_s20] sm:$0x3] %vm476_vm0, %v233_v52 }
  0x29   : > { %v276_v55 = vadd.f32 %v274_v54, %v239_v53 }
  0x2b   : > { %277 = vst.msk [vmem:[%s494_s23] sm:$0x3] %vm476_vm0, %v276_v55 }
  0x2c PF: > { %s13_s11 = sadd.s32 1, %s439_s11   ;;  %s521_s9 = smov %s435_s10 }
  0x2d   : > { %p10_p5 = scmp.ge.s32.totalorder %s13_s11, 4   ;;  %s522_s10 = smov %s524_s12 }
  0x2f   :  { %12 = sbr.rel (!%p10_p5) target bundleno = 2 (0x2), region = 70 }

// kernel: transformer_network_forward.85
= control target key start
LH: loop header
LB: loop body
LE: loop exit
PB: predicated region body
PF: predicated region fallthrough
CT: control target
= control target key end

     0   :  { %s1012_s1 = inlined_call_operand.vmem [shape: bf16[512,256], index: 1, kind: input, shape index: {}]   ;;  %s1013_s0 = inlined_call_operand.vmem [shape: bf16[32,512], index: 0, kind: input, shape index: {}]   ;;  %s1014_s2 = inlined_call_operand.vmem [shape: bf16[32,256], index: 2, kind: output, shape index: {}]  }
   0x1   :  { %v661_v0 = vld [vmem:[%s1012_s1 + $0x74] ss:$8 sps:$4 sm:$0xff]   ;;  %v665_v2 = vld [vmem:[%s1012_s1 + $0x70] ss:$8 sps:$4 sm:$0xff]   ;;  %v667_v4 = vld [vmem:[%s1012_s1 + $0x64] ss:$8 sps:$4 sm:$0xff]  }
   0x2   :  { %v663_v1 = vld [vmem:[%s1012_s1 + $0x174] ss:$8 sps:$4 sm:$0xff]   ;;  %443 = vmatprep.subr.bf16.mxu0 %v661_v0  ;;  %v666_v3 = vld [vmem:[%s1012_s1 + $0x170] ss:$8 sps:$4 sm:$0xff]   ;;  %v669_v5 = vld [vmem:[%s1012_s1 + $0x164] ss:$8 sps:$4 sm:$0xff]  }
   0x3   :  { %496 = vmatprep.subr.bf16.mxu1 %v663_v1  ;;  %444 = vmatpush1.bf16.msra.mxu0 %v665_v2  ;;  %v671_v6 = vld [vmem:[%s1012_s1 + $0x60] ss:$8 sps:$4 sm:$0xff]   ;;  %v673_v8 = vld [vmem:[%s1012_s1 + $0x54] ss:$8 sps:$4 sm:$0xff]   ;;  %v677_v10 = vld [vmem:[%s1012_s1 + $0x50] ss:$8 sps:$4 sm:$0xff]  }
   0x4   :  { %497 = vmatpush1.bf16.msra.mxu1 %v666_v3  ;;  %445 = vmatprep.subr.bf16.mxu0 %v667_v4  ;;  %v672_v7 = vld [vmem:[%s1012_s1 + $0x160] ss:$8 sps:$4 sm:$0xff]   ;;  %v675_v9 = vld [vmem:[%s1012_s1 + $0x154] ss:$8 sps:$4 sm:$0xff]   ;;  %v678_v11 = vld [vmem:[%s1012_s1 + $0x150] ss:$8 sps:$4 sm:$0xff]  }
   0x5   :  { %498 = vmatprep.subr.bf16.mxu1 %v669_v5  ;;  %v679_v12 = vld [vmem:[%s1012_s1 + $0x44] ss:$8 sps:$4 sm:$0xff]   ;;  %v683_v14 = vld [vmem:[%s1012_s1 + $0x40] ss:$8 sps:$4 sm:$0xff]   ;;  %v685_v16 = vld [vmem:[%s1012_s1 + $0x34] ss:$8 sps:$4 sm:$0xff]  }
   0x6   :  { %v681_v13 = vld [vmem:[%s1012_s1 + $0x144] ss:$8 sps:$4 sm:$0xff]   ;;  %v684_v15 = vld [vmem:[%s1012_s1 + $0x140] ss:$8 sps:$4 sm:$0xff]   ;;  %v687_v17 = vld [vmem:[%s1012_s1 + $0x134] ss:$8 sps:$4 sm:$0xff]  }
   0x7   :  { %446 = vmatpush1.bf16.msra.mxu0 %v671_v6  ;;  %v689_v18 = vld [vmem:[%s1012_s1 + $0x30] ss:$8 sps:$4 sm:$0xff]   ;;  %v691_v20 = vld [vmem:[%s1012_s1 + $0x24] ss:$8 sps:$4 sm:$0xff]   ;;  %v695_v22 = vld [vmem:[%s1012_s1 + $0x20] ss:$8 sps:$4 sm:$0xff]  }
   0x8   :  { %499 = vmatpush1.bf16.msra.mxu1 %v672_v7  ;;  %447 = vmatprep.subr.bf16.mxu0 %v673_v8  ;;  %v690_v19 = vld [vmem:[%s1012_s1 + $0x130] ss:$8 sps:$4 sm:$0xff]   ;;  %v693_v21 = vld [vmem:[%s1012_s1 + $0x124] ss:$8 sps:$4 sm:$0xff]   ;;  %v696_v23 = vld [vmem:[%s1012_s1 + $0x120] ss:$8 sps:$4 sm:$0xff]  }
   0x9   :  { %500 = vmatprep.subr.bf16.mxu1 %v675_v9  ;;  %v697_v24 = vld [vmem:[%s1012_s1 + $0x14] ss:$8 sps:$4 sm:$0xff]   ;;  %v701_v26 = vld [vmem:[%s1012_s1 + $0x10] ss:$8 sps:$4 sm:$0xff]   ;;  %v703_v28 = vld [vmem:[%s1012_s1 + $0x4] ss:$8 sps:$4 sm:$0xff]  }
   0xa   :  { %v699_v25 = vld [vmem:[%s1012_s1 + $0x114] ss:$8 sps:$4 sm:$0xff]   ;;  %v702_v27 = vld [vmem:[%s1012_s1 + $0x110] ss:$8 sps:$4 sm:$0xff]   ;;  %v705_v29 = vld [vmem:[%s1012_s1 + $0x104] ss:$8 sps:$4 sm:$0xff]  }
   0xb   :  { %448 = vmatpush1.bf16.msra.mxu0 %v677_v10  ;;  %v707_v30 = vld [vmem:[%s1012_s1] ss:$8 sps:$4 sm:$0xff]   ;;  %v709_v32 = vld [vmem:[%s1012_s1 + $0xf4] ss:$8 sps:$4 sm:$0xff]   ;;  %v713_v34 = vld [vmem:[%s1012_s1 + $0xf0] ss:$8 sps:$4 sm:$0xff]  }
   0xc   :  { %501 = vmatpush1.bf16.msra.mxu1 %v678_v11  ;;  %449 = vmatprep.subr.bf16.mxu0 %v679_v12  ;;  %v708_v31 = vld [vmem:[%s1012_s1 + $0x100] ss:$8 sps:$4 sm:$0xff]   ;;  %v711_v33 = vld [vmem:[%s1012_s1 + $0x1f4] ss:$8 sps:$4 sm:$0xff]   ;;  %v714_v35 = vld [vmem:[%s1012_s1 + $0x1f0] ss:$8 sps:$4 sm:$0xff]  }
   0xd   :  { %502 = vmatprep.subr.bf16.mxu1 %v681_v13  ;;  %v715_v36 = vld [vmem:[%s1012_s1 + $0xe4] ss:$8 sps:$4 sm:$0xff]   ;;  %v719_v38 = vld [vmem:[%s1012_s1 + $0xe0] ss:$8 sps:$4 sm:$0xff]   ;;  %v721_v40 = vld [vmem:[%s1012_s1 + $0xd4] ss:$8 sps:$4 sm:$0xff]  }
   0xe   :  { %v717_v37 = vld [vmem:[%s1012_s1 + $0x1e4] ss:$8 sps:$4 sm:$0xff]   ;;  %v720_v39 = vld [vmem:[%s1012_s1 + $0x1e0] ss:$8 sps:$4 sm:$0xff]   ;;  %v723_v41 = vld [vmem:[%s1012_s1 + $0x1d4] ss:$8 sps:$4 sm:$0xff]  }
   0xf   :  { %450 = vmatpush1.bf16.msra.mxu0 %v683_v14  ;;  %v725_v42 = vld [vmem:[%s1012_s1 + $0xd0] ss:$8 sps:$4 sm:$0xff]   ;;  %v727_v44 = vld [vmem:[%s1012_s1 + $0xc4] ss:$8 sps:$4 sm:$0xff]   ;;  %v731_v46 = vld [vmem:[%s1012_s1 + $0xc0] ss:$8 sps:$4 sm:$0xff]  }
  0x10   :  { %503 = vmatpush1.bf16.msra.mxu1 %v684_v15  ;;  %451 = vmatprep.subr.bf16.mxu0 %v685_v16  ;;  %v726_v43 = vld [vmem:[%s1012_s1 + $0x1d0] ss:$8 sps:$4 sm:$0xff]   ;;  %v729_v45 = vld [vmem:[%s1012_s1 + $0x1c4] ss:$8 sps:$4 sm:$0xff]   ;;  %v732_v47 = vld [vmem:[%s1012_s1 + $0x1c0] ss:$8 sps:$4 sm:$0xff]  }
  0x11   :  { %504 = vmatprep.subr.bf16.mxu1 %v687_v17  ;;  %v733_v48 = vld [vmem:[%s1012_s1 + $0xb4] ss:$8 sps:$4 sm:$0xff]   ;;  %v737_v52 = vld [vmem:[%s1012_s1 + $0xb0] ss:$8 sps:$4 sm:$0xff]   ;;  %v739_v54 = vld [vmem:[%s1012_s1 + $0xa4] ss:$8 sps:$4 sm:$0xff]  }
  0x12   :  { %v759_v49 = vld [vmem:[%s1013_s0 + $0x4] ss:$16 sps:$4 sm:$0xff]   ;;  %v762_v51 = vld [vmem:[%s1013_s0 + $0xc] ss:$16 sps:$4 sm:$0xff]   ;;  %v738_v53 = vld [vmem:[%s1012_s1 + $0x1b0] ss:$8 sps:$4 sm:$0xff]  }
  0x13   :  { %452 = vmatpush1.bf16.msra.mxu0 %v689_v18  ;;  %v735_v50 = vld [vmem:[%s1012_s1 + $0x1b4] ss:$8 sps:$4 sm:$0xff]   ;;  %475 = vmatprep.mubr.bf16.mxu0 %v759_v49  ;;  %v741_v55 = vld [vmem:[%s1012_s1 + $0x1a4] ss:$8 sps:$4 sm:$0xff]   ;;  %v743_v56 = vld [vmem:[%s1012_s1 + $0xa0] ss:$8 sps:$4 sm:$0xff]  }
  0x14   :  { %505 = vmatpush1.bf16.msra.mxu1 %v690_v19  ;;  %453 = vmatprep.subr.bf16.mxu0 %v691_v20  ;;  %v744_v57 = vld [vmem:[%s1012_s1 + $0x1a0] ss:$8 sps:$4 sm:$0xff]   ;;  %v745_v58 = vld [vmem:[%s1012_s1 + $0x94] ss:$8 sps:$4 sm:$0xff]   ;;  %v749_v60 = vld [vmem:[%s1012_s1 + $0x90] ss:$8 sps:$4 sm:$0xff]  }
  0x15   :  { %506 = vmatprep.subr.bf16.mxu1 %v693_v21  ;;  %528 = vmatprep.mubr.bf16.mxu1 %v762_v51  ;;  %v747_v59 = vld [vmem:[%s1012_s1 + $0x194] ss:$8 sps:$4 sm:$0xff]   ;;  %v750_v61 = vld [vmem:[%s1012_s1 + $0x190] ss:$8 sps:$4 sm:$0xff]   ;;  %v751_v62 = vld [vmem:[%s1012_s1 + $0x84] ss:$8 sps:$4 sm:$0xff]  }
  0x16   :  { %v753_v63 = vld [vmem:[%s1012_s1 + $0x184] ss:$8 sps:$4 sm:$0xff]   ;;  %v755_v0 = vld [vmem:[%s1012_s1 + $0x80] ss:$8 sps:$4 sm:$0xff]  }
  0x17   :  { %454 = vmatpush1.bf16.msra.mxu0 %v695_v22  ;;  %v756_v1 = vld [vmem:[%s1012_s1 + $0x180] ss:$8 sps:$4 sm:$0xff]   ;;  %v763_v4 = vld [vmem:[%s1013_s0 + $0x24] ss:$16 sps:$4 sm:$0xff]   ;;  %v765_v5 = vld [vmem:[%s1013_s0 + $0x2c] ss:$16 sps:$4 sm:$0xff]  }
  0x18   :  { %507 = vmatpush1.bf16.msra.mxu1 %v696_v23  ;;  %455 = vmatprep.subr.bf16.mxu0 %v697_v24  ;;  %v757_v2 = vld [vmem:[%s1013_s0] ss:$16 sps:$4 sm:$0xff]   ;;  %v760_v3 = vld [vmem:[%s1013_s0 + $0x8] ss:$16 sps:$4 sm:$0xff]  }
  0x19   :  { %508 = vmatprep.subr.bf16.mxu1 %v699_v25  ;;  %v767_v6 = vld [vmem:[%s1013_s0 + $0x20] ss:$16 sps:$4 sm:$0xff]   ;;  %v768_v7 = vld [vmem:[%s1013_s0 + $0x28] ss:$16 sps:$4 sm:$0xff]  }
  0x1b   :  { %456 = vmatpush1.bf16.msra.mxu0 %v701_v26 }
  0x1c   :  { %509 = vmatpush1.bf16.msra.mxu1 %v702_v27  ;;  %457 = vmatprep.subr.bf16.mxu0 %v703_v28 }
  0x1d   :  { %510 = vmatprep.subr.bf16.mxu1 %v705_v29 }
  0x1f   :  { %458 = vmatpush1.bf16.msra.mxu0 %v707_v30 }
  0x20   :  { %511 = vmatpush1.bf16.msra.mxu1 %v708_v31  ;;  %459 = vmatprep.subr.bf16.mxu0 %v709_v32 }
  0x21   :  { %512 = vmatprep.subr.bf16.mxu1 %v711_v33 }
  0x23   :  { %460 = vmatpush2.bf16.msra.mxu0 %v713_v34 }
  0x24   :  { %513 = vmatpush2.bf16.msra.mxu1 %v714_v35  ;;  %461 = vmatprep.subr.bf16.mxu0 %v715_v36 }
  0x25   :  { %514 = vmatprep.subr.bf16.mxu1 %v717_v37 }
  0x27   :  { %462 = vmatpush2.bf16.msra.mxu0 %v719_v38 }
  0x28   :  { %515 = vmatpush2.bf16.msra.mxu1 %v720_v39  ;;  %463 = vmatprep.subr.bf16.mxu0 %v721_v40 }
  0x29   :  { %516 = vmatprep.subr.bf16.mxu1 %v723_v41 }
  0x2b   :  { %464 = vmatpush2.bf16.msra.mxu0 %v725_v42 }
  0x2c   :  { %517 = vmatpush2.bf16.msra.mxu1 %v726_v43  ;;  %465 = vmatprep.subr.bf16.mxu0 %v727_v44 }
  0x2d   :  { %518 = vmatprep.subr.bf16.mxu1 %v729_v45 }
  0x2f   :  { %466 = vmatpush2.bf16.msra.mxu0 %v731_v46 }
  0x30   :  { %519 = vmatpush2.bf16.msra.mxu1 %v732_v47  ;;  %467 = vmatprep.subr.bf16.mxu0 %v733_v48 }
  0x31   :  { %520 = vmatprep.subr.bf16.mxu1 %v735_v50 }
  0x33   :  { %468 = vmatpush2.bf16.msra.mxu0 %v737_v52 }
  0x34   :  { %521 = vmatpush2.bf16.msra.mxu1 %v738_v53  ;;  %469 = vmatprep.subr.bf16.mxu0 %v739_v54 }
  0x35   :  { %522 = vmatprep.subr.bf16.mxu1 %v741_v55 }
  0x37   :  { %470 = vmatpush2.bf16.msra.mxu0 %v743_v56 }
  0x38   :  { %523 = vmatpush2.bf16.msra.mxu1 %v744_v57  ;;  %471 = vmatprep.subr.bf16.mxu0 %v745_v58 }
  0x39   :  { %524 = vmatprep.subr.bf16.mxu1 %v747_v59 }
  0x3b   :  { %472 = vmatpush2.bf16.msra.mxu0 %v749_v60 }
  0x3c   :  { %525 = vmatpush2.bf16.msra.mxu1 %v750_v61  ;;  %473 = vmatprep.subr.bf16.mxu0 %v751_v62 }
  0x3d   :  { %526 = vmatprep.subr.bf16.mxu1 %v753_v63 }
  0x3f   :  { %474 = vmatpush2.bf16.msra.mxu0 %v755_v0 }
  0x40   :  { %527 = vmatpush2.bf16.msra.mxu1 %v756_v1 }
  0x42   :  { %476 = vmatmul.mubr.bf16.vlgmr.msra.gmra.mxu0 %v757_v2 }
  0x43   :  { %529 = vmatmul.mubr.bf16.vlgmr.msra.gmra.mxu1 %v760_v3  ;;  %485 = vmatprep.mubr.bf16.mxu0 %v763_v4 }
  0x44   :  { %538 = vmatprep.mubr.bf16.mxu1 %v765_v5 }
  0x4a   :  { %486 = vmatmul.mubr.bf16.gmra.mxu0 %v767_v6 }
  0x4b   :  { %539 = vmatmul.mubr.bf16.gmra.mxu1 %v768_v7 }
 0x102   :  { %v477_v8 = vpop.f32.mrf.mxu0 }
 0x103   :  { %v530_v9 = vpop.f32.mrf.mxu1 }
 0x104   :  { %v479_v10 = vpop.f32.mrf.mxu0  ;;  %v531_v12 = vadd.f32 %v530_v9, %v477_v8 }
 0x105   :  { %v532_v11 = vpop.f32.mrf.mxu1 }
 0x106   :  { %v533_v13 = vadd.f32 %v532_v11, %v479_v10  ;;  %v481_v14 = vpop.f32.mrf.mxu0 }
 0x107   :  { %v534_v15 = vpop.f32.mrf.mxu1 }
 0x108   :  { %v657_v16 = vpack.c.bf16 %v533_v13, %v531_v12  ;;  %v483_v17 = vpop.f32.mrf.mxu0  ;;  %v535_v19 = vadd.f32 %v534_v15, %v481_v14 }
 0x109   :  { %v536_v18 = vpop.f32.mrf.mxu1 }
 0x10a   :  { %573 = vst [vmem:[%s1014_s2] sm:$0xff] %v657_v16  ;;  %v537_v20 = vadd.f32 %v536_v18, %v483_v17  ;;  %v487_v21 = vpop.f32.mrf.mxu0 }
 0x10b   :  { %v540_v22 = vpop.f32.mrf.mxu1 }
 0x10c   :  { %v658_v23 = vpack.c.bf16 %v537_v20, %v535_v19  ;;  %v489_v24 = vpop.f32.mrf.mxu0  ;;  %v541_v26 = vadd.f32 %v540_v22, %v487_v21 }
 0x10d   :  { %v542_v25 = vpop.f32.mrf.mxu1 }
 0x10e   :  { %574 = vst [vmem:[%s1014_s2 + $0x8] sm:$0xff] %v658_v23  ;;  %v543_v27 = vadd.f32 %v542_v25, %v489_v24  ;;  %v491_v28 = vpop.f32.mrf.mxu0 }
 0x10f   :  { %v544_v29 = vpop.f32.mrf.mxu1 }
 0x110   :  { %v659_v30 = vpack.c.bf16 %v543_v27, %v541_v26  ;;  %v493_v31 = vpop.f32.mrf.mxu0  ;;  %v545_v33 = vadd.f32 %v544_v29, %v491_v28 }
 0x111   :  { %v546_v32 = vpop.f32.mrf.mxu1 }
 0x112   :  { %575 = vst [vmem:[%s1014_s2 + $0x10] sm:$0xff] %v659_v30  ;;  %v547_v34 = vadd.f32 %v546_v32, %v493_v31 }
 0x114   :  { %v660_v35 = vpack.c.bf16 %v547_v34, %v545_v33 }
 0x116   :  { %576 = vst [vmem:[%s1014_s2 + $0x18] sm:$0xff] %v660_v35 }

// kernel: transformer_network_forward.87
= control target key start
LH: loop header
LB: loop body
LE: loop exit
PB: predicated region body
PF: predicated region fallthrough
CT: control target
= control target key end

     0   :  { %s512_s12 = smov 0   ;;  %s514_s13 = smov 0   ;;  %s559_s0 = inlined_call_operand.vmem [shape: bf16[2,16,256], index: 0, kind: input, shape index: {}]   ;;  %s560_s1 = inlined_call_operand.vmem [shape: f32[2,1,256], index: 1, kind: input, shape index: {}]   ;;  %s561_s2 = inlined_call_operand.vmem [shape: f32[2,1,256], index: 2, kind: input, shape index: {}]   ;;  %s562_s3 = inlined_call_operand.vmem [shape: bf16[2,16,256], index: 3, kind: output, shape index: {}]  }
   0x1   :  { %s516_s14 = smov 0  }
   0x2 LB: > { %s25_s15 = sadd.s32 1, %s486_s13  ;;  %p429_p0 = scmp.ge.s32.totalorder %s490_s14, 1  ;;  %s490_s14 = sphi %s516_s14, %s13_s14   ;;  %s486_s13 = sphi %s514_s13, %s564_s13   ;;  %s482_s12 = sphi %s512_s12, %s563_s12  }
   0x3   : > { %p27_p1 = scmp.ge.s32.totalorder %s25_s15, 2  ;;  %p177_p2 = scmp.lt.s32.totalorder %s490_s14, 3 }
   0x5   : > { %s566_s15 = smov (%p27_p1, %s25_s15), 0  ;;  %p178_p3 = pnand %p429_p0, %p177_p2 }
   0x6   : > { %p220_p4 = scmp.lt.s32.totalorder (!%p178_p3), %s482_s12, 1 }
   0x7   : > { %181 = sbr.rel (%p178_p3) target bundleno = 29 (0x1d), region = 32 }
   0xc   : > { %v257_v0 = vlaneseq  ;;  %s568_s12 = smov (!%p220_p4, %s482_s12), 1 }
   0xd   : > { %s440_s16 = sshll.u32 %s568_s12, 4  ;;  %s432_s17 = sshll.u32 %s568_s12, 1 }
   0xe   : > { %v258_v1 = vshrl.u32 %v257_v0, 7  ;;  %s228_s20 = scalar_lea.vmem %s559_s0, %s440_s16  ;;  %s233_s23 = scalar_lea.vmem %s560_s1, %s432_s17 }
   0xf   : > { %s237_s26 = scalar_lea.vmem %s561_s2, %s432_s17  ;;  %v249_v4 = vld [vmem:[%s228_s20] sm:$0xff]  ;;  %v250_v5 = vld [vmem:[%s228_s20 + $0x8] sm:$0xff]  ;;  %s247_s29 = scalar_lea.vmem %s562_s3, %s440_s16 }
  0x10   : > { %v259_v2 = vsub.s32 0, %v258_v1  ;;  %v263_v3 = vsub.s32 1, %v258_v1  ;;  %v255_v6 = vld [vmem:[%s233_s23] sm:$0x3]  ;;  %v251_v7 = vunpack.c.l.bf16 %v249_v4  ;;  %v252_v8 = vunpack.c.h.bf16 %v249_v4 }
  0x11   : > { %v253_v9 = vunpack.c.l.bf16 %v250_v5  ;;  %v254_v10 = vunpack.c.h.bf16 %v250_v5  ;;  %v271_v11 = vld [vmem:[%s237_s26] sm:$0x3] }
  0x12   : > { %v260_v12 = vrot.slane %v255_v6, %v259_v2  ;;  %v264_v13 = vrot.slane %v255_v6, %v263_v3  ;;  %v276_v14 = vrot.slane %v271_v11, %v259_v2  ;;  %v280_v15 = vrot.slane %v271_v11, %v263_v3 }
  0x14   : > { %v267_v16 = vmul.f32 %v260_v12, %v251_v7  ;;  %v268_v17 = vmul.f32 %v264_v13, %v252_v8  ;;  %v269_v18 = vmul.f32 %v260_v12, %v253_v9  ;;  %v270_v19 = vmul.f32 %v264_v13, %v254_v10 }
  0x16   : > { %v283_v20 = vadd.f32 %v276_v14, %v267_v16  ;;  %v284_v21 = vadd.f32 %v280_v15, %v268_v17  ;;  %v285_v22 = vadd.f32 %v276_v14, %v269_v18  ;;  %v286_v23 = vadd.f32 %v280_v15, %v270_v19 }
  0x18   : > { %v287_v24 = vmax.f32 %v283_v20, 0.0  ;;  %v288_v25 = vmax.f32 %v284_v21, 0.0  ;;  %v289_v26 = vmax.f32 %v285_v22, 0.0  ;;  %v290_v27 = vmax.f32 %v286_v23, 0.0 }
  0x1a   : > { %v442_v28 = vpack.c.bf16 %v288_v25, %v287_v24  ;;  %v443_v29 = vpack.c.bf16 %v290_v27, %v289_v26 }
  0x1c   : > { %303 = vst [vmem:[%s247_s29] sm:$0xff] %v442_v28  ;;  %304 = vst [vmem:[%s247_s29 + $0x8] sm:$0xff] %v443_v29 }
  0x1d PF: > { %s13_s14 = sadd.s32 1, %s490_s14   ;;  %s563_s12 = smov %s486_s13 }
  0x1e   : > { %p10_p5 = scmp.ge.s32.totalorder %s13_s14, 4   ;;  %s564_s13 = smov %s566_s15 }
  0x20   :  { %12 = sbr.rel (!%p10_p5) target bundleno = 2 (0x2), region = 68 }

// kernel: transformer_network_forward.88
= control target key start
LH: loop header
LB: loop body
LE: loop exit
PB: predicated region body
PF: predicated region fallthrough
CT: control target
= control target key end

     0   :  { %s783_s1 = inlined_call_operand.vmem [shape: bf16[256,128], index: 1, kind: input, shape index: {}]   ;;  %s784_s0 = inlined_call_operand.vmem [shape: bf16[128,256], index: 0, kind: input, shape index: {}]   ;;  %s785_s2 = inlined_call_operand.vmem [shape: bf16[128,128], index: 2, kind: output, shape index: {}]  }
   0x1   :  { %v608_v0 = vld [vmem:[%s783_s1 + $0x78] sm:$0xff]   ;;  %v610_v2 = vld [vmem:[%s783_s1 + $0x70] sm:$0xff]   ;;  %v612_v4 = vld [vmem:[%s783_s1 + $0x68] sm:$0xff]  }
   0x2   :  { %v609_v1 = vld [vmem:[%s783_s1 + $0x38] sm:$0xff]   ;;  %528 = vmatprep.subr.bf16.mxu0 %v608_v0  ;;  %592 = vmatprep.subr.bf16.mxu1 %v608_v0  ;;  %v611_v3 = vld [vmem:[%s783_s1 + $0x30] sm:$0xff]   ;;  %v613_v5 = vld [vmem:[%s783_s1 + $0x28] sm:$0xff]  }
   0x3   :  { %529 = vmatpush3.bf16.msra.mxu0 %v609_v1  ;;  %600 = vmatpush3.bf16.msra.mxu1 %v609_v1  ;;  %v614_v6 = vld [vmem:[%s783_s1 + $0x60] sm:$0xff]   ;;  %v616_v8 = vld [vmem:[%s783_s1 + $0x58] sm:$0xff]   ;;  %v618_v10 = vld [vmem:[%s783_s1 + $0x50] sm:$0xff]  }
   0x4   :  { %530 = vmatprep.subr.bf16.mxu0 %v610_v2  ;;  %593 = vmatprep.subr.bf16.mxu1 %v610_v2  ;;  %v615_v7 = vld [vmem:[%s783_s1 + $0x20] sm:$0xff]   ;;  %v617_v9 = vld [vmem:[%s783_s1 + $0x18] sm:$0xff]   ;;  %v619_v13 = vld [vmem:[%s783_s1 + $0x10] sm:$0xff]  }
   0x5   :  { %v626_v11 = vld [vmem:[%s784_s0 + $0x4] ss:$8 sps:$4 sm:$0xff]   ;;  %v624_v18 = vld [vmem:[%s784_s0] ss:$8 sps:$4 sm:$0xff]   ;;  %v630_v20 = vld [vmem:[%s784_s0 + $0x14] ss:$8 sps:$4 sm:$0xff]  }
   0x6   :  { %v629_v12 = vld [vmem:[%s784_s0 + $0x44] ss:$8 sps:$4 sm:$0xff]   ;;  %268 = vmatprep.mubr.bf16.mxu0 %v626_v11  ;;  %v627_v19 = vld [vmem:[%s784_s0 + $0x40] ss:$8 sps:$4 sm:$0xff]   ;;  %v632_v21 = vld [vmem:[%s784_s0 + $0x54] ss:$8 sps:$4 sm:$0xff]  }
   0x7   :  { %531 = vmatpush3.bf16.msra.mxu0 %v611_v3  ;;  %601 = vmatpush3.bf16.msra.mxu1 %v611_v3  ;;  %v620_v14 = vld [vmem:[%s783_s1 + $0x48] sm:$0xff]   ;;  %v622_v16 = vld [vmem:[%s783_s1 + $0x40] sm:$0xff]   ;;  %v634_v22 = vld [vmem:[%s784_s0 + $0x10] ss:$8 sps:$4 sm:$0xff]  }
   0x8   :  { %532 = vmatprep.subr.bf16.mxu0 %v612_v4  ;;  %594 = vmatprep.subr.bf16.mxu1 %v612_v4  ;;  %v621_v15 = vld [vmem:[%s783_s1 + $0x8] sm:$0xff]   ;;  %v623_v17 = vld [vmem:[%s783_s1] sm:$0xff]   ;;  %v635_v23 = vld [vmem:[%s784_s0 + $0x50] ss:$8 sps:$4 sm:$0xff]  }
   0x9   :  { %300 = vmatprep.mubr.bf16.mxu1 %v629_v12  ;;  %v636_v24 = vld [vmem:[%s784_s0 + $0x24] ss:$8 sps:$4 sm:$0xff]   ;;  %v640_v26 = vld [vmem:[%s784_s0 + $0x20] ss:$8 sps:$4 sm:$0xff]   ;;  %v642_v28 = vld [vmem:[%s784_s0 + $0x34] ss:$8 sps:$4 sm:$0xff]  }
   0xa   :  { %v638_v25 = vld [vmem:[%s784_s0 + $0x64] ss:$8 sps:$4 sm:$0xff]   ;;  %v641_v27 = vld [vmem:[%s784_s0 + $0x60] ss:$8 sps:$4 sm:$0xff]   ;;  %v644_v29 = vld [vmem:[%s784_s0 + $0x74] ss:$8 sps:$4 sm:$0xff]  }
   0xb   :  { %533 = vmatpush3.bf16.msra.mxu0 %v613_v5  ;;  %602 = vmatpush3.bf16.msra.mxu1 %v613_v5  ;;  %v646_v30 = vld [vmem:[%s784_s0 + $0x30] ss:$8 sps:$4 sm:$0xff]  }
   0xc   :  { %534 = vmatprep.subr.bf16.mxu0 %v614_v6  ;;  %595 = vmatprep.subr.bf16.mxu1 %v614_v6  ;;  %v647_v31 = vld [vmem:[%s784_s0 + $0x70] ss:$8 sps:$4 sm:$0xff]  }
   0xf   :  { %535 = vmatpush3.bf16.msra.mxu0 %v615_v7  ;;  %603 = vmatpush3.bf16.msra.mxu1 %v615_v7 }
  0x10   :  { %536 = vmatprep.subr.bf16.mxu0 %v616_v8  ;;  %596 = vmatprep.subr.bf16.mxu1 %v616_v8 }
  0x13   :  { %537 = vmatpush3.bf16.msra.mxu0 %v617_v9  ;;  %604 = vmatpush3.bf16.msra.mxu1 %v617_v9 }
  0x14   :  { %538 = vmatprep.subr.bf16.mxu0 %v618_v10  ;;  %597 = vmatprep.subr.bf16.mxu1 %v618_v10 }
  0x17   :  { %539 = vmatpush3.bf16.msra.mxu0 %v619_v13  ;;  %605 = vmatpush3.bf16.msra.mxu1 %v619_v13 }
  0x18   :  { %540 = vmatprep.subr.bf16.mxu0 %v620_v14  ;;  %598 = vmatprep.subr.bf16.mxu1 %v620_v14 }
  0x1b   :  { %541 = vmatpush3.bf16.msra.mxu0 %v621_v15  ;;  %606 = vmatpush3.bf16.msra.mxu1 %v621_v15 }
  0x1c   :  { %542 = vmatprep.subr.bf16.mxu0 %v622_v16  ;;  %599 = vmatprep.subr.bf16.mxu1 %v622_v16 }
  0x1f   :  { %543 = vmatpush3.bf16.msra.mxu0 %v623_v17  ;;  %607 = vmatpush3.bf16.msra.mxu1 %v623_v17 }
  0x22   :  { %269 = vmatmul.mubr.bf16.vlgmr.msra.gmra.mxu0 %v624_v18  ;;  %301 = vmatmul.mubr.bf16.vlgmr.msra.gmra.mxu1 %v627_v19 }
  0x23   :  { %276 = vmatprep.mubr.bf16.mxu0 %v630_v20  ;;  %308 = vmatprep.mubr.bf16.mxu1 %v632_v21 }
  0x2a   :  { %277 = vmatmul.mubr.bf16.gmra.mxu0 %v634_v22  ;;  %309 = vmatmul.mubr.bf16.gmra.mxu1 %v635_v23 }
  0x2b   :  { %284 = vmatprep.mubr.bf16.mxu0 %v636_v24  ;;  %316 = vmatprep.mubr.bf16.mxu1 %v638_v25 }
  0x32   :  { %285 = vmatmul.mubr.bf16.gmra.mxu0 %v640_v26  ;;  %317 = vmatmul.mubr.bf16.gmra.mxu1 %v641_v27 }
  0x33   :  { %292 = vmatprep.mubr.bf16.mxu0 %v642_v28  ;;  %324 = vmatprep.mubr.bf16.mxu1 %v644_v29 }
  0x3a   :  { %293 = vmatmul.mubr.bf16.gmra.mxu0 %v646_v30  ;;  %325 = vmatmul.mubr.bf16.gmra.mxu1 %v647_v31 }
  0xe2   :  { %v544_v32 = vpop.f32.mrf.mxu0  ;;  %v568_v33 = vpop.f32.mrf.mxu1 }
  0xe4   :  { %v545_v34 = vpop.f32.mrf.mxu0  ;;  %v569_v35 = vpop.f32.mrf.mxu1 }
  0xe5   :  { %v546_v40 = vadd.f32 %v545_v34, %v544_v32  ;;  %v570_v41 = vadd.f32 %v569_v35, %v568_v33 }
  0xe6   :  { %v547_v36 = vpop.f32.mrf.mxu0  ;;  %v571_v37 = vpop.f32.mrf.mxu1 }
  0xe8   :  { %v548_v38 = vpop.f32.mrf.mxu0  ;;  %v572_v39 = vpop.f32.mrf.mxu1 }
  0xe9   :  { %v549_v42 = vadd.f32 %v548_v38, %v547_v36  ;;  %v573_v43 = vadd.f32 %v572_v39, %v571_v37 }
  0xea   :  { %v550_v44 = vpop.f32.mrf.mxu0  ;;  %v574_v45 = vpop.f32.mrf.mxu1 }
  0xeb   :  { %v484_v46 = vpack.c.bf16 %v549_v42, %v546_v40  ;;  %v504_v47 = vpack.c.bf16 %v573_v43, %v570_v41 }
  0xec   :  { %v551_v48 = vpop.f32.mrf.mxu0  ;;  %v575_v49 = vpop.f32.mrf.mxu1 }
  0xed   :  { %485 = vst [vmem:[%s785_s2] sm:$0xff] %v484_v46   ;;  %524 = vst [vmem:[%s785_s2 + $0x20] sm:$0xff] %v504_v47   ;;  %v552_v54 = vadd.f32 %v551_v48, %v550_v44  ;;  %v576_v55 = vadd.f32 %v575_v49, %v574_v45 }
  0xee   :  { %v553_v50 = vpop.f32.mrf.mxu0  ;;  %v577_v51 = vpop.f32.mrf.mxu1 }
  0xf0   :  { %v554_v52 = vpop.f32.mrf.mxu0  ;;  %v578_v53 = vpop.f32.mrf.mxu1 }
  0xf1   :  { %v555_v56 = vadd.f32 %v554_v52, %v553_v50  ;;  %v579_v57 = vadd.f32 %v578_v53, %v577_v51 }
  0xf2   :  { %v556_v58 = vpop.f32.mrf.mxu0  ;;  %v580_v59 = vpop.f32.mrf.mxu1 }
  0xf3   :  { %v489_v60 = vpack.c.bf16 %v555_v56, %v552_v54  ;;  %v509_v61 = vpack.c.bf16 %v579_v57, %v576_v55 }
  0xf4   :  { %v557_v62 = vpop.f32.mrf.mxu0  ;;  %v581_v63 = vpop.f32.mrf.mxu1 }
  0xf5   :  { %521 = vst [vmem:[%s785_s2 + $0x8] sm:$0xff] %v489_v60   ;;  %525 = vst [vmem:[%s785_s2 + $0x28] sm:$0xff] %v509_v61   ;;  %v558_v4 = vadd.f32 %v557_v62, %v556_v58  ;;  %v582_v5 = vadd.f32 %v581_v63, %v580_v59 }
  0xf6   :  { %v559_v0 = vpop.f32.mrf.mxu0  ;;  %v583_v1 = vpop.f32.mrf.mxu1 }
  0xf8   :  { %v560_v2 = vpop.f32.mrf.mxu0  ;;  %v584_v3 = vpop.f32.mrf.mxu1 }
  0xf9   :  { %v561_v6 = vadd.f32 %v560_v2, %v559_v0  ;;  %v585_v7 = vadd.f32 %v584_v3, %v583_v1 }
  0xfa   :  { %v562_v8 = vpop.f32.mrf.mxu0  ;;  %v586_v9 = vpop.f32.mrf.mxu1 }
  0xfb   :  { %v494_v10 = vpack.c.bf16 %v561_v6, %v558_v4  ;;  %v514_v11 = vpack.c.bf16 %v585_v7, %v582_v5 }
  0xfc   :  { %v563_v12 = vpop.f32.mrf.mxu0  ;;  %v587_v13 = vpop.f32.mrf.mxu1 }
  0xfd   :  { %522 = vst [vmem:[%s785_s2 + $0x10] sm:$0xff] %v494_v10   ;;  %526 = vst [vmem:[%s785_s2 + $0x30] sm:$0xff] %v514_v11   ;;  %v564_v18 = vadd.f32 %v563_v12, %v562_v8  ;;  %v588_v19 = vadd.f32 %v587_v13, %v586_v9 }
  0xfe   :  { %v565_v14 = vpop.f32.mrf.mxu0  ;;  %v589_v15 = vpop.f32.mrf.mxu1 }
 0x100   :  { %v566_v16 = vpop.f32.mrf.mxu0  ;;  %v590_v17 = vpop.f32.mrf.mxu1 }
 0x101   :  { %v567_v20 = vadd.f32 %v566_v16, %v565_v14  ;;  %v591_v21 = vadd.f32 %v590_v17, %v589_v15 }
 0x103   :  { %v499_v22 = vpack.c.bf16 %v567_v20, %v564_v18  ;;  %v519_v23 = vpack.c.bf16 %v591_v21, %v588_v19 }
 0x105   :  { %523 = vst [vmem:[%s785_s2 + $0x18] sm:$0xff] %v499_v22   ;;  %527 = vst [vmem:[%s785_s2 + $0x38] sm:$0xff] %v519_v23  }

// kernel: transformer_network_forward.91
= control target key start
LH: loop header
LB: loop body
LE: loop exit
PB: predicated region body
PF: predicated region fallthrough
CT: control target
= control target key end

     0   :  { %s10619_s12 = smov 0   ;;  %s13492_s0 = inlined_call_operand.vmem [shape: bf16[2,384,288], index: 0, kind: input, shape index: {}]   ;;  %s13493_s1 = inlined_call_operand.vmem [shape: bf16[9,288,3], index: 1, kind: input, shape index: {}]   ;;  %s13494_s2 = inlined_call_operand.vmem [shape: f32[1,3], index: 2, kind: input, shape index: {}]   ;;  %s13495_s3 = inlined_call_operand.vmem [shape: f32[2,256,3], index: 3, kind: output, shape index: {}]  }
   0x1 LB: > { %s7564_s13 = sadd.s32 4294967295, %s10597_s12   ;;  %p7568_p0 = scmp.ge.s32.totalorder %s10597_s12, 1  ;;  %s10597_s12 = sphi %s10619_s12, %s13_s12  }
   0x2   : > { %p137_p1 = scmp.lt.s32.totalorder %s10597_s12, 3 }
   0x4   : > { %p138_p2 = pnand %p7568_p0, %p137_p1 }
   0x6   : > { %141 = sbr.rel (%p138_p2) target bundleno = 1100 (0x44c), region = 32 }
   0xb   : > { %v10064_v0 = vld [vmem:[%s13493_s1 + $0x108] sm:$0xff]   ;;  %p161_p3 = scmp.lt.s32.totalorder %s7564_s13, 1  ;;  %v10633_v1 = vld [vmem:[%s13493_s1 + $0x118] sm:$0xff]   ;;  %v10067_v3 = vld [vmem:[%s13493_s1 + $0x100] sm:$0xff]   ;;  %vm661_vm0 = vcmask 261120   ;;  %vm7476_vm1 = vcmask 23552  }
   0xc   : > { %8557 = vmatprep.subr.bf16.mxu0 %v10064_v0  ;;  %v10066_v2 = vld [vmem:[%s13493_s1 + $0xc8] sm:$0xff]   ;;  %10051 = vmatprep.subr.bf16.mxu1 %v10633_v1  ;;  %v10648_v4 = vld [vmem:[%s13493_s1 + $0x110] sm:$0xff]   ;;  %v10069_v5 = vld [vmem:[%s13493_s1 + $0xc0] sm:$0xff]  }
   0xd   : > { %s13641_s13 = smov (!%p161_p3, %s7564_s13), 1  ;;  %8558 = vmatpush3.bf16.msra.mxu0 %v10066_v2  ;;  %10053 = vmatpush3.bf16.msra.mxu1 %v10633_v1  ;;  %v10071_v6 = vld [vmem:[%s13493_s1 + $0xf8] sm:$0xff]   ;;  %v10076_v12 = vld [vmem:[%s13493_s1 + $0xf0] sm:$0xff]   ;;  %v10081_v17 = vld [vmem:[%s13493_s1 + $0xe8] sm:$0xff]  }
   0xe   : > { %s10055_s24 = smul.u32 576, %s13641_s13  ;;  %8559 = vmatprep.subr.bf16.mxu0 %v10067_v3  ;;  %10052 = vmatprep.subr.bf16.mxu1 %v10648_v4  ;;  %v10073_v9 = vld [vmem:[%s13493_s1 + $0x78] sm:$0xff]   ;;  %v10077_v13 = vld [vmem:[%s13493_s1 + $0xb0] sm:$0xff]   ;;  %v10083_v19 = vld [vmem:[%s13493_s1 + $0xa8] sm:$0xff]  }
   0xf   : > { %v10074_v10 = vld [vmem:[%s13493_s1 + $0xb8] sm:$0xff]   ;;  %v10078_v14 = vld [vmem:[%s13493_s1 + $0x70] sm:$0xff]   ;;  %v10084_v20 = vld [vmem:[%s13493_s1 + $0xe0] sm:$0xff]  }
  0x10   : > { %s10658_s29 = scalar_lea.vmem %s13492_s0, %s10055_s24  ;;  %v10075_v11 = vld [vmem:[%s13493_s1 + $0x38] sm:$0xff]   ;;  %v10080_v16 = vld [vmem:[%s13493_s1 + $0x30] sm:$0xff]   ;;  %v10085_v21 = vld [vmem:[%s13493_s1 + $0x68] sm:$0xff]  }
  0x11   : > { %v10070_v7 = vld [vmem:[%s10658_s29 + $0x80] ss:$12 sps:$4 sm:$0xff]   ;;  %8560 = vmatpush3.bf16.msra.mxu0 %v10069_v5  ;;  %10054 = vmatpush3.bf16.msra.mxu1 %v10648_v4  ;;  %v10072_v8 = vld [vmem:[%s10658_s29 + $0x98] ss:$12 sps:$4 sm:$0xff]   ;;  %v10079_v15 = vld [vmem:[%s10658_s29 + $0xb0] ss:$12 sps:$4 sm:$0xff]  }
  0x12   : > { %9739 = vmatprep.mubr.msk.bf16.mxu1 %vm661_vm0, %v10070_v7  ;;  %8561 = vmatprep.subr.bf16.mxu0 %v10071_v6  ;;  %v10082_v18 = vld [vmem:[%s10658_s29 + $0xc8] ss:$12 sps:$4 sm:$0xff]   ;;  %v10086_v22 = vld [vmem:[%s13493_s1 + $0xa0] sm:$0xff]   ;;  %v10089_v25 = vld [vmem:[%s13493_s1 + $0xd8] sm:$0xff]  }
  0x13   : > { %8687 = vmatprep.subr.bf16.mxu1 %v10073_v9  ;;  %v10087_v23 = vld [vmem:[%s13493_s1 + $0x28] sm:$0xff]   ;;  %v10090_v26 = vld [vmem:[%s10658_s29 + $0xf8] ss:$12 sps:$4 sm:$0xff]   ;;  %v10094_v30 = vld [vmem:[%s13493_s1 + $0xd0] sm:$0xff]  }
  0x14   : > { %9740 = vmatmul.mubr.msk.bf16.vlgmr.msra.gmra.mxu1 %vm661_vm0, %v10072_v8  ;;  %v10088_v24 = vld [vmem:[%s10658_s29 + $0xe0] ss:$12 sps:$4 sm:$0xff]   ;;  %v10091_v27 = vld [vmem:[%s13493_s1 + $0x98] sm:$0xff]   ;;  %v10095_v31 = vld [vmem:[%s13493_s1 + $0x90] sm:$0xff]  }
  0x15   : > { %8562 = vmatpush3.bf16.msra.mxu0 %v10074_v10  ;;  %8688 = vmatpush3.bf16.msra.mxu1 %v10075_v11  ;;  %v10092_v28 = vld [vmem:[%s13493_s1 + $0x60] sm:$0xff]   ;;  %v10098_v33 = vld [vmem:[%s10658_s29 + $0x1c] ss:$12 sps:$4 sm:$0xff]   ;;  %v10103_v38 = vld [vmem:[%s13493_s1 + $0x50] sm:$0xff]  }
  0x16   : > { %8563 = vmatprep.subr.bf16.mxu0 %v10076_v12  ;;  %8689 = vmatprep.subr.bf16.mxu1 %v10078_v14  ;;  %v10093_v29 = vld [vmem:[%s13493_s1 + $0x20] sm:$0xff]   ;;  %v10099_v34 = vld [vmem:[%s10658_s29 + $0x110] ss:$12 sps:$4 sm:$0xff]   ;;  %v10100_v35 = vld [vmem:[%s10658_s29 + $0x128] ss:$12 sps:$4 sm:$0xff]  }
  0x17   : > { %9743 = vmatprep.mubr.msk.bf16.mxu1 %vm661_vm0, %v10079_v15  ;;  %v10734_v32 = vld [vmem:[%s10658_s29 + $0x18] ss:$12 sps:$4 sm:$0xff]   ;;  %742 = vmatprep.mubr.bf16.mxu0 %v10098_v33  ;;  %v10755_v39 = vld [vmem:[%s10658_s29 + $0x34] ss:$12 sps:$4 sm:$0xff]   ;;  %v10763_v42 = vld [vmem:[%s10658_s29 + $0x30] ss:$12 sps:$4 sm:$0xff]  }
  0x18   : > { %v10101_v36 = vld [vmem:[%s13493_s1 + $0x58] sm:$0xff]   ;;  %v10106_v40 = vld [vmem:[%s10658_s29 + $0x140] ss:$12 sps:$4 sm:$0xff]   ;;  %v10107_v41 = vld [vmem:[%s13493_s1 + $0x10] sm:$0xff]  }
  0x19   : > { %8564 = vmatpush3.bf16.msra.mxu0 %v10077_v13  ;;  %8690 = vmatpush3.bf16.msra.mxu1 %v10080_v16  ;;  %v10102_v37 = vld [vmem:[%s13493_s1 + $0x18] sm:$0xff]   ;;  %v10110_v44 = vld [vmem:[%s13493_s1 + $0x48] sm:$0xff]   ;;  %v10117_v50 = vld [vmem:[%s13493_s1 + $0x40] sm:$0xff]  }
  0x1a   : > { %8565 = vmatprep.subr.bf16.mxu0 %v10081_v17  ;;  %8691 = vmatprep.subr.bf16.mxu1 %v10085_v21  ;;  %v10109_v43 = vld [vmem:[%s10658_s29 + $0x158] ss:$12 sps:$4 sm:$0xff]   ;;  %v10111_v45 = vld [vmem:[%s13493_s1 + $0x8] sm:$0xff]   ;;  %v10114_v47 = vld [vmem:[%s10658_s29 + $0x170] ss:$12 sps:$4 sm:$0xff]  }
  0x1b   : > { %v10777_v46 = vld [vmem:[%s10658_s29 + $0x4c] ss:$12 sps:$4 sm:$0xff]   ;;  %v10781_v48 = vld [vmem:[%s10658_s29 + $0x48] ss:$12 sps:$4 sm:$0xff]   ;;  %v10118_v51 = vld [vmem:[%s13493_s1] sm:$0xff]  }
  0x1c   : > { %9744 = vmatmul.mubr.msk.bf16.gmra.mxu1 %vm661_vm0, %v10082_v18  ;;  %v10116_v49 = vld [vmem:[%s10658_s29 + $0x188] ss:$12 sps:$4 sm:$0xff]   ;;  %v10793_v52 = vld [vmem:[%s10658_s29 + $0x64] ss:$12 sps:$4 sm:$0xff]   ;;  %v10125_v54 = vld [vmem:[%s13493_s1 + $0x198] sm:$0xff]  }
  0x1d   : > { %8566 = vmatpush3.bf16.msra.mxu0 %v10083_v19  ;;  %8692 = vmatpush3.bf16.msra.mxu1 %v10087_v23  ;;  %v10123_v53 = vld [vmem:[%s10658_s29 + $0x4] ss:$12 sps:$4 sm:$0xff]   ;;  %v10121_v55 = vld [vmem:[%s10658_s29] ss:$12 sps:$4 sm:$0xff]   ;;  %v10807_v57 = vld [vmem:[%s10658_s29 + $0x7c] ss:$12 sps:$4 sm:$0xff]  }
  0x1e   : > { %8567 = vmatprep.subr.bf16.mxu0 %v10084_v20  ;;  %9747 = vmatprep.mubr.msk.bf16.mxu1 %vm661_vm0, %v10088_v24  ;;  %v10804_v56 = vld [vmem:[%s10658_s29 + $0x60] ss:$12 sps:$4 sm:$0xff]   ;;  %v10126_v58 = vld [vmem:[%s13493_s1 + $0x158] sm:$0xff]   ;;  %v10133_v59 = vld [vmem:[%s13493_s1 + $0x190] sm:$0xff]  }
  0x1f   : > { %8693 = vmatprep.subr.bf16.mxu1 %v10092_v28  ;;  %v10134_v60 = vld [vmem:[%s13493_s1 + $0x150] sm:$0xff]   ;;  %v10141_v61 = vld [vmem:[%s13493_s1 + $0x188] sm:$0xff]   ;;  %v10824_v62 = vld [vmem:[%s10658_s29 + $0x78] ss:$12 sps:$4 sm:$0xff]  }
  0x20   : > { %v10827_v63 = vld [vmem:[%s10658_s29 + $0x94] ss:$12 sps:$4 sm:$0xff]   ;;  %v10142_v0 = vld [vmem:[%s13493_s1 + $0x148] sm:$0xff]   ;;  %v10843_v3 = vld [vmem:[%s10658_s29 + $0x90] ss:$12 sps:$4 sm:$0xff]  }
  0x21   : > { %8568 = vmatpush3.bf16.msra.mxu0 %v10086_v22  ;;  %8694 = vmatpush3.bf16.msra.mxu1 %v10093_v29  ;;  %v10150_v2 = vld [vmem:[%s13493_s1 + $0x140] sm:$0xff]   ;;  %v10849_v5 = vld [vmem:[%s10658_s29 + $0xac] ss:$12 sps:$4 sm:$0xff]   ;;  %v10165_v7 = vld [vmem:[%s13493_s1 + $0x170] sm:$0xff]  }
  0x22   : > { %8569 = vmatprep.subr.bf16.mxu0 %v10089_v25  ;;  %8695 = vmatprep.subr.bf16.mxu1 %v10101_v36  ;;  %v10158_v6 = vld [vmem:[%s13493_s1 + $0x138] sm:$0xff]   ;;  %v10166_v8 = vld [vmem:[%s13493_s1 + $0x130] sm:$0xff]   ;;  %v10173_v11 = vld [vmem:[%s13493_s1 + $0x168] sm:$0xff]  }
  0x23   : > { %v10865_v9 = vld [vmem:[%s10658_s29 + $0xa8] ss:$12 sps:$4 sm:$0xff]   ;;  %v10868_v10 = vld [vmem:[%s10658_s29 + $0xc4] ss:$12 sps:$4 sm:$0xff]   ;;  %v10140_v13 = vld [vmem:[%s10658_s29 + $0xc0] ss:$12 sps:$4 sm:$0xff]  }
  0x24   : > { %9748 = vmatmul.mubr.msk.bf16.gmra.mxu1 %vm661_vm0, %v10090_v26  ;;  %v10174_v12 = vld [vmem:[%s13493_s1 + $0x128] sm:$0xff]   ;;  %v10180_v16 = vld [vmem:[%s13493_s1 + $0x160] sm:$0xff]   ;;  %v10897_v18 = vld [vmem:[%s13493_s1 + $0x238] sm:$0xff]  }
  0x25   : > { %8570 = vmatpush3.bf16.msra.mxu0 %v10091_v27  ;;  %9751 = vmatprep.mubr.msk.bf16.mxu1 %vm661_vm0, %v10099_v34  ;;  %v10143_v14 = vld [vmem:[%s10658_s29 + $0xdc] ss:$12 sps:$4 sm:$0xff]   ;;  %v10181_v17 = vld [vmem:[%s13493_s1 + $0x120] sm:$0xff]   ;;  %v10151_v22 = vld [vmem:[%s10658_s29 + $0x10c] ss:$12 sps:$4 sm:$0xff]  }
  0x26   : > { %8571 = vmatprep.subr.bf16.mxu0 %v10094_v30  ;;  %8696 = vmatpush3.bf16.msra.mxu1 %v10102_v37  ;;  %v10885_v15 = vld [vmem:[%s13493_s1 + $0x88] sm:$0xff]   ;;  %v10145_v19 = vld [vmem:[%s10658_s29 + $0xd8] ss:$12 sps:$4 sm:$0xff]   ;;  %v10146_v20 = vld [vmem:[%s10658_s29 + $0xf4] ss:$12 sps:$4 sm:$0xff]  }
  0x27   : > { %8697 = vmatprep.subr.bf16.mxu1 %v10103_v38  ;;  %v10148_v21 = vld [vmem:[%s10658_s29 + $0xf0] ss:$12 sps:$4 sm:$0xff]   ;;  %v10153_v23 = vld [vmem:[%s10658_s29 + $0x108] ss:$12 sps:$4 sm:$0xff]   ;;  %v10156_v25 = vld [vmem:[%s10658_s29 + $0x120] ss:$12 sps:$4 sm:$0xff]  }
  0x28   : > { %v10154_v24 = vld [vmem:[%s10658_s29 + $0x124] ss:$12 sps:$4 sm:$0xff]   ;;  %v10159_v26 = vld [vmem:[%s10658_s29 + $0x13c] ss:$12 sps:$4 sm:$0xff]   ;;  %v10162_v28 = vld [vmem:[%s10658_s29 + $0x154] ss:$12 sps:$4 sm:$0xff]  }
  0x29   : > { %8572 = vmatpush3.bf16.msra.mxu0 %v10095_v31  ;;  %v10161_v27 = vld [vmem:[%s10658_s29 + $0x138] ss:$12 sps:$4 sm:$0xff]   ;;  %v10164_v29 = vld [vmem:[%s10658_s29 + $0x150] ss:$12 sps:$4 sm:$0xff]   ;;  %v10169_v31 = vld [vmem:[%s10658_s29 + $0x168] ss:$12 sps:$4 sm:$0xff]  }
  0x2a   : > { %9727 = vmatprep.subr.bf16.mxu0 %v10633_v1  ;;  %8698 = vmatpush3.bf16.msra.mxu1 %v10107_v41  ;;  %v10167_v30 = vld [vmem:[%s10658_s29 + $0x16c] ss:$12 sps:$4 sm:$0xff]   ;;  %v10177_v36 = vld [vmem:[%s10658_s29 + $0x50] ss:$12 sps:$4 sm:$0xff]   ;;  %v10182_v37 = vld [vmem:[%s13493_s1 + $0x80] sm:$0xff]  }
  0x2b   : > { %8699 = vmatprep.subr.bf16.mxu1 %v10110_v44  ;;  %v10175_v34 = vld [vmem:[%s10658_s29 + $0x20] ss:$12 sps:$4 sm:$0xff]   ;;  %v10178_v38 = vld [vmem:[%s10658_s29 + $0x68] ss:$12 sps:$4 sm:$0xff]  }
  0x2c   : > { %743 = vmatmul.mubr.bf16.vlgmr.msra.gmra.mxu0 %v10734_v32  ;;  %9752 = vmatmul.mubr.msk.bf16.gmra.mxu1 %vm661_vm0, %v10100_v35  ;;  %v10176_v35 = vld [vmem:[%s10658_s29 + $0x38] ss:$12 sps:$4 sm:$0xff]   ;;  %v10183_v41 = vld [vmem:[%s10658_s29 + $0x8] ss:$12 sps:$4 sm:$0xff]  }
  0x2d   : > { %9728 = vmatpush3.bf16.msra.mxu0 %v10633_v1  ;;  %750 = vmatprep.mubr.bf16.mxu0 %v10755_v39  ;;  %v10149_v1 = vld [vmem:[%s13493_s1 + $0x180] sm:$0xff]   ;;  %v10192_v44 = vld [vmem:[%s13493_s1 + $0x228] sm:$0xff]  }
  0x2e   : > { %9729 = vmatprep.subr.bf16.mxu0 %v10648_v4  ;;  %9755 = vmatprep.mubr.msk.bf16.mxu1 %vm661_vm0, %v10106_v40  ;;  %v10185_v40 = vld [vmem:[%s13493_s1 + $0x1a8] sm:$0xff]  }
  0x2f   : > { %8700 = vmatpush3.bf16.msra.mxu1 %v10111_v45  ;;  %v10191_v45 = vld [vmem:[%s13493_s1 + $0x230] sm:$0xff]  }
  0x30   : > { %8701 = vmatprep.subr.bf16.mxu1 %v10117_v50  ;;  %v10565_v50 = vld [vmem:[%s10658_s29 + $0xb0] ss:$12 sps:$4 sm:$0xff]  }
  0x31   : > { %9730 = vmatpush3.bf16.msra.mxu0 %v10648_v4  ;;  %v10157_v4 = vld [vmem:[%s13493_s1 + $0x178] sm:$0xff]  }
  0x32   : > { %9763 = vmatprep.subr.bf16.mxu0 %v10885_v15 }
  0x33   : > { %8702 = vmatpush3.bf16.msra.mxu1 %v10118_v51  ;;  %v10566_v51 = vld [vmem:[%s10658_s29 + $0xc8] ss:$12 sps:$4 sm:$0xff]  }
  0x34   : > { %751 = vmatmul.mubr.bf16.gmra.mxu0 %v10763_v42  ;;  %9756 = vmatmul.mubr.msk.bf16.gmra.mxu1 %vm661_vm0, %v10109_v43  ;;  %v10186_v43 = vld [vmem:[%s13493_s1 + $0x1a0] sm:$0xff]  }
  0x35   : > { %758 = vmatprep.mubr.bf16.mxu0 %v10777_v46  ;;  %9759 = vmatprep.mubr.msk.bf16.mxu1 %vm661_vm0, %v10114_v47  ;;  %v10562_v47 = vld [vmem:[%s10658_s29 + $0x80] ss:$12 sps:$4 sm:$0xff]  }
  0x36   : > { %8817 = vmatprep.subr.bf16.mxu1 %v10125_v54 }
  0x3c   : > { %759 = vmatmul.mubr.bf16.gmra.mxu0 %v10781_v48  ;;  %9760 = vmatmul.mubr.msk.bf16.gmra.mxu1 %vm661_vm0, %v10116_v49 }
  0x3d   : > { %766 = vmatprep.mubr.bf16.mxu0 %v10793_v52  ;;  %1190 = vmatprep.mubr.bf16.mxu1 %v10123_v53 }
  0x44   : > { %767 = vmatmul.mubr.bf16.gmra.mxu0 %v10804_v56  ;;  %1191 = vmatmul.mubr.bf16.vlgmr.msra.gmra.mxu1 %v10121_v55  ;;  %v10567_v55 = vld [vmem:[%s10658_s29 + $0xe0] ss:$12 sps:$4 sm:$0xff]  }
  0x45   : > { %774 = vmatprep.mubr.bf16.mxu0 %v10807_v57  ;;  %8818 = vmatpush3.bf16.msra.mxu1 %v10126_v58 }
  0x46   : > { %1198 = vmatprep.mubr.bf16.mxu1 %v10098_v33  ;;  %8819 = vmatprep.subr.bf16.mxu1 %v10133_v59  ;;  %v10172_v33 = vld [vmem:[%s10658_s29 + $0x180] ss:$12 sps:$4 sm:$0xff]  }
  0x49   : > { %8820 = vmatpush3.bf16.msra.mxu1 %v10134_v60 }
  0x4a   : > { %8821 = vmatprep.subr.bf16.mxu1 %v10141_v61  ;;  %v10569_v61 = vld [vmem:[%s10658_s29 + $0x110] ss:$12 sps:$4 sm:$0xff]  }
  0x4c   : > { %775 = vmatmul.mubr.bf16.gmra.mxu0 %v10824_v62  ;;  %1199 = vmatmul.mubr.bf16.gmra.mxu1 %v10734_v32  ;;  %v10170_v32 = vld [vmem:[%s10658_s29 + $0x184] ss:$12 sps:$4 sm:$0xff]  }
  0x4d   : > { %782 = vmatprep.mubr.bf16.mxu0 %v10827_v63  ;;  %1206 = vmatprep.mubr.bf16.mxu1 %v10755_v39 }
  0x4e   : > { %8822 = vmatpush3.bf16.msra.mxu1 %v10142_v0 }
  0x4f   : > { %8823 = vmatprep.subr.bf16.mxu1 %v10149_v1 }
  0x52   : > { %8824 = vmatpush3.bf16.msra.mxu1 %v10150_v2 }
  0x53   : > { %8825 = vmatprep.subr.bf16.mxu1 %v10157_v4  ;;  %v10571_v4 = vld [vmem:[%s10658_s29 + $0x140] ss:$12 sps:$4 sm:$0xff]  }
  0x54   : > { %783 = vmatmul.mubr.bf16.gmra.mxu0 %v10843_v3  ;;  %1207 = vmatmul.mubr.bf16.gmra.mxu1 %v10763_v42 }
  0x55   : > { %790 = vmatprep.mubr.bf16.mxu0 %v10849_v5  ;;  %1214 = vmatprep.mubr.bf16.mxu1 %v10777_v46 }
  0x56   : > { %8826 = vmatpush3.bf16.msra.mxu1 %v10158_v6 }
  0x57   : > { %8827 = vmatprep.subr.bf16.mxu1 %v10165_v7 }
  0x5a   : > { %8828 = vmatpush3.bf16.msra.mxu1 %v10166_v8 }
  0x5b   : > { %8829 = vmatprep.subr.bf16.mxu1 %v10173_v11  ;;  %v10187_v11 = vld [vmem:[%s10658_s29 + $0x38] ss:$12 sps:$4 sm:$0xff]  }
  0x5c   : > { %791 = vmatmul.mubr.bf16.gmra.mxu0 %v10865_v9  ;;  %1215 = vmatmul.mubr.bf16.gmra.mxu1 %v10781_v48  ;;  %v10563_v48 = vld [vmem:[%s10658_s29 + $0x48] ss:$12 sps:$4 sm:$0xff]  }
  0x5d   : > { %798 = vmatprep.mubr.bf16.mxu0 %v10868_v10  ;;  %1222 = vmatprep.mubr.bf16.mxu1 %v10793_v52 }
  0x5e   : > { %8830 = vmatpush3.bf16.msra.mxu1 %v10174_v12 }
  0x5f   : > { %8831 = vmatprep.subr.bf16.mxu1 %v10180_v16 }
  0x62   : > { %8832 = vmatpush3.bf16.msra.mxu1 %v10181_v17  ;;  %v10573_v17 = vld [vmem:[%s10658_s29 + $0x170] ss:$12 sps:$4 sm:$0xff]  }
  0x63   : > { %9835 = vmatprep.subr.bf16.mxu1 %v10897_v18 }
  0x64   : > { %799 = vmatmul.mubr.bf16.gmra.mxu0 %v10140_v13  ;;  %1223 = vmatmul.mubr.bf16.gmra.mxu1 %v10804_v56 }
  0x65   : > { %806 = vmatprep.mubr.bf16.mxu0 %v10143_v14  ;;  %1230 = vmatprep.mubr.bf16.mxu1 %v10807_v57 }
  0x6c   : > { %807 = vmatmul.mubr.bf16.gmra.mxu0 %v10145_v19  ;;  %1231 = vmatmul.mubr.bf16.gmra.mxu1 %v10824_v62 }
  0x6d   : > { %814 = vmatprep.mubr.bf16.mxu0 %v10146_v20  ;;  %1238 = vmatprep.mubr.bf16.mxu1 %v10827_v63 }
  0x74   : > { %815 = vmatmul.mubr.bf16.gmra.mxu0 %v10148_v21  ;;  %1239 = vmatmul.mubr.bf16.gmra.mxu1 %v10843_v3 }
  0x75   : > { %822 = vmatprep.mubr.bf16.mxu0 %v10151_v22  ;;  %1246 = vmatprep.mubr.bf16.mxu1 %v10849_v5 }
  0x7c   : > { %823 = vmatmul.mubr.bf16.gmra.mxu0 %v10153_v23  ;;  %1247 = vmatmul.mubr.bf16.gmra.mxu1 %v10865_v9 }
  0x7d   : > { %830 = vmatprep.mubr.bf16.mxu0 %v10154_v24  ;;  %1254 = vmatprep.mubr.bf16.mxu1 %v10868_v10 }
  0x84   : > { %831 = vmatmul.mubr.bf16.gmra.mxu0 %v10156_v25  ;;  %1255 = vmatmul.mubr.bf16.gmra.mxu1 %v10140_v13 }
  0x85   : > { %838 = vmatprep.mubr.bf16.mxu0 %v10159_v26  ;;  %1262 = vmatprep.mubr.bf16.mxu1 %v10143_v14 }
  0x8c   : > { %839 = vmatmul.mubr.bf16.gmra.mxu0 %v10161_v27  ;;  %1263 = vmatmul.mubr.bf16.gmra.mxu1 %v10145_v19 }
  0x8d   : > { %846 = vmatprep.mubr.bf16.mxu0 %v10162_v28  ;;  %1270 = vmatprep.mubr.bf16.mxu1 %v10146_v20  ;;  %v10575_v20 = vld [vmem:[%s10658_s29 + $0xdc] ss:$12 sps:$4 sm:$0xff]  }
  0x94   : > { %847 = vmatmul.mubr.bf16.gmra.mxu0 %v10164_v29  ;;  %1271 = vmatmul.mubr.bf16.gmra.mxu1 %v10148_v21  ;;  %v10188_v21 = vld [vmem:[%s10658_s29 + $0x50] ss:$12 sps:$4 sm:$0xff]  }
  0x95   : > { %854 = vmatprep.mubr.bf16.mxu0 %v10167_v30  ;;  %1278 = vmatprep.mubr.bf16.mxu1 %v10151_v22 }
  0x9c   : > { %855 = vmatmul.mubr.bf16.gmra.mxu0 %v10169_v31  ;;  %1279 = vmatmul.mubr.bf16.gmra.mxu1 %v10153_v23 }
  0x9d   : > { %862 = vmatprep.mubr.bf16.mxu0 %v10170_v32  ;;  %1286 = vmatprep.mubr.bf16.mxu1 %v10154_v24  ;;  %v10189_v24 = vld [vmem:[%s10658_s29 + $0x68] ss:$12 sps:$4 sm:$0xff]  }
  0xa4   : > { %863 = vmatmul.mubr.bf16.gmra.mxu0 %v10172_v33  ;;  %1287 = vmatmul.mubr.bf16.gmra.mxu1 %v10156_v25 }
  0xa5   : > { %9731 = vmatprep.mubr.msk.bf16.mxu0 %vm661_vm0, %v10175_v34  ;;  %1294 = vmatprep.mubr.bf16.mxu1 %v10159_v26 }
  0xac   : > { %9732 = vmatmul.mubr.msk.bf16.vlgmr.msra.gmra.mxu0 %vm661_vm0, %v10176_v35  ;;  %1295 = vmatmul.mubr.bf16.gmra.mxu1 %v10161_v27 }
  0xad   : > { %9735 = vmatprep.mubr.msk.bf16.mxu0 %vm661_vm0, %v10177_v36  ;;  %1302 = vmatprep.mubr.bf16.mxu1 %v10162_v28  ;;  %v10193_v28 = vld [vmem:[%s13493_s1 + $0x1e8] sm:$0xff]  }
  0xae   : > { %9764 = vmatpush3.bf16.msra.mxu0 %v10885_v15 }
  0xaf   : > { %9765 = vmatprep.subr.bf16.mxu0 %v10182_v37 }
  0xb2   : > { %9766 = vmatpush3.bf16.msra.mxu0 %v10182_v37 }
  0xb3   : > { %9799 = vmatprep.subr.bf16.mxu0 %v10185_v40 }
  0xb4   : > { %9736 = vmatmul.mubr.msk.bf16.gmra.mxu0 %vm661_vm0, %v10178_v38  ;;  %1303 = vmatmul.mubr.bf16.gmra.mxu1 %v10164_v29 }
  0xb5   : > { %9767 = vmatprep.mubr.msk.bf16.mxu0 %vm661_vm0, %v10183_v41  ;;  %1310 = vmatprep.mubr.bf16.mxu1 %v10167_v30 }
  0xbc   : > { %9768 = vmatmul.mubr.msk.bf16.vlgmr.msra.gmra.mxu0 %vm661_vm0, %v10175_v34  ;;  %1311 = vmatmul.mubr.bf16.gmra.mxu1 %v10169_v31  ;;  %v10196_v31 = vld [vmem:[%s13493_s1 + $0x220] sm:$0xff]  }
  0xbd   : > { %9771 = vmatprep.mubr.msk.bf16.mxu0 %vm661_vm0, %v10176_v35  ;;  %2009 = vmatprep.mubr.bf16.mxu1 %v10755_v39  ;;  %v10231_v39 = vld [vmem:[%s13493_s1 + $0x2b8] sm:$0xff]   ;;  %v10197_v35 = vld [vmem:[%s13493_s1 + $0x1e0] sm:$0xff]  }
  0xbe   : > { %9800 = vmatpush3.bf16.msra.mxu0 %v10185_v40  ;;  %v10576_v34 = vld [vmem:[%s10658_s29 + $0xd8] ss:$12 sps:$4 sm:$0xff]   ;;  %v10190_v40 = vld [vmem:[%s10658_s29 + $0x80] ss:$12 sps:$4 sm:$0xff]  }
  0xbf   : > { %9801 = vmatprep.subr.bf16.mxu0 %v10186_v43 }
  0xc2   : > { %9802 = vmatpush3.bf16.msra.mxu0 %v10186_v43 }
  0xc3   : > { %8947 = vmatprep.subr.bf16.mxu0 %v10192_v44  ;;  %v10194_v44 = vld [vmem:[%s10658_s29 + $0x98] ss:$12 sps:$4 sm:$0xff]  }
  0xc4   : > { %9772 = vmatmul.mubr.msk.bf16.gmra.mxu0 %vm661_vm0, %v10177_v36  ;;  %2010 = vmatmul.mubr.bf16.vlgmr.msra.gmra.mxu1 %v10763_v42  ;;  %v10564_v42 = vld [vmem:[%s10658_s29 + $0x98] ss:$12 sps:$4 sm:$0xff]  }
  0xc5   : > { %9775 = vmatprep.mubr.msk.bf16.mxu0 %vm661_vm0, %v10178_v38  ;;  %9836 = vmatpush3.bf16.msra.mxu1 %v10897_v18  ;;  %v10574_v18 = vld [vmem:[%s10658_s29 + $0xc0] ss:$12 sps:$4 sm:$0xff]   ;;  %v10200_v36 = vld [vmem:[%s13493_s1 + $0x218] sm:$0xff]  }
  0xc6   : > { %2017 = vmatprep.mubr.bf16.mxu1 %v10777_v46  ;;  %9837 = vmatprep.subr.bf16.mxu1 %v10191_v45  ;;  %v10577_v38 = vld [vmem:[%s10658_s29 + $0xf4] ss:$12 sps:$4 sm:$0xff]  }
  0xc9   : > { %9838 = vmatpush3.bf16.msra.mxu1 %v10191_v45 }
  0xca   : > { %9077 = vmatprep.subr.bf16.mxu1 %v10231_v39 }
  0xcc   : > { %9776 = vmatmul.mubr.msk.bf16.gmra.mxu0 %vm661_vm0, %v10562_v47  ;;  %2018 = vmatmul.mubr.bf16.gmra.mxu1 %v10563_v48  ;;  %v10201_v48 = vld [vmem:[%s13493_s1 + $0x1d8] sm:$0xff]  }
  0xcd   : > { %9779 = vmatprep.mubr.msk.bf16.mxu0 %vm661_vm0, %v10564_v42  ;;  %2025 = vmatprep.mubr.bf16.mxu1 %v10793_v52 }
  0xd4   : > { %v10966_v49 = vpop.f32.mrf.mxu1  ;;  %9780 = vmatmul.mubr.msk.bf16.gmra.mxu0 %vm661_vm0, %v10565_v50  ;;  %2026 = vmatmul.mubr.bf16.gmra.mxu1 %v10804_v56  ;;  %v10568_v56 = vld [vmem:[%s10658_s29 + $0xf8] ss:$12 sps:$4 sm:$0xff]  }
  0xd5   : > { %9783 = vmatprep.mubr.msk.bf16.mxu0 %vm661_vm0, %v10566_v51  ;;  %2033 = vmatprep.mubr.bf16.mxu1 %v10807_v57  ;;  %v10204_v51 = vld [vmem:[%s13493_s1 + $0x210] sm:$0xff]  }
  0xd6   : > { %v10971_v46 = vpop.f32.mrf.mxu1 }
  0xd8   : > { %v10976_v53 = vpop.f32.mrf.mxu1 }
  0xda   : > { %v10978_v54 = vpop.f32.mrf.mxu1 }
  0xdc   : > { %v10980_v52 = vpop.f32.mrf.mxu1  ;;  %9784 = vmatmul.mubr.msk.bf16.gmra.mxu0 %vm661_vm0, %v10567_v55  ;;  %2034 = vmatmul.mubr.bf16.gmra.mxu1 %v10824_v62  ;;  %v10570_v62 = vld [vmem:[%s10658_s29 + $0x128] ss:$12 sps:$4 sm:$0xff]  }
  0xdd   : > { %9787 = vmatprep.mubr.msk.bf16.mxu0 %vm661_vm0, %v10568_v56  ;;  %2041 = vmatprep.mubr.bf16.mxu1 %v10827_v63  ;;  %v10205_v56 = vld [vmem:[%s13493_s1 + $0x1d0] sm:$0xff]  }
  0xde   : > { %v10987_v58 = vpop.f32.mrf.mxu1 }
  0xe0   : > { %v10990_v57 = vpop.f32.mrf.mxu1 }
  0xe2   : > { %v10992_v59 = vpop.f32.mrf.mxu1 }
  0xe4   : > { %v10994_v60 = vpop.f32.mrf.mxu1  ;;  %9788 = vmatmul.mubr.msk.bf16.gmra.mxu0 %vm661_vm0, %v10569_v61  ;;  %2042 = vmatmul.mubr.bf16.gmra.mxu1 %v10843_v3  ;;  %v10572_v3 = vld [vmem:[%s10658_s29 + $0x158] ss:$12 sps:$4 sm:$0xff]  }
  0xe5   : > { %9791 = vmatprep.mubr.msk.bf16.mxu0 %vm661_vm0, %v10570_v62  ;;  %2049 = vmatprep.mubr.bf16.mxu1 %v10849_v5  ;;  %v10578_v62 = vld [vmem:[%s10658_s29 + $0xf0] ss:$12 sps:$4 sm:$0xff]  }
  0xe6   : > { %v11001_v0 = vpop.f32.mrf.mxu1 }
  0xe8   : > { %v11004_v63 = vpop.f32.mrf.mxu1 }
  0xea   : > { %v11006_v1 = vpop.f32.mrf.mxu1 }
  0xec   : > { %v8573_v2 = vpop.f32.mrf.mxu0  ;;  %9792 = vmatmul.mubr.msk.bf16.gmra.mxu0 %vm661_vm0, %v10571_v4  ;;  %v11010_v6 = vpop.f32.mrf.mxu1  ;;  %2050 = vmatmul.mubr.bf16.gmra.mxu1 %v10865_v9 }
  0xed   : > { %9795 = vmatprep.mubr.msk.bf16.mxu0 %vm661_vm0, %v10572_v3  ;;  %2057 = vmatprep.mubr.bf16.mxu1 %v10868_v10  ;;  %v10579_v3 = vld [vmem:[%s10658_s29 + $0x10c] ss:$12 sps:$4 sm:$0xff]  }
  0xee   : > { %v8574_v7 = vpop.f32.mrf.mxu0  ;;  %v11018_v8 = vpop.f32.mrf.mxu1 }
  0xef   : > { %v11016_v5 = vadd.f32 %v8574_v7, %v8573_v2  ;;  %v10208_v2 = vld [vmem:[%s13493_s1 + $0x208] sm:$0xff]   ;;  %v10195_v7 = vld [vmem:[%s10658_s29 + $0xb0] ss:$12 sps:$4 sm:$0xff]  }
  0xf0   : > { %v8576_v12 = vpop.f32.mrf.mxu0  ;;  %v11021_v13 = vpop.f32.mrf.mxu1 }
  0xf2   : > { %v8577_v14 = vpop.f32.mrf.mxu0  ;;  %v11025_v15 = vpop.f32.mrf.mxu1 }
  0xf3   : > { %v11023_v9 = vadd.f32 %v8577_v14, %v8576_v12 }
  0xf4   : > { %v8579_v16 = vpop.f32.mrf.mxu0  ;;  %9796 = vmatmul.mubr.msk.bf16.gmra.mxu0 %vm661_vm0, %v10573_v17  ;;  %v11029_v10 = vpop.f32.mrf.mxu1  ;;  %2058 = vmatmul.mubr.bf16.gmra.mxu1 %v10574_v18  ;;  %v10198_v17 = vld [vmem:[%s10658_s29 + $0xc8] ss:$12 sps:$4 sm:$0xff]  }
  0xf5   : > { %9803 = vmatprep.mubr.msk.bf16.mxu0 %vm661_vm0, %v10187_v11  ;;  %2065 = vmatprep.mubr.bf16.mxu1 %v10575_v20  ;;  %v10209_v20 = vld [vmem:[%s13493_s1 + $0x1c8] sm:$0xff]  }
  0xf6   : > { %v8580_v19 = vpop.f32.mrf.mxu0  ;;  %v11037_v23 = vpop.f32.mrf.mxu1 }
  0xf7   : > { %v11035_v22 = vadd.f32 %v8580_v19, %v8579_v16 }
  0xf8   : > { %v8582_v25 = vpop.f32.mrf.mxu0  ;;  %v11040_v26 = vpop.f32.mrf.mxu1 }
  0xfa   : > { %v8583_v27 = vpop.f32.mrf.mxu0  ;;  %v11047_v30 = vpop.f32.mrf.mxu1 }
  0xfb   : > { %v11045_v29 = vadd.f32 %v8583_v27, %v8582_v25  ;;  %v10212_v25 = vld [vmem:[%s13493_s1 + $0x200] sm:$0xff]  }
  0xfc   : > { %v8585_v32 = vpop.f32.mrf.mxu0  ;;  %9804 = vmatmul.mubr.msk.bf16.vlgmr.msra.gmra.mxu0 %vm661_vm0, %v10188_v21  ;;  %v11053_v33 = vpop.f32.mrf.mxu1  ;;  %2066 = vmatmul.mubr.bf16.gmra.mxu1 %v10576_v34  ;;  %v10580_v34 = vld [vmem:[%s10658_s29 + $0x108] ss:$12 sps:$4 sm:$0xff]  }
  0xfd   : > { %9807 = vmatprep.mubr.msk.bf16.mxu0 %vm661_vm0, %v10189_v24  ;;  %2073 = vmatprep.mubr.bf16.mxu1 %v10577_v38  ;;  %v10199_v38 = vld [vmem:[%s10658_s29 + $0xe0] ss:$12 sps:$4 sm:$0xff]  }
  0xfe   : > { %v8586_v37 = vpop.f32.mrf.mxu0  ;;  %8948 = vmatpush3.bf16.msra.mxu0 %v10193_v28  ;;  %v11067_v43 = vpop.f32.mrf.mxu1 }
  0xff   : > { %v11065_v41 = vadd.f32 %v8586_v37, %v8585_v32  ;;  %8949 = vmatprep.subr.bf16.mxu0 %v10196_v31  ;;  %v10213_v31 = vld [vmem:[%s13493_s1 + $0x1c0] sm:$0xff]  }
 0x100   : > { %v8588_v45 = vpop.f32.mrf.mxu0  ;;  %v11070_v39 = vpop.f32.mrf.mxu1  ;;  %v10581_v37 = vld [vmem:[%s10658_s29 + $0x124] ss:$12 sps:$4 sm:$0xff]  }
 0x102   : > { %v8589_v47 = vpop.f32.mrf.mxu0  ;;  %8950 = vmatpush3.bf16.msra.mxu0 %v10197_v35  ;;  %v11077_v50 = vpop.f32.mrf.mxu1  ;;  %v10216_v35 = vld [vmem:[%s13493_s1 + $0x1f8] sm:$0xff]  }
 0x103   : > { %v11075_v42 = vadd.f32 %v8589_v47, %v8588_v45  ;;  %8951 = vmatprep.subr.bf16.mxu0 %v10200_v36  ;;  %v10202_v45 = vld [vmem:[%s10658_s29 + $0xf8] ss:$12 sps:$4 sm:$0xff]  }
 0x104   : > { %v8591_v55 = vpop.f32.mrf.mxu0  ;;  %9808 = vmatmul.mubr.msk.bf16.gmra.mxu0 %vm661_vm0, %v10190_v40  ;;  %v8703_v61 = vpop.f32.mrf.mxu1  ;;  %2074 = vmatmul.mubr.bf16.gmra.mxu1 %v10578_v62 }
 0x105   : > { %9811 = vmatprep.mubr.msk.bf16.mxu0 %vm661_vm0, %v10194_v44  ;;  %2081 = vmatprep.mubr.bf16.mxu1 %v10579_v3 }
 0x106   : > { %v8592_v4 = vpop.f32.mrf.mxu0  ;;  %8952 = vmatpush3.bf16.msra.mxu0 %v10201_v48  ;;  %v8704_v12 = vpop.f32.mrf.mxu1 }
 0x107   : > { %v11093_v11 = vadd.f32 %v8592_v4, %v8591_v55  ;;  %8953 = vmatprep.subr.bf16.mxu0 %v10204_v51  ;;  %v11095_v14 = vadd.f32 %v8704_v12, %v8703_v61  ;;  %v10217_v61 = vld [vmem:[%s13493_s1 + $0x1b8] sm:$0xff]   ;;  %v10218_v4 = vld [vmem:[%s13493_s1 + $0x1f0] sm:$0xff]  }
 0x108   : > { %v8594_v16 = vpop.f32.mrf.mxu0  ;;  %v8706_v18 = vpop.f32.mrf.mxu1 }
 0x10a   : > { %v8595_v19 = vpop.f32.mrf.mxu0  ;;  %8954 = vmatpush3.bf16.msra.mxu0 %v10205_v56  ;;  %v8707_v24 = vpop.f32.mrf.mxu1 }
 0x10b   : > { %v11101_v21 = vadd.f32 %v8595_v19, %v8594_v16  ;;  %8955 = vmatprep.subr.bf16.mxu0 %v10208_v2  ;;  %v11106_v27 = vadd.f32 %v8707_v24, %v8706_v18  ;;  %v11145_v18 = vld [vmem:[%s13493_s1 + $0x2c8] sm:$0xff]   ;;  %v10203_v24 = vld [vmem:[%s10658_s29 + $0x110] ss:$12 sps:$4 sm:$0xff]  }
 0x10c   : > { %v8597_v28 = vpop.f32.mrf.mxu0  ;;  %9812 = vmatmul.mubr.msk.bf16.gmra.mxu0 %vm661_vm0, %v10195_v7  ;;  %v8709_v32 = vpop.f32.mrf.mxu1  ;;  %2082 = vmatmul.mubr.bf16.gmra.mxu1 %v10580_v34  ;;  %v10219_v7 = vld [vmem:[%s13493_s1 + $0x1b0] sm:$0xff]  }
 0x10d   : > { %9815 = vmatprep.mubr.msk.bf16.mxu0 %vm661_vm0, %v10198_v17  ;;  %2089 = vmatprep.mubr.bf16.mxu1 %v10581_v37  ;;  %v10582_v17 = vld [vmem:[%s10658_s29 + $0x120] ss:$12 sps:$4 sm:$0xff]  }
 0x10e   : > { %v8598_v36 = vpop.f32.mrf.mxu0  ;;  %8956 = vmatpush3.bf16.msra.mxu0 %v10209_v20  ;;  %v8710_v44 = vpop.f32.mrf.mxu1  ;;  %v10583_v20 = vld [vmem:[%s10658_s29 + $0x13c] ss:$12 sps:$4 sm:$0xff]  }
 0x10f   : > { %v8599_v40 = vadd.f32 %v8598_v36, %v8597_v28  ;;  %8957 = vmatprep.subr.bf16.mxu0 %v10212_v25  ;;  %v11120_v47 = vadd.f32 %v8710_v44, %v8709_v32  ;;  %v10206_v28 = vld [vmem:[%s10658_s29 + $0x128] ss:$12 sps:$4 sm:$0xff]  }
 0x110   : > { %v8600_v48 = vpop.f32.mrf.mxu0  ;;  %v8712_v55 = vpop.f32.mrf.mxu1 }
 0x111   : > { %v11123_v51 = vadd.f32 %v8599_v40, %v10971_v46 }
 0x112   : > { %v8601_v56 = vpop.f32.mrf.mxu0  ;;  %8958 = vmatpush3.bf16.msra.mxu0 %v10213_v31  ;;  %v8713_v2 = vpop.f32.mrf.mxu1 }
 0x113   : > { %v8602_v62 = vadd.f32 %v8601_v56, %v8600_v48  ;;  %8959 = vmatprep.subr.bf16.mxu0 %v10216_v35  ;;  %v11131_v3 = vadd.f32 %v8713_v2, %v8712_v55  ;;  %v10585_v55 = vld [vmem:[%s10658_s29 + $0x154] ss:$12 sps:$4 sm:$0xff]   ;;  %v10210_v2 = vld [vmem:[%s10658_s29 + $0x158] ss:$12 sps:$4 sm:$0xff]  }
 0x114   : > { %v8603_v46 = vpop.f32.mrf.mxu0  ;;  %9816 = vmatmul.mubr.msk.bf16.gmra.mxu0 %vm661_vm0, %v10199_v38  ;;  %v8715_v16 = vpop.f32.mrf.mxu1  ;;  %2090 = vmatmul.mubr.bf16.gmra.mxu1 %v10582_v17  ;;  %v10207_v56 = vld [vmem:[%s10658_s29 + $0x140] ss:$12 sps:$4 sm:$0xff]  }
 0x115   : > { %v11138_v12 = vadd.f32 %v8602_v62, %v10978_v54  ;;  %9819 = vmatprep.mubr.msk.bf16.mxu0 %vm661_vm0, %v10202_v45  ;;  %2097 = vmatprep.mubr.bf16.mxu1 %v10583_v20  ;;  %v10584_v45 = vld [vmem:[%s10658_s29 + $0x138] ss:$12 sps:$4 sm:$0xff]  }
 0x116   : > { %v8604_v19 = vpop.f32.mrf.mxu0  ;;  %8960 = vmatpush3.bf16.msra.mxu0 %v10217_v61  ;;  %v8716_v54 = vpop.f32.mrf.mxu1 }
 0x117   : > { %v11149_v25 = vadd.f32 %v8604_v19, %v8603_v46  ;;  %8961 = vmatprep.subr.bf16.mxu0 %v10218_v4  ;;  %v11152_v31 = vadd.f32 %v8716_v54, %v8715_v16 }
 0x118   : > { %v8606_v32 = vpop.f32.mrf.mxu0  ;;  %v8718_v34 = vpop.f32.mrf.mxu1 }
 0x11a   : > { %v8607_v35 = vpop.f32.mrf.mxu0  ;;  %8962 = vmatpush3.bf16.msra.mxu0 %v10219_v7  ;;  %v8719_v37 = vpop.f32.mrf.mxu1 }
 0x11b   : > { %v11154_v36 = vadd.f32 %v8607_v35, %v8606_v32  ;;  %9871 = vmatprep.subr.bf16.mxu0 %v11145_v18  ;;  %v11157_v38 = vadd.f32 %v8719_v37, %v8718_v34  ;;  %v10587_v34 = vld [vmem:[%s10658_s29 + $0x16c] ss:$12 sps:$4 sm:$0xff]   ;;  %v10211_v35 = vld [vmem:[%s10658_s29 + $0x170] ss:$12 sps:$4 sm:$0xff]  }
 0x11c   : > { %v8609_v40 = vpop.f32.mrf.mxu0  ;;  %9820 = vmatmul.mubr.msk.bf16.gmra.mxu0 %vm661_vm0, %v10203_v24  ;;  %v8721_v44 = vpop.f32.mrf.mxu1  ;;  %2098 = vmatmul.mubr.bf16.gmra.mxu1 %v10584_v45 }
 0x11d   : > { %9823 = vmatprep.mubr.msk.bf16.mxu0 %vm661_vm0, %v10206_v28  ;;  %2105 = vmatprep.mubr.bf16.mxu1 %v10585_v55  ;;  %v10586_v28 = vld [vmem:[%s10658_s29 + $0x150] ss:$12 sps:$4 sm:$0xff]  }
 0x11e   : > { %v8610_v48 = vpop.f32.mrf.mxu0  ;;  %v8722_v62 = vpop.f32.mrf.mxu1 }
 0x11f   : > { %v11164_v61 = vadd.f32 %v8610_v48, %v8609_v40  ;;  %v11167_v4 = vadd.f32 %v8722_v62, %v8721_v44  ;;  %v10214_v44 = vld [vmem:[%s10658_s29 + $0x188] ss:$12 sps:$4 sm:$0xff]  }
 0x120   : > { %v8612_v46 = vpop.f32.mrf.mxu0  ;;  %v8724_v7 = vpop.f32.mrf.mxu1 }
 0x122   : > { %v8613_v16 = vpop.f32.mrf.mxu0  ;;  %v8725_v19 = vpop.f32.mrf.mxu1 }
 0x123   : > { %v11169_v17 = vadd.f32 %v8613_v16, %v8612_v46  ;;  %v11171_v20 = vadd.f32 %v8725_v19, %v8724_v7 }
 0x124   : > { %v8615_v24 = vpop.f32.mrf.mxu0  ;;  %9824 = vmatmul.mubr.msk.bf16.gmra.mxu0 %vm661_vm0, %v10207_v56  ;;  %v8727_v54 = vpop.f32.mrf.mxu1  ;;  %2106 = vmatmul.mubr.bf16.gmra.mxu1 %v10586_v28  ;;  %v10589_v28 = vld [vmem:[%s10658_s29 + $0x184] ss:$12 sps:$4 sm:$0xff]  }
 0x125   : > { %9827 = vmatprep.mubr.msk.bf16.mxu0 %vm661_vm0, %v10210_v2  ;;  %2113 = vmatprep.mubr.bf16.mxu1 %v10587_v34 }
 0x126   : > { %v8616_v32 = vpop.f32.mrf.mxu0  ;;  %v8728_v40 = vpop.f32.mrf.mxu1 }
 0x127   : > { %v11178_v37 = vadd.f32 %v8616_v32, %v8615_v24  ;;  %v8729_v45 = vadd.f32 %v8728_v40, %v8727_v54  ;;  %v10588_v24 = vld [vmem:[%s10658_s29 + $0x168] ss:$12 sps:$4 sm:$0xff]   ;;  %v10215_v32 = vld [vmem:[%s10658_s29 + $0x1a0] ss:$12 sps:$4 sm:$0xff]  }
 0x128   : > { %v8618_v48 = vpop.f32.mrf.mxu0  ;;  %v8730_v55 = vpop.f32.mrf.mxu1 }
 0x129   : > { %v11182_v62 = vadd.f32 %v8729_v45, %v11123_v51  ;;  %v10225_v45 = vld [vmem:[%s10658_s29 + $0x4c] ss:$12 sps:$4 sm:$0xff]  }
 0x12a   : > { %v8619_v56 = vpop.f32.mrf.mxu0  ;;  %v8731_v2 = vpop.f32.mrf.mxu1 }
 0x12b   : > { %v11184_v46 = vadd.f32 %v8619_v56, %v8618_v48  ;;  %v8732_v7 = vadd.f32 %v8731_v2, %v8730_v55  ;;  %v11200_v2 = vld [vmem:[%s10658_s29 + $0x19c] ss:$12 sps:$4 sm:$0xff]  }
 0x12c   : > { %v8621_v16 = vpop.f32.mrf.mxu0  ;;  %9828 = vmatmul.mubr.msk.bf16.gmra.mxu0 %vm661_vm0, %v10211_v35  ;;  %v8733_v19 = vpop.f32.mrf.mxu1  ;;  %2114 = vmatmul.mubr.bf16.gmra.mxu1 %v10588_v24  ;;  %v946_v35 = vadd.f32 %v10966_v49, %v11149_v25  ;;  %13505 = vst [vmem:[#allocation3_spill] sm:$0xff] %v11200_v2  ;;  %v10590_v25 = vld [vmem:[%s10658_s29 + $0x180] ss:$12 sps:$4 sm:$0xff]  }
 0x12d   : > { %9831 = vmatprep.mubr.msk.bf16.mxu0 %vm661_vm0, %v10214_v44  ;;  %2121 = vmatprep.mubr.bf16.mxu1 %v10589_v28  ;;  %v11192_v51 = vadd.f32 %v8732_v7, %v11138_v12  ;;  %v949_v7 = vadd.f32 %v10976_v53, %v11154_v36  ;;  %v11220_v53 = vld [vmem:[%s10658_s29 + $0x64] ss:$12 sps:$4 sm:$0xff]   ;;  %v954_v36 = vadd.f32 %v11164_v61, %v10987_v58 }
 0x12e   : > { %v8622_v54 = vpop.f32.mrf.mxu0  ;;  %v8734_v40 = vpop.f32.mrf.mxu1 }
 0x12f   : > { %13504 = vst [vmem:[#allocation2_spill] sm:$0xff] %v11192_v51  ;;  %v11194_v34 = vadd.f32 %v8622_v54, %v8621_v16  ;;  %v8735_v48 = vadd.f32 %v8734_v40, %v8733_v19  ;;  %v10223_v40 = vld [vmem:[%s10658_s29 + $0x48] ss:$12 sps:$4 sm:$0xff]  }
 0x130   : > { %v8624_v55 = vpop.f32.mrf.mxu0  ;;  %v8736_v56 = vpop.f32.mrf.mxu1 }
 0x131   : > { %v11202_v24 = vadd.f32 %v8735_v48, %v946_v35 }
 0x132   : > { %v8625_v44 = vpop.f32.mrf.mxu0  ;;  %v8737_v12 = vpop.f32.mrf.mxu1 }
 0x133   : > { %v11204_v28 = vadd.f32 %v8625_v44, %v8624_v55  ;;  %v8738_v16 = vadd.f32 %v8737_v12, %v8736_v56  ;;  %v11217_v44 = vld [vmem:[%s10658_s29 + $0x198] ss:$12 sps:$4 sm:$0xff]  }
 0x134   : > { %v8627_v54 = vpop.f32.mrf.mxu0  ;;  %9832 = vmatmul.mubr.msk.bf16.gmra.mxu0 %vm661_vm0, %v10215_v32  ;;  %v8739_v49 = vpop.f32.mrf.mxu1  ;;  %2122 = vmatmul.mubr.bf16.gmra.mxu1 %v10590_v25  ;;  %13506 = vst [vmem:[#allocation4_spill] sm:$0xff] %v11217_v44  ;;  %v10229_v25 = vld [vmem:[%s10658_s29 + $0x50] ss:$12 sps:$4 sm:$0xff]  }
 0x135   : > { %2860 = vmatprep.mubr.bf16.mxu0 %v10225_v45  ;;  %2129 = vmatprep.mubr.bf16.mxu1 %v11200_v2  ;;  %v11212_v35 = vadd.f32 %v8738_v16, %v949_v7  ;;  %v10287_v16 = vld [vmem:[%s13493_s1 + $0x2c0] sm:$0xff]  }
 0x136   : > { %v8628_v19 = vpop.f32.mrf.mxu0  ;;  %v8740_v55 = vpop.f32.mrf.mxu1 }
 0x137   : > { %v11214_v48 = vadd.f32 %v8628_v19, %v8627_v54  ;;  %v8741_v32 = vadd.f32 %v8740_v55, %v8739_v49  ;;  %v957_v54 = vadd.f32 %v11169_v17, %v10992_v59 }
 0x138   : > { %v8630_v56 = vpop.f32.mrf.mxu0  ;;  %v8742_v12 = vpop.f32.mrf.mxu1 }
 0x139   : > { %v11225_v51 = vadd.f32 %v8741_v32, %v954_v36 }
 0x13a   : > { %v8631_v45 = vpop.f32.mrf.mxu0  ;;  %v8743_v7 = vpop.f32.mrf.mxu1 }
 0x13b   : > { %13507 = vst [vmem:[#allocation5_spill] sm:$0xff] %v11225_v51  ;;  %v11227_v2 = vadd.f32 %v8631_v45, %v8630_v56  ;;  %v8744_v19 = vadd.f32 %v8743_v7, %v8742_v12  ;;  %v11245_v56 = vld [vmem:[%s10658_s29 + $0x60] ss:$12 sps:$4 sm:$0xff]   ;;  %v10230_v45 = vld [vmem:[%s10658_s29 + $0x68] ss:$12 sps:$4 sm:$0xff]  }
 0x13c   : > { %v8633_v58 = vpop.f32.mrf.mxu0  ;;  %2861 = vmatmul.mubr.bf16.vlgmr.msra.gmra.mxu0 %v10223_v40  ;;  %v8745_v61 = vpop.f32.mrf.mxu1  ;;  %2130 = vmatmul.mubr.bf16.gmra.mxu1 %v11217_v44  ;;  %v962_v40 = vadd.f32 %v10980_v52, %v11178_v37  ;;  %v11249_v7 = vld [vmem:[%s10658_s29 + $0x7c] ss:$12 sps:$4 sm:$0xff]   ;;  %v10239_v37 = vld [vmem:[%s13493_s1 + $0x2b0] sm:$0xff]  }
 0x13d   : > { %2868 = vmatprep.mubr.bf16.mxu0 %v11220_v53  ;;  %9839 = vmatprep.mubr.msk.bf16.mxu1 %vm661_vm0, %v10229_v25  ;;  %v11238_v55 = vadd.f32 %v8744_v19, %v957_v54  ;;  %v10237_v54 = vld [vmem:[%s10658_s29 + $0x80] ss:$12 sps:$4 sm:$0xff]  }
 0x13e   : > { %v8634_v49 = vpop.f32.mrf.mxu0  ;;  %9872 = vmatpush3.bf16.msra.mxu0 %v11145_v18  ;;  %v8746_v17 = vpop.f32.mrf.mxu1  ;;  %v10232_v18 = vld [vmem:[%s13493_s1 + $0x278] sm:$0xff]  }
 0x13f   : > { %13508 = vst [vmem:[#allocation6_spill] sm:$0xff] %v11238_v55  ;;  %v11240_v59 = vadd.f32 %v8634_v49, %v8633_v58  ;;  %9873 = vmatprep.subr.bf16.mxu0 %v10287_v16  ;;  %v8747_v36 = vadd.f32 %v8746_v17, %v8745_v61  ;;  %v965_v61 = vadd.f32 %v10990_v57, %v11184_v46  ;;  %v10240_v57 = vld [vmem:[%s13493_s1 + $0x270] sm:$0xff]  }
 0x140   : > { %v8636_v32 = vpop.f32.mrf.mxu0  ;;  %v8748_v12 = vpop.f32.mrf.mxu1  ;;  %v11285_v55 = vld [vmem:[%s10658_s29 + $0x94] ss:$12 sps:$4 sm:$0xff]  }
 0x141   : > { %v11255_v19 = vadd.f32 %v8747_v36, %v962_v40 }
 0x142   : > { %v8637_v25 = vpop.f32.mrf.mxu0  ;;  %9874 = vmatpush3.bf16.msra.mxu0 %v10287_v16  ;;  %v8749_v52 = vpop.f32.mrf.mxu1 }
 0x143   : > { %v11257_v58 = vadd.f32 %v8637_v25, %v8636_v32  ;;  %v8750_v49 = vadd.f32 %v8749_v52, %v8748_v12  ;;  %v10246_v32 = vld [vmem:[%s13493_s1 + $0x2a8] sm:$0xff]   ;;  %v970_v12 = vadd.f32 %v11194_v34, %v11001_v0  ;;  %v10238_v52 = vld [vmem:[%s10658_s29 + $0x98] ss:$12 sps:$4 sm:$0xff]  }
 0x144   : > { %v8639_v17 = vpop.f32.mrf.mxu0  ;;  %2869 = vmatmul.mubr.bf16.gmra.mxu0 %v11245_v56  ;;  %v8751_v44 = vpop.f32.mrf.mxu1  ;;  %9840 = vmatmul.mubr.msk.bf16.vlgmr.msra.gmra.mxu1 %vm661_vm0, %v10230_v45 }
 0x145   : > { %2876 = vmatprep.mubr.bf16.mxu0 %v11249_v7  ;;  %9078 = vmatpush3.bf16.msra.mxu1 %v10232_v18  ;;  %v11271_v46 = vadd.f32 %v8750_v49, %v965_v61  ;;  %v11281_v18 = vld [vmem:[%s10658_s29 + $0x78] ss:$12 sps:$4 sm:$0xff]   ;;  %v10308_v61 = vld [vmem:[%s13493_s1 + $0x348] sm:$0xff]   ;;  %v10244_v49 = vld [vmem:[%s10658_s29 + $0xb0] ss:$12 sps:$4 sm:$0xff]  }
 0x146   : > { %v8640_v16 = vpop.f32.mrf.mxu0  ;;  %9843 = vmatprep.mubr.msk.bf16.mxu1 %vm661_vm0, %v10237_v54  ;;  %v8752_v36 = vpop.f32.mrf.mxu1  ;;  %9079 = vmatprep.subr.bf16.mxu1 %v10239_v37 }
 0x147   : > { %13509 = vst [vmem:[#allocation7_spill] sm:$0xff] %v11271_v46  ;;  %v11273_v40 = vadd.f32 %v8640_v16, %v8639_v17  ;;  %v8753_v45 = vadd.f32 %v8752_v36, %v8751_v44  ;;  %v10247_v17 = vld [vmem:[%s13493_s1 + $0x268] sm:$0xff]   ;;  %v10253_v16 = vld [vmem:[%s13493_s1 + $0x2a0] sm:$0xff]   ;;  %9207 = vmatprep.subr.bf16.mxu0 %v10308_v61  ;;  %v973_v36 = vadd.f32 %v11204_v28, %v11006_v1 }
 0x148   : > { %v8642_v25 = vpop.f32.mrf.mxu0  ;;  %v8754_v54 = vpop.f32.mrf.mxu1  ;;  %v10254_v1 = vld [vmem:[%s13493_s1 + $0x260] sm:$0xff]  }
 0x149   : > { %9080 = vmatpush3.bf16.msra.mxu1 %v10240_v57  ;;  %v11294_v0 = vadd.f32 %v8753_v45, %v970_v12 }
 0x14a   : > { %v8643_v37 = vpop.f32.mrf.mxu0  ;;  %v8755_v44 = vpop.f32.mrf.mxu1  ;;  %9081 = vmatprep.subr.bf16.mxu1 %v10246_v32 }
 0x14b   : > { %13510 = vst [vmem:[#allocation8_spill] sm:$0xff] %v11294_v0  ;;  %v11296_v34 = vadd.f32 %v8643_v37, %v8642_v25  ;;  %v8756_v57 = vadd.f32 %v8755_v44, %v8754_v54  ;;  %v10260_v25 = vld [vmem:[%s13493_s1 + $0x298] sm:$0xff]   ;;  %v978_v54 = vadd.f32 %v10994_v60, %v11214_v48  ;;  %v981_v48 = vadd.f32 %v11004_v63, %v11227_v2  ;;  %v10268_v63 = vld [vmem:[%s13493_s1 + $0x250] sm:$0xff]  }
 0x14c   : > { %v8645_v46 = vpop.f32.mrf.mxu0  ;;  %2877 = vmatmul.mubr.bf16.gmra.mxu0 %v11281_v18  ;;  %v8757_v51 = vpop.f32.mrf.mxu1  ;;  %9844 = vmatmul.mubr.msk.bf16.gmra.mxu1 %vm661_vm0, %v10238_v52  ;;  %v11320_v37 = vld [vmem:[%s10658_s29 + $0x90] ss:$12 sps:$4 sm:$0xff]   ;;  %v11324_v44 = vld [vmem:[%s10658_s29 + $0xac] ss:$12 sps:$4 sm:$0xff]  }
 0x14d   : > { %2884 = vmatprep.mubr.bf16.mxu0 %v11285_v55  ;;  %9847 = vmatprep.mubr.msk.bf16.mxu1 %vm661_vm0, %v10244_v49  ;;  %v11310_v28 = vadd.f32 %v8756_v57, %v973_v36  ;;  %v11360_v0 = vld [vmem:[%s10658_s29 + $0xc4] ss:$12 sps:$4 sm:$0xff]  }
 0x14e   : > { %v8646_v32 = vpop.f32.mrf.mxu0  ;;  %9082 = vmatpush3.bf16.msra.mxu1 %v10247_v17  ;;  %v8758_v45 = vpop.f32.mrf.mxu1  ;;  %v10245_v17 = vld [vmem:[%s10658_s29 + $0xc8] ss:$12 sps:$4 sm:$0xff]  }
 0x14f   : > { %13511 = vst [vmem:[#allocation9_spill] sm:$0xff] %v11310_v28  ;;  %v11312_v12 = vadd.f32 %v8646_v32, %v8645_v46  ;;  %9083 = vmatprep.subr.bf16.mxu1 %v10253_v16  ;;  %v8759_v52 = vadd.f32 %v8758_v45, %v8757_v51  ;;  %v10251_v46 = vld [vmem:[%s10658_s29 + $0xe0] ss:$12 sps:$4 sm:$0xff]   ;;  %v10261_v16 = vld [vmem:[%s13493_s1 + $0x258] sm:$0xff]   ;;  %v10267_v51 = vld [vmem:[%s13493_s1 + $0x290] sm:$0xff]  }
 0x150   : > { %v8648_v61 = vpop.f32.mrf.mxu0  ;;  %v8760_v49 = vpop.f32.mrf.mxu1 }
 0x151   : > { %v11330_v57 = vadd.f32 %v8759_v52, %v978_v54 }
 0x152   : > { %v8649_v36 = vpop.f32.mrf.mxu0  ;;  %9084 = vmatpush3.bf16.msra.mxu1 %v10254_v1  ;;  %v8761_v60 = vpop.f32.mrf.mxu1 }
 0x153   : > { %v11332_v32 = vadd.f32 %v8649_v36, %v8648_v61  ;;  %9085 = vmatprep.subr.bf16.mxu1 %v10260_v25  ;;  %v8762_v45 = vadd.f32 %v8761_v60, %v8760_v49  ;;  %v10274_v61 = vld [vmem:[%s13493_s1 + $0x288] sm:$0xff]   ;;  %v986_v49 = vadd.f32 %v11240_v59, %v11018_v8  ;;  %v10252_v60 = vld [vmem:[%s10658_s29 + $0xf8] ss:$12 sps:$4 sm:$0xff]  }
 0x154   : > { %v8651_v28 = vpop.f32.mrf.mxu0  ;;  %2885 = vmatmul.mubr.bf16.gmra.mxu0 %v11320_v37  ;;  %v8763_v1 = vpop.f32.mrf.mxu1  ;;  %9848 = vmatmul.mubr.msk.bf16.gmra.mxu1 %vm661_vm0, %v10245_v17  ;;  %v10281_v59 = vld [vmem:[%s13493_s1 + $0x280] sm:$0xff]  }
 0x155   : > { %2892 = vmatprep.mubr.bf16.mxu0 %v11324_v44  ;;  %9851 = vmatprep.mubr.msk.bf16.mxu1 %vm661_vm0, %v10251_v46  ;;  %v11346_v2 = vadd.f32 %v8762_v45, %v981_v48  ;;  %v11356_v46 = vld [vmem:[%s10658_s29 + $0xa8] ss:$12 sps:$4 sm:$0xff]  }
 0x156   : > { %v8652_v25 = vpop.f32.mrf.mxu0  ;;  %9086 = vmatpush3.bf16.msra.mxu1 %v10261_v16  ;;  %v8764_v52 = vpop.f32.mrf.mxu1 }
 0x157   : > { %13512 = vst [vmem:[#allocation10_spill] sm:$0xff] %v11346_v2  ;;  %v11348_v54 = vadd.f32 %v8652_v25, %v8651_v28  ;;  %9087 = vmatprep.subr.bf16.mxu1 %v10267_v51  ;;  %v8765_v17 = vadd.f32 %v8764_v52, %v8763_v1  ;;  %v10258_v28 = vld [vmem:[%s10658_s29 + $0x110] ss:$12 sps:$4 sm:$0xff]   ;;  %v10275_v51 = vld [vmem:[%s13493_s1 + $0x248] sm:$0xff]   ;;  %v989_v1 = vadd.f32 %v11257_v58, %v11025_v15  ;;  %v10282_v15 = vld [vmem:[%s13493_s1 + $0x240] sm:$0xff]  }
 0x158   : > { %v8654_v36 = vpop.f32.mrf.mxu0  ;;  %v8766_v16 = vpop.f32.mrf.mxu1 }
 0x159   : > { %v11366_v45 = vadd.f32 %v8765_v17, %v986_v49 }
 0x15a   : > { %v8655_v48 = vpop.f32.mrf.mxu0  ;;  %9088 = vmatpush3.bf16.msra.mxu1 %v10268_v63  ;;  %v8767_v8 = vpop.f32.mrf.mxu1 }
 0x15b   : > { %13513 = vst [vmem:[#allocation11_spill] sm:$0xff] %v11366_v45  ;;  %v11368_v25 = vadd.f32 %v8655_v48, %v8654_v36  ;;  %9089 = vmatprep.subr.bf16.mxu1 %v10274_v61  ;;  %v8768_v52 = vadd.f32 %v8767_v8, %v8766_v16  ;;  %v11389_v36 = vld [vmem:[%s13493_s1 + $0x358] sm:$0xff]   ;;  %v994_v16 = vadd.f32 %v11010_v6, %v11273_v40  ;;  %v10259_v8 = vld [vmem:[%s10658_s29 + $0x128] ss:$12 sps:$4 sm:$0xff]  }
 0x15c   : > { %v8657_v2 = vpop.f32.mrf.mxu0  ;;  %2893 = vmatmul.mubr.bf16.gmra.mxu0 %v11356_v46  ;;  %v8769_v63 = vpop.f32.mrf.mxu1  ;;  %9852 = vmatmul.mubr.msk.bf16.gmra.mxu1 %vm661_vm0, %v10252_v60  ;;  %v997_v6 = vadd.f32 %v11021_v13, %v11296_v34  ;;  %v1002_v34 = vadd.f32 %v11312_v12, %v11037_v23  ;;  %v10266_v45 = vld [vmem:[%s10658_s29 + $0x158] ss:$12 sps:$4 sm:$0xff]  }
 0x15d   : > { %2900 = vmatprep.mubr.bf16.mxu0 %v11360_v0  ;;  %9855 = vmatprep.mubr.msk.bf16.mxu1 %vm661_vm0, %v10258_v28  ;;  %v11382_v58 = vadd.f32 %v8768_v52, %v989_v1  ;;  %v11394_v28 = vld [vmem:[%s10658_s29 + $0xc0] ss:$12 sps:$4 sm:$0xff]   ;;  %v11398_v1 = vld [vmem:[%s10658_s29 + $0xdc] ss:$12 sps:$4 sm:$0xff]  }
 0x15e   : > { %v8658_v61 = vpop.f32.mrf.mxu0  ;;  %9090 = vmatpush3.bf16.msra.mxu1 %v10275_v51  ;;  %v8770_v17 = vpop.f32.mrf.mxu1  ;;  %13515 = vst [vmem:[#allocation13_spill] sm:$0xff] %v11394_v28  ;;  %13516 = vst [vmem:[#allocation14_spill] sm:$0xff] %v11398_v1  ;;  %v10265_v52 = vld [vmem:[%s10658_s29 + $0x140] ss:$12 sps:$4 sm:$0xff]  }
 0x15f   : > { %13514 = vst [vmem:[#allocation12_spill] sm:$0xff] %v11382_v58  ;;  %v11384_v49 = vadd.f32 %v8658_v61, %v8657_v2  ;;  %9091 = vmatprep.subr.bf16.mxu1 %v10281_v59  ;;  %v8771_v60 = vadd.f32 %v8770_v17, %v8769_v63 }
 0x160   : > { %v8660_v48 = vpop.f32.mrf.mxu0  ;;  %v8772_v51 = vpop.f32.mrf.mxu1 }
 0x161   : > { %v11401_v59 = vadd.f32 %v8771_v60, %v994_v16 }
 0x162   : > { %v8661_v2 = vpop.f32.mrf.mxu0  ;;  %9092 = vmatpush3.bf16.msra.mxu1 %v10282_v15  ;;  %v8773_v58 = vpop.f32.mrf.mxu1 }
 0x163   : > { %13517 = vst [vmem:[#allocation15_spill] sm:$0xff] %v11401_v59  ;;  %v11403_v61 = vadd.f32 %v8661_v2, %v8660_v48  ;;  %9907 = vmatprep.subr.bf16.mxu1 %v11389_v36  ;;  %v8774_v40 = vadd.f32 %v8773_v58, %v8772_v51  ;;  %v11419_v51 = vld [vmem:[%s10658_s29 + $0xd8] ss:$12 sps:$4 sm:$0xff]  }
 0x164   : > { %v8663_v63 = vpop.f32.mrf.mxu0  ;;  %2901 = vmatmul.mubr.bf16.gmra.mxu0 %v11394_v28  ;;  %v8775_v17 = vpop.f32.mrf.mxu1  ;;  %9856 = vmatmul.mubr.msk.bf16.gmra.mxu1 %vm661_vm0, %v10259_v8  ;;  %v11423_v8 = vld [vmem:[%s10658_s29 + $0xf4] ss:$12 sps:$4 sm:$0xff]   ;;  %v10272_v28 = vld [vmem:[%s10658_s29 + $0x170] ss:$12 sps:$4 sm:$0xff]  }
 0x165   : > { %2908 = vmatprep.mubr.bf16.mxu0 %v11398_v1  ;;  %9859 = vmatprep.mubr.msk.bf16.mxu1 %vm661_vm0, %v10265_v52  ;;  %v11412_v16 = vadd.f32 %v8774_v40, %v997_v6  ;;  %v1005_v40 = vadd.f32 %v11332_v32, %v11047_v30 }
 0x166   : > { %v8664_v15 = vpop.f32.mrf.mxu0  ;;  %v8776_v13 = vpop.f32.mrf.mxu1 }
 0x167   : > { %v11414_v60 = vadd.f32 %v8664_v15, %v8663_v63  ;;  %v8777_v58 = vadd.f32 %v8776_v13, %v8775_v17 }
 0x168   : > { %v8666_v48 = vpop.f32.mrf.mxu0  ;;  %v8778_v2 = vpop.f32.mrf.mxu1 }
 0x169   : > { %v11426_v59 = vadd.f32 %v8777_v58, %v1002_v34 }
 0x16a   : > { %v8667_v1 = vpop.f32.mrf.mxu0  ;;  %v8779_v6 = vpop.f32.mrf.mxu1 }
 0x16b   : > { %v11428_v52 = vadd.f32 %v8667_v1, %v8666_v48  ;;  %v8780_v63 = vadd.f32 %v8779_v6, %v8778_v2  ;;  %v11444_v48 = vld [vmem:[%s10658_s29 + $0xf0] ss:$12 sps:$4 sm:$0xff]   ;;  %v10273_v6 = vld [vmem:[%s10658_s29 + $0x188] ss:$12 sps:$4 sm:$0xff]  }
 0x16c   : > { %v9733_v23 = vpop.f32.mrf.mxu0  ;;  %2909 = vmatmul.mubr.bf16.gmra.mxu0 %v11419_v51  ;;  %v8781_v17 = vpop.f32.mrf.mxu1  ;;  %9860 = vmatmul.mubr.msk.bf16.gmra.mxu1 %vm661_vm0, %v10266_v45 }
 0x16d   : > { %v914_v12 = vadd.f32 %v9733_v23, %v11035_v22  ;;  %2916 = vmatprep.mubr.bf16.mxu0 %v11423_v8  ;;  %9863 = vmatprep.mubr.msk.bf16.mxu1 %vm661_vm0, %v10272_v28  ;;  %v11437_v15 = vadd.f32 %v8780_v63, %v1005_v40  ;;  %v1010_v22 = vadd.f32 %v11029_v10, %v11348_v54  ;;  %v11449_v23 = vld [vmem:[%s10658_s29 + $0x10c] ss:$12 sps:$4 sm:$0xff]  }
 0x16e   : > { %v905_v1 = vpop.f32.mrf.mxu0  ;;  %v8782_v32 = vpop.f32.mrf.mxu1  ;;  %v1013_v54 = vadd.f32 %v11040_v26, %v11368_v25 }
 0x16f   : > { %v906_v30 = vadd.f32 %v11016_v5, %v905_v1  ;;  %v1201_v13 = vadd.f32 %v11120_v47, %v914_v12  ;;  %v8783_v34 = vadd.f32 %v8782_v32, %v8781_v17  ;;  %v10279_v5 = vld [vmem:[%s10658_s29 + $0x1a0] ss:$12 sps:$4 sm:$0xff]  }
 0x170   : > { %v9734_v58 = vpop.f32.mrf.mxu0  ;;  %v8784_v2 = vpop.f32.mrf.mxu1 }
 0x171   : > { %v917_v45 = vadd.f32 %v9734_v58, %v11045_v29  ;;  %v1193_v28 = vadd.f32 %v11095_v14, %v906_v30  ;;  %v11453_v63 = vadd.f32 %v8783_v34, %v1010_v22  ;;  %v11472_v58 = vld [vmem:[%s10658_s29 + $0x108] ss:$12 sps:$4 sm:$0xff]  }
 0x172   : > { %v908_v40 = vpop.f32.mrf.mxu0  ;;  %v8785_v12 = vpop.f32.mrf.mxu1 }
 0x173   : > { %v909_v47 = vadd.f32 %v11023_v9, %v908_v40  ;;  %v1204_v10 = vadd.f32 %v11131_v3, %v917_v45  ;;  %v8786_v17 = vadd.f32 %v8785_v12, %v8784_v2  ;;  %v10280_v2 = vld [vmem:[%s10658_s29 + $0x1b8] ss:$12 sps:$4 sm:$0xff]  }
 0x174   : > { %v9737_v29 = vpop.f32.mrf.mxu0  ;;  %2917 = vmatmul.mubr.bf16.gmra.mxu0 %v11444_v48  ;;  %v8787_v14 = vpop.f32.mrf.mxu1  ;;  %9864 = vmatmul.mubr.msk.bf16.gmra.mxu1 %vm661_vm0, %v10273_v6  ;;  %v11477_v6 = vld [vmem:[%s10658_s29 + $0x124] ss:$12 sps:$4 sm:$0xff]  }
 0x175   : > { %v930_v1 = vadd.f32 %v9737_v29, %v11093_v11  ;;  %2924 = vmatprep.mubr.bf16.mxu0 %v11449_v23  ;;  %v1196_v9 = vadd.f32 %v11106_v27, %v909_v47  ;;  %9867 = vmatprep.mubr.msk.bf16.mxu1 %vm661_vm0, %v10279_v5  ;;  %v11465_v26 = vadd.f32 %v8786_v17, %v1013_v54 }
 0x176   : > { %v921_v3 = vpop.f32.mrf.mxu0  ;;  %v8788_v30 = vpop.f32.mrf.mxu1  ;;  %v1018_v11 = vadd.f32 %v11384_v49, %v11067_v43  ;;  %v1021_v49 = vadd.f32 %v11403_v61, %v11077_v50  ;;  %v1026_v29 = vadd.f32 %v11053_v33, %v11414_v60  ;;  %v1029_v33 = vadd.f32 %v11070_v39, %v11428_v52 }
 0x177   : > { %v922_v25 = vadd.f32 %v11065_v41, %v921_v3  ;;  %v1217_v32 = vadd.f32 %v11167_v4, %v930_v1  ;;  %v8789_v22 = vadd.f32 %v8788_v30, %v8787_v14  ;;  %v11500_v14 = vld [vmem:[%s10658_s29 + $0x120] ss:$12 sps:$4 sm:$0xff]   ;;  %v11505_v30 = vld [vmem:[%s10658_s29 + $0x13c] ss:$12 sps:$4 sm:$0xff]  }
 0x178   : > { %v9738_v34 = vpop.f32.mrf.mxu0  ;;  %v8790_v27 = vpop.f32.mrf.mxu1 }
 0x179   : > { %v933_v45 = vadd.f32 %v9738_v34, %v11101_v21  ;;  %v1209_v40 = vadd.f32 %v11152_v31, %v922_v25  ;;  %v11480_v41 = vadd.f32 %v8789_v22, %v1018_v11 }
 0x17a   : > { %v924_v5 = vpop.f32.mrf.mxu0  ;;  %v8791_v47 = vpop.f32.mrf.mxu1 }
 0x17b   : > { %v925_v4 = vadd.f32 %v11075_v42, %v924_v5  ;;  %v1220_v43 = vadd.f32 %v11171_v20, %v933_v45  ;;  %v8792_v12 = vadd.f32 %v8791_v47, %v8790_v27  ;;  %v11530_v5 = vld [vmem:[%s10658_s29 + $0x138] ss:$12 sps:$4 sm:$0xff]   ;;  %v11538_v47 = vld [vmem:[%s10658_s29 + $0x154] ss:$12 sps:$4 sm:$0xff]  }
 0x17c   : > { %v9769_v21 = vpop.f32.mrf.mxu0  ;;  %2925 = vmatmul.mubr.bf16.gmra.mxu0 %v11472_v58  ;;  %v8793_v54 = vpop.f32.mrf.mxu1  ;;  %9868 = vmatmul.mubr.msk.bf16.gmra.mxu1 %vm661_vm0, %v10280_v2 }
 0x17d   : > { %v11487_v17 = vadd.f32 %v9769_v21, %v1201_v13  ;;  %2932 = vmatprep.mubr.bf16.mxu0 %v11477_v6  ;;  %v1212_v42 = vadd.f32 %v11157_v38, %v925_v4  ;;  %3711 = vmatprep.mubr.bf16.mxu1 %v11220_v53  ;;  %v11493_v20 = vadd.f32 %v8792_v12, %v1021_v49 }
 0x17e   : > { %v1353_v31 = vpop.f32.mrf.mxu0  ;;  %v8794_v50 = vpop.f32.mrf.mxu1 }
 0x17f   : > { %v11495_v61 = vadd.f32 %v1353_v31, %v1193_v28  ;;  %v8795_v1 = vadd.f32 %v8794_v50, %v8793_v54  ;;  %v10307_v28 = vld [vmem:[%s13493_s1 + $0x350] sm:$0xff]  }
 0x180   : > { %v9770_v13 = vpop.f32.mrf.mxu0  ;;  %v8796_v3 = vpop.f32.mrf.mxu1 }
 0x181   : > { %v11502_v25 = vadd.f32 %v9770_v13, %v1204_v10  ;;  %v11507_v11 = vadd.f32 %v8795_v1, %v1026_v29  ;;  %v11557_v13 = vld [vmem:[%s10658_s29 + $0x150] ss:$12 sps:$4 sm:$0xff]  }
 0x182   : > { %v1356_v38 = vpop.f32.mrf.mxu0  ;;  %v8797_v53 = vpop.f32.mrf.mxu1 }
 0x183   : > { %v11509_v22 = vadd.f32 %v1356_v38, %v1196_v9  ;;  %v8798_v60 = vadd.f32 %v8797_v53, %v8796_v3  ;;  %v11563_v38 = vld [vmem:[%s10658_s29 + $0x16c] ss:$12 sps:$4 sm:$0xff]   ;;  %v13518_v53 = vld [vmem:[#allocation2_spill] sm:$0xff] }
 0x184   : > { %v9773_v34 = vpop.f32.mrf.mxu0  ;;  %2933 = vmatmul.mubr.bf16.gmra.mxu0 %v11500_v14  ;;  %v8833_v45 = vpop.f32.mrf.mxu1  ;;  %3712 = vmatmul.mubr.bf16.vlgmr.msra.gmra.mxu1 %v11245_v56  ;;  %v10350_v56 = vld [vmem:[%s13493_s1 + $0x3d8] sm:$0xff]  }
 0x185   : > { %v11517_v10 = vadd.f32 %v9773_v34, %v1217_v32  ;;  %2940 = vmatprep.mubr.bf16.mxu0 %v11505_v30  ;;  %9908 = vmatpush3.bf16.msra.mxu1 %v11389_v36  ;;  %v11523_v27 = vadd.f32 %v8798_v60, %v1029_v33 }
 0x186   : > { %v1369_v9 = vpop.f32.mrf.mxu0  ;;  %3719 = vmatprep.mubr.bf16.mxu1 %v11249_v7  ;;  %v8834_v52 = vpop.f32.mrf.mxu1  ;;  %9909 = vmatprep.subr.bf16.mxu1 %v10307_v28 }
 0x187   : > { %v11525_v39 = vadd.f32 %v1369_v9, %v1209_v40  ;;  %v11527_v2 = vadd.f32 %v8834_v52, %v8833_v45  ;;  %v13519_v45 = vld [vmem:[#allocation5_spill] sm:$0xff] }
 0x188   : > { %v9774_v32 = vpop.f32.mrf.mxu0  ;;  %v8836_v36 = vpop.f32.mrf.mxu1 }
 0x189   : > { %v11535_v4 = vadd.f32 %v9774_v32, %v1220_v43  ;;  %9910 = vmatpush3.bf16.msra.mxu1 %v10307_v28 }
 0x18a   : > { %v1372_v7 = vpop.f32.mrf.mxu0  ;;  %v8837_v49 = vpop.f32.mrf.mxu1  ;;  %9337 = vmatprep.subr.bf16.mxu1 %v10350_v56 }
 0x18b   : > { %v11540_v40 = vadd.f32 %v1372_v7, %v1212_v42  ;;  %v11542_v12 = vadd.f32 %v8837_v49, %v8836_v36  ;;  %v11583_v36 = vld [vmem:[%s10658_s29 + $0x168] ss:$12 sps:$4 sm:$0xff]  }
 0x18c   : > { %v9777_v21 = vpop.f32.mrf.mxu0  ;;  %2941 = vmatmul.mubr.bf16.gmra.mxu0 %v11530_v5  ;;  %v8839_v43 = vpop.f32.mrf.mxu1  ;;  %3720 = vmatmul.mubr.bf16.gmra.mxu1 %v11281_v18  ;;  %v13520_v7 = vld [vmem:[#allocation7_spill] sm:$0xff] }
 0x18d   : > { %v11546_v54 = vadd.f32 %v9777_v21, %v11202_v24  ;;  %2948 = vmatprep.mubr.bf16.mxu0 %v11538_v47  ;;  %3727 = vmatprep.mubr.bf16.mxu1 %v11285_v55  ;;  %v11589_v21 = vld [vmem:[%s10658_s29 + $0x184] ss:$12 sps:$4 sm:$0xff]  }
 0x18e   : > { %v1385_v31 = vpop.f32.mrf.mxu0  ;;  %v8840_v50 = vpop.f32.mrf.mxu1 }
 0x18f   : > { %v11552_v42 = vadd.f32 %v1385_v31, %v11182_v62  ;;  %v11554_v29 = vadd.f32 %v8840_v50, %v8839_v43  ;;  %v13521_v43 = vld [vmem:[#allocation6_spill] sm:$0xff] }
 0x190   : > { %v9778_v1 = vpop.f32.mrf.mxu0  ;;  %v8842_v3 = vpop.f32.mrf.mxu1 }
 0x191   : > { %v11560_v24 = vadd.f32 %v9778_v1, %v11212_v35 }
 0x192   : > { %v1388_v18 = vpop.f32.mrf.mxu0  ;;  %v8843_v55 = vpop.f32.mrf.mxu1 }
 0x193   : > { %v11566_v28 = vadd.f32 %v1388_v18, %v13518_v53  ;;  %v11568_v62 = vadd.f32 %v8843_v55, %v8842_v3  ;;  %v13522_v55 = vld [vmem:[#allocation8_spill] sm:$0xff] }
 0x194   : > { %v9781_v33 = vpop.f32.mrf.mxu0  ;;  %2949 = vmatmul.mubr.bf16.gmra.mxu0 %v11557_v13  ;;  %v8845_v35 = vpop.f32.mrf.mxu1  ;;  %3728 = vmatmul.mubr.bf16.gmra.mxu1 %v11320_v37 }
 0x195   : > { %v11572_v60 = vadd.f32 %v9781_v33, %v11255_v19  ;;  %2956 = vmatprep.mubr.bf16.mxu0 %v11563_v38  ;;  %3735 = vmatprep.mubr.bf16.mxu1 %v11324_v44 }
 0x196   : > { %v1401_v34 = vpop.f32.mrf.mxu0  ;;  %v8846_v52 = vpop.f32.mrf.mxu1 }
 0x197   : > { %v11578_v9 = vadd.f32 %v1401_v34, %v13519_v45  ;;  %v11580_v32 = vadd.f32 %v8846_v52, %v8845_v35  ;;  %v11609_v52 = vld [vmem:[%s10658_s29 + $0x180] ss:$12 sps:$4 sm:$0xff]  }
 0x198   : > { %v9782_v56 = vpop.f32.mrf.mxu0  ;;  %v8848_v49 = vpop.f32.mrf.mxu1  ;;  %13523 = vst [vmem:[#allocation2_spill] sm:$0xff] %v11609_v52 }
 0x199   : > { %v11586_v19 = vadd.f32 %v9782_v56, %v13520_v7  ;;  %v13524_v56 = vld [vmem:[#allocation10_spill] sm:$0xff] }
 0x19a   : > { %v1404_v37 = vpop.f32.mrf.mxu0  ;;  %v8849_v44 = vpop.f32.mrf.mxu1 }
 0x19b   : > { %v11592_v31 = vadd.f32 %v1404_v37, %v13521_v43  ;;  %v11594_v50 = vadd.f32 %v8849_v44, %v8848_v49 }
 0x19c   : > { %v9785_v1 = vpop.f32.mrf.mxu0  ;;  %2957 = vmatmul.mubr.bf16.gmra.mxu0 %v11583_v36  ;;  %v8851_v18 = vpop.f32.mrf.mxu1  ;;  %3736 = vmatmul.mubr.bf16.gmra.mxu1 %v11356_v46  ;;  %v13526_v46 = vld [vmem:[#allocation9_spill] sm:$0xff] }
 0x19d   : > { %v11598_v3 = vadd.f32 %v9785_v1, %v11330_v57  ;;  %2964 = vmatprep.mubr.bf16.mxu0 %v11589_v21  ;;  %3743 = vmatprep.mubr.bf16.mxu1 %v11360_v0  ;;  %v13528_v1 = vld [vmem:[#allocation15_spill] sm:$0xff] }
 0x19e   : > { %v1417_v53 = vpop.f32.mrf.mxu0  ;;  %v8852_v35 = vpop.f32.mrf.mxu1 }
 0x19f   : > { %v11604_v33 = vadd.f32 %v1417_v53, %v13522_v55  ;;  %v11606_v34 = vadd.f32 %v8852_v35, %v8851_v18  ;;  %v13530_v55 = vld [vmem:[#allocation13_spill] sm:$0xff]  ;;  %v13531_v35 = vld [vmem:[#allocation3_spill] sm:$0xff] }
 0x1a0   : > { %v9786_v45 = vpop.f32.mrf.mxu0  ;;  %v8854_v7 = vpop.f32.mrf.mxu1 }
 0x1a1   : > { %v11612_v57 = vadd.f32 %v9786_v45, %v13524_v56  ;;  %v13532_v56 = vld [vmem:[#allocation14_spill] sm:$0xff] }
 0x1a2   : > { %v1420_v49 = vpop.f32.mrf.mxu0  ;;  %v8855_v43 = vpop.f32.mrf.mxu1 }
 0x1a3   : > { %13525 = vst [vmem:[#allocation5_spill] sm:$0xff] %v11612_v57  ;;  %v11615_v37 = vadd.f32 %v1420_v49, %v13526_v46  ;;  %v11617_v0 = vadd.f32 %v8855_v43, %v8854_v7  ;;  %v13533_v49 = vld [vmem:[#allocation11_spill] sm:$0xff] }
 0x1a4   : > { %v9789_v44 = vpop.f32.mrf.mxu0  ;;  %2965 = vmatmul.mubr.bf16.gmra.mxu0 %v11609_v52  ;;  %v8857_v53 = vpop.f32.mrf.mxu1  ;;  %3744 = vmatmul.mubr.bf16.gmra.mxu1 %v13530_v55  ;;  %v13535_v55 = vld [vmem:[#allocation12_spill] sm:$0xff] }
 0x1a5   : > { %13527 = vst [vmem:[#allocation7_spill] sm:$0xff] %v11615_v37  ;;  %v11621_v18 = vadd.f32 %v9789_v44, %v13528_v1  ;;  %2972 = vmatprep.mubr.bf16.mxu0 %v13531_v35  ;;  %3751 = vmatprep.mubr.bf16.mxu1 %v13532_v56  ;;  %v11635_v1 = vld [vmem:[%s10658_s29 + $0x1b4] ss:$12 sps:$4 sm:$0xff]  }
 0x1a6   : > { %v1433_v45 = vpop.f32.mrf.mxu0  ;;  %v8858_v37 = vpop.f32.mrf.mxu1  ;;  %13534 = vst [vmem:[#allocation8_spill] sm:$0xff] %v11635_v1 }
 0x1a7   : > { %13529 = vst [vmem:[#allocation6_spill] sm:$0xff] %v11621_v18  ;;  %v11627_v46 = vadd.f32 %v1433_v45, %v13533_v49  ;;  %v11629_v7 = vadd.f32 %v8858_v37, %v8857_v53  ;;  %v13536_v49 = vld [vmem:[#allocation4_spill] sm:$0xff] }
 0x1a8   : > { %v9790_v43 = vpop.f32.mrf.mxu0  ;;  %v8860_v44 = vpop.f32.mrf.mxu1 }
 0x1a9   : > { %v11632_v52 = vadd.f32 %v9790_v43, %v11412_v16 }
 0x1aa   : > { %v1436_v18 = vpop.f32.mrf.mxu0  ;;  %v8861_v57 = vpop.f32.mrf.mxu1 }
 0x1ab   : > { %v11638_v35 = vadd.f32 %v1436_v18, %v13535_v55  ;;  %v11640_v56 = vadd.f32 %v8861_v57, %v8860_v44  ;;  %v11655_v55 = vld [vmem:[%s10658_s29 + $0x1b0] ss:$12 sps:$4 sm:$0xff]  }
 0x1ac   : > { %v9793_v45 = vpop.f32.mrf.mxu0  ;;  %2973 = vmatmul.mubr.bf16.gmra.mxu0 %v13536_v49  ;;  %v8863_v16 = vpop.f32.mrf.mxu1  ;;  %3752 = vmatmul.mubr.bf16.gmra.mxu1 %v11419_v51  ;;  %v10303_v49 = vld [vmem:[%s10658_s29 + $0x68] ss:$12 sps:$4 sm:$0xff]  }
 0x1ad   : > { %v11644_v37 = vadd.f32 %v9793_v45, %v11453_v63  ;;  %2980 = vmatprep.mubr.bf16.mxu0 %v11635_v1  ;;  %3759 = vmatprep.mubr.bf16.mxu1 %v11423_v8 }
 0x1ae   : > { %v1449_v53 = vpop.f32.mrf.mxu0  ;;  %v8864_v57 = vpop.f32.mrf.mxu1 }
 0x1af   : > { %13537 = vst [vmem:[#allocation10_spill] sm:$0xff] %v11644_v37  ;;  %v11650_v18 = vadd.f32 %v1449_v53, %v11426_v59  ;;  %v11652_v43 = vadd.f32 %v8864_v57, %v8863_v16 }
 0x1b0   : > { %v9794_v44 = vpop.f32.mrf.mxu0  ;;  %v8866_v45 = vpop.f32.mrf.mxu1 }
 0x1b1   : > { %v11658_v63 = vadd.f32 %v9794_v44, %v11465_v26 }
 0x1b2   : > { %v1452_v51 = vpop.f32.mrf.mxu0  ;;  %v8867_v8 = vpop.f32.mrf.mxu1 }
 0x1b3   : > { %v11662_v37 = vadd.f32 %v1452_v51, %v11437_v15  ;;  %v11664_v1 = vadd.f32 %v8867_v8, %v8866_v45  ;;  %v10304_v51 = vld [vmem:[%s10658_s29 + $0x80] ss:$12 sps:$4 sm:$0xff]  }
 0x1b4   : > { %v9797_v59 = vpop.f32.mrf.mxu0  ;;  %2981 = vmatmul.mubr.bf16.gmra.mxu0 %v11655_v55  ;;  %v8869_v53 = vpop.f32.mrf.mxu1  ;;  %3760 = vmatmul.mubr.bf16.gmra.mxu1 %v11444_v48  ;;  %v10309_v48 = vld [vmem:[%s13493_s1 + $0x308] sm:$0xff]  }
 0x1b5   : > { %v11668_v16 = vadd.f32 %v9797_v59, %v11507_v11  ;;  %9875 = vmatprep.mubr.msk.bf16.mxu0 %vm661_vm0, %v10303_v49  ;;  %3767 = vmatprep.mubr.bf16.mxu1 %v11449_v23  ;;  %v10305_v59 = vld [vmem:[%s10658_s29 + $0x98] ss:$12 sps:$4 sm:$0xff]  }
 0x1b6   : > { %v1465_v26 = vpop.f32.mrf.mxu0  ;;  %v8870_v57 = vpop.f32.mrf.mxu1  ;;  %v10312_v49 = vld [vmem:[%s13493_s1 + $0x340] sm:$0xff]  }
 0x1b7   : > { %13538 = vst [vmem:[#allocation9_spill] sm:$0xff] %v11668_v16  ;;  %v11674_v15 = vadd.f32 %v1465_v26, %v11480_v41  ;;  %v11676_v44 = vadd.f32 %v8870_v57, %v8869_v53 }
 0x1b8   : > { %v9798_v45 = vpop.f32.mrf.mxu0  ;;  %v8872_v11 = vpop.f32.mrf.mxu1 }
 0x1b9   : > { %v11680_v8 = vadd.f32 %v9798_v45, %v11523_v27 }
 0x1ba   : > { %v1468_v16 = vpop.f32.mrf.mxu0  ;;  %v8873_v41 = vpop.f32.mrf.mxu1 }
 0x1bb   : > { %v11687_v23 = vadd.f32 %v1468_v16, %v11493_v20  ;;  %v11692_v53 = vadd.f32 %v8873_v41, %v8872_v11  ;;  %v10313_v16 = vld [vmem:[%s13493_s1 + $0x300] sm:$0xff]  }
 0x1bc   : > { %v9805_v26 = vpop.f32.mrf.mxu0  ;;  %9876 = vmatmul.mubr.msk.bf16.vlgmr.msra.gmra.mxu0 %vm661_vm0, %v10304_v51  ;;  %v8875_v27 = vpop.f32.mrf.mxu1  ;;  %3768 = vmatmul.mubr.bf16.gmra.mxu1 %v11472_v58  ;;  %v10316_v58 = vld [vmem:[%s13493_s1 + $0x338] sm:$0xff]  }
 0x1bd   : > { %v2181_v57 = vadd.f32 %v9805_v26, %v11554_v29  ;;  %9879 = vmatprep.mubr.msk.bf16.mxu0 %vm661_vm0, %v10305_v59  ;;  %3775 = vmatprep.mubr.bf16.mxu1 %v11477_v6  ;;  %v10306_v6 = vld [vmem:[%s10658_s29 + $0xb0] ss:$12 sps:$4 sm:$0xff]  }
 0x1be   : > { %v2172_v20 = vpop.f32.mrf.mxu0  ;;  %9208 = vmatpush3.bf16.msra.mxu0 %v10309_v48  ;;  %v8876_v51 = vpop.f32.mrf.mxu1 }
 0x1bf   : > { %v11703_v45 = vadd.f32 %v2181_v57, %v11487_v17  ;;  %v2173_v11 = vadd.f32 %v11527_v2, %v2172_v20  ;;  %9209 = vmatprep.subr.bf16.mxu0 %v10312_v49  ;;  %v11709_v29 = vadd.f32 %v8876_v51, %v8875_v27  ;;  %v10310_v17 = vld [vmem:[%s10658_s29 + $0xc8] ss:$12 sps:$4 sm:$0xff]   ;;  %v10317_v2 = vld [vmem:[%s13493_s1 + $0x2f8] sm:$0xff]  }
 0x1c0   : > { %v9806_v59 = vpop.f32.mrf.mxu0  ;;  %v8878_v41 = vpop.f32.mrf.mxu1 }
 0x1c1   : > { %v11713_v48 = vadd.f32 %v2173_v11, %v11495_v61  ;;  %v2184_v26 = vadd.f32 %v9806_v59, %v11568_v62  ;;  %v10320_v61 = vld [vmem:[%s13493_s1 + $0x330] sm:$0xff]  }
 0x1c2   : > { %v2175_v57 = vpop.f32.mrf.mxu0  ;;  %9210 = vmatpush3.bf16.msra.mxu0 %v10313_v16  ;;  %v8879_v27 = vpop.f32.mrf.mxu1 }
 0x1c3   : > { %v11721_v49 = vadd.f32 %v2184_v26, %v11502_v25  ;;  %v2176_v20 = vadd.f32 %v11542_v12, %v2175_v57  ;;  %9211 = vmatprep.subr.bf16.mxu0 %v10316_v58  ;;  %v11727_v51 = vadd.f32 %v8879_v27, %v8878_v41  ;;  %v10321_v58 = vld [vmem:[%s13493_s1 + $0x2f0] sm:$0xff]  }
 0x1c4   : > { %v9809_v62 = vpop.f32.mrf.mxu0  ;;  %9880 = vmatmul.mubr.msk.bf16.gmra.mxu0 %vm661_vm0, %v10306_v6  ;;  %v8881_v11 = vpop.f32.mrf.mxu1  ;;  %3776 = vmatmul.mubr.bf16.gmra.mxu1 %v11500_v14  ;;  %v10324_v14 = vld [vmem:[%s13493_s1 + $0x328] sm:$0xff]  }
 0x1c5   : > { %v11731_v16 = vadd.f32 %v2176_v20, %v11509_v22  ;;  %v2197_v25 = vadd.f32 %v9809_v62, %v11606_v34  ;;  %9883 = vmatprep.mubr.msk.bf16.mxu0 %vm661_vm0, %v10310_v17  ;;  %3783 = vmatprep.mubr.bf16.mxu1 %v11505_v30  ;;  %v10311_v30 = vld [vmem:[%s10658_s29 + $0xe0] ss:$12 sps:$4 sm:$0xff]  }
 0x1c6   : > { %v2188_v12 = vpop.f32.mrf.mxu0  ;;  %9212 = vmatpush3.bf16.msra.mxu0 %v10317_v2  ;;  %v8882_v59 = vpop.f32.mrf.mxu1 }
 0x1c7   : > { %v11741_v22 = vadd.f32 %v2197_v25, %v11517_v10  ;;  %v2189_v6 = vadd.f32 %v11580_v32, %v2188_v12  ;;  %9213 = vmatprep.subr.bf16.mxu0 %v10320_v61  ;;  %v11747_v34 = vadd.f32 %v8882_v59, %v8881_v11  ;;  %v10314_v10 = vld [vmem:[%s10658_s29 + $0xf8] ss:$12 sps:$4 sm:$0xff]   ;;  %v10325_v32 = vld [vmem:[%s13493_s1 + $0x2e8] sm:$0xff]  }
 0x1c8   : > { %v9810_v41 = vpop.f32.mrf.mxu0  ;;  %v8884_v17 = vpop.f32.mrf.mxu1  ;;  %v10332_v12 = vld [vmem:[%s13493_s1 + $0x2e0] sm:$0xff]  }
 0x1c9   : > { %v11751_v26 = vadd.f32 %v2189_v6, %v11525_v39  ;;  %v2200_v57 = vadd.f32 %v9810_v41, %v11617_v0  ;;  %v10331_v39 = vld [vmem:[%s13493_s1 + $0x320] sm:$0xff]  }
 0x1ca   : > { %v2191_v2 = vpop.f32.mrf.mxu0  ;;  %9214 = vmatpush3.bf16.msra.mxu0 %v10321_v58  ;;  %v8885_v20 = vpop.f32.mrf.mxu1 }
 0x1cb   : > { %v11759_v27 = vadd.f32 %v2200_v57, %v11535_v4  ;;  %v2192_v61 = vadd.f32 %v11594_v50, %v2191_v2  ;;  %9215 = vmatprep.subr.bf16.mxu0 %v10324_v14  ;;  %v11765_v62 = vadd.f32 %v8885_v20, %v8884_v17  ;;  %v10315_v14 = vld [vmem:[%s10658_s29 + $0x110] ss:$12 sps:$4 sm:$0xff]   ;;  %v10318_v17 = vld [vmem:[%s10658_s29 + $0x128] ss:$12 sps:$4 sm:$0xff]  }
 0x1cc   : > { %v9813_v0 = vpop.f32.mrf.mxu0  ;;  %9884 = vmatmul.mubr.msk.bf16.gmra.mxu0 %vm661_vm0, %v10311_v30  ;;  %v8887_v25 = vpop.f32.mrf.mxu1  ;;  %3784 = vmatmul.mubr.bf16.gmra.mxu1 %v11530_v5  ;;  %v10335_v5 = vld [vmem:[%s13493_s1 + $0x318] sm:$0xff]  }
 0x1cd   : > { %v11769_v11 = vadd.f32 %v2192_v61, %v11540_v40  ;;  %v2213_v4 = vadd.f32 %v9813_v0, %v11652_v43  ;;  %9887 = vmatprep.mubr.msk.bf16.mxu0 %vm661_vm0, %v10314_v10  ;;  %3791 = vmatprep.mubr.bf16.mxu1 %v11538_v47 }
 0x1ce   : > { %v2204_v50 = vpop.f32.mrf.mxu0  ;;  %9216 = vmatpush3.bf16.msra.mxu0 %v10325_v32  ;;  %v8888_v58 = vpop.f32.mrf.mxu1 }
 0x1cf   : > { %v11779_v40 = vadd.f32 %v2213_v4, %v11546_v54  ;;  %v2205_v59 = vadd.f32 %v11629_v7, %v2204_v50  ;;  %9217 = vmatprep.subr.bf16.mxu0 %v10331_v39  ;;  %v8889_v43 = vadd.f32 %v8888_v58, %v8887_v25  ;;  %v10336_v7 = vld [vmem:[%s13493_s1 + $0x2d8] sm:$0xff]   ;;  %v10338_v39 = vld [vmem:[%s13493_s1 + $0x2d0] sm:$0xff]  }
 0x1d0   : > { %v9814_v6 = vpop.f32.mrf.mxu0  ;;  %v8890_v41 = vpop.f32.mrf.mxu1 }
 0x1d1   : > { %v11787_v47 = vadd.f32 %v2205_v59, %v11552_v42  ;;  %v2216_v30 = vadd.f32 %v9814_v6, %v11664_v1  ;;  %v10337_v42 = vld [vmem:[%s13493_s1 + $0x310] sm:$0xff]  }
 0x1d2   : > { %v2207_v54 = vpop.f32.mrf.mxu0  ;;  %9218 = vmatpush3.bf16.msra.mxu0 %v10332_v12  ;;  %v8891_v10 = vpop.f32.mrf.mxu1 }
 0x1d3   : > { %v11795_v57 = vadd.f32 %v2216_v30, %v11560_v24  ;;  %v2208_v2 = vadd.f32 %v11640_v56, %v2207_v54  ;;  %9219 = vmatprep.subr.bf16.mxu0 %v10335_v5  ;;  %v8892_v32 = vadd.f32 %v8891_v10, %v8890_v41  ;;  %v10323_v10 = vld [vmem:[%s10658_s29 + $0x170] ss:$12 sps:$4 sm:$0xff]  }
 0x1d4   : > { %v9817_v1 = vpop.f32.mrf.mxu0  ;;  %9888 = vmatmul.mubr.msk.bf16.gmra.mxu0 %vm661_vm0, %v10315_v14  ;;  %v8893_v61 = vpop.f32.mrf.mxu1  ;;  %3792 = vmatmul.mubr.bf16.gmra.mxu1 %v11557_v13  ;;  %v11819_v13 = vld [vmem:[%s13493_s1 + $0x3e8] sm:$0xff]  }
 0x1d5   : > { %v11803_v20 = vadd.f32 %v2208_v2, %v11566_v28  ;;  %v2229_v24 = vadd.f32 %v9817_v1, %v11709_v29  ;;  %9891 = vmatprep.mubr.msk.bf16.mxu0 %vm661_vm0, %v10318_v17  ;;  %3799 = vmatprep.mubr.bf16.mxu1 %v11563_v38  ;;  %v10319_v38 = vld [vmem:[%s10658_s29 + $0x140] ss:$12 sps:$4 sm:$0xff]  }
 0x1d6   : > { %v2220_v56 = vpop.f32.mrf.mxu0  ;;  %9220 = vmatpush3.bf16.msra.mxu0 %v10336_v7  ;;  %v8894_v0 = vpop.f32.mrf.mxu1 }
 0x1d7   : > { %v11813_v28 = vadd.f32 %v2229_v24, %v11572_v60  ;;  %v2221_v25 = vadd.f32 %v11676_v44, %v2220_v56  ;;  %9221 = vmatprep.subr.bf16.mxu0 %v10337_v42  ;;  %v8895_v29 = vadd.f32 %v8894_v0, %v8893_v61  ;;  %v10322_v60 = vld [vmem:[%s10658_s29 + $0x158] ss:$12 sps:$4 sm:$0xff]   ;;  %v11849_v61 = vld [vmem:[%s10658_s29 + $0x19c] ss:$12 sps:$4 sm:$0xff]  }
 0x1d8   : > { %v9818_v4 = vpop.f32.mrf.mxu0  ;;  %v8896_v12 = vpop.f32.mrf.mxu1  ;;  %v13539_v24 = vld [vmem:[#allocation5_spill] sm:$0xff]  ;;  %v13540_v0 = vld [vmem:[#allocation7_spill] sm:$0xff] }
 0x1d9   : > { %v11823_v50 = vadd.f32 %v2221_v25, %v11578_v9  ;;  %v2232_v58 = vadd.f32 %v9818_v4, %v11727_v51  ;;  %v13541_v4 = vld [vmem:[#allocation2_spill] sm:$0xff] }
 0x1da   : > { %v2223_v59 = vpop.f32.mrf.mxu0  ;;  %9222 = vmatpush3.bf16.msra.mxu0 %v10338_v39  ;;  %v8897_v5 = vpop.f32.mrf.mxu1 }
 0x1db   : > { %v11828_v44 = vadd.f32 %v2232_v58, %v11586_v19  ;;  %v2224_v6 = vadd.f32 %v11692_v53, %v2223_v59  ;;  %9943 = vmatprep.subr.bf16.mxu0 %v11819_v13  ;;  %v8898_v14 = vadd.f32 %v8897_v5, %v8896_v12 }
 0x1dc   : > { %v9821_v41 = vpop.f32.mrf.mxu0  ;;  %9892 = vmatmul.mubr.msk.bf16.gmra.mxu0 %vm661_vm0, %v10319_v38  ;;  %v8899_v51 = vpop.f32.mrf.mxu1  ;;  %3800 = vmatmul.mubr.bf16.gmra.mxu1 %v11583_v36  ;;  %v10329_v36 = vld [vmem:[%s10658_s29 + $0x188] ss:$12 sps:$4 sm:$0xff]  }
 0x1dd   : > { %v11834_v9 = vadd.f32 %v2224_v6, %v11592_v31  ;;  %v2245_v30 = vadd.f32 %v9821_v41, %v8889_v43  ;;  %9895 = vmatprep.mubr.msk.bf16.mxu0 %vm661_vm0, %v10322_v60  ;;  %3807 = vmatprep.mubr.bf16.mxu1 %v11589_v21  ;;  %v10330_v6 = vld [vmem:[%s10658_s29 + $0x1a0] ss:$12 sps:$4 sm:$0xff]  }
 0x1de   : > { %v2236_v19 = vpop.f32.mrf.mxu0  ;;  %v8900_v17 = vpop.f32.mrf.mxu1 }
 0x1df   : > { %v11840_v53 = vadd.f32 %v2245_v30, %v11598_v3  ;;  %v2237_v54 = vadd.f32 %v11747_v34, %v2236_v19  ;;  %v8901_v7 = vadd.f32 %v8900_v17, %v8899_v51  ;;  %v11870_v19 = vld [vmem:[%s10658_s29 + $0x198] ss:$12 sps:$4 sm:$0xff]  }
 0x1e0   : > { %v9822_v31 = vpop.f32.mrf.mxu0  ;;  %v8902_v43 = vpop.f32.mrf.mxu1  ;;  %v10333_v17 = vld [vmem:[%s10658_s29 + $0x1b8] ss:$12 sps:$4 sm:$0xff]  }
 0x1e1   : > { %v11845_v2 = vadd.f32 %v2237_v54, %v11604_v33  ;;  %v2248_v42 = vadd.f32 %v9822_v31, %v8892_v32 }
 0x1e2   : > { %v2239_v1 = vpop.f32.mrf.mxu0  ;;  %v8903_v3 = vpop.f32.mrf.mxu1 }
 0x1e3   : > { %v11852_v21 = vadd.f32 %v2248_v42, %v13539_v24  ;;  %v2240_v56 = vadd.f32 %v11765_v62, %v2239_v1  ;;  %v8904_v34 = vadd.f32 %v8903_v3, %v8902_v43  ;;  %v13542_v62 = vld [vmem:[#allocation6_spill] sm:$0xff] }
 0x1e4   : > { %v9825_v39 = vpop.f32.mrf.mxu0  ;;  %9896 = vmatmul.mubr.msk.bf16.gmra.mxu0 %vm661_vm0, %v10323_v10  ;;  %v8905_v32 = vpop.f32.mrf.mxu1  ;;  %3808 = vmatmul.mubr.bf16.gmra.mxu1 %v13541_v4 }
 0x1e5   : > { %v11857_v33 = vadd.f32 %v2240_v56, %v13540_v0  ;;  %v2261_v25 = vadd.f32 %v9825_v39, %v8901_v7  ;;  %9899 = vmatprep.mubr.msk.bf16.mxu0 %vm661_vm0, %v10329_v36  ;;  %3815 = vmatprep.mubr.bf16.mxu1 %v11849_v61  ;;  %v10334_v56 = vld [vmem:[%s10658_s29 + $0x1d0] ss:$12 sps:$4 sm:$0xff]  }
 0x1e6   : > { %v2252_v38 = vpop.f32.mrf.mxu0  ;;  %v8906_v58 = vpop.f32.mrf.mxu1 }
 0x1e7   : > { %v11863_v12 = vadd.f32 %v2261_v25, %v13542_v62  ;;  %v2253_v60 = vadd.f32 %v8895_v29, %v2252_v38  ;;  %v8907_v59 = vadd.f32 %v8906_v58, %v8905_v32  ;;  %v11889_v25 = vld [vmem:[%s10658_s29 + $0x1cc] ss:$12 sps:$4 sm:$0xff]   ;;  %v13544_v62 = vld [vmem:[#allocation10_spill] sm:$0xff] }
 0x1e8   : > { %v9826_v5 = vpop.f32.mrf.mxu0  ;;  %v8908_v51 = vpop.f32.mrf.mxu1 }
 0x1e9   : > { %v11867_v41 = vadd.f32 %v2253_v60, %v11627_v46  ;;  %v2264_v30 = vadd.f32 %v9826_v5, %v8904_v34 }
 0x1ea   : > { %v2255_v54 = vpop.f32.mrf.mxu0  ;;  %v8909_v31 = vpop.f32.mrf.mxu1 }
 0x1eb   : > { %v11874_v7 = vadd.f32 %v2264_v30, %v11632_v52  ;;  %v2256_v10 = vadd.f32 %v8898_v14, %v2255_v54  ;;  %v8910_v43 = vadd.f32 %v8909_v31, %v8908_v51  ;;  %v13543_v52 = vld [vmem:[#allocation8_spill] sm:$0xff] }
 0x1ec   : > { %v9829_v29 = vpop.f32.mrf.mxu0  ;;  %9900 = vmatmul.mubr.msk.bf16.gmra.mxu0 %vm661_vm0, %v10330_v6  ;;  %v8911_v42 = vpop.f32.mrf.mxu1  ;;  %3816 = vmatmul.mubr.bf16.gmra.mxu1 %v11870_v19 }
 0x1ed   : > { %v11878_v46 = vadd.f32 %v2256_v10, %v11638_v35  ;;  %9903 = vmatprep.mubr.msk.bf16.mxu0 %vm661_vm0, %v10333_v17  ;;  %3823 = vmatprep.mubr.bf16.mxu1 %v13543_v52  ;;  %v10344_v35 = vld [vmem:[%s10658_s29 + $0x7c] ss:$12 sps:$4 sm:$0xff]   ;;  %v10342_v10 = vld [vmem:[%s10658_s29 + $0x78] ss:$12 sps:$4 sm:$0xff]  }
 0x1ee   : > { %v2268_v36 = vpop.f32.mrf.mxu0  ;;  %v8912_v1 = vpop.f32.mrf.mxu1 }
 0x1ef   : > { %v2269_v24 = vadd.f32 %v8907_v59, %v2268_v36  ;;  %v8913_v14 = vadd.f32 %v8912_v1, %v8911_v42  ;;  %v10406_v1 = vld [vmem:[%s13493_s1 + $0x3e0] sm:$0xff]  }
 0x1f0   : > { %v9830_v3 = vpop.f32.mrf.mxu0  ;;  %v8914_v39 = vpop.f32.mrf.mxu1 }
 0x1f1   : > { %v11885_v34 = vadd.f32 %v2269_v24, %v11650_v18  ;;  %v2277_v0 = vadd.f32 %v9829_v29, %v8913_v14  ;;  %v11905_v29 = vld [vmem:[%s10658_s29 + $0x1c8] ss:$12 sps:$4 sm:$0xff]  }
 0x1f2   : > { %v2271_v32 = vpop.f32.mrf.mxu0  ;;  %v8915_v4 = vpop.f32.mrf.mxu1 }
 0x1f3   : > { %v2272_v38 = vadd.f32 %v8910_v43, %v2271_v32  ;;  %v11892_v58 = vadd.f32 %v2277_v0, %v13544_v62  ;;  %v8916_v60 = vadd.f32 %v8915_v4, %v8914_v39 }
 0x1f4   : > { %v9833_v59 = vpop.f32.mrf.mxu0  ;;  %9904 = vmatmul.mubr.msk.bf16.gmra.mxu0 %vm661_vm0, %v10334_v56  ;;  %v8917_v5 = vpop.f32.mrf.mxu1  ;;  %3824 = vmatmul.mubr.bf16.gmra.mxu1 %v11655_v55  ;;  %v10348_v55 = vld [vmem:[%s10658_s29 + $0x80] ss:$12 sps:$4 sm:$0xff]  }
 0x1f5   : > { %v11896_v18 = vadd.f32 %v2272_v38, %v11662_v37  ;;  %4562 = vmatprep.mubr.bf16.mxu0 %v10344_v35  ;;  %v2280_v6 = vadd.f32 %v9830_v3, %v8916_v60  ;;  %3831 = vmatprep.mubr.bf16.mxu1 %v11889_v25  ;;  %v11908_v37 = vld [vmem:[%s10658_s29 + $0x94] ss:$12 sps:$4 sm:$0xff]   ;;  %v11925_v38 = vld [vmem:[%s10658_s29 + $0x90] ss:$12 sps:$4 sm:$0xff]   ;;  %v10349_v60 = vld [vmem:[%s10658_s29 + $0x98] ss:$12 sps:$4 sm:$0xff]  }
 0x1f6   : > { %v2284_v51 = vpop.f32.mrf.mxu0  ;;  %v8918_v30 = vpop.f32.mrf.mxu1 }
 0x1f7   : > { %v11901_v17 = vadd.f32 %v2280_v6, %v11658_v63  ;;  %v8919_v54 = vadd.f32 %v8918_v30, %v8917_v5  ;;  %v11929_v5 = vld [vmem:[%s10658_s29 + $0xac] ss:$12 sps:$4 sm:$0xff]   ;;  %v10356_v30 = vld [vmem:[%s10658_s29 + $0xb0] ss:$12 sps:$4 sm:$0xff]  }
 0x1f8   : > { %v9834_v31 = vpop.f32.mrf.mxu0  ;;  %v8920_v43 = vpop.f32.mrf.mxu1 }
 0x1f9   : > { %v2285_v42 = vadd.f32 %v8919_v54, %v2284_v51 }
 0x1fa   : > { %v2287_v36 = vpop.f32.mrf.mxu0  ;;  %v8921_v52 = vpop.f32.mrf.mxu1 }
 0x1fb   : > { %v11915_v24 = vadd.f32 %v2285_v42, %v11674_v15  ;;  %v8922_v63 = vadd.f32 %v8921_v52, %v8920_v43  ;;  %v13545_v43 = vld [vmem:[#allocation9_spill] sm:$0xff] }
 0x1fc   : > { %v8963_v14 = vpop.f32.mrf.mxu0  ;;  %4563 = vmatmul.mubr.bf16.vlgmr.msra.gmra.mxu0 %v10342_v10  ;;  %v8923_v3 = vpop.f32.mrf.mxu1  ;;  %3832 = vmatmul.mubr.bf16.gmra.mxu1 %v11905_v29 }
 0x1fd   : > { %4570 = vmatprep.mubr.bf16.mxu0 %v11908_v37  ;;  %v2288_v56 = vadd.f32 %v8922_v63, %v2287_v36  ;;  %9911 = vmatprep.mubr.msk.bf16.mxu1 %vm661_vm0, %v10348_v55  ;;  %v10359_v63 = vld [vmem:[%s13493_s1 + $0x390] sm:$0xff]  }
 0x1fe   : > { %v8964_v39 = vpop.f32.mrf.mxu0  ;;  %9944 = vmatpush3.bf16.msra.mxu0 %v11819_v13  ;;  %v8924_v15 = vpop.f32.mrf.mxu1  ;;  %v10351_v13 = vld [vmem:[%s13493_s1 + $0x398] sm:$0xff]  }
 0x1ff   : > { %v8965_v35 = vadd.f32 %v8964_v39, %v8963_v14  ;;  %9945 = vmatprep.subr.bf16.mxu0 %v10406_v1  ;;  %v11922_v0 = vadd.f32 %v2288_v56, %v11687_v23  ;;  %v8925_v32 = vadd.f32 %v8924_v15, %v8923_v3  ;;  %v10358_v23 = vld [vmem:[%s13493_s1 + $0x3d0] sm:$0xff]   ;;  %v10365_v56 = vld [vmem:[%s13493_s1 + $0x3c8] sm:$0xff]  }
 0x200   : > { %v8966_v4 = vpop.f32.mrf.mxu0  ;;  %v8926_v62 = vpop.f32.mrf.mxu1 }
 0x201   : > { %v2293_v6 = vadd.f32 %v9833_v59, %v8925_v32  ;;  %v11955_v32 = vld [vmem:[%s10658_s29 + $0xa8] ss:$12 sps:$4 sm:$0xff]  }
 0x202   : > { %v8967_v51 = vpop.f32.mrf.mxu0  ;;  %9946 = vmatpush3.bf16.msra.mxu0 %v10406_v1  ;;  %v8927_v54 = vpop.f32.mrf.mxu1 }
 0x203   : > { %v8968_v10 = vadd.f32 %v8967_v51, %v8966_v4  ;;  %v11939_v42 = vadd.f32 %v2293_v6, %v13545_v43  ;;  %v8928_v36 = vadd.f32 %v8927_v54, %v8926_v62  ;;  %v11959_v6 = vld [vmem:[%s10658_s29 + $0xc4] ss:$12 sps:$4 sm:$0xff]   ;;  %v10424_v51 = vld [vmem:[%s13493_s1 + $0x468] sm:$0xff]  }
 0x204   : > { %v8969_v55 = vpop.f32.mrf.mxu0  ;;  %4571 = vmatmul.mubr.bf16.gmra.mxu0 %v11925_v38  ;;  %v9841_v59 = vpop.f32.mrf.mxu1  ;;  %9912 = vmatmul.mubr.msk.bf16.vlgmr.msra.gmra.mxu1 %vm661_vm0, %v10349_v60  ;;  %v10357_v60 = vld [vmem:[%s10658_s29 + $0xc8] ss:$12 sps:$4 sm:$0xff]   ;;  %v10372_v43 = vld [vmem:[%s13493_s1 + $0x3c0] sm:$0xff]  }
 0x205   : > { %4578 = vmatprep.mubr.bf16.mxu0 %v11929_v5  ;;  %v2296_v52 = vadd.f32 %v9834_v31, %v8928_v36  ;;  %9338 = vmatpush3.bf16.msra.mxu1 %v10351_v13 }
 0x206   : > { %v8970_v1 = vpop.f32.mrf.mxu0  ;;  %9915 = vmatprep.mubr.msk.bf16.mxu1 %vm661_vm0, %v10356_v30  ;;  %v3023_v3 = vpop.f32.mrf.mxu1  ;;  %9339 = vmatprep.subr.bf16.mxu1 %v10358_v23 }
 0x207   : > { %v8971_v14 = vadd.f32 %v8970_v1, %v8969_v55  ;;  %v11952_v39 = vadd.f32 %v2296_v52, %v11680_v8  ;;  %v3024_v31 = vadd.f32 %v8965_v35, %v3023_v3  ;;  %v10363_v8 = vld [vmem:[%s10658_s29 + $0xe0] ss:$12 sps:$4 sm:$0xff]   ;;  %9467 = vmatprep.subr.bf16.mxu0 %v10424_v51  ;;  %v10379_v3 = vld [vmem:[%s13493_s1 + $0x3b8] sm:$0xff]  }
 0x208   : > { %v8972_v15 = vpop.f32.mrf.mxu0  ;;  %v9842_v62 = vpop.f32.mrf.mxu1  ;;  %v10366_v35 = vld [vmem:[%s13493_s1 + $0x388] sm:$0xff]  }
 0x209   : > { %13546 = vst [vmem:[#allocation15_spill] sm:$0xff] %v11952_v39  ;;  %v3032_v4 = vadd.f32 %v9841_v59, %v8971_v14  ;;  %v11965_v13 = vadd.f32 %v3024_v31, %v11713_v48  ;;  %9340 = vmatpush3.bf16.msra.mxu1 %v10359_v63  ;;  %v11994_v31 = vld [vmem:[%s10658_s29 + $0xc0] ss:$12 sps:$4 sm:$0xff]  }
 0x20a   : > { %v8973_v30 = vpop.f32.mrf.mxu0  ;;  %v3026_v23 = vpop.f32.mrf.mxu1  ;;  %9341 = vmatprep.subr.bf16.mxu1 %v10365_v56 }
 0x20b   : > { %13547 = vst [vmem:[#allocation13_spill] sm:$0xff] %v11965_v13  ;;  %v8974_v54 = vadd.f32 %v8973_v30, %v8972_v15  ;;  %v11975_v36 = vadd.f32 %v3032_v4, %v11703_v45  ;;  %v3027_v48 = vadd.f32 %v8968_v10, %v3026_v23  ;;  %v10373_v45 = vld [vmem:[%s13493_s1 + $0x380] sm:$0xff]   ;;  %v10370_v30 = vld [vmem:[%s10658_s29 + $0x110] ss:$12 sps:$4 sm:$0xff]  }
 0x20c   : > { %v8975_v55 = vpop.f32.mrf.mxu0  ;;  %4579 = vmatmul.mubr.bf16.gmra.mxu0 %v11955_v32  ;;  %v9845_v52 = vpop.f32.mrf.mxu1  ;;  %9916 = vmatmul.mubr.msk.bf16.gmra.mxu1 %vm661_vm0, %v10357_v60  ;;  %v11998_v60 = vld [vmem:[%s10658_s29 + $0xdc] ss:$12 sps:$4 sm:$0xff]   ;;  %v10386_v23 = vld [vmem:[%s13493_s1 + $0x3b0] sm:$0xff]  }
 0x20d   : > { %13548 = vst [vmem:[#allocation3_spill] sm:$0xff] %v11975_v36  ;;  %v3035_v59 = vadd.f32 %v9842_v62, %v8974_v54  ;;  %4586 = vmatprep.mubr.bf16.mxu0 %v11959_v6  ;;  %v11981_v1 = vadd.f32 %v3027_v48, %v11731_v16  ;;  %9919 = vmatprep.mubr.msk.bf16.mxu1 %vm661_vm0, %v10363_v8  ;;  %v10364_v62 = vld [vmem:[%s10658_s29 + $0xf8] ss:$12 sps:$4 sm:$0xff]   ;;  %v10398_v13 = vld [vmem:[%s10658_s29 + $0x1d0] ss:$12 sps:$4 sm:$0xff]  }
 0x20e   : > { %v8976_v63 = vpop.f32.mrf.mxu0  ;;  %9342 = vmatpush3.bf16.msra.mxu1 %v10366_v35  ;;  %v3039_v14 = vpop.f32.mrf.mxu1  ;;  %v10380_v8 = vld [vmem:[%s13493_s1 + $0x378] sm:$0xff]  }
 0x20f   : > { %13549 = vst [vmem:[#allocation14_spill] sm:$0xff] %v11981_v1  ;;  %v8977_v10 = vadd.f32 %v8976_v63, %v8975_v55  ;;  %9343 = vmatprep.subr.bf16.mxu1 %v10372_v43  ;;  %v11991_v56 = vadd.f32 %v3035_v59, %v11721_v49  ;;  %v10387_v59 = vld [vmem:[%s13493_s1 + $0x370] sm:$0xff]   ;;  %v10391_v1 = vld [vmem:[%s10658_s29 + $0x1a0] ss:$12 sps:$4 sm:$0xff]  }
 0x210   : > { %v8978_v16 = vpop.f32.mrf.mxu0  ;;  %v9846_v4 = vpop.f32.mrf.mxu1 }
 0x211   : > { %13550 = vst [vmem:[#allocation11_spill] sm:$0xff] %v11991_v56  ;;  %v3040_v15 = vadd.f32 %v8977_v10, %v3039_v14  ;;  %v10393_v14 = vld [vmem:[%s13493_s1 + $0x3a8] sm:$0xff]  }
 0x212   : > { %v8979_v51 = vpop.f32.mrf.mxu0  ;;  %9344 = vmatpush3.bf16.msra.mxu1 %v10373_v45  ;;  %v3042_v54 = vpop.f32.mrf.mxu1  ;;  %v12121_v56 = vld [vmem:[%s10658_s29 + $0x13c] ss:$12 sps:$4 sm:$0xff]  }
 0x213   : > { %v12005_v35 = vadd.f32 %v3040_v15, %v11751_v26  ;;  %v8980_v49 = vadd.f32 %v8979_v51, %v8978_v16  ;;  %9345 = vmatprep.subr.bf16.mxu1 %v10379_v3  ;;  %v12026_v16 = vld [vmem:[%s10658_s29 + $0xd8] ss:$12 sps:$4 sm:$0xff]   ;;  %v10371_v51 = vld [vmem:[%s10658_s29 + $0x128] ss:$12 sps:$4 sm:$0xff]  }
 0x214   : > { %v8981_v43 = vpop.f32.mrf.mxu0  ;;  %4587 = vmatmul.mubr.bf16.gmra.mxu0 %v11994_v31  ;;  %v12011_v55 = vpop.f32.mrf.mxu1  ;;  %9920 = vmatmul.mubr.msk.bf16.gmra.mxu1 %vm661_vm0, %v10364_v62 }
 0x215   : > { %13551 = vst [vmem:[#allocation12_spill] sm:$0xff] %v12005_v35  ;;  %v3043_v48 = vadd.f32 %v8980_v49, %v3042_v54  ;;  %4594 = vmatprep.mubr.bf16.mxu0 %v11998_v60  ;;  %9923 = vmatprep.mubr.msk.bf16.mxu1 %vm661_vm0, %v10370_v30  ;;  %v12032_v30 = vld [vmem:[%s10658_s29 + $0xf4] ss:$12 sps:$4 sm:$0xff]  }
 0x216   : > { %v8982_v26 = vpop.f32.mrf.mxu0  ;;  %9346 = vmatpush3.bf16.msra.mxu1 %v10380_v8  ;;  %v3055_v10 = vpop.f32.mrf.mxu1  ;;  %v10377_v49 = vld [vmem:[%s10658_s29 + $0x140] ss:$12 sps:$4 sm:$0xff]  }
 0x217   : > { %v12020_v63 = vadd.f32 %v3043_v48, %v11769_v11  ;;  %v8983_v45 = vadd.f32 %v8982_v26, %v8981_v43  ;;  %9347 = vmatprep.subr.bf16.mxu1 %v10386_v23  ;;  %v10394_v11 = vld [vmem:[%s13493_s1 + $0x368] sm:$0xff]   ;;  %v10400_v43 = vld [vmem:[%s13493_s1 + $0x3a0] sm:$0xff]  }
 0x218   : > { %v8984_v3 = vpop.f32.mrf.mxu0  ;;  %v12028_v62 = vpop.f32.mrf.mxu1 }
 0x219   : > { %13552 = vst [vmem:[#allocation4_spill] sm:$0xff] %v12020_v63  ;;  %v3048_v15 = vadd.f32 %v9845_v52, %v8983_v45  ;;  %v12068_v63 = vld [vmem:[%s10658_s29 + $0x10c] ss:$12 sps:$4 sm:$0xff]  }
 0x21a   : > { %v8985_v8 = vpop.f32.mrf.mxu0  ;;  %9348 = vmatpush3.bf16.msra.mxu1 %v10387_v59  ;;  %v3058_v23 = vpop.f32.mrf.mxu1 }
 0x21b   : > { %v8986_v54 = vadd.f32 %v8985_v8, %v8984_v3  ;;  %9349 = vmatprep.subr.bf16.mxu1 %v10393_v14  ;;  %v12042_v52 = vadd.f32 %v3048_v15, %v11741_v22  ;;  %v10401_v22 = vld [vmem:[%s13493_s1 + $0x360] sm:$0xff]   ;;  %v12062_v8 = vld [vmem:[%s10658_s29 + $0xf0] ss:$12 sps:$4 sm:$0xff]  }
 0x21c   : > { %v8987_v48 = vpop.f32.mrf.mxu0  ;;  %4595 = vmatmul.mubr.bf16.gmra.mxu0 %v12026_v16  ;;  %v12045_v59 = vpop.f32.mrf.mxu1  ;;  %9924 = vmatmul.mubr.msk.bf16.gmra.mxu1 %vm661_vm0, %v10371_v51 }
 0x21d   : > { %13553 = vst [vmem:[#allocation5_spill] sm:$0xff] %v12042_v52  ;;  %v3051_v26 = vadd.f32 %v9846_v4, %v8986_v54  ;;  %4602 = vmatprep.mubr.bf16.mxu0 %v12032_v30  ;;  %9927 = vmatprep.mubr.msk.bf16.mxu1 %vm661_vm0, %v10377_v49  ;;  %v12056_v4 = vld [vmem:[%s13493_s1 + $0x478] sm:$0xff]  }
 0x21e   : > { %v8988_v45 = vpop.f32.mrf.mxu0  ;;  %9350 = vmatpush3.bf16.msra.mxu1 %v10394_v11  ;;  %v3071_v3 = vpop.f32.mrf.mxu1  ;;  %v10378_v54 = vld [vmem:[%s10658_s29 + $0x158] ss:$12 sps:$4 sm:$0xff]  }
 0x21f   : > { %v8989_v14 = vadd.f32 %v8988_v45, %v8987_v48  ;;  %9351 = vmatprep.subr.bf16.mxu1 %v10400_v43  ;;  %v12059_v15 = vadd.f32 %v3051_v26, %v11759_v27  ;;  %v10384_v45 = vld [vmem:[%s10658_s29 + $0x170] ss:$12 sps:$4 sm:$0xff]  }
 0x220   : > { %v8990_v51 = vpop.f32.mrf.mxu0  ;;  %v12064_v11 = vpop.f32.mrf.mxu1 }
 0x221   : > { %13554 = vst [vmem:[#allocation7_spill] sm:$0xff] %v12059_v15  ;;  %v3056_v49 = vadd.f32 %v8989_v14, %v3055_v10  ;;  %v10385_v15 = vld [vmem:[%s10658_s29 + $0x188] ss:$12 sps:$4 sm:$0xff]  }
 0x222   : > { %v8991_v48 = vpop.f32.mrf.mxu0  ;;  %9352 = vmatpush3.bf16.msra.mxu1 %v10401_v22  ;;  %v3074_v35 = vpop.f32.mrf.mxu1 }
 0x223   : > { %v8992_v43 = vadd.f32 %v8991_v48, %v8990_v51  ;;  %9979 = vmatprep.subr.bf16.mxu1 %v12056_v4  ;;  %v12073_v27 = vadd.f32 %v3056_v49, %v11787_v47 }
 0x224   : > { %v8993_v26 = vpop.f32.mrf.mxu0  ;;  %4603 = vmatmul.mubr.bf16.gmra.mxu0 %v12062_v8  ;;  %v12076_v14 = vpop.f32.mrf.mxu1  ;;  %9928 = vmatmul.mubr.msk.bf16.gmra.mxu1 %vm661_vm0, %v10378_v54  ;;  %v12094_v54 = vld [vmem:[%s10658_s29 + $0x124] ss:$12 sps:$4 sm:$0xff]  }
 0x225   : > { %13555 = vst [vmem:[#allocation2_spill] sm:$0xff] %v12073_v27  ;;  %v3059_v10 = vadd.f32 %v8992_v43, %v3058_v23  ;;  %4610 = vmatprep.mubr.bf16.mxu0 %v12068_v63  ;;  %9931 = vmatprep.mubr.msk.bf16.mxu1 %vm661_vm0, %v10384_v45  ;;  %v12087_v27 = vld [vmem:[%s10658_s29 + $0x108] ss:$12 sps:$4 sm:$0xff]  }
 0x226   : > { %v8994_v22 = vpop.f32.mrf.mxu0  ;;  %v12081_v48 = vpop.f32.mrf.mxu1 }
 0x227   : > { %v8995_v51 = vadd.f32 %v8994_v22, %v8993_v26  ;;  %v12084_v47 = vadd.f32 %v3059_v10, %v11803_v20 }
 0x228   : > { %v8996_v49 = vpop.f32.mrf.mxu0  ;;  %v12090_v43 = vpop.f32.mrf.mxu1 }
 0x229   : > { %13556 = vst [vmem:[#allocation6_spill] sm:$0xff] %v12084_v47  ;;  %v3064_v23 = vadd.f32 %v12011_v55, %v8995_v51  ;;  %v12115_v47 = vld [vmem:[%s10658_s29 + $0x120] ss:$12 sps:$4 sm:$0xff]  }
 0x22a   : > { %v8997_v52 = vpop.f32.mrf.mxu0  ;;  %v12097_v26 = vpop.f32.mrf.mxu1 }
 0x22b   : > { %v8998_v45 = vadd.f32 %v8997_v52, %v8996_v49  ;;  %v12100_v22 = vadd.f32 %v3064_v23, %v11779_v40 }
 0x22c   : > { %v8999_v20 = vpop.f32.mrf.mxu0  ;;  %4611 = vmatmul.mubr.bf16.gmra.mxu0 %v12087_v27  ;;  %v12104_v10 = vpop.f32.mrf.mxu1  ;;  %9932 = vmatmul.mubr.msk.bf16.gmra.mxu1 %vm661_vm0, %v10385_v15 }
 0x22d   : > { %13557 = vst [vmem:[#allocation8_spill] sm:$0xff] %v12100_v22  ;;  %v3067_v55 = vadd.f32 %v12028_v62, %v8998_v45  ;;  %4618 = vmatprep.mubr.bf16.mxu0 %v12094_v54  ;;  %9935 = vmatprep.mubr.msk.bf16.mxu1 %vm661_vm0, %v10391_v1  ;;  %v10392_v22 = vld [vmem:[%s10658_s29 + $0x1b8] ss:$12 sps:$4 sm:$0xff]  }
 0x22e   : > { %v9000_v52 = vpop.f32.mrf.mxu0  ;;  %v12109_v40 = vpop.f32.mrf.mxu1 }
 0x22f   : > { %v9001_v51 = vadd.f32 %v9000_v52, %v8999_v20  ;;  %v12112_v49 = vadd.f32 %v3067_v55, %v11795_v57 }
 0x230   : > { %v9002_v23 = vpop.f32.mrf.mxu0  ;;  %v12117_v45 = vpop.f32.mrf.mxu1 }
 0x231   : > { %13558 = vst [vmem:[#allocation10_spill] sm:$0xff] %v12112_v49  ;;  %v3072_v62 = vadd.f32 %v9001_v51, %v3071_v3 }
 0x232   : > { %v9003_v15 = vpop.f32.mrf.mxu0  ;;  %v12124_v1 = vpop.f32.mrf.mxu1 }
 0x233   : > { %v9004_v36 = vadd.f32 %v9003_v15, %v9002_v23  ;;  %v12127_v20 = vadd.f32 %v3072_v62, %v11823_v50  ;;  %v12141_v15 = vld [vmem:[%s10658_s29 + $0x138] ss:$12 sps:$4 sm:$0xff]  }
 0x234   : > { %v9005_v57 = vpop.f32.mrf.mxu0  ;;  %4619 = vmatmul.mubr.bf16.gmra.mxu0 %v12115_v47  ;;  %v12130_v55 = vpop.f32.mrf.mxu1  ;;  %9936 = vmatmul.mubr.msk.bf16.gmra.mxu1 %vm661_vm0, %v10392_v22  ;;  %v12148_v22 = vld [vmem:[%s10658_s29 + $0x154] ss:$12 sps:$4 sm:$0xff]  }
 0x235   : > { %13559 = vst [vmem:[#allocation9_spill] sm:$0xff] %v12127_v20  ;;  %v3075_v3 = vadd.f32 %v9004_v36, %v3074_v35  ;;  %4626 = vmatprep.mubr.bf16.mxu0 %v12121_v56  ;;  %9939 = vmatprep.mubr.msk.bf16.mxu1 %vm661_vm0, %v10398_v13  ;;  %v10399_v20 = vld [vmem:[%s10658_s29 + $0x1e8] ss:$12 sps:$4 sm:$0xff]   ;;  %13561 = vst [vmem:[#allocation17_spill] sm:$0xff] %v12148_v22 }
 0x236   : > { %v9006_v52 = vpop.f32.mrf.mxu0  ;;  %v12135_v23 = vpop.f32.mrf.mxu1 }
 0x237   : > { %v9007_v51 = vadd.f32 %v9006_v52, %v9005_v57  ;;  %v12138_v50 = vadd.f32 %v3075_v3, %v11834_v9 }
 0x238   : > { %v9008_v62 = vpop.f32.mrf.mxu0  ;;  %v12144_v35 = vpop.f32.mrf.mxu1 }
 0x239   : > { %13560 = vst [vmem:[#allocation16_spill] sm:$0xff] %v12138_v50  ;;  %v3080_v36 = vadd.f32 %v12045_v59, %v9007_v51  ;;  %v12174_v50 = vld [vmem:[%s10658_s29 + $0x16c] ss:$12 sps:$4 sm:$0xff]  }
 0x23a   : > { %v9009_v49 = vpop.f32.mrf.mxu0  ;;  %v12150_v13 = vpop.f32.mrf.mxu1 }
 0x23b   : > { %v9010_v39 = vadd.f32 %v9009_v49, %v9008_v62  ;;  %v12153_v57 = vadd.f32 %v3080_v36, %v11813_v28  ;;  %v12168_v36 = vld [vmem:[%s10658_s29 + $0x150] ss:$12 sps:$4 sm:$0xff]  }
 0x23c   : > { %v9011_v9 = vpop.f32.mrf.mxu0  ;;  %4627 = vmatmul.mubr.bf16.gmra.mxu0 %v12141_v15  ;;  %v12157_v59 = vpop.f32.mrf.mxu1  ;;  %9940 = vmatmul.mubr.msk.bf16.gmra.mxu1 %vm661_vm0, %v10399_v20 }
 0x23d   : > { %13562 = vst [vmem:[#allocation18_spill] sm:$0xff] %v12153_v57  ;;  %v3083_v3 = vadd.f32 %v12064_v11, %v9010_v39  ;;  %4634 = vmatprep.mubr.bf16.mxu0 %v12148_v22  ;;  %5413 = vmatprep.mubr.bf16.mxu1 %v11908_v37  ;;  %v10423_v37 = vld [vmem:[%s13493_s1 + $0x470] sm:$0xff]  }
 0x23e   : > { %v9012_v52 = vpop.f32.mrf.mxu0  ;;  %v12162_v51 = vpop.f32.mrf.mxu1 }
 0x23f   : > { %v9013_v49 = vadd.f32 %v9012_v52, %v9011_v9  ;;  %v12165_v28 = vadd.f32 %v3083_v3, %v11828_v44 }
 0x240   : > { %v9014_v62 = vpop.f32.mrf.mxu0  ;;  %v12171_v11 = vpop.f32.mrf.mxu1 }
 0x241   : > { %v3088_v39 = vadd.f32 %v9013_v49, %v12081_v48 }
 0x242   : > { %v9015_v20 = vpop.f32.mrf.mxu0  ;;  %v12176_v22 = vpop.f32.mrf.mxu1 }
 0x243   : > { %v9016_v57 = vadd.f32 %v9015_v20, %v9014_v62  ;;  %v12182_v44 = vadd.f32 %v3088_v39, %v11845_v2 }
 0x244   : > { %v9017_v9 = vpop.f32.mrf.mxu0  ;;  %4635 = vmatmul.mubr.bf16.gmra.mxu0 %v12168_v36  ;;  %v9093_v3 = vpop.f32.mrf.mxu1  ;;  %5414 = vmatmul.mubr.bf16.vlgmr.msra.gmra.mxu1 %v11925_v38  ;;  %v10469_v38 = vld [vmem:[%s13493_s1 + $0x4f8] sm:$0xff]  }
 0x245   : > { %13563 = vst [vmem:[#allocation19_spill] sm:$0xff] %v12182_v44  ;;  %v3091_v48 = vadd.f32 %v9016_v57, %v12097_v26  ;;  %4642 = vmatprep.mubr.bf16.mxu0 %v12174_v50  ;;  %9980 = vmatpush3.bf16.msra.mxu1 %v12056_v4  ;;  %v12196_v57 = vld [vmem:[%s10658_s29 + $0x168] ss:$12 sps:$4 sm:$0xff]   ;;  %v12203_v44 = vld [vmem:[%s10658_s29 + $0x184] ss:$12 sps:$4 sm:$0xff]  }
 0x246   : > { %v9018_v52 = vpop.f32.mrf.mxu0  ;;  %5421 = vmatprep.mubr.bf16.mxu1 %v11929_v5  ;;  %v9094_v2 = vpop.f32.mrf.mxu1  ;;  %9981 = vmatprep.subr.bf16.mxu1 %v10423_v37 }
 0x247   : > { %v9019_v49 = vadd.f32 %v9018_v52, %v9017_v9  ;;  %v12191_v62 = vadd.f32 %v3091_v48, %v11857_v33  ;;  %v12193_v39 = vadd.f32 %v9094_v2, %v9093_v3 }
 0x248   : > { %v9020_v26 = vpop.f32.mrf.mxu0  ;;  %v9096_v20 = vpop.f32.mrf.mxu1 }
 0x249   : > { %13564 = vst [vmem:[#allocation20_spill] sm:$0xff] %v12191_v62  ;;  %v3096_v4 = vadd.f32 %v12076_v14, %v9019_v49  ;;  %9982 = vmatpush3.bf16.msra.mxu1 %v10423_v37 }
 0x24a   : > { %v9021_v5 = vpop.f32.mrf.mxu0  ;;  %v9097_v52 = vpop.f32.mrf.mxu1  ;;  %9597 = vmatprep.subr.bf16.mxu1 %v10469_v38 }
 0x24b   : > { %v9022_v9 = vadd.f32 %v9021_v5, %v9020_v26  ;;  %v12206_v33 = vadd.f32 %v3096_v4, %v11840_v53  ;;  %v12208_v48 = vadd.f32 %v9097_v52, %v9096_v20  ;;  %v12221_v20 = vld [vmem:[%s10658_s29 + $0x180] ss:$12 sps:$4 sm:$0xff]  }
 0x24c   : > { %v9023_v3 = vpop.f32.mrf.mxu0  ;;  %4643 = vmatmul.mubr.bf16.gmra.mxu0 %v12196_v57  ;;  %v9099_v14 = vpop.f32.mrf.mxu1  ;;  %5422 = vmatmul.mubr.bf16.gmra.mxu1 %v11955_v32 }
 0x24d   : > { %v3099_v2 = vadd.f32 %v12090_v43, %v9022_v9  ;;  %4650 = vmatprep.mubr.bf16.mxu0 %v12203_v44  ;;  %5429 = vmatprep.mubr.bf16.mxu1 %v11959_v6 }
 0x24e   : > { %v9024_v37 = vpop.f32.mrf.mxu0  ;;  %v9100_v53 = vpop.f32.mrf.mxu1 }
 0x24f   : > { %v9025_v49 = vadd.f32 %v9024_v37, %v9023_v3  ;;  %v12216_v26 = vadd.f32 %v3099_v2, %v11852_v21  ;;  %v12218_v38 = vadd.f32 %v9100_v53, %v9099_v14 }
 0x250   : > { %v9026_v4 = vpop.f32.mrf.mxu0  ;;  %v9102_v5 = vpop.f32.mrf.mxu1 }
 0x251   : > { %v3104_v43 = vadd.f32 %v9025_v49, %v12109_v40 }
 0x252   : > { %v9027_v9 = vpop.f32.mrf.mxu0  ;;  %v9103_v52 = vpop.f32.mrf.mxu1 }
 0x253   : > { %v9028_v32 = vadd.f32 %v9027_v9, %v9026_v4  ;;  %v12225_v62 = vadd.f32 %v3104_v43, %v11867_v41  ;;  %v12227_v6 = vadd.f32 %v9103_v52, %v9102_v5 }
 0x254   : > { %v9029_v3 = vpop.f32.mrf.mxu0  ;;  %4651 = vmatmul.mubr.bf16.gmra.mxu0 %v12221_v20  ;;  %v9105_v2 = vpop.f32.mrf.mxu1  ;;  %5430 = vmatmul.mubr.bf16.gmra.mxu1 %v11994_v31 }
 0x255   : > { %v3107_v21 = vadd.f32 %v9028_v32, %v12124_v1  ;;  %4658 = vmatprep.mubr.bf16.mxu0 %v11849_v61  ;;  %5437 = vmatprep.mubr.bf16.mxu1 %v11998_v60  ;;  %v12241_v1 = vld [vmem:[%s10658_s29 + $0x1b4] ss:$12 sps:$4 sm:$0xff]  }
 0x256   : > { %v9030_v40 = vpop.f32.mrf.mxu0  ;;  %v9106_v37 = vpop.f32.mrf.mxu1 }
 0x257   : > { %v9031_v14 = vadd.f32 %v9030_v40, %v9029_v3  ;;  %v12235_v41 = vadd.f32 %v3107_v21, %v11878_v46  ;;  %v12237_v49 = vadd.f32 %v9106_v37, %v9105_v2 }
 0x258   : > { %v9032_v53 = vpop.f32.mrf.mxu0  ;;  %v9108_v43 = vpop.f32.mrf.mxu1 }
 0x259   : > { %v3112_v4 = vadd.f32 %v12104_v10, %v9031_v14  ;;  %v12259_v14 = vld [vmem:[%s10658_s29 + $0x1b0] ss:$12 sps:$4 sm:$0xff]  }
 0x25a   : > { %v9033_v5 = vpop.f32.mrf.mxu0  ;;  %v9109_v9 = vpop.f32.mrf.mxu1 }
 0x25b   : > { %v9034_v31 = vadd.f32 %v9033_v5, %v9032_v53  ;;  %v12244_v61 = vadd.f32 %v3112_v4, %v11863_v12  ;;  %v12246_v60 = vadd.f32 %v9109_v9, %v9108_v43 }
 0x25c   : > { %v9035_v32 = vpop.f32.mrf.mxu0  ;;  %4659 = vmatmul.mubr.bf16.gmra.mxu0 %v11870_v19  ;;  %v9111_v52 = vpop.f32.mrf.mxu1  ;;  %5438 = vmatmul.mubr.bf16.gmra.mxu1 %v12026_v16 }
 0x25d   : > { %v3115_v46 = vadd.f32 %v12117_v45, %v9034_v31  ;;  %4666 = vmatprep.mubr.bf16.mxu0 %v12241_v1  ;;  %5445 = vmatprep.mubr.bf16.mxu1 %v12032_v30 }
 0x25e   : > { %v9036_v10 = vpop.f32.mrf.mxu0  ;;  %v9112_v21 = vpop.f32.mrf.mxu1 }
 0x25f   : > { %v9037_v3 = vadd.f32 %v9036_v10, %v9035_v32  ;;  %v12254_v12 = vadd.f32 %v3115_v46, %v11874_v7  ;;  %v12256_v2 = vadd.f32 %v9112_v21, %v9111_v52 }
 0x260   : > { %v9038_v40 = vpop.f32.mrf.mxu0  ;;  %v9114_v45 = vpop.f32.mrf.mxu1 }
 0x261   : > { %v3120_v19 = vadd.f32 %v9037_v3, %v12135_v23 }
 0x262   : > { %v9039_v37 = vpop.f32.mrf.mxu0  ;;  %v9115_v53 = vpop.f32.mrf.mxu1 }
 0x263   : > { %v9040_v16 = vadd.f32 %v9039_v37, %v9038_v40  ;;  %v12263_v4 = vadd.f32 %v3120_v19, %v11885_v34  ;;  %v12265_v30 = vadd.f32 %v9115_v53, %v9114_v45 }
 0x264   : > { %v9041_v43 = vpop.f32.mrf.mxu0  ;;  %4667 = vmatmul.mubr.bf16.gmra.mxu0 %v12259_v14  ;;  %v9117_v5 = vpop.f32.mrf.mxu1  ;;  %5446 = vmatmul.mubr.bf16.gmra.mxu1 %v12062_v8 }
 0x265   : > { %v3123_v7 = vadd.f32 %v9040_v16, %v12150_v13  ;;  %4674 = vmatprep.mubr.bf16.mxu0 %v11889_v25  ;;  %5453 = vmatprep.mubr.bf16.mxu1 %v12068_v63  ;;  %v12279_v13 = vld [vmem:[%s10658_s29 + $0x1e4] ss:$12 sps:$4 sm:$0xff]  }
 0x266   : > { %v9042_v23 = vpop.f32.mrf.mxu0  ;;  %v9118_v9 = vpop.f32.mrf.mxu1 }
 0x267   : > { %v9043_v31 = vadd.f32 %v9042_v23, %v9041_v43  ;;  %v12273_v34 = vadd.f32 %v3123_v7, %v11896_v18  ;;  %v12275_v32 = vadd.f32 %v9118_v9, %v9117_v5  ;;  %v12297_v43 = vld [vmem:[%s10658_s29 + $0x1e0] ss:$12 sps:$4 sm:$0xff]   ;;  %v10419_v7 = vld [vmem:[%s10658_s29 + $0x98] ss:$12 sps:$4 sm:$0xff]  }
 0x268   : > { %v9044_v46 = vpop.f32.mrf.mxu0  ;;  %v9120_v10 = vpop.f32.mrf.mxu1 }
 0x269   : > { %v3128_v52 = vadd.f32 %v12130_v55, %v9043_v31 }
 0x26a   : > { %v9045_v3 = vpop.f32.mrf.mxu0  ;;  %v9121_v63 = vpop.f32.mrf.mxu1 }
 0x26b   : > { %v12282_v8 = vadd.f32 %v3128_v52, %v11892_v58  ;;  %v9046_v25 = vadd.f32 %v9045_v3, %v9044_v46  ;;  %v12284_v21 = vadd.f32 %v9121_v63, %v9120_v10  ;;  %v10420_v63 = vld [vmem:[%s10658_s29 + $0xb0] ss:$12 sps:$4 sm:$0xff]  }
 0x26c   : > { %v9047_v40 = vpop.f32.mrf.mxu0  ;;  %4675 = vmatmul.mubr.bf16.gmra.mxu0 %v11905_v29  ;;  %v9123_v19 = vpop.f32.mrf.mxu1  ;;  %5454 = vmatmul.mubr.bf16.gmra.mxu1 %v12087_v27 }
 0x26d   : > { %v3131_v18 = vadd.f32 %v12144_v35, %v9046_v25  ;;  %4682 = vmatprep.mubr.bf16.mxu0 %v12279_v13  ;;  %5461 = vmatprep.mubr.bf16.mxu1 %v12094_v54 }
 0x26e   : > { %v9048_v55 = vpop.f32.mrf.mxu0  ;;  %v9124_v37 = vpop.f32.mrf.mxu1 }
 0x26f   : > { %v12292_v58 = vadd.f32 %v3131_v18, %v11901_v17  ;;  %v9049_v45 = vadd.f32 %v9048_v55, %v9047_v40  ;;  %v12294_v16 = vadd.f32 %v9124_v37, %v9123_v19  ;;  %v10421_v18 = vld [vmem:[%s10658_s29 + $0xc8] ss:$12 sps:$4 sm:$0xff]  }
 0x270   : > { %v9050_v53 = vpop.f32.mrf.mxu0  ;;  %v9126_v35 = vpop.f32.mrf.mxu1 }
 0x271   : > { %v3136_v29 = vadd.f32 %v9049_v45, %v12162_v51 }
 0x272   : > { %v9051_v27 = vpop.f32.mrf.mxu0  ;;  %v9127_v23 = vpop.f32.mrf.mxu1 }
 0x273   : > { %v9052_v5 = vadd.f32 %v9051_v27, %v9050_v53  ;;  %v12302_v54 = vadd.f32 %v3136_v29, %v11915_v24  ;;  %v12304_v17 = vadd.f32 %v9127_v23, %v9126_v35  ;;  %v10429_v27 = vld [vmem:[%s13493_s1 + $0x420] sm:$0xff]  }
 0x274   : > { %v9053_v31 = vpop.f32.mrf.mxu0  ;;  %4683 = vmatmul.mubr.bf16.gmra.mxu0 %v12297_v43  ;;  %v9129_v46 = vpop.f32.mrf.mxu1  ;;  %5462 = vmatmul.mubr.bf16.gmra.mxu1 %v12115_v47  ;;  %v10425_v47 = vld [vmem:[%s13493_s1 + $0x428] sm:$0xff]  }
 0x275   : > { %v3139_v9 = vadd.f32 %v9052_v5, %v12176_v22  ;;  %9947 = vmatprep.mubr.msk.bf16.mxu0 %vm661_vm0, %v10419_v7  ;;  %5469 = vmatprep.mubr.bf16.mxu1 %v12121_v56  ;;  %v13565_v7 = vld [vmem:[#allocation17_spill] sm:$0xff]  ;;  %v13566_v5 = vld [vmem:[#allocation15_spill] sm:$0xff] }
 0x276   : > { %v9054_v51 = vpop.f32.mrf.mxu0  ;;  %v9130_v10 = vpop.f32.mrf.mxu1 }
 0x277   : > { %v9055_v52 = vadd.f32 %v9054_v51, %v9053_v31  ;;  %v12312_v24 = vadd.f32 %v3139_v9, %v11922_v0  ;;  %v12314_v3 = vadd.f32 %v9130_v10, %v9129_v46  ;;  %v10428_v0 = vld [vmem:[%s13493_s1 + $0x460] sm:$0xff]   ;;  %v10432_v9 = vld [vmem:[%s13493_s1 + $0x458] sm:$0xff]  }
 0x278   : > { %v9056_v25 = vpop.f32.mrf.mxu0  ;;  %v9132_v22 = vpop.f32.mrf.mxu1  ;;  %v13568_v10 = vld [vmem:[#allocation13_spill] sm:$0xff] }
 0x279   : > { %v3144_v40 = vadd.f32 %v12157_v59, %v9055_v52  ;;  %v10422_v52 = vld [vmem:[%s10658_s29 + $0xe0] ss:$12 sps:$4 sm:$0xff]  }
 0x27a   : > { %v9057_v19 = vpop.f32.mrf.mxu0  ;;  %v9133_v45 = vpop.f32.mrf.mxu1 }
 0x27b   : > { %v12323_v56 = vadd.f32 %v3144_v40, %v11939_v42  ;;  %v9058_v55 = vadd.f32 %v9057_v19, %v9056_v25  ;;  %v12328_v37 = vadd.f32 %v9133_v45, %v9132_v22  ;;  %v10426_v22 = vld [vmem:[%s10658_s29 + $0xf8] ss:$12 sps:$4 sm:$0xff]   ;;  %v13569_v19 = vld [vmem:[#allocation11_spill] sm:$0xff] }
 0x27c   : > { %v9877_v53 = vpop.f32.mrf.mxu0  ;;  %9948 = vmatmul.mubr.msk.bf16.vlgmr.msra.gmra.mxu0 %vm661_vm0, %v10420_v63  ;;  %v9135_v29 = vpop.f32.mrf.mxu1  ;;  %5470 = vmatmul.mubr.bf16.gmra.mxu1 %v12141_v15 }
 0x27d   : > { %v3147_v59 = vadd.f32 %v12171_v11, %v9058_v55  ;;  %v3883_v35 = vadd.f32 %v9877_v53, %v12218_v38  ;;  %9951 = vmatprep.mubr.msk.bf16.mxu0 %vm661_vm0, %v10421_v18  ;;  %5477 = vmatprep.mubr.bf16.mxu1 %v13565_v7  ;;  %v13567_v11 = vld [vmem:[#allocation3_spill] sm:$0xff]  ;;  %v10440_v7 = vld [vmem:[%s13493_s1 + $0x410] sm:$0xff]  }
 0x27e   : > { %v3874_v42 = vpop.f32.mrf.mxu0  ;;  %9468 = vmatpush3.bf16.msra.mxu0 %v10425_v47  ;;  %v9136_v38 = vpop.f32.mrf.mxu1 }
 0x27f   : > { %v12340_v23 = vadd.f32 %v3147_v59, %v13566_v5  ;;  %v12343_v31 = vadd.f32 %v3883_v35, %v13567_v11  ;;  %v3875_v15 = vadd.f32 %v12193_v39, %v3874_v42  ;;  %9469 = vmatprep.subr.bf16.mxu0 %v10428_v0  ;;  %v12349_v46 = vadd.f32 %v9136_v38, %v9135_v29  ;;  %v10433_v39 = vld [vmem:[%s13493_s1 + $0x418] sm:$0xff]   ;;  %v10439_v0 = vld [vmem:[%s13493_s1 + $0x450] sm:$0xff]   ;;  %v13570_v59 = vld [vmem:[#allocation14_spill] sm:$0xff] }
 0x280   : > { %v9878_v51 = vpop.f32.mrf.mxu0  ;;  %v9138_v63 = vpop.f32.mrf.mxu1 }
 0x281   : > { %v12353_v25 = vadd.f32 %v3875_v15, %v13568_v10  ;;  %v3886_v40 = vadd.f32 %v9878_v51, %v12227_v6 }
 0x282   : > { %v3877_v18 = vpop.f32.mrf.mxu0  ;;  %9470 = vmatpush3.bf16.msra.mxu0 %v10429_v27  ;;  %v9139_v55 = vpop.f32.mrf.mxu1  ;;  %v13571_v27 = vld [vmem:[#allocation5_spill] sm:$0xff] }
 0x283   : > { %v12361_v47 = vadd.f32 %v3886_v40, %v13569_v19  ;;  %v3878_v45 = vadd.f32 %v12208_v48, %v3877_v18  ;;  %9471 = vmatprep.subr.bf16.mxu0 %v10432_v9  ;;  %v12367_v53 = vadd.f32 %v9139_v55, %v9138_v63  ;;  %v13572_v9 = vld [vmem:[#allocation12_spill] sm:$0xff]  ;;  %v10450_v55 = vld [vmem:[%s13493_s1 + $0x440] sm:$0xff]  }
 0x284   : > { %v9881_v6 = vpop.f32.mrf.mxu0  ;;  %9952 = vmatmul.mubr.msk.bf16.gmra.mxu0 %vm661_vm0, %v10422_v52  ;;  %v9141_v35 = vpop.f32.mrf.mxu1  ;;  %5478 = vmatmul.mubr.bf16.gmra.mxu1 %v12168_v36  ;;  %v10443_v36 = vld [vmem:[%s13493_s1 + $0x448] sm:$0xff]  }
 0x285   : > { %v12371_v29 = vadd.f32 %v3878_v45, %v13570_v59  ;;  %v3899_v42 = vadd.f32 %v9881_v6, %v12256_v2  ;;  %9955 = vmatprep.mubr.msk.bf16.mxu0 %vm661_vm0, %v10426_v22  ;;  %5485 = vmatprep.mubr.bf16.mxu1 %v12174_v50  ;;  %v10427_v50 = vld [vmem:[%s10658_s29 + $0x110] ss:$12 sps:$4 sm:$0xff]   ;;  %v10430_v63 = vld [vmem:[%s10658_s29 + $0x128] ss:$12 sps:$4 sm:$0xff]  }
 0x286   : > { %v3890_v48 = vpop.f32.mrf.mxu0  ;;  %9472 = vmatpush3.bf16.msra.mxu0 %v10433_v39  ;;  %v9142_v11 = vpop.f32.mrf.mxu1  ;;  %v13573_v22 = vld [vmem:[#allocation7_spill] sm:$0xff] }
 0x287   : > { %v12381_v5 = vadd.f32 %v3899_v42, %v13571_v27  ;;  %v3891_v38 = vadd.f32 %v12237_v49, %v3890_v48  ;;  %9473 = vmatprep.subr.bf16.mxu0 %v10439_v0  ;;  %v12387_v2 = vadd.f32 %v9142_v11, %v9141_v35  ;;  %v10444_v49 = vld [vmem:[%s13493_s1 + $0x408] sm:$0xff]   ;;  %v13574_v0 = vld [vmem:[#allocation4_spill] sm:$0xff]  ;;  %v10451_v42 = vld [vmem:[%s13493_s1 + $0x400] sm:$0xff]  }
 0x288   : > { %v9882_v15 = vpop.f32.mrf.mxu0  ;;  %v9144_v52 = vpop.f32.mrf.mxu1  ;;  %v13575_v48 = vld [vmem:[#allocation8_spill] sm:$0xff] }
 0x289   : > { %v12391_v51 = vadd.f32 %v3891_v38, %v13572_v9  ;;  %v3902_v10 = vadd.f32 %v9882_v15, %v12265_v30 }
 0x28a   : > { %v3893_v40 = vpop.f32.mrf.mxu0  ;;  %9474 = vmatpush3.bf16.msra.mxu0 %v10440_v7  ;;  %v9145_v39 = vpop.f32.mrf.mxu1 }
 0x28b   : > { %v12399_v18 = vadd.f32 %v3902_v10, %v13573_v22  ;;  %v3894_v19 = vadd.f32 %v12246_v60, %v3893_v40  ;;  %9475 = vmatprep.subr.bf16.mxu0 %v10443_v36  ;;  %v12405_v45 = vadd.f32 %v9145_v39, %v9144_v52  ;;  %v13576_v36 = vld [vmem:[#allocation2_spill] sm:$0xff] }
 0x28c   : > { %v9885_v30 = vpop.f32.mrf.mxu0  ;;  %9956 = vmatmul.mubr.msk.bf16.gmra.mxu0 %vm661_vm0, %v10427_v50  ;;  %v9147_v59 = vpop.f32.mrf.mxu1  ;;  %5486 = vmatmul.mubr.bf16.gmra.mxu1 %v12196_v57  ;;  %v10454_v57 = vld [vmem:[%s13493_s1 + $0x438] sm:$0xff]   ;;  %v13577_v40 = vld [vmem:[#allocation10_spill] sm:$0xff] }
 0x28d   : > { %v12409_v6 = vadd.f32 %v3894_v19, %v13574_v0  ;;  %v3915_v35 = vadd.f32 %v9885_v30, %v12294_v16  ;;  %9959 = vmatprep.mubr.msk.bf16.mxu0 %vm661_vm0, %v10430_v63  ;;  %5493 = vmatprep.mubr.bf16.mxu1 %v12203_v44  ;;  %v10431_v44 = vld [vmem:[%s10658_s29 + $0x140] ss:$12 sps:$4 sm:$0xff]   ;;  %v10437_v52 = vld [vmem:[%s10658_s29 + $0x158] ss:$12 sps:$4 sm:$0xff]   ;;  %v10436_v63 = vld [vmem:[%s10658_s29 + $0x19c] ss:$12 sps:$4 sm:$0xff]  }
 0x28e   : > { %v3906_v60 = vpop.f32.mrf.mxu0  ;;  %9476 = vmatpush3.bf16.msra.mxu0 %v10444_v49  ;;  %v9148_v27 = vpop.f32.mrf.mxu1  ;;  %v10456_v19 = vld [vmem:[%s13493_s1 + $0x430] sm:$0xff]   ;;  %v13578_v30 = vld [vmem:[#allocation6_spill] sm:$0xff] }
 0x28f   : > { %v12419_v7 = vadd.f32 %v3915_v35, %v13575_v48  ;;  %v3907_v16 = vadd.f32 %v12275_v32, %v3906_v60  ;;  %9477 = vmatprep.subr.bf16.mxu0 %v10450_v55  ;;  %v9149_v11 = vadd.f32 %v9148_v27, %v9147_v59  ;;  %v10455_v32 = vld [vmem:[%s13493_s1 + $0x3f8] sm:$0xff]   ;;  %v10457_v60 = vld [vmem:[%s13493_s1 + $0x3f0] sm:$0xff]  }
 0x290   : > { %v9886_v38 = vpop.f32.mrf.mxu0  ;;  %v9150_v50 = vpop.f32.mrf.mxu1 }
 0x291   : > { %v12427_v15 = vadd.f32 %v3907_v16, %v13576_v36  ;;  %v3918_v9 = vadd.f32 %v9886_v38, %v12304_v17  ;;  %v10438_v38 = vld [vmem:[%s10658_s29 + $0x170] ss:$12 sps:$4 sm:$0xff]  }
 0x292   : > { %v3909_v10 = vpop.f32.mrf.mxu0  ;;  %9478 = vmatpush3.bf16.msra.mxu0 %v10451_v42  ;;  %v9151_v22 = vpop.f32.mrf.mxu1  ;;  %v13579_v42 = vld [vmem:[#allocation18_spill] sm:$0xff] }
 0x293   : > { %v12436_v49 = vadd.f32 %v3918_v9, %v13577_v40  ;;  %v3910_v39 = vadd.f32 %v12284_v21, %v3909_v10  ;;  %9479 = vmatprep.subr.bf16.mxu0 %v10454_v57  ;;  %v9152_v17 = vadd.f32 %v9151_v22, %v9150_v50  ;;  %v10441_v10 = vld [vmem:[%s10658_s29 + $0x188] ss:$12 sps:$4 sm:$0xff]  }
 0x294   : > { %v9889_v55 = vpop.f32.mrf.mxu0  ;;  %9960 = vmatmul.mubr.msk.bf16.gmra.mxu0 %vm661_vm0, %v10431_v44  ;;  %v9153_v59 = vpop.f32.mrf.mxu1  ;;  %5494 = vmatmul.mubr.bf16.gmra.mxu1 %v12221_v20  ;;  %v12459_v20 = vld [vmem:[%s13493_s1 + $0x508] sm:$0xff]   ;;  %v13580_v44 = vld [vmem:[#allocation9_spill] sm:$0xff] }
 0x295   : > { %v12444_v0 = vadd.f32 %v3910_v39, %v13578_v30  ;;  %v3931_v35 = vadd.f32 %v9889_v55, %v12349_v46  ;;  %9963 = vmatprep.mubr.msk.bf16.mxu0 %vm661_vm0, %v10437_v52  ;;  %5501 = vmatprep.mubr.bf16.mxu1 %v10436_v63  ;;  %v10434_v52 = vld [vmem:[%s10658_s29 + $0x198] ss:$12 sps:$4 sm:$0xff]  }
 0x296   : > { %v3922_v21 = vpop.f32.mrf.mxu0  ;;  %9480 = vmatpush3.bf16.msra.mxu0 %v10455_v32  ;;  %v9154_v27 = vpop.f32.mrf.mxu1 }
 0x297   : > { %v12453_v48 = vadd.f32 %v3931_v35, %v13579_v42  ;;  %v3923_v16 = vadd.f32 %v12314_v3, %v3922_v21  ;;  %9481 = vmatprep.subr.bf16.mxu0 %v10456_v19  ;;  %v9155_v46 = vadd.f32 %v9154_v27, %v9153_v59  ;;  %v13581_v19 = vld [vmem:[#allocation16_spill] sm:$0xff]  ;;  %v10442_v42 = vld [vmem:[%s10658_s29 + $0x1a0] ss:$12 sps:$4 sm:$0xff]  }
 0x298   : > { %v9890_v57 = vpop.f32.mrf.mxu0  ;;  %v9156_v50 = vpop.f32.mrf.mxu1  ;;  %v13582_v27 = vld [vmem:[#allocation19_spill] sm:$0xff] }
 0x299   : > { %v12463_v36 = vadd.f32 %v3923_v16, %v13580_v44  ;;  %v3934_v9 = vadd.f32 %v9890_v57, %v12367_v53 }
 0x29a   : > { %v3925_v63 = vpop.f32.mrf.mxu0  ;;  %9482 = vmatpush3.bf16.msra.mxu0 %v10457_v60  ;;  %v9157_v32 = vpop.f32.mrf.mxu1 }
 0x29b   : > { %v12469_v3 = vadd.f32 %v3934_v9, %v12165_v28  ;;  %v3926_v40 = vadd.f32 %v12328_v37, %v3925_v63  ;;  %10015 = vmatprep.subr.bf16.mxu0 %v12459_v20  ;;  %v9158_v22 = vadd.f32 %v9157_v32, %v9156_v50  ;;  %v12489_v50 = vld [vmem:[%s10658_s29 + $0x1cc] ss:$12 sps:$4 sm:$0xff]  }
 0x29c   : > { %v9893_v39 = vpop.f32.mrf.mxu0  ;;  %9964 = vmatmul.mubr.msk.bf16.gmra.mxu0 %vm661_vm0, %v10438_v38  ;;  %v9159_v53 = vpop.f32.mrf.mxu1  ;;  %5502 = vmatmul.mubr.bf16.gmra.mxu1 %v10434_v52  ;;  %v10448_v38 = vld [vmem:[%s10658_s29 + $0x1b8] ss:$12 sps:$4 sm:$0xff]  }
 0x29d   : > { %v12475_v55 = vadd.f32 %v3926_v40, %v13581_v19  ;;  %v3947_v30 = vadd.f32 %v9893_v39, %v9149_v11  ;;  %9967 = vmatprep.mubr.msk.bf16.mxu0 %vm661_vm0, %v10441_v10  ;;  %5509 = vmatprep.mubr.bf16.mxu1 %v12241_v1  ;;  %v13583_v10 = vld [vmem:[#allocation20_spill] sm:$0xff] }
 0x29e   : > { %v3938_v28 = vpop.f32.mrf.mxu0  ;;  %v9160_v59 = vpop.f32.mrf.mxu1 }
 0x29f   : > { %v12480_v37 = vadd.f32 %v3947_v30, %v12206_v33  ;;  %v3939_v35 = vadd.f32 %v12387_v2, %v3938_v28  ;;  %v9161_v21 = vadd.f32 %v9160_v59, %v9159_v53  ;;  %v10449_v30 = vld [vmem:[%s10658_s29 + $0x1d0] ss:$12 sps:$4 sm:$0xff]  }
 0x2a0   : > { %v9894_v60 = vpop.f32.mrf.mxu0  ;;  %v9162_v11 = vpop.f32.mrf.mxu1 }
 0x2a1   : > { %v12485_v16 = vadd.f32 %v3939_v35, %v13582_v27  ;;  %v3950_v57 = vadd.f32 %v9894_v60, %v9152_v17 }
 0x2a2   : > { %v3941_v44 = vpop.f32.mrf.mxu0  ;;  %v9163_v33 = vpop.f32.mrf.mxu1 }
 0x2a3   : > { %v12492_v1 = vadd.f32 %v3950_v57, %v12216_v26  ;;  %v3942_v9 = vadd.f32 %v12405_v45, %v3941_v44  ;;  %v9164_v2 = vadd.f32 %v9163_v33, %v9162_v11 }
 0x2a4   : > { %v9897_v52 = vpop.f32.mrf.mxu0  ;;  %9968 = vmatmul.mubr.msk.bf16.gmra.mxu0 %vm661_vm0, %v10442_v42  ;;  %v9165_v17 = vpop.f32.mrf.mxu1  ;;  %5510 = vmatmul.mubr.bf16.gmra.mxu1 %v12259_v14  ;;  %v10452_v14 = vld [vmem:[%s10658_s29 + $0x1e8] ss:$12 sps:$4 sm:$0xff]  }
 0x2a5   : > { %v12497_v63 = vadd.f32 %v3942_v9, %v13583_v10  ;;  %v3963_v32 = vadd.f32 %v9897_v52, %v9161_v21  ;;  %9971 = vmatprep.mubr.msk.bf16.mxu0 %vm661_vm0, %v10448_v38  ;;  %5517 = vmatprep.mubr.bf16.mxu1 %v12489_v50  ;;  %v12510_v21 = vld [vmem:[%s10658_s29 + $0x1c8] ss:$12 sps:$4 sm:$0xff]   ;;  %v10453_v9 = vld [vmem:[%s10658_s29 + $0x200] ss:$12 sps:$4 sm:$0xff]  }
 0x2a6   : > { %v3954_v26 = vpop.f32.mrf.mxu0  ;;  %v9166_v40 = vpop.f32.mrf.mxu1 }
 0x2a7   : > { %v12503_v45 = vadd.f32 %v3963_v32, %v12244_v61  ;;  %v3955_v39 = vadd.f32 %v9155_v46, %v3954_v26  ;;  %v9167_v19 = vadd.f32 %v9166_v40, %v9165_v17  ;;  %v12529_v32 = vld [vmem:[%s10658_s29 + $0x1fc] ss:$12 sps:$4 sm:$0xff]  }
 0x2a8   : > { %v9898_v53 = vpop.f32.mrf.mxu0  ;;  %v9168_v59 = vpop.f32.mrf.mxu1 }
 0x2a9   : > { %v12507_v28 = vadd.f32 %v3955_v39, %v12225_v62  ;;  %v3966_v35 = vadd.f32 %v9898_v53, %v9164_v2 }
 0x2aa   : > { %v3957_v60 = vpop.f32.mrf.mxu0  ;;  %v9169_v61 = vpop.f32.mrf.mxu1 }
 0x2ab   : > { %v12514_v42 = vadd.f32 %v3966_v35, %v12254_v12  ;;  %v3958_v27 = vadd.f32 %v9158_v22, %v3957_v60  ;;  %v9170_v11 = vadd.f32 %v9169_v61, %v9168_v59  ;;  %v10461_v61 = vld [vmem:[%s10658_s29 + $0xa8] ss:$12 sps:$4 sm:$0xff]  }
 0x2ac   : > { %v9901_v46 = vpop.f32.mrf.mxu0  ;;  %9972 = vmatmul.mubr.msk.bf16.gmra.mxu0 %vm661_vm0, %v10449_v30  ;;  %v9171_v57 = vpop.f32.mrf.mxu1  ;;  %5518 = vmatmul.mubr.bf16.gmra.mxu1 %v12510_v21 }
 0x2ad   : > { %v12518_v62 = vadd.f32 %v3958_v27, %v12235_v41  ;;  %9975 = vmatprep.mubr.msk.bf16.mxu0 %vm661_vm0, %v10452_v14  ;;  %5525 = vmatprep.mubr.bf16.mxu1 %v12279_v13  ;;  %v10463_v41 = vld [vmem:[%s10658_s29 + $0xac] ss:$12 sps:$4 sm:$0xff]  }
 0x2ae   : > { %v3970_v38 = vpop.f32.mrf.mxu0  ;;  %v9172_v12 = vpop.f32.mrf.mxu1 }
 0x2af   : > { %v3971_v44 = vadd.f32 %v9167_v19, %v3970_v38  ;;  %v9173_v22 = vadd.f32 %v9172_v12, %v9171_v57  ;;  %v10524_v12 = vld [vmem:[%s13493_s1 + $0x500] sm:$0xff]  }
 0x2b0   : > { %v9902_v33 = vpop.f32.mrf.mxu0  ;;  %v9174_v52 = vpop.f32.mrf.mxu1 }
 0x2b1   : > { %v12525_v2 = vadd.f32 %v3971_v44, %v12263_v4  ;;  %v3979_v10 = vadd.f32 %v9901_v46, %v9173_v22 }
 0x2b2   : > { %v3973_v17 = vpop.f32.mrf.mxu0  ;;  %v9175_v26 = vpop.f32.mrf.mxu1 }
 0x2b3   : > { %v3974_v40 = vadd.f32 %v9170_v11, %v3973_v17  ;;  %v12532_v39 = vadd.f32 %v3979_v10, %v12282_v8  ;;  %v9176_v13 = vadd.f32 %v9175_v26, %v9174_v52  ;;  %v12545_v11 = vld [vmem:[%s10658_s29 + $0x1f8] ss:$12 sps:$4 sm:$0xff]  }
 0x2b4   : > { %v9905_v19 = vpop.f32.mrf.mxu0  ;;  %9976 = vmatmul.mubr.msk.bf16.gmra.mxu0 %vm661_vm0, %v10453_v9  ;;  %v9177_v53 = vpop.f32.mrf.mxu1  ;;  %5526 = vmatmul.mubr.bf16.gmra.mxu1 %v12297_v43  ;;  %v10467_v43 = vld [vmem:[%s10658_s29 + $0xb0] ss:$12 sps:$4 sm:$0xff]  }
 0x2b5   : > { %v12536_v4 = vadd.f32 %v3974_v40, %v12273_v34  ;;  %6264 = vmatprep.mubr.bf16.mxu0 %v10463_v41  ;;  %v3982_v30 = vadd.f32 %v9902_v33, %v9176_v13  ;;  %5533 = vmatprep.mubr.bf16.mxu1 %v12529_v32  ;;  %v12548_v34 = vld [vmem:[%s10658_s29 + $0xc4] ss:$12 sps:$4 sm:$0xff]   ;;  %v12565_v40 = vld [vmem:[%s10658_s29 + $0xc0] ss:$12 sps:$4 sm:$0xff]  }
 0x2b6   : > { %v3986_v59 = vpop.f32.mrf.mxu0  ;;  %v9178_v8 = vpop.f32.mrf.mxu1 }
 0x2b7   : > { %v12541_v35 = vadd.f32 %v3982_v30, %v12292_v58  ;;  %v9179_v14 = vadd.f32 %v9178_v8, %v9177_v53  ;;  %v10468_v53 = vld [vmem:[%s10658_s29 + $0xc8] ss:$12 sps:$4 sm:$0xff]  }
 0x2b8   : > { %v9906_v60 = vpop.f32.mrf.mxu0  ;;  %v9180_v27 = vpop.f32.mrf.mxu1  ;;  %v12569_v30 = vld [vmem:[%s10658_s29 + $0xdc] ss:$12 sps:$4 sm:$0xff]  }
 0x2b9   : > { %v3987_v46 = vadd.f32 %v9179_v14, %v3986_v59  ;;  %v10475_v14 = vld [vmem:[%s10658_s29 + $0xe0] ss:$12 sps:$4 sm:$0xff]  }
 0x2ba   : > { %v3989_v57 = vpop.f32.mrf.mxu0  ;;  %v9181_v38 = vpop.f32.mrf.mxu1 }
 0x2bb   : > { %v12555_v44 = vadd.f32 %v3987_v46, %v12302_v54  ;;  %v9182_v58 = vadd.f32 %v9181_v38, %v9180_v27 }
 0x2bc   : > { %v9223_v22 = vpop.f32.mrf.mxu0  ;;  %6265 = vmatmul.mubr.bf16.vlgmr.msra.gmra.mxu0 %v10461_v61  ;;  %v9183_v33 = vpop.f32.mrf.mxu1  ;;  %5534 = vmatmul.mubr.bf16.gmra.mxu1 %v12545_v11 }
 0x2bd   : > { %6272 = vmatprep.mubr.bf16.mxu0 %v12548_v34  ;;  %v3990_v9 = vadd.f32 %v9182_v58, %v3989_v57  ;;  %9983 = vmatprep.mubr.msk.bf16.mxu1 %vm661_vm0, %v10467_v43 }
 0x2be   : > { %v9224_v52 = vpop.f32.mrf.mxu0  ;;  %10016 = vmatpush3.bf16.msra.mxu0 %v12459_v20  ;;  %v9184_v54 = vpop.f32.mrf.mxu1  ;;  %v10470_v20 = vld [vmem:[%s13493_s1 + $0x4b8] sm:$0xff]  }
 0x2bf   : > { %v9225_v41 = vadd.f32 %v9224_v52, %v9223_v22  ;;  %10017 = vmatprep.subr.bf16.mxu0 %v10524_v12  ;;  %v12562_v10 = vadd.f32 %v3990_v9, %v12312_v24  ;;  %v9185_v17 = vadd.f32 %v9184_v54, %v9183_v33  ;;  %v10477_v24 = vld [vmem:[%s13493_s1 + $0x4f0] sm:$0xff]   ;;  %v10484_v33 = vld [vmem:[%s13493_s1 + $0x4e8] sm:$0xff]   ;;  %v12595_v54 = vld [vmem:[%s10658_s29 + $0xd8] ss:$12 sps:$4 sm:$0xff]  }
 0x2c0   : > { %v9226_v26 = vpop.f32.mrf.mxu0  ;;  %v9186_v13 = vpop.f32.mrf.mxu1 }
 0x2c1   : > { %v3995_v59 = vadd.f32 %v9905_v19, %v9185_v17 }
 0x2c2   : > { %v9227_v8 = vpop.f32.mrf.mxu0  ;;  %10018 = vmatpush3.bf16.msra.mxu0 %v10524_v12  ;;  %v9187_v61 = vpop.f32.mrf.mxu1 }
 0x2c3   : > { %v9228_v27 = vadd.f32 %v9227_v8, %v9226_v26  ;;  %v12579_v46 = vadd.f32 %v3995_v59, %v12323_v56  ;;  %v9188_v57 = vadd.f32 %v9187_v61, %v9186_v13  ;;  %v10478_v56 = vld [vmem:[%s13493_s1 + $0x4b0] sm:$0xff]   ;;  %v10476_v13 = vld [vmem:[%s10658_s29 + $0xf8] ss:$12 sps:$4 sm:$0xff]  }
 0x2c4   : > { %v9229_v43 = vpop.f32.mrf.mxu0  ;;  %6273 = vmatmul.mubr.bf16.gmra.mxu0 %v12565_v40  ;;  %v9913_v19 = vpop.f32.mrf.mxu1  ;;  %9984 = vmatmul.mubr.msk.bf16.vlgmr.msra.gmra.mxu1 %vm661_vm0, %v10468_v53  ;;  %v12599_v53 = vld [vmem:[%s10658_s29 + $0xf4] ss:$12 sps:$4 sm:$0xff]  }
 0x2c5   : > { %6280 = vmatprep.mubr.bf16.mxu0 %v12569_v30  ;;  %v3998_v38 = vadd.f32 %v9906_v60, %v9188_v57  ;;  %9598 = vmatpush3.bf16.msra.mxu1 %v10470_v20  ;;  %v10482_v20 = vld [vmem:[%s10658_s29 + $0x110] ss:$12 sps:$4 sm:$0xff]   ;;  %v10491_v61 = vld [vmem:[%s13493_s1 + $0x4e0] sm:$0xff]  }
 0x2c6   : > { %v9230_v12 = vpop.f32.mrf.mxu0  ;;  %9987 = vmatprep.mubr.msk.bf16.mxu1 %vm661_vm0, %v10475_v14  ;;  %v4725_v22 = vpop.f32.mrf.mxu1  ;;  %9599 = vmatprep.subr.bf16.mxu1 %v10477_v24 }
 0x2c7   : > { %v9231_v58 = vadd.f32 %v9230_v12, %v9229_v43  ;;  %v12592_v9 = vadd.f32 %v3998_v38, %v12340_v23  ;;  %v4726_v60 = vadd.f32 %v9225_v41, %v4725_v22  ;;  %v10485_v23 = vld [vmem:[%s13493_s1 + $0x4a8] sm:$0xff]  }
 0x2c8   : > { %v9232_v52 = vpop.f32.mrf.mxu0  ;;  %v9914_v26 = vpop.f32.mrf.mxu1 }
 0x2c9   : > { %13584 = vst [vmem:[#allocation17_spill] sm:$0xff] %v12592_v9  ;;  %v4734_v17 = vadd.f32 %v9913_v19, %v9231_v58  ;;  %v12602_v59 = vadd.f32 %v4726_v60, %v12353_v25  ;;  %9600 = vmatpush3.bf16.msra.mxu1 %v10478_v56  ;;  %v10498_v58 = vld [vmem:[%s13493_s1 + $0x4d8] sm:$0xff]  }
 0x2ca   : > { %v9233_v8 = vpop.f32.mrf.mxu0  ;;  %v4728_v41 = vpop.f32.mrf.mxu1  ;;  %9601 = vmatprep.subr.bf16.mxu1 %v10484_v33  ;;  %v12631_v33 = vld [vmem:[%s10658_s29 + $0xf0] ss:$12 sps:$4 sm:$0xff]  }
 0x2cb   : > { %13585 = vst [vmem:[#allocation15_spill] sm:$0xff] %v12602_v59  ;;  %v9234_v14 = vadd.f32 %v9233_v8, %v9232_v52  ;;  %v12612_v24 = vadd.f32 %v4734_v17, %v12343_v31  ;;  %v4729_v57 = vadd.f32 %v9228_v27, %v4728_v41  ;;  %v10492_v31 = vld [vmem:[%s13493_s1 + $0x4a0] sm:$0xff]   ;;  %v10483_v17 = vld [vmem:[%s10658_s29 + $0x128] ss:$12 sps:$4 sm:$0xff]  }
 0x2cc   : > { %v9235_v25 = vpop.f32.mrf.mxu0  ;;  %6281 = vmatmul.mubr.bf16.gmra.mxu0 %v12595_v54  ;;  %v9917_v19 = vpop.f32.mrf.mxu1  ;;  %9988 = vmatmul.mubr.msk.bf16.gmra.mxu1 %vm661_vm0, %v10476_v13  ;;  %v10489_v8 = vld [vmem:[%s10658_s29 + $0x140] ss:$12 sps:$4 sm:$0xff]   ;;  %v10505_v41 = vld [vmem:[%s13493_s1 + $0x4d0] sm:$0xff]  }
 0x2cd   : > { %13586 = vst [vmem:[#allocation3_spill] sm:$0xff] %v12612_v24  ;;  %v4737_v43 = vadd.f32 %v9914_v26, %v9234_v14  ;;  %6288 = vmatprep.mubr.bf16.mxu0 %v12599_v53  ;;  %v12618_v38 = vadd.f32 %v4729_v57, %v12371_v29  ;;  %9991 = vmatprep.mubr.msk.bf16.mxu1 %vm661_vm0, %v10482_v20  ;;  %v12635_v26 = vld [vmem:[%s10658_s29 + $0x10c] ss:$12 sps:$4 sm:$0xff]  }
 0x2ce   : > { %v9236_v12 = vpop.f32.mrf.mxu0  ;;  %9602 = vmatpush3.bf16.msra.mxu1 %v10485_v23  ;;  %v4741_v56 = vpop.f32.mrf.mxu1  ;;  %v10499_v20 = vld [vmem:[%s13493_s1 + $0x498] sm:$0xff]  }
 0x2cf   : > { %13587 = vst [vmem:[#allocation13_spill] sm:$0xff] %v12618_v38  ;;  %v9237_v27 = vadd.f32 %v9236_v12, %v9235_v25  ;;  %9603 = vmatprep.subr.bf16.mxu1 %v10491_v61  ;;  %v12628_v22 = vadd.f32 %v4737_v43, %v12361_v47  ;;  %v10506_v43 = vld [vmem:[%s13493_s1 + $0x490] sm:$0xff]   ;;  %v12749_v38 = vld [vmem:[%s10658_s29 + $0x16c] ss:$12 sps:$4 sm:$0xff]  }
 0x2d0   : > { %v9238_v29 = vpop.f32.mrf.mxu0  ;;  %v9918_v52 = vpop.f32.mrf.mxu1 }
 0x2d1   : > { %13588 = vst [vmem:[#allocation11_spill] sm:$0xff] %v12628_v22  ;;  %v4742_v60 = vadd.f32 %v9237_v27, %v4741_v56  ;;  %v10512_v56 = vld [vmem:[%s13493_s1 + $0x4c8] sm:$0xff]  }
 0x2d2   : > { %v9239_v13 = vpop.f32.mrf.mxu0  ;;  %9604 = vmatpush3.bf16.msra.mxu1 %v10492_v31  ;;  %v4744_v14 = vpop.f32.mrf.mxu1  ;;  %v10517_v22 = vld [vmem:[%s10658_s29 + $0x200] ss:$12 sps:$4 sm:$0xff]  }
 0x2d3   : > { %v12642_v23 = vadd.f32 %v4742_v60, %v12391_v51  ;;  %v9240_v47 = vadd.f32 %v9239_v13, %v9238_v29  ;;  %9605 = vmatprep.subr.bf16.mxu1 %v10498_v58  ;;  %v12663_v29 = vld [vmem:[%s10658_s29 + $0x108] ss:$12 sps:$4 sm:$0xff]   ;;  %v10490_v13 = vld [vmem:[%s10658_s29 + $0x158] ss:$12 sps:$4 sm:$0xff]  }
 0x2d4   : > { %v9241_v61 = vpop.f32.mrf.mxu0  ;;  %6289 = vmatmul.mubr.bf16.gmra.mxu0 %v12631_v33  ;;  %v12648_v25 = vpop.f32.mrf.mxu1  ;;  %9992 = vmatmul.mubr.msk.bf16.gmra.mxu1 %vm661_vm0, %v10483_v17 }
 0x2d5   : > { %13589 = vst [vmem:[#allocation14_spill] sm:$0xff] %v12642_v23  ;;  %v4745_v57 = vadd.f32 %v9240_v47, %v4744_v14  ;;  %6296 = vmatprep.mubr.bf16.mxu0 %v12635_v26  ;;  %9995 = vmatprep.mubr.msk.bf16.mxu1 %vm661_vm0, %v10489_v8  ;;  %v12667_v8 = vld [vmem:[%s10658_s29 + $0x124] ss:$12 sps:$4 sm:$0xff]   ;;  %v12698_v23 = vld [vmem:[%s10658_s29 + $0x13c] ss:$12 sps:$4 sm:$0xff]  }
 0x2d6   : > { %v9242_v51 = vpop.f32.mrf.mxu0  ;;  %9606 = vmatpush3.bf16.msra.mxu1 %v10499_v20  ;;  %v4757_v27 = vpop.f32.mrf.mxu1  ;;  %v10496_v47 = vld [vmem:[%s10658_s29 + $0x170] ss:$12 sps:$4 sm:$0xff]  }
 0x2d7   : > { %v12657_v12 = vadd.f32 %v4745_v57, %v12409_v6  ;;  %v9243_v31 = vadd.f32 %v9242_v51, %v9241_v61  ;;  %9607 = vmatprep.subr.bf16.mxu1 %v10505_v41  ;;  %v10513_v6 = vld [vmem:[%s13493_s1 + $0x488] sm:$0xff]   ;;  %v10519_v61 = vld [vmem:[%s13493_s1 + $0x4c0] sm:$0xff]  }
 0x2d8   : > { %v9244_v58 = vpop.f32.mrf.mxu0  ;;  %v9922_v17 = vpop.f32.mrf.mxu1 }
 0x2d9   : > { %13590 = vst [vmem:[#allocation5_spill] sm:$0xff] %v12657_v12  ;;  %v4750_v60 = vadd.f32 %v9917_v19, %v9243_v31  ;;  %v10497_v12 = vld [vmem:[%s10658_s29 + $0x188] ss:$12 sps:$4 sm:$0xff]  }
 0x2da   : > { %v9245_v20 = vpop.f32.mrf.mxu0  ;;  %9608 = vmatpush3.bf16.msra.mxu1 %v10506_v43  ;;  %v4760_v41 = vpop.f32.mrf.mxu1 }
 0x2db   : > { %v9246_v14 = vadd.f32 %v9245_v20, %v9244_v58  ;;  %9609 = vmatprep.subr.bf16.mxu1 %v10512_v56  ;;  %v12677_v19 = vadd.f32 %v4750_v60, %v12381_v5  ;;  %v10520_v5 = vld [vmem:[%s13493_s1 + $0x480] sm:$0xff]  }
 0x2dc   : > { %v9247_v57 = vpop.f32.mrf.mxu0  ;;  %6297 = vmatmul.mubr.bf16.gmra.mxu0 %v12663_v29  ;;  %v12680_v43 = vpop.f32.mrf.mxu1  ;;  %9996 = vmatmul.mubr.msk.bf16.gmra.mxu1 %vm661_vm0, %v10490_v13  ;;  %v12692_v20 = vld [vmem:[%s10658_s29 + $0x120] ss:$12 sps:$4 sm:$0xff]  }
 0x2dd   : > { %13591 = vst [vmem:[#allocation12_spill] sm:$0xff] %v12677_v19  ;;  %v4753_v51 = vadd.f32 %v9918_v52, %v9246_v14  ;;  %6304 = vmatprep.mubr.bf16.mxu0 %v12667_v8  ;;  %9999 = vmatprep.mubr.msk.bf16.mxu1 %vm661_vm0, %v10496_v47 }
 0x2de   : > { %v9248_v31 = vpop.f32.mrf.mxu0  ;;  %9610 = vmatpush3.bf16.msra.mxu1 %v10513_v6  ;;  %v4773_v58 = vpop.f32.mrf.mxu1  ;;  %v10503_v6 = vld [vmem:[%s10658_s29 + $0x1a0] ss:$12 sps:$4 sm:$0xff]  }
 0x2df   : > { %v9249_v56 = vadd.f32 %v9248_v31, %v9247_v57  ;;  %9611 = vmatprep.subr.bf16.mxu1 %v10519_v61  ;;  %v12689_v52 = vadd.f32 %v4753_v51, %v12399_v18 }
 0x2e0   : > { %v9250_v60 = vpop.f32.mrf.mxu0  ;;  %v12694_v14 = vpop.f32.mrf.mxu1 }
 0x2e1   : > { %13592 = vst [vmem:[#allocation7_spill] sm:$0xff] %v12689_v52  ;;  %v4758_v13 = vadd.f32 %v9249_v56, %v4757_v27  ;;  %v10510_v52 = vld [vmem:[%s10658_s29 + $0x1d0] ss:$12 sps:$4 sm:$0xff]  }
 0x2e2   : > { %v9251_v47 = vpop.f32.mrf.mxu0  ;;  %9612 = vmatpush3.bf16.msra.mxu1 %v10520_v5  ;;  %v4776_v57 = vpop.f32.mrf.mxu1 }
 0x2e3   : > { %v9252_v19 = vadd.f32 %v9251_v47, %v9250_v60  ;;  %v12702_v61 = vadd.f32 %v4758_v13, %v12427_v15  ;;  %v12716_v13 = vld [vmem:[%s10658_s29 + $0x138] ss:$12 sps:$4 sm:$0xff]  }
 0x2e4   : > { %v9253_v18 = vpop.f32.mrf.mxu0  ;;  %6305 = vmatmul.mubr.bf16.gmra.mxu0 %v12692_v20  ;;  %v12705_v51 = vpop.f32.mrf.mxu1  ;;  %10000 = vmatmul.mubr.msk.bf16.gmra.mxu1 %vm661_vm0, %v10497_v12  ;;  %v10504_v47 = vld [vmem:[%s10658_s29 + $0x1b8] ss:$12 sps:$4 sm:$0xff]   ;;  %v12723_v12 = vld [vmem:[%s10658_s29 + $0x154] ss:$12 sps:$4 sm:$0xff]  }
 0x2e5   : > { %13593 = vst [vmem:[#allocation4_spill] sm:$0xff] %v12702_v61  ;;  %v4761_v27 = vadd.f32 %v9252_v19, %v4760_v41  ;;  %6312 = vmatprep.mubr.bf16.mxu0 %v12698_v23  ;;  %10003 = vmatprep.mubr.msk.bf16.mxu1 %vm661_vm0, %v10503_v6 }
 0x2e6   : > { %v9254_v31 = vpop.f32.mrf.mxu0  ;;  %v12710_v56 = vpop.f32.mrf.mxu1 }
 0x2e7   : > { %v9255_v5 = vadd.f32 %v9254_v31, %v9253_v18  ;;  %v12713_v15 = vadd.f32 %v4761_v27, %v12444_v0 }
 0x2e8   : > { %v9256_v60 = vpop.f32.mrf.mxu0  ;;  %v12719_v19 = vpop.f32.mrf.mxu1 }
 0x2e9   : > { %13594 = vst [vmem:[#allocation8_spill] sm:$0xff] %v12713_v15  ;;  %v4766_v41 = vadd.f32 %v12648_v25, %v9255_v5  ;;  %v12743_v15 = vld [vmem:[%s10658_s29 + $0x150] ss:$12 sps:$4 sm:$0xff]  }
 0x2ea   : > { %v9257_v61 = vpop.f32.mrf.mxu0  ;;  %v12726_v18 = vpop.f32.mrf.mxu1 }
 0x2eb   : > { %v9258_v6 = vadd.f32 %v9257_v61, %v9256_v60  ;;  %v12729_v31 = vadd.f32 %v4766_v41, %v12419_v7 }
 0x2ec   : > { %v9259_v0 = vpop.f32.mrf.mxu0  ;;  %6313 = vmatmul.mubr.bf16.gmra.mxu0 %v12716_v13  ;;  %v12732_v27 = vpop.f32.mrf.mxu1  ;;  %10004 = vmatmul.mubr.msk.bf16.gmra.mxu1 %vm661_vm0, %v10504_v47 }
 0x2ed   : > { %13595 = vst [vmem:[#allocation2_spill] sm:$0xff] %v12729_v31  ;;  %v4769_v25 = vadd.f32 %v9922_v17, %v9258_v6  ;;  %6320 = vmatprep.mubr.bf16.mxu0 %v12723_v12  ;;  %10007 = vmatprep.mubr.msk.bf16.mxu1 %vm661_vm0, %v10510_v52  ;;  %v10511_v31 = vld [vmem:[%s10658_s29 + $0x1e8] ss:$12 sps:$4 sm:$0xff]  }
 0x2ee   : > { %v9260_v5 = vpop.f32.mrf.mxu0  ;;  %v12737_v60 = vpop.f32.mrf.mxu1 }
 0x2ef   : > { %v9261_v61 = vadd.f32 %v9260_v5, %v9259_v0  ;;  %v12740_v7 = vadd.f32 %v4769_v25, %v12436_v49 }
 0x2f0   : > { %v9262_v41 = vpop.f32.mrf.mxu0  ;;  %v12745_v6 = vpop.f32.mrf.mxu1 }
 0x2f1   : > { %13596 = vst [vmem:[#allocation10_spill] sm:$0xff] %v12740_v7  ;;  %v4774_v17 = vadd.f32 %v9261_v61, %v4773_v58 }
 0x2f2   : > { %v9263_v47 = vpop.f32.mrf.mxu0  ;;  %v12752_v52 = vpop.f32.mrf.mxu1 }
 0x2f3   : > { %v9264_v59 = vadd.f32 %v9263_v47, %v9262_v41  ;;  %v12755_v0 = vadd.f32 %v4774_v17, %v12463_v36  ;;  %v12769_v47 = vld [vmem:[%s10658_s29 + $0x168] ss:$12 sps:$4 sm:$0xff]  }
 0x2f4   : > { %v9265_v49 = vpop.f32.mrf.mxu0  ;;  %6321 = vmatmul.mubr.bf16.gmra.mxu0 %v12743_v15  ;;  %v12758_v25 = vpop.f32.mrf.mxu1  ;;  %10008 = vmatmul.mubr.msk.bf16.gmra.mxu1 %vm661_vm0, %v10511_v31  ;;  %v12776_v31 = vld [vmem:[%s10658_s29 + $0x184] ss:$12 sps:$4 sm:$0xff]  }
 0x2f5   : > { %13597 = vst [vmem:[#allocation6_spill] sm:$0xff] %v12755_v0  ;;  %v4777_v58 = vadd.f32 %v9264_v59, %v4776_v57  ;;  %6328 = vmatprep.mubr.bf16.mxu0 %v12749_v38  ;;  %10011 = vmatprep.mubr.msk.bf16.mxu1 %vm661_vm0, %v10517_v22  ;;  %v10518_v0 = vld [vmem:[%s10658_s29 + $0x218] ss:$12 sps:$4 sm:$0xff]  }
 0x2f6   : > { %v9266_v5 = vpop.f32.mrf.mxu0  ;;  %v12763_v41 = vpop.f32.mrf.mxu1 }
 0x2f7   : > { %v9267_v61 = vadd.f32 %v9266_v5, %v9265_v49  ;;  %v12766_v36 = vadd.f32 %v4777_v58, %v12475_v55 }
 0x2f8   : > { %v9268_v17 = vpop.f32.mrf.mxu0  ;;  %v12772_v57 = vpop.f32.mrf.mxu1 }
 0x2f9   : > { %13598 = vst [vmem:[#allocation18_spill] sm:$0xff] %v12766_v36  ;;  %v4782_v59 = vadd.f32 %v12680_v43, %v9267_v61  ;;  %v12802_v36 = vld [vmem:[%s10658_s29 + $0x19c] ss:$12 sps:$4 sm:$0xff]  }
 0x2fa   : > { %v9269_v7 = vpop.f32.mrf.mxu0  ;;  %v12778_v22 = vpop.f32.mrf.mxu1  ;;  %13601 = vst [vmem:[#allocation19_spill] sm:$0xff] %v12802_v36 }
 0x2fb   : > { %v9270_v24 = vadd.f32 %v9269_v7, %v9268_v17  ;;  %v12781_v49 = vadd.f32 %v4782_v59, %v12453_v48  ;;  %v12796_v59 = vld [vmem:[%s10658_s29 + $0x180] ss:$12 sps:$4 sm:$0xff]  }
 0x2fc   : > { %v9271_v55 = vpop.f32.mrf.mxu0  ;;  %6329 = vmatmul.mubr.bf16.gmra.mxu0 %v12769_v47  ;;  %v12785_v43 = vpop.f32.mrf.mxu1  ;;  %10012 = vmatmul.mubr.msk.bf16.gmra.mxu1 %vm661_vm0, %v10518_v0 }
 0x2fd   : > { %13599 = vst [vmem:[#allocation9_spill] sm:$0xff] %v12781_v49  ;;  %v4785_v58 = vadd.f32 %v12694_v14, %v9270_v24  ;;  %6336 = vmatprep.mubr.bf16.mxu0 %v12776_v31  ;;  %7115 = vmatprep.mubr.bf16.mxu1 %v12548_v34 }
 0x2fe   : > { %v9272_v5 = vpop.f32.mrf.mxu0  ;;  %v12790_v61 = vpop.f32.mrf.mxu1 }
 0x2ff   : > { %v9273_v7 = vadd.f32 %v9272_v5, %v9271_v55  ;;  %v12793_v48 = vadd.f32 %v4785_v58, %v12469_v3 }
 0x300   : > { %v9274_v17 = vpop.f32.mrf.mxu0  ;;  %v12799_v14 = vpop.f32.mrf.mxu1 }
 0x301   : > { %13600 = vst [vmem:[#allocation16_spill] sm:$0xff] %v12793_v48  ;;  %v4790_v24 = vadd.f32 %v9273_v7, %v12710_v56 }
 0x302   : > { %v9275_v0 = vpop.f32.mrf.mxu0  ;;  %v12804_v9 = vpop.f32.mrf.mxu1 }
 0x303   : > { %v9276_v49 = vadd.f32 %v9275_v0, %v9274_v17  ;;  %v12807_v34 = vadd.f32 %v4790_v24, %v12485_v16  ;;  %v12820_v0 = vld [vmem:[%s10658_s29 + $0x198] ss:$12 sps:$4 sm:$0xff]  }
 0x304   : > { %v9277_v55 = vpop.f32.mrf.mxu0  ;;  %6337 = vmatmul.mubr.bf16.gmra.mxu0 %v12796_v59  ;;  %v9353_v58 = vpop.f32.mrf.mxu1  ;;  %7116 = vmatmul.mubr.bf16.vlgmr.msra.gmra.mxu1 %v12565_v40 }
 0x305   : > { %13602 = vst [vmem:[#allocation20_spill] sm:$0xff] %v12807_v34  ;;  %v4793_v3 = vadd.f32 %v9276_v49, %v12726_v18  ;;  %6344 = vmatprep.mubr.bf16.mxu0 %v12802_v36  ;;  %7123 = vmatprep.mubr.bf16.mxu1 %v12569_v30  ;;  %v12824_v34 = vld [vmem:[%s10658_s29 + $0x1b4] ss:$12 sps:$4 sm:$0xff]  }
 0x306   : > { %v9278_v56 = vpop.f32.mrf.mxu0  ;;  %v9354_v7 = vpop.f32.mrf.mxu1 }
 0x307   : > { %v9279_v5 = vadd.f32 %v9278_v56, %v9277_v55  ;;  %v12815_v17 = vadd.f32 %v4793_v3, %v12497_v63  ;;  %v12817_v16 = vadd.f32 %v9354_v7, %v9353_v58 }
 0x308   : > { %v9280_v24 = vpop.f32.mrf.mxu0  ;;  %v9356_v49 = vpop.f32.mrf.mxu1 }
 0x309   : > { %v4798_v18 = vadd.f32 %v12705_v51, %v9279_v5 }
 0x30a   : > { %v9281_v40 = vpop.f32.mrf.mxu0  ;;  %v9357_v36 = vpop.f32.mrf.mxu1 }
 0x30b   : > { %v9282_v48 = vadd.f32 %v9281_v40, %v9280_v24  ;;  %v12827_v30 = vadd.f32 %v4798_v18, %v12480_v37  ;;  %v12829_v55 = vadd.f32 %v9357_v36, %v9356_v49  ;;  %v12842_v24 = vld [vmem:[%s10658_s29 + $0x1b0] ss:$12 sps:$4 sm:$0xff]  }
 0x30c   : > { %v9283_v63 = vpop.f32.mrf.mxu0  ;;  %6345 = vmatmul.mubr.bf16.gmra.mxu0 %v12820_v0  ;;  %v9359_v58 = vpop.f32.mrf.mxu1  ;;  %7124 = vmatmul.mubr.bf16.gmra.mxu1 %v12595_v54 }
 0x30d   : > { %v4801_v3 = vadd.f32 %v12719_v19, %v9282_v48  ;;  %6352 = vmatprep.mubr.bf16.mxu0 %v12824_v34  ;;  %7131 = vmatprep.mubr.bf16.mxu1 %v12599_v53 }
 0x30e   : > { %v9284_v51 = vpop.f32.mrf.mxu0  ;;  %v9360_v5 = vpop.f32.mrf.mxu1 }
 0x30f   : > { %v9285_v56 = vadd.f32 %v9284_v51, %v9283_v63  ;;  %v12837_v37 = vadd.f32 %v4801_v3, %v12492_v1  ;;  %v12839_v36 = vadd.f32 %v9360_v5, %v9359_v58 }
 0x310   : > { %v9286_v7 = vpop.f32.mrf.mxu0  ;;  %v9362_v48 = vpop.f32.mrf.mxu1 }
 0x311   : > { %v4806_v19 = vadd.f32 %v9285_v56, %v12737_v60 }
 0x312   : > { %v9287_v18 = vpop.f32.mrf.mxu0  ;;  %v9363_v49 = vpop.f32.mrf.mxu1 }
 0x313   : > { %v9288_v54 = vadd.f32 %v9287_v18, %v9286_v7  ;;  %v12846_v40 = vadd.f32 %v4806_v19, %v12507_v28  ;;  %v12848_v53 = vadd.f32 %v9363_v49, %v9362_v48 }
 0x314   : > { %v9289_v63 = vpop.f32.mrf.mxu0  ;;  %6353 = vmatmul.mubr.bf16.gmra.mxu0 %v12842_v24  ;;  %v9365_v3 = vpop.f32.mrf.mxu1  ;;  %7132 = vmatmul.mubr.bf16.gmra.mxu1 %v12631_v33 }
 0x315   : > { %v4809_v1 = vadd.f32 %v9288_v54, %v12752_v52  ;;  %6360 = vmatprep.mubr.bf16.mxu0 %v12489_v50  ;;  %7139 = vmatprep.mubr.bf16.mxu1 %v12635_v26  ;;  %v12862_v52 = vld [vmem:[%s10658_s29 + $0x1e4] ss:$12 sps:$4 sm:$0xff]  }
 0x316   : > { %v9290_v60 = vpop.f32.mrf.mxu0  ;;  %v9366_v51 = vpop.f32.mrf.mxu1 }
 0x317   : > { %v9291_v58 = vadd.f32 %v9290_v60, %v9289_v63  ;;  %v12856_v28 = vadd.f32 %v4809_v1, %v12518_v62  ;;  %v12858_v56 = vadd.f32 %v9366_v51, %v9365_v3 }
 0x318   : > { %v9292_v5 = vpop.f32.mrf.mxu0  ;;  %v9368_v19 = vpop.f32.mrf.mxu1 }
 0x319   : > { %v4814_v7 = vadd.f32 %v12732_v27, %v9291_v58  ;;  %v12880_v58 = vld [vmem:[%s10658_s29 + $0x1e0] ss:$12 sps:$4 sm:$0xff]  }
 0x31a   : > { %v9293_v48 = vpop.f32.mrf.mxu0  ;;  %v9369_v18 = vpop.f32.mrf.mxu1 }
 0x31b   : > { %v9294_v33 = vadd.f32 %v9293_v48, %v9292_v5  ;;  %v12865_v50 = vadd.f32 %v4814_v7, %v12503_v45  ;;  %v12867_v26 = vadd.f32 %v9369_v18, %v9368_v19 }
 0x31c   : > { %v9295_v54 = vpop.f32.mrf.mxu0  ;;  %6361 = vmatmul.mubr.bf16.gmra.mxu0 %v12510_v21  ;;  %v9371_v49 = vpop.f32.mrf.mxu1  ;;  %7140 = vmatmul.mubr.bf16.gmra.mxu1 %v12663_v29 }
 0x31d   : > { %v4817_v62 = vadd.f32 %v12745_v6, %v9294_v33  ;;  %6368 = vmatprep.mubr.bf16.mxu0 %v12862_v52  ;;  %7147 = vmatprep.mubr.bf16.mxu1 %v12667_v8 }
 0x31e   : > { %v9296_v27 = vpop.f32.mrf.mxu0  ;;  %v9372_v1 = vpop.f32.mrf.mxu1 }
 0x31f   : > { %v9297_v63 = vadd.f32 %v9296_v27, %v9295_v54  ;;  %v12875_v45 = vadd.f32 %v4817_v62, %v12514_v42  ;;  %v12877_v3 = vadd.f32 %v9372_v1, %v9371_v49 }
 0x320   : > { %v9298_v60 = vpop.f32.mrf.mxu0  ;;  %v9374_v6 = vpop.f32.mrf.mxu1 }
 0x321   : > { %v4822_v21 = vadd.f32 %v9297_v63, %v12763_v41 }
 0x322   : > { %v9299_v51 = vpop.f32.mrf.mxu0  ;;  %v9375_v5 = vpop.f32.mrf.mxu1 }
 0x323   : > { %v9300_v29 = vadd.f32 %v9299_v51, %v9298_v60  ;;  %v12884_v7 = vadd.f32 %v4822_v21, %v12525_v2  ;;  %v12886_v8 = vadd.f32 %v9375_v5, %v9374_v6 }
 0x324   : > { %v9301_v19 = vpop.f32.mrf.mxu0  ;;  %6369 = vmatmul.mubr.bf16.gmra.mxu0 %v12880_v58  ;;  %v9377_v48 = vpop.f32.mrf.mxu1  ;;  %7148 = vmatmul.mubr.bf16.gmra.mxu1 %v12692_v20 }
 0x325   : > { %v4825_v42 = vadd.f32 %v9300_v29, %v12778_v22  ;;  %6376 = vmatprep.mubr.bf16.mxu0 %v12529_v32  ;;  %7155 = vmatprep.mubr.bf16.mxu1 %v12698_v23  ;;  %v12900_v22 = vld [vmem:[%s10658_s29 + $0x214] ss:$12 sps:$4 sm:$0xff]  }
 0x326   : > { %v9302_v41 = vpop.f32.mrf.mxu0  ;;  %v9378_v18 = vpop.f32.mrf.mxu1 }
 0x327   : > { %v9303_v33 = vadd.f32 %v9302_v41, %v9301_v19  ;;  %v12894_v2 = vadd.f32 %v4825_v42, %v12536_v4  ;;  %v12896_v54 = vadd.f32 %v9378_v18, %v9377_v48  ;;  %v12918_v19 = vld [vmem:[%s10658_s29 + $0x210] ss:$12 sps:$4 sm:$0xff]   ;;  %v10537_v42 = vld [vmem:[%s10658_s29 + $0xc8] ss:$12 sps:$4 sm:$0xff]  }
 0x328   : > { %v9304_v62 = vpop.f32.mrf.mxu0  ;;  %v9380_v27 = vpop.f32.mrf.mxu1 }
 0x329   : > { %v4830_v49 = vadd.f32 %v12758_v25, %v9303_v33 }
 0x32a   : > { %v9305_v63 = vpop.f32.mrf.mxu0  ;;  %v9381_v23 = vpop.f32.mrf.mxu1 }
 0x32b   : > { %v12903_v20 = vadd.f32 %v4830_v49, %v12532_v39  ;;  %v9306_v32 = vadd.f32 %v9305_v63, %v9304_v62  ;;  %v12905_v1 = vadd.f32 %v9381_v23, %v9380_v27  ;;  %v10538_v23 = vld [vmem:[%s10658_s29 + $0xe0] ss:$12 sps:$4 sm:$0xff]  }
 0x32c   : > { %v9307_v60 = vpop.f32.mrf.mxu0  ;;  %6377 = vmatmul.mubr.bf16.gmra.mxu0 %v12545_v11  ;;  %v9383_v21 = vpop.f32.mrf.mxu1  ;;  %7156 = vmatmul.mubr.bf16.gmra.mxu1 %v12716_v13 }
 0x32d   : > { %v4833_v4 = vadd.f32 %v12772_v57, %v9306_v32  ;;  %6384 = vmatprep.mubr.bf16.mxu0 %v12900_v22  ;;  %7163 = vmatprep.mubr.bf16.mxu1 %v12723_v12 }
 0x32e   : > { %v9308_v25 = vpop.f32.mrf.mxu0  ;;  %v9384_v51 = vpop.f32.mrf.mxu1 }
 0x32f   : > { %v12913_v39 = vadd.f32 %v4833_v4, %v12541_v35  ;;  %v9309_v6 = vadd.f32 %v9308_v25, %v9307_v60  ;;  %v12915_v29 = vadd.f32 %v9384_v51, %v9383_v21  ;;  %v10539_v4 = vld [vmem:[%s10658_s29 + $0xf8] ss:$12 sps:$4 sm:$0xff]  }
 0x330   : > { %v9310_v5 = vpop.f32.mrf.mxu0  ;;  %v9386_v57 = vpop.f32.mrf.mxu1 }
 0x331   : > { %v4838_v11 = vadd.f32 %v9309_v6, %v12790_v61 }
 0x332   : > { %v9311_v13 = vpop.f32.mrf.mxu0  ;;  %v9387_v41 = vpop.f32.mrf.mxu1 }
 0x333   : > { %v9312_v48 = vadd.f32 %v9311_v13, %v9310_v5  ;;  %v12923_v12 = vadd.f32 %v4838_v11, %v12555_v44  ;;  %v12925_v35 = vadd.f32 %v9387_v41, %v9386_v57  ;;  %v13603_v11 = vld [vmem:[#allocation17_spill] sm:$0xff] }
 0x334   : > { %v9313_v33 = vpop.f32.mrf.mxu0  ;;  %6385 = vmatmul.mubr.bf16.gmra.mxu0 %v12918_v19  ;;  %v9389_v62 = vpop.f32.mrf.mxu1  ;;  %7164 = vmatmul.mubr.bf16.gmra.mxu1 %v12743_v15 }
 0x335   : > { %v4841_v18 = vadd.f32 %v9312_v48, %v12804_v9  ;;  %10019 = vmatprep.mubr.msk.bf16.mxu0 %vm661_vm0, %v10537_v42  ;;  %7171 = vmatprep.mubr.bf16.mxu1 %v12749_v38  ;;  %v13604_v42 = vld [vmem:[#allocation3_spill] sm:$0xff] }
 0x336   : > { %v9314_v61 = vpop.f32.mrf.mxu0  ;;  %v9390_v27 = vpop.f32.mrf.mxu1 }
 0x337   : > { %v9315_v49 = vadd.f32 %v9314_v61, %v9313_v33  ;;  %v12933_v44 = vadd.f32 %v4841_v18, %v12562_v10  ;;  %v12935_v63 = vadd.f32 %v9390_v27, %v9389_v62  ;;  %v13605_v18 = vld [vmem:[#allocation15_spill] sm:$0xff] }
 0x338   : > { %v9316_v32 = vpop.f32.mrf.mxu0  ;;  %v9392_v9 = vpop.f32.mrf.mxu1  ;;  %v13606_v27 = vld [vmem:[#allocation11_spill] sm:$0xff] }
 0x339   : > { %v4846_v60 = vadd.f32 %v12785_v43, %v9315_v49 }
 0x33a   : > { %v9317_v21 = vpop.f32.mrf.mxu0  ;;  %v9393_v6 = vpop.f32.mrf.mxu1 }
 0x33b   : > { %v12941_v15 = vadd.f32 %v4846_v60, %v12579_v46  ;;  %v9318_v25 = vadd.f32 %v9317_v21, %v9316_v32  ;;  %v12943_v38 = vadd.f32 %v9393_v6, %v9392_v9 }
 0x33c   : > { %v9949_v51 = vpop.f32.mrf.mxu0  ;;  %10020 = vmatmul.mubr.msk.bf16.vlgmr.msra.gmra.mxu0 %vm661_vm0, %v10538_v23  ;;  %v9395_v5 = vpop.f32.mrf.mxu1  ;;  %7172 = vmatmul.mubr.bf16.gmra.mxu1 %v12769_v47 }
 0x33d   : > { %v4849_v10 = vadd.f32 %v12799_v14, %v9318_v25  ;;  %v5585_v43 = vadd.f32 %v9949_v51, %v12839_v36  ;;  %10023 = vmatprep.mubr.msk.bf16.mxu0 %vm661_vm0, %v10539_v4  ;;  %7179 = vmatprep.mubr.bf16.mxu1 %v12776_v31  ;;  %v10540_v36 = vld [vmem:[%s10658_s29 + $0x110] ss:$12 sps:$4 sm:$0xff]   ;;  %v10541_v31 = vld [vmem:[%s10658_s29 + $0x128] ss:$12 sps:$4 sm:$0xff]  }
 0x33e   : > { %v5576_v46 = vpop.f32.mrf.mxu0  ;;  %v9396_v48 = vpop.f32.mrf.mxu1  ;;  %v13607_v4 = vld [vmem:[#allocation13_spill] sm:$0xff]  ;;  %v13608_v51 = vld [vmem:[#allocation19_spill] sm:$0xff] }
 0x33f   : > { %v12952_v57 = vadd.f32 %v4849_v10, %v13603_v11  ;;  %v12955_v13 = vadd.f32 %v5585_v43, %v13604_v42  ;;  %v5577_v14 = vadd.f32 %v12817_v16, %v5576_v46  ;;  %v12958_v41 = vadd.f32 %v9396_v48, %v9395_v5  ;;  %v10542_v42 = vld [vmem:[%s10658_s29 + $0x140] ss:$12 sps:$4 sm:$0xff]  }
 0x340   : > { %v9950_v33 = vpop.f32.mrf.mxu0  ;;  %v9398_v62 = vpop.f32.mrf.mxu1  ;;  %v13610_v48 = vld [vmem:[#allocation14_spill] sm:$0xff] }
 0x341   : > { %v12962_v47 = vadd.f32 %v5577_v14, %v13605_v18  ;;  %v5588_v61 = vadd.f32 %v9950_v33, %v12848_v53  ;;  %v10543_v33 = vld [vmem:[%s10658_s29 + $0x158] ss:$12 sps:$4 sm:$0xff]   ;;  %v13611_v18 = vld [vmem:[#allocation7_spill] sm:$0xff] }
 0x342   : > { %v5579_v49 = vpop.f32.mrf.mxu0  ;;  %v9399_v23 = vpop.f32.mrf.mxu1 }
 0x343   : > { %v12967_v32 = vadd.f32 %v5588_v61, %v13606_v27  ;;  %v5580_v60 = vadd.f32 %v12829_v55, %v5579_v49  ;;  %v12970_v16 = vadd.f32 %v9399_v23, %v9398_v62  ;;  %v13609_v55 = vld [vmem:[#allocation12_spill] sm:$0xff]  ;;  %v13612_v27 = vld [vmem:[#allocation5_spill] sm:$0xff] }
 0x344   : > { %v9953_v9 = vpop.f32.mrf.mxu0  ;;  %10024 = vmatmul.mubr.msk.bf16.gmra.mxu0 %vm661_vm0, %v10540_v36  ;;  %v9401_v25 = vpop.f32.mrf.mxu1  ;;  %7180 = vmatmul.mubr.bf16.gmra.mxu1 %v12796_v59 }
 0x345   : > { %v12974_v21 = vadd.f32 %v5580_v60, %v13607_v4  ;;  %v5601_v53 = vadd.f32 %v9953_v9, %v12877_v3  ;;  %10027 = vmatprep.mubr.msk.bf16.mxu0 %vm661_vm0, %v10541_v31  ;;  %7187 = vmatprep.mubr.bf16.mxu1 %v13608_v51 }
 0x346   : > { %v5592_v6 = vpop.f32.mrf.mxu0  ;;  %v9402_v5 = vpop.f32.mrf.mxu1 }
 0x347   : > { %v12981_v10 = vadd.f32 %v5601_v53, %v13609_v55  ;;  %v5593_v43 = vadd.f32 %v12858_v56, %v5592_v6  ;;  %v12984_v46 = vadd.f32 %v9402_v5, %v9401_v25  ;;  %v10544_v55 = vld [vmem:[%s10658_s29 + $0x170] ss:$12 sps:$4 sm:$0xff]  }
 0x348   : > { %v9954_v11 = vpop.f32.mrf.mxu0  ;;  %v9404_v3 = vpop.f32.mrf.mxu1  ;;  %v13614_v5 = vld [vmem:[#allocation4_spill] sm:$0xff] }
 0x349   : > { %v12988_v14 = vadd.f32 %v5593_v43, %v13610_v48  ;;  %v5604_v59 = vadd.f32 %v9954_v11, %v12886_v8  ;;  %v10548_v11 = vld [vmem:[%s10658_s29 + $0x188] ss:$12 sps:$4 sm:$0xff]   ;;  %v10547_v48 = vld [vmem:[%s10658_s29 + $0x1cc] ss:$12 sps:$4 sm:$0xff]  }
 0x34a   : > { %v5595_v36 = vpop.f32.mrf.mxu0  ;;  %v9405_v61 = vpop.f32.mrf.mxu1 }
 0x34b   : > { %v12993_v62 = vadd.f32 %v5604_v59, %v13611_v18  ;;  %v5596_v31 = vadd.f32 %v12867_v26, %v5595_v36  ;;  %v12996_v56 = vadd.f32 %v9405_v61, %v9404_v3  ;;  %v13613_v26 = vld [vmem:[#allocation2_spill] sm:$0xff]  ;;  %v13616_v18 = vld [vmem:[#allocation8_spill] sm:$0xff] }
 0x34c   : > { %v9957_v49 = vpop.f32.mrf.mxu0  ;;  %10028 = vmatmul.mubr.msk.bf16.gmra.mxu0 %vm661_vm0, %v10542_v42  ;;  %v9407_v60 = vpop.f32.mrf.mxu1  ;;  %7188 = vmatmul.mubr.bf16.gmra.mxu1 %v12820_v0  ;;  %v13615_v3 = vld [vmem:[#allocation10_spill] sm:$0xff] }
 0x34d   : > { %v13000_v23 = vadd.f32 %v5596_v31, %v13612_v27  ;;  %v5617_v8 = vadd.f32 %v9957_v49, %v12915_v29  ;;  %10031 = vmatprep.mubr.msk.bf16.mxu0 %vm661_vm0, %v10543_v33  ;;  %7195 = vmatprep.mubr.bf16.mxu1 %v12824_v34 }
 0x34e   : > { %v5608_v9 = vpop.f32.mrf.mxu0  ;;  %v9408_v25 = vpop.f32.mrf.mxu1 }
 0x34f   : > { %v13007_v4 = vadd.f32 %v5617_v8, %v13613_v26  ;;  %v5609_v53 = vadd.f32 %v12896_v54, %v5608_v9  ;;  %v9409_v6 = vadd.f32 %v9408_v25, %v9407_v60  ;;  %v10549_v25 = vld [vmem:[%s10658_s29 + $0x1a0] ss:$12 sps:$4 sm:$0xff]  }
 0x350   : > { %v9958_v51 = vpop.f32.mrf.mxu0  ;;  %v9410_v29 = vpop.f32.mrf.mxu1 }
 0x351   : > { %v13012_v43 = vadd.f32 %v5609_v53, %v13614_v5  ;;  %v5620_v0 = vadd.f32 %v9958_v51, %v12925_v35  ;;  %v13618_v53 = vld [vmem:[#allocation6_spill] sm:$0xff] }
 0x352   : > { %v5611_v42 = vpop.f32.mrf.mxu0  ;;  %v9411_v59 = vpop.f32.mrf.mxu1  ;;  %v10550_v5 = vld [vmem:[%s10658_s29 + $0x1b8] ss:$12 sps:$4 sm:$0xff]  }
 0x353   : > { %v13018_v34 = vadd.f32 %v5620_v0, %v13615_v3  ;;  %v5612_v33 = vadd.f32 %v12905_v1, %v5611_v42  ;;  %v9412_v54 = vadd.f32 %v9411_v59, %v9410_v29  ;;  %v13617_v1 = vld [vmem:[#allocation9_spill] sm:$0xff]  ;;  %v13619_v0 = vld [vmem:[#allocation16_spill] sm:$0xff]  ;;  %v13620_v59 = vld [vmem:[#allocation18_spill] sm:$0xff] }
 0x354   : > { %v9961_v36 = vpop.f32.mrf.mxu0  ;;  %10032 = vmatmul.mubr.msk.bf16.gmra.mxu0 %vm661_vm0, %v10544_v55  ;;  %v9413_v31 = vpop.f32.mrf.mxu1  ;;  %7196 = vmatmul.mubr.bf16.gmra.mxu1 %v12842_v24  ;;  %v10545_v24 = vld [vmem:[%s10658_s29 + $0x1c8] ss:$12 sps:$4 sm:$0xff]  }
 0x355   : > { %v13023_v61 = vadd.f32 %v5612_v33, %v13616_v18  ;;  %v5633_v35 = vadd.f32 %v9961_v36, %v12958_v41  ;;  %10035 = vmatprep.mubr.msk.bf16.mxu0 %vm661_vm0, %v10548_v11  ;;  %7203 = vmatprep.mubr.bf16.mxu1 %v10547_v48 }
 0x356   : > { %v5624_v49 = vpop.f32.mrf.mxu0  ;;  %v9414_v60 = vpop.f32.mrf.mxu1 }
 0x357   : > { %v13029_v27 = vadd.f32 %v5633_v35, %v13617_v1  ;;  %v5625_v8 = vadd.f32 %v12935_v63, %v5624_v49  ;;  %v9415_v9 = vadd.f32 %v9414_v60, %v9413_v31  ;;  %v10551_v60 = vld [vmem:[%s10658_s29 + $0x1d0] ss:$12 sps:$4 sm:$0xff]  }
 0x358   : > { %v9962_v26 = vpop.f32.mrf.mxu0  ;;  %v9416_v55 = vpop.f32.mrf.mxu1 }
 0x359   : > { %v13034_v51 = vadd.f32 %v5625_v8, %v13618_v53  ;;  %v5636_v41 = vadd.f32 %v9962_v26, %v12970_v16  ;;  %v13621_v8 = vld [vmem:[#allocation20_spill] sm:$0xff] }
 0x35a   : > { %v5627_v29 = vpop.f32.mrf.mxu0  ;;  %v9417_v42 = vpop.f32.mrf.mxu1  ;;  %v10555_v53 = vld [vmem:[%s10658_s29 + $0x1e8] ss:$12 sps:$4 sm:$0xff]  }
 0x35b   : > { %v13040_v11 = vadd.f32 %v5636_v41, %v13619_v0  ;;  %v5628_v48 = vadd.f32 %v12943_v38, %v5627_v29  ;;  %v9418_v63 = vadd.f32 %v9417_v42, %v9416_v55  ;;  %v10554_v41 = vld [vmem:[%s10658_s29 + $0x1fc] ss:$12 sps:$4 sm:$0xff]  }
 0x35c   : > { %v9965_v3 = vpop.f32.mrf.mxu0  ;;  %10036 = vmatmul.mubr.msk.bf16.gmra.mxu0 %vm661_vm0, %v10549_v25  ;;  %v9419_v36 = vpop.f32.mrf.mxu1  ;;  %7204 = vmatmul.mubr.bf16.gmra.mxu1 %v10545_v24 }
 0x35d   : > { %v13045_v33 = vadd.f32 %v5628_v48, %v13620_v59  ;;  %v5649_v16 = vadd.f32 %v9965_v3, %v9409_v6  ;;  %10039 = vmatprep.mubr.msk.bf16.mxu0 %vm661_vm0, %v10550_v5  ;;  %7211 = vmatprep.mubr.bf16.mxu1 %v12862_v52 }
 0x35e   : > { %v5640_v18 = vpop.f32.mrf.mxu0  ;;  %v9420_v31 = vpop.f32.mrf.mxu1 }
 0x35f   : > { %v13050_v38 = vadd.f32 %v5649_v16, %v12827_v30  ;;  %v5641_v35 = vadd.f32 %v12984_v46, %v5640_v18  ;;  %v9421_v49 = vadd.f32 %v9420_v31, %v9419_v36  ;;  %v10556_v36 = vld [vmem:[%s10658_s29 + $0x200] ss:$12 sps:$4 sm:$0xff]   ;;  %v10552_v31 = vld [vmem:[%s10658_s29 + $0x1f8] ss:$12 sps:$4 sm:$0xff]  }
 0x360   : > { %v9966_v1 = vpop.f32.mrf.mxu0  ;;  %v9422_v6 = vpop.f32.mrf.mxu1 }
 0x361   : > { %v13055_v26 = vadd.f32 %v5641_v35, %v13621_v8  ;;  %v5652_v25 = vadd.f32 %v9966_v1, %v9412_v54  ;;  %v10557_v35 = vld [vmem:[%s10658_s29 + $0x218] ss:$12 sps:$4 sm:$0xff]  }
 0x362   : > { %v5643_v55 = vpop.f32.mrf.mxu0  ;;  %v9423_v52 = vpop.f32.mrf.mxu1 }
 0x363   : > { %v13060_v24 = vadd.f32 %v5652_v25, %v12837_v37  ;;  %v5644_v30 = vadd.f32 %v12996_v56, %v5643_v55  ;;  %v9424_v5 = vadd.f32 %v9423_v52, %v9422_v6 }
 0x364   : > { %v9969_v46 = vpop.f32.mrf.mxu0  ;;  %10040 = vmatmul.mubr.msk.bf16.gmra.mxu0 %vm661_vm0, %v10551_v60  ;;  %v9425_v0 = vpop.f32.mrf.mxu1  ;;  %7212 = vmatmul.mubr.bf16.gmra.mxu1 %v12880_v58 }
 0x365   : > { %v13065_v29 = vadd.f32 %v5644_v30, %v12815_v17  ;;  %v5665_v54 = vadd.f32 %v9969_v46, %v9421_v49  ;;  %10043 = vmatprep.mubr.msk.bf16.mxu0 %vm661_vm0, %v10555_v53  ;;  %7219 = vmatprep.mubr.bf16.mxu1 %v10554_v41 }
 0x366   : > { %v5656_v37 = vpop.f32.mrf.mxu0  ;;  %v9426_v42 = vpop.f32.mrf.mxu1 }
 0x367   : > { %v13070_v56 = vadd.f32 %v5665_v54, %v12865_v50  ;;  %v5657_v48 = vadd.f32 %v9415_v9, %v5656_v37  ;;  %v9427_v3 = vadd.f32 %v9426_v42, %v9425_v0 }
 0x368   : > { %v9970_v59 = vpop.f32.mrf.mxu0  ;;  %v9428_v16 = vpop.f32.mrf.mxu1 }
 0x369   : > { %v13074_v17 = vadd.f32 %v5657_v48, %v12846_v40  ;;  %v5668_v18 = vadd.f32 %v9970_v59, %v9424_v5 }
 0x36a   : > { %v5659_v58 = vpop.f32.mrf.mxu0  ;;  %v9429_v1 = vpop.f32.mrf.mxu1 }
 0x36b   : > { %v13079_v49 = vadd.f32 %v5668_v18, %v12875_v45  ;;  %v5660_v50 = vadd.f32 %v9418_v63, %v5659_v58  ;;  %v9430_v60 = vadd.f32 %v9429_v1, %v9428_v16  ;;  %v10558_v63 = vld [vmem:[%s10658_s29 + $0x230] ss:$12 sps:$4 sm:$0xff]  }
 0x36c   : > { %v9973_v8 = vpop.f32.mrf.mxu0  ;;  %10044 = vmatmul.mubr.msk.bf16.gmra.mxu0 %vm661_vm0, %v10556_v36  ;;  %v9431_v40 = vpop.f32.mrf.mxu1  ;;  %7220 = vmatmul.mubr.bf16.gmra.mxu1 %v10552_v31  ;;  %v10559_v31 = vld [vmem:[%s10658_s29 + $0x228] ss:$12 sps:$4 sm:$0xff]  }
 0x36d   : > { %v13083_v9 = vadd.f32 %v5660_v50, %v12856_v28  ;;  %10047 = vmatprep.mubr.msk.bf16.mxu0 %vm661_vm0, %v10557_v35  ;;  %7227 = vmatprep.mubr.bf16.mxu1 %v12900_v22  ;;  %v10561_v28 = vld [vmem:[%s10658_s29 + $0x22c] ss:$12 sps:$4 sm:$0xff]   ;;  %s8556_s29 = sshll.u32 %s13641_s13, 8 }
 0x36e   : > { %v5672_v6 = vpop.f32.mrf.mxu0  ;;  %v9432_v45 = vpop.f32.mrf.mxu1  ;;  %s13318_s6 = scalar_lea.vmem %s13495_s3, %s8556_s29 }
 0x36f   : > { %v5673_v25 = vadd.f32 %v9427_v3, %v5672_v6  ;;  %v9433_v53 = vadd.f32 %v9432_v45, %v9431_v40 }
 0x370   : > { %v9974_v55 = vpop.f32.mrf.mxu0  ;;  %v9434_v52 = vpop.f32.mrf.mxu1 }
 0x371   : > { %v13089_v41 = vadd.f32 %v5673_v25, %v12884_v7  ;;  %v5681_v30 = vadd.f32 %v9973_v8, %v9433_v53 }
 0x372   : > { %v5675_v5 = vpop.f32.mrf.mxu0  ;;  %v9435_v46 = vpop.f32.mrf.mxu1 }
 0x373   : > { %v5676_v0 = vadd.f32 %v9430_v60, %v5675_v5  ;;  %v13093_v54 = vadd.f32 %v5681_v30, %v12903_v20  ;;  %v9436_v37 = vadd.f32 %v9435_v46, %v9434_v52 }
 0x374   : > { %v9977_v22 = vpop.f32.mrf.mxu0  ;;  %10048 = vmatmul.mubr.msk.bf16.gmra.mxu0 %vm661_vm0, %v10558_v63  ;;  %v9437_v48 = vpop.f32.mrf.mxu1  ;;  %7228 = vmatmul.mubr.bf16.gmra.mxu1 %v12918_v19 }
 0x375   : > { %v13097_v42 = vadd.f32 %v5676_v0, %v12894_v2  ;;  %v5684_v7 = vadd.f32 %v9974_v55, %v9436_v37  ;;  %7235 = vmatprep.mubr.bf16.mxu1 %v10561_v28 }
 0x376   : > { %v5688_v3 = vpop.f32.mrf.mxu0  ;;  %v9438_v59 = vpop.f32.mrf.mxu1 }
 0x377   : > { %v13101_v36 = vadd.f32 %v5684_v7, %v12913_v39  ;;  %v9439_v16 = vadd.f32 %v9438_v59, %v9437_v48 }
 0x378   : > { %v9978_v20 = vpop.f32.mrf.mxu0  ;;  %v9440_v18 = vpop.f32.mrf.mxu1 }
 0x379   : > { %v5689_v35 = vadd.f32 %v9439_v16, %v5688_v3 }
 0x37a   : > { %v5691_v58 = vpop.f32.mrf.mxu0  ;;  %v9441_v1 = vpop.f32.mrf.mxu1 }
 0x37b   : > { %v13105_v2 = vadd.f32 %v5689_v35, %v12923_v12  ;;  %v9442_v50 = vadd.f32 %v9441_v1, %v9440_v18 }
 0x37c   : > { %v9483_v60 = vpop.f32.mrf.mxu0  ;;  %v9443_v19 = vpop.f32.mrf.mxu1  ;;  %7236 = vmatmul.mubr.bf16.gmra.mxu1 %v10559_v31 }
 0x37d   : > { %v5692_v8 = vadd.f32 %v9442_v50, %v5691_v58 }
 0x37e   : > { %v9484_v40 = vpop.f32.mrf.mxu0  ;;  %v9444_v6 = vpop.f32.mrf.mxu1 }
 0x37f   : > { %v9485_v45 = vadd.f32 %v9484_v40, %v9483_v60  ;;  %v13108_v39 = vadd.f32 %v5692_v8, %v12933_v44  ;;  %v9445_v25 = vadd.f32 %v9444_v6, %v9443_v19 }
 0x380   : > { %v9486_v53 = vpop.f32.mrf.mxu0  ;;  %v9446_v55 = vpop.f32.mrf.mxu1 }
 0x381   : > { %v5697_v63 = vadd.f32 %v9977_v22, %v9445_v25 }
 0x382   : > { %v9487_v52 = vpop.f32.mrf.mxu0  ;;  %v9447_v30 = vpop.f32.mrf.mxu1 }
 0x383   : > { %v9488_v5 = vadd.f32 %v9487_v52, %v9486_v53  ;;  %v13111_v12 = vadd.f32 %v5697_v63, %v12941_v15  ;;  %v9448_v28 = vadd.f32 %v9447_v30, %v9446_v55 }
 0x384   : > { %v9489_v46 = vpop.f32.mrf.mxu0  ;;  %v9985_v0 = vpop.f32.mrf.mxu1 }
 0x385   : > { %v5700_v37 = vadd.f32 %v9978_v20, %v9448_v28 }
 0x386   : > { %v9490_v48 = vpop.f32.mrf.mxu0  ;;  %v6427_v3 = vpop.f32.mrf.mxu1 }
 0x387   : > { %v9491_v7 = vadd.f32 %v9490_v48, %v9489_v46  ;;  %v13114_v44 = vadd.f32 %v5700_v37, %v12952_v57  ;;  %v6428_v59 = vadd.f32 %v9485_v45, %v6427_v3 }
 0x388   : > { %v9492_v16 = vpop.f32.mrf.mxu0  ;;  %v9986_v22 = vpop.f32.mrf.mxu1 }
 0x389   : > { %v6436_v18 = vadd.f32 %v9985_v0, %v9491_v7  ;;  %v13117_v31 = vadd.f32 %v6428_v59, %v12962_v47 }
 0x38a   : > { %v9493_v35 = vpop.f32.mrf.mxu0  ;;  %v6430_v58 = vpop.f32.mrf.mxu1 }
 0x38b   : > { %v9494_v15 = vadd.f32 %v9493_v35, %v9492_v16  ;;  %v13120_v1 = vadd.f32 %v6436_v18, %v12955_v13  ;;  %v6431_v20 = vadd.f32 %v9488_v5, %v6430_v58 }
 0x38c   : > { %v9495_v50 = vpop.f32.mrf.mxu0  ;;  %v9989_v19 = vpop.f32.mrf.mxu1 }
 0x38d   : > { %v6439_v60 = vadd.f32 %v9986_v22, %v9494_v15  ;;  %v13123_v57 = vadd.f32 %v6431_v20, %v12974_v21 }
 0x38e   : > { %v9496_v8 = vpop.f32.mrf.mxu0  ;;  %v6443_v6 = vpop.f32.mrf.mxu1 }
 0x38f   : > { %v9497_v40 = vadd.f32 %v9496_v8, %v9495_v50  ;;  %v13126_v45 = vadd.f32 %v6439_v60, %v12967_v32 }
 0x390   : > { %v9498_v47 = vpop.f32.mrf.mxu0  ;;  %v9990_v53 = vpop.f32.mrf.mxu1 }
 0x391   : > { %v6444_v25 = vadd.f32 %v9497_v40, %v6443_v6 }
 0x392   : > { %v9499_v55 = vpop.f32.mrf.mxu0  ;;  %v6446_v52 = vpop.f32.mrf.mxu1 }
 0x393   : > { %v13129_v13 = vadd.f32 %v6444_v25, %v12988_v14  ;;  %v9500_v63 = vadd.f32 %v9499_v55, %v9498_v47 }
 0x394   : > { %v9501_v30 = vpop.f32.mrf.mxu0  ;;  %v9993_v28 = vpop.f32.mrf.mxu1 }
 0x395   : > { %v6447_v5 = vadd.f32 %v9500_v63, %v6446_v52 }
 0x396   : > { %v9502_v21 = vpop.f32.mrf.mxu0  ;;  %v6459_v37 = vpop.f32.mrf.mxu1 }
 0x397   : > { %v13132_v46 = vadd.f32 %v6447_v5, %v13000_v23  ;;  %v9503_v0 = vadd.f32 %v9502_v21, %v9501_v30 }
 0x398   : > { %v9504_v32 = vpop.f32.mrf.mxu0  ;;  %v9994_v7 = vpop.f32.mrf.mxu1 }
 0x399   : > { %v6452_v48 = vadd.f32 %v9989_v19, %v9503_v0 }
 0x39a   : > { %v9505_v3 = vpop.f32.mrf.mxu0  ;;  %v6462_v16 = vpop.f32.mrf.mxu1 }
 0x39b   : > { %v9506_v59 = vadd.f32 %v9505_v3, %v9504_v32  ;;  %v13135_v14 = vadd.f32 %v6452_v48, %v12981_v10 }
 0x39c   : > { %v9507_v18 = vpop.f32.mrf.mxu0  ;;  %v9997_v35 = vpop.f32.mrf.mxu1 }
 0x39d   : > { %v6455_v22 = vadd.f32 %v9990_v53, %v9506_v59 }
 0x39e   : > { %v9508_v15 = vpop.f32.mrf.mxu0  ;;  %v6475_v20 = vpop.f32.mrf.mxu1 }
 0x39f   : > { %v9509_v58 = vadd.f32 %v9508_v15, %v9507_v18  ;;  %v13138_v23 = vadd.f32 %v6455_v22, %v12993_v62 }
 0x3a0   : > { %v9510_v50 = vpop.f32.mrf.mxu0  ;;  %v9998_v8 = vpop.f32.mrf.mxu1 }
 0x3a1   : > { %v6460_v60 = vadd.f32 %v9509_v58, %v6459_v37 }
 0x3a2   : > { %v9511_v19 = vpop.f32.mrf.mxu0  ;;  %v6478_v6 = vpop.f32.mrf.mxu1 }
 0x3a3   : > { %v9512_v40 = vadd.f32 %v9511_v19, %v9510_v50  ;;  %v13141_v47 = vadd.f32 %v6460_v60, %v13012_v43 }
 0x3a4   : > { %v9513_v10 = vpop.f32.mrf.mxu0  ;;  %v10001_v55 = vpop.f32.mrf.mxu1 }
 0x3a5   : > { %v6463_v25 = vadd.f32 %v9512_v40, %v6462_v16 }
 0x3a6   : > { %v9514_v53 = vpop.f32.mrf.mxu0  ;;  %v6491_v52 = vpop.f32.mrf.mxu1 }
 0x3a7   : > { %v9515_v63 = vadd.f32 %v9514_v53, %v9513_v10  ;;  %v13144_v30 = vadd.f32 %v6463_v25, %v13023_v61 }
 0x3a8   : > { %v9516_v62 = vpop.f32.mrf.mxu0  ;;  %v10002_v21 = vpop.f32.mrf.mxu1 }
 0x3a9   : > { %v6468_v5 = vadd.f32 %v9993_v28, %v9515_v63 }
 0x3aa   : > { %v9517_v0 = vpop.f32.mrf.mxu0  ;;  %v6494_v32 = vpop.f32.mrf.mxu1 }
 0x3ab   : > { %v9518_v37 = vadd.f32 %v9517_v0, %v9516_v62  ;;  %v13147_v48 = vadd.f32 %v6468_v5, %v13007_v4 }
 0x3ac   : > { %v9519_v43 = vpop.f32.mrf.mxu0  ;;  %v13149_v59 = vpop.f32.mrf.mxu1 }
 0x3ad   : > { %v6471_v3 = vadd.f32 %v9994_v7, %v9518_v37 }
 0x3ae   : > { %v9520_v16 = vpop.f32.mrf.mxu0  ;;  %v6507_v22 = vpop.f32.mrf.mxu1 }
 0x3af   : > { %v9521_v18 = vadd.f32 %v9520_v16, %v9519_v43  ;;  %v13152_v15 = vadd.f32 %v6471_v3, %v13018_v34 }
 0x3b0   : > { %v9522_v61 = vpop.f32.mrf.mxu0  ;;  %v13154_v28 = vpop.f32.mrf.mxu1 }
 0x3b1   : > { %v6476_v58 = vadd.f32 %v9521_v18, %v6475_v20 }
 0x3b2   : > { %v9523_v50 = vpop.f32.mrf.mxu0  ;;  %v6510_v19 = vpop.f32.mrf.mxu1 }
 0x3b3   : > { %v9524_v60 = vadd.f32 %v9523_v50, %v9522_v61  ;;  %v13157_v4 = vadd.f32 %v6476_v58, %v13034_v51 }
 0x3b4   : > { %v9525_v40 = vpop.f32.mrf.mxu0  ;;  %v13159_v10 = vpop.f32.mrf.mxu1 }
 0x3b5   : > { %v6479_v7 = vadd.f32 %v9524_v60, %v6478_v6 }
 0x3b6   : > { %v9526_v25 = vpop.f32.mrf.mxu0  ;;  %v13161_v63 = vpop.f32.mrf.mxu1 }
 0x3b7   : > { %v9527_v53 = vadd.f32 %v9526_v25, %v9525_v40  ;;  %v13164_v34 = vadd.f32 %v6479_v7, %v13045_v33 }
 0x3b8   : > { %v9528_v20 = vpop.f32.mrf.mxu0  ;;  %v13166_v5 = vpop.f32.mrf.mxu1 }
 0x3b9   : > { %v6484_v62 = vadd.f32 %v9997_v35, %v9527_v53 }
 0x3ba   : > { %v9529_v0 = vpop.f32.mrf.mxu0  ;;  %v13168_v43 = vpop.f32.mrf.mxu1 }
 0x3bb   : > { %v9530_v37 = vadd.f32 %v9529_v0, %v9528_v20  ;;  %v13171_v51 = vadd.f32 %v6484_v62, %v13029_v27 }
 0x3bc   : > { %v9531_v6 = vpop.f32.mrf.mxu0  ;;  %v13173_v16 = vpop.f32.mrf.mxu1 }
 0x3bd   : > { %v6487_v3 = vadd.f32 %v9998_v8, %v9530_v37 }
 0x3be   : > { %v9532_v18 = vpop.f32.mrf.mxu0  ;;  %v13175_v58 = vpop.f32.mrf.mxu1 }
 0x3bf   : > { %v9533_v61 = vadd.f32 %v9532_v18, %v9531_v6  ;;  %v13178_v33 = vadd.f32 %v6487_v3, %v13040_v11 }
 0x3c0   : > { %v9534_v35 = vpop.f32.mrf.mxu0  ;;  %v13180_v60 = vpop.f32.mrf.mxu1 }
 0x3c1   : > { %v6492_v50 = vadd.f32 %v9533_v61, %v6491_v52 }
 0x3c2   : > { %v9535_v40 = vpop.f32.mrf.mxu0  ;;  %v13182_v25 = vpop.f32.mrf.mxu1 }
 0x3c3   : > { %v9536_v7 = vadd.f32 %v9535_v40, %v9534_v35  ;;  %v13185_v27 = vadd.f32 %v6492_v50, %v13055_v26 }
 0x3c4   : > { %v9537_v8 = vpop.f32.mrf.mxu0  ;;  %v13187_v20 = vpop.f32.mrf.mxu1 }
 0x3c5   : > { %13622 = vst [vmem:[#allocation17_spill] sm:$0xff] %v13185_v27  ;;  %v6495_v53 = vadd.f32 %v9536_v7, %v6494_v32 }
 0x3c6   : > { %v9538_v62 = vpop.f32.mrf.mxu0  ;;  %v13189_v37 = vpop.f32.mrf.mxu1 }
 0x3c7   : > { %v9539_v0 = vadd.f32 %v9538_v62, %v9537_v8  ;;  %v13192_v11 = vadd.f32 %v6495_v53, %v13065_v29 }
 0x3c8   : > { %v9540_v52 = vpop.f32.mrf.mxu0  ;;  %v13194_v3 = vpop.f32.mrf.mxu1 }
 0x3c9   : > { %13623 = vst [vmem:[#allocation3_spill] sm:$0xff] %v13192_v11  ;;  %v6500_v6 = vadd.f32 %v10001_v55, %v9539_v0 }
 0x3ca   : > { %v9541_v18 = vpop.f32.mrf.mxu0  ;;  %v13196_v35 = vpop.f32.mrf.mxu1 }
 0x3cb   : > { %v9542_v61 = vadd.f32 %v9541_v18, %v9540_v52  ;;  %v13199_v26 = vadd.f32 %v6500_v6, %v13050_v38 }
 0x3cc   : > { %v9543_v32 = vpop.f32.mrf.mxu0  ;;  %v13201_v40 = vpop.f32.mrf.mxu1 }
 0x3cd   : > { %v6503_v50 = vadd.f32 %v10002_v21, %v9542_v61 }
 0x3ce   : > { %v9544_v7 = vpop.f32.mrf.mxu0  ;;  %v13203_v62 = vpop.f32.mrf.mxu1 }
 0x3cf   : > { %v9545_v8 = vadd.f32 %v9544_v7, %v9543_v32  ;;  %v13206_v29 = vadd.f32 %v6503_v50, %v13060_v24 }
 0x3d0   : > { %v9546_v55 = vpop.f32.mrf.mxu0  ;;  %v13208_v0 = vpop.f32.mrf.mxu1 }
 0x3d1   : > { %v6508_v53 = vadd.f32 %v9545_v8, %v6507_v22 }
 0x3d2   : > { %v9547_v52 = vpop.f32.mrf.mxu0  ;;  %v13210_v11 = vpop.f32.mrf.mxu1 }
 0x3d3   : > { %v9548_v18 = vadd.f32 %v9547_v52, %v9546_v55  ;;  %v13213_v38 = vadd.f32 %v6508_v53, %v13074_v17 }
 0x3d4   : > { %v9549_v21 = vpop.f32.mrf.mxu0  ;;  %v13215_v61 = vpop.f32.mrf.mxu1 }
 0x3d5   : > { %13624 = vst [vmem:[#allocation15_spill] sm:$0xff] %v13213_v38  ;;  %v6511_v6 = vadd.f32 %v9548_v18, %v6510_v19 }
 0x3d6   : > { %v9550_v32 = vpop.f32.mrf.mxu0  ;;  %v13217_v27 = vpop.f32.mrf.mxu1 }
 0x3d7   : > { %v9551_v7 = vadd.f32 %v9550_v32, %v9549_v21  ;;  %v13220_v24 = vadd.f32 %v6511_v6, %v13083_v9 }
 0x3d8   : > { %v9552_v22 = vpop.f32.mrf.mxu0  ;;  %v13223_v8 = vpop.f32.mrf.mxu1 }
 0x3d9   : > { %13625 = vst [vmem:[#allocation11_spill] sm:$0xff] %v13220_v24  ;;  %v6516_v50 = vadd.f32 %v13149_v59, %v9551_v7 }
 0x3da   : > { %v9553_v55 = vpop.f32.mrf.mxu0  ;;  %v13225_v17 = vpop.f32.mrf.mxu1 }
 0x3db   : > { %v9554_v52 = vadd.f32 %v9553_v55, %v9552_v22  ;;  %v13228_v19 = vadd.f32 %v6516_v50, %v13070_v56 }
 0x3dc   : > { %v9555_v53 = vpop.f32.mrf.mxu0  ;;  %v13231_v21 = vpop.f32.mrf.mxu1 }
 0x3dd   : > { %v6519_v18 = vadd.f32 %v13154_v28, %v9554_v52 }
 0x3de   : > { %v9556_v32 = vpop.f32.mrf.mxu0  ;;  %v13233_v6 = vpop.f32.mrf.mxu1 }
 0x3df   : > { %v9557_v9 = vadd.f32 %v9556_v32, %v9555_v53  ;;  %v13236_v59 = vadd.f32 %v6519_v18, %v13079_v49 }
 0x3e0   : > { %v9558_v7 = vpop.f32.mrf.mxu0  ;;  %v13239_v55 = vpop.f32.mrf.mxu1 }
 0x3e1   : > { %13626 = vst [vmem:[#allocation13_spill] sm:$0xff] %v13236_v59  ;;  %v6524_v22 = vadd.f32 %v9557_v9, %v13161_v63 }
 0x3e2   : > { %v9559_v24 = vpop.f32.mrf.mxu0  ;;  %v13241_v50 = vpop.f32.mrf.mxu1 }
 0x3e3   : > { %v9560_v56 = vadd.f32 %v9559_v24, %v9558_v7  ;;  %v13244_v28 = vadd.f32 %v6524_v22, %v13089_v41 }
 0x3e4   : > { %v9561_v52 = vpop.f32.mrf.mxu0  ;;  %v13247_v32 = vpop.f32.mrf.mxu1 }
 0x3e5   : > { %13627 = vst [vmem:[#allocation19_spill] sm:$0xff] %v13244_v28  ;;  %v6527_v53 = vadd.f32 %v9560_v56, %v13168_v43 }
 0x3e6   : > { %v9562_v38 = vpop.f32.mrf.mxu0  ;;  %v13249_v18 = vpop.f32.mrf.mxu1 }
 0x3e7   : > { %v9563_v49 = vadd.f32 %v9562_v38, %v9561_v52  ;;  %v13252_v63 = vadd.f32 %v6527_v53, %v13097_v42 }
 0x3e8   : > { %v9564_v9 = vpop.f32.mrf.mxu0  ;;  %v13255_v7 = vpop.f32.mrf.mxu1 }
 0x3e9   : > { %13628 = vst [vmem:[#allocation12_spill] sm:$0xff] %v13252_v63  ;;  %v6532_v24 = vadd.f32 %v13159_v10, %v9563_v49 }
 0x3ea   : > { %v9565_v59 = vpop.f32.mrf.mxu0  ;;  %v13260_v43 = vpop.f32.mrf.mxu1 }
 0x3eb   : > { %v13258_v41 = vadd.f32 %v6532_v24, %v13093_v54  ;;  %v9566_v22 = vadd.f32 %v9565_v59, %v9564_v9 }
 0x3ec   : > { %v9567_v56 = vpop.f32.mrf.mxu0  ;;  %v13263_v52 = vpop.f32.mrf.mxu1 }
 0x3ed   : > { %13629 = vst [vmem:[#allocation14_spill] sm:$0xff] %v13258_v41  ;;  %v6535_v38 = vadd.f32 %v13166_v5, %v9566_v22 }
 0x3ee   : > { %v9568_v28 = vpop.f32.mrf.mxu0  ;;  %v13268_v10 = vpop.f32.mrf.mxu1 }
 0x3ef   : > { %v13266_v42 = vadd.f32 %v6535_v38, %v13101_v36  ;;  %v9569_v53 = vadd.f32 %v9568_v28, %v9567_v56 }
 0x3f0   : > { %v9570_v49 = vpop.f32.mrf.mxu0  ;;  %v13271_v54 = vpop.f32.mrf.mxu1 }
 0x3f1   : > { %v6540_v63 = vadd.f32 %v9569_v53, %v13175_v58 }
 0x3f2   : > { %v9571_v59 = vpop.f32.mrf.mxu0  ;;  %v13273_v24 = vpop.f32.mrf.mxu1 }
 0x3f3   : > { %v9572_v9 = vadd.f32 %v9571_v59, %v9570_v49  ;;  %v13276_v5 = vadd.f32 %v6540_v63, %v13105_v2  ;;  %v9621_v63 = vadd.f32 %v13203_v62, %v13201_v40  ;;  %v13305_v40 = vld [vmem:[%s13494_s2] ss:$0 sm:$0xff]  ;;  %v9624_v62 = vadd.f32 %v13210_v11, %v13208_v0 }
 0x3f4   : > { %v9573_v22 = vpop.f32.mrf.mxu0  ;;  %v13279_v36 = vpop.f32.mrf.mxu1  ;;  %v9618_v11 = vadd.f32 %v13196_v35, %v13194_v3 }
 0x3f5   : > { %13630 = vst [vmem:[#allocation7_spill] sm:$0xff] %v13276_v5  ;;  %v6543_v41 = vadd.f32 %v9572_v9, %v13182_v25 }
 0x3f6   : > { %v9574_v28 = vpop.f32.mrf.mxu0  ;;  %v13281_v38 = vpop.f32.mrf.mxu1 }
 0x3f7   : > { %v9575_v56 = vadd.f32 %v9574_v28, %v9573_v22  ;;  %v13284_v58 = vadd.f32 %v6543_v41, %v13108_v39  ;;  %v9615_v39 = vadd.f32 %v13189_v37, %v13187_v20 }
 0x3f8   : > { %v9576_v53 = vpop.f32.mrf.mxu0  ;;  %v13287_v59 = vpop.f32.mrf.mxu1 }
 0x3f9   : > { %v6548_v49 = vadd.f32 %v13173_v16, %v9575_v56 }
 0x3fa   : > { %v9577_v2 = vpop.f32.mrf.mxu0  ;;  %v13294_v5 = vpop.f32.mrf.mxu1 }
 0x3fb   : > { %v13292_v25 = vadd.f32 %v6548_v49, %v13111_v12  ;;  %v9578_v9 = vadd.f32 %v9577_v2, %v9576_v53 }
 0x3fc   : > { %v10021_v22 = vpop.f32.mrf.mxu0  ;;  %v13299_v28 = vpop.f32.mrf.mxu1 }
 0x3fd   : > { %v6551_v41 = vadd.f32 %v13180_v60, %v9578_v9  ;;  %v7287_v16 = vadd.f32 %v10021_v22, %v9621_v63  ;;  %v9633_v63 = vadd.f32 %v13233_v6, %v13231_v21 }
 0x3fe   : > { %v7278_v12 = vpop.f32.mrf.mxu0  ;;  %v13313_v37 = vpop.f32.mrf.mxu1 }
 0x3ff   : > { %v13310_v56 = vadd.f32 %v6551_v41, %v13114_v44  ;;  %v7407_v20 = vadd.f32 %v7287_v16, %v13120_v1  ;;  %v7279_v60 = vadd.f32 %v9615_v39, %v7278_v12 }
 0x400   : > { %v10022_v53 = vpop.f32.mrf.mxu0  ;;  %v13324_v1 = vpop.f32.mrf.mxu1 }
 0x401   : > { %v7446_v44 = vadd.f32 %v13305_v40, %v7407_v20  ;;  %v7405_v0 = vadd.f32 %v7279_v60, %v13117_v31  ;;  %v7290_v49 = vadd.f32 %v10022_v53, %v9624_v62  ;;  %v9627_v31 = vadd.f32 %v13217_v27, %v13215_v61 }
 0x402   : > { %v7281_v2 = vpop.f32.mrf.mxu0  ;;  %v13332_v39 = vpop.f32.mrf.mxu1 }
 0x403   : > { %7479 = vst.msk [vmem:[%s13318_s6 + $0x10] sm:$0xff] %vm7476_vm1, %v7446_v44  ;;  %v7444_v9 = vadd.f32 %v13305_v40, %v7405_v0  ;;  %v7408_v22 = vadd.f32 %v7290_v49, %v13126_v45  ;;  %v7282_v3 = vadd.f32 %v9618_v11, %v7281_v2  ;;  %v9636_v45 = vadd.f32 %v13241_v50, %v13239_v55 }
 0x404   : > { %v10025_v35 = vpop.f32.mrf.mxu0  ;;  %v13340_v6 = vpop.f32.mrf.mxu1 }
 0x405   : > { %7477 = vst.msk [vmem:[%s13318_s6] sm:$0xff] %vm7476_vm1, %v7444_v9  ;;  %v7447_v41 = vadd.f32 %v13305_v40, %v7408_v22  ;;  %v7406_v21 = vadd.f32 %v7282_v3, %v13123_v57  ;;  %v7303_v16 = vadd.f32 %v10025_v35, %v9633_v63  ;;  %v9630_v57 = vadd.f32 %v13225_v17, %v13223_v8 }
 0x406   : > { %v7294_v12 = vpop.f32.mrf.mxu0  ;;  %v13348_v61 = vpop.f32.mrf.mxu1 }
 0x407   : > { %7480 = vst.msk [vmem:[%s13318_s6 + $0x18] sm:$0xff] %vm7476_vm1, %v7447_v41  ;;  %v7445_v62 = vadd.f32 %v13305_v40, %v7406_v21  ;;  %v7411_v27 = vadd.f32 %v7303_v16, %v13135_v14  ;;  %v7295_v20 = vadd.f32 %v9627_v31, %v7294_v12  ;;  %v9645_v14 = vadd.f32 %v13268_v10, %v13263_v52 }
 0x408   : > { %v10026_v60 = vpop.f32.mrf.mxu0  ;;  %v13356_v50 = vpop.f32.mrf.mxu1 }
 0x409   : > { %7478 = vst.msk [vmem:[%s13318_s6 + $0x8] sm:$0xff] %vm7476_vm1, %v7445_v62  ;;  %v7450_v53 = vadd.f32 %v13305_v40, %v7411_v27  ;;  %v7409_v55 = vadd.f32 %v7295_v20, %v13129_v13  ;;  %v7306_v11 = vadd.f32 %v10026_v60, %v9636_v45  ;;  %v9639_v13 = vadd.f32 %v13249_v18, %v13247_v32 }
 0x40a   : > { %v7297_v44 = vpop.f32.mrf.mxu0  ;;  %v13364_v17 = vpop.f32.mrf.mxu1 }
 0x40b   : > { %7483 = vst.msk [vmem:[%s13318_s6 + $0x30] sm:$0xff] %vm7476_vm1, %v7450_v53  ;;  %v7448_v0 = vadd.f32 %v13305_v40, %v7409_v55  ;;  %v7412_v8 = vadd.f32 %v7306_v11, %v13138_v23  ;;  %v7298_v49 = vadd.f32 %v9630_v57, %v7297_v44  ;;  %v9648_v23 = vadd.f32 %v13273_v24, %v13271_v54 }
 0x40c   : > { %v10029_v2 = vpop.f32.mrf.mxu0  ;;  %v9667_v10 = vpop.f32.mrf.mxu1 }
 0x40d   : > { %7481 = vst.msk [vmem:[%s13318_s6 + $0x20] sm:$0xff] %vm7476_vm1, %v7448_v0  ;;  %v7451_v63 = vadd.f32 %v13305_v40, %v7412_v8  ;;  %v7410_v52 = vadd.f32 %v7298_v49, %v13132_v46  ;;  %v7319_v9 = vadd.f32 %v10029_v2, %v9645_v14  ;;  %v9642_v46 = vadd.f32 %v13260_v43, %v13255_v7 }
 0x40e   : > { %v7310_v22 = vpop.f32.mrf.mxu0  ;;  %v9668_v32 = vpop.f32.mrf.mxu1 }
 0x40f   : > { %7484 = vst.msk [vmem:[%s13318_s6 + $0x38] sm:$0xff] %vm7476_vm1, %v7451_v63  ;;  %v7449_v3 = vadd.f32 %v13305_v40, %v7410_v52  ;;  %v7415_v35 = vadd.f32 %v7319_v9, %v13147_v48  ;;  %v7311_v18 = vadd.f32 %v9639_v13, %v7310_v22  ;;  %v9657_v48 = vadd.f32 %v13313_v37, %v13299_v28 }
 0x410   : > { %v10030_v31 = vpop.f32.mrf.mxu0  ;;  %v9670_v54 = vpop.f32.mrf.mxu1  ;;  %v9669_v0 = vadd.f32 %v9668_v32, %v9667_v10 }
 0x411   : > { %7482 = vst.msk [vmem:[%s13318_s6 + $0x28] sm:$0xff] %vm7476_vm1, %v7449_v3  ;;  %v7454_v41 = vadd.f32 %v13305_v40, %v7415_v35  ;;  %v7413_v21 = vadd.f32 %v7311_v18, %v13141_v47  ;;  %v7322_v24 = vadd.f32 %v10030_v31, %v9648_v23  ;;  %v9651_v47 = vadd.f32 %v13281_v38, %v13279_v36  ;;  %v13631_v35 = vld [vmem:[#allocation17_spill] sm:$0xff] }
 0x412   : > { %v7313_v16 = vpop.f32.mrf.mxu0  ;;  %v9671_v7 = vpop.f32.mrf.mxu1 }
 0x413   : > { %7487 = vst.msk [vmem:[%s13318_s6 + $0x50] sm:$0xff] %vm7476_vm1, %v7454_v41  ;;  %v7452_v12 = vadd.f32 %v13305_v40, %v7413_v21  ;;  %v7416_v45 = vadd.f32 %v7322_v24, %v13152_v15  ;;  %v7314_v43 = vadd.f32 %v9642_v46, %v7313_v16  ;;  %v9660_v15 = vadd.f32 %v13332_v39, %v13324_v1 }
 0x414   : > { %v10033_v62 = vpop.f32.mrf.mxu0  ;;  %v9673_v28 = vpop.f32.mrf.mxu1  ;;  %v9672_v9 = vadd.f32 %v9671_v7, %v9670_v54 }
 0x415   : > { %7485 = vst.msk [vmem:[%s13318_s6 + $0x40] sm:$0xff] %vm7476_vm1, %v7452_v12  ;;  %v7455_v27 = vadd.f32 %v13305_v40, %v7416_v45  ;;  %v7414_v20 = vadd.f32 %v7314_v43, %v13144_v30  ;;  %v7335_v37 = vadd.f32 %v10033_v62, %v9657_v48  ;;  %v9654_v30 = vadd.f32 %v13294_v5, %v13287_v59  ;;  %v13632_v48 = vld [vmem:[#allocation3_spill] sm:$0xff] }
 0x416   : > { %v7326_v60 = vpop.f32.mrf.mxu0  ;;  %v9674_v36 = vpop.f32.mrf.mxu1  ;;  %v9663_v59 = vadd.f32 %v13348_v61, %v13340_v6  ;;  %v9666_v61 = vadd.f32 %v13364_v17, %v13356_v50 }
 0x417   : > { %7488 = vst.msk [vmem:[%s13318_s6 + $0x58] sm:$0xff] %vm7476_vm1, %v7455_v27  ;;  %v7453_v57 = vadd.f32 %v13305_v40, %v7414_v20  ;;  %v7419_v53 = vadd.f32 %v7335_v37, %v13171_v51  ;;  %v7327_v38 = vadd.f32 %v9651_v47, %v7326_v60  ;;  %v9675_v17 = vadd.f32 %v9674_v36, %v9673_v28 }
 0x418   : > { %v10034_v55 = vpop.f32.mrf.mxu0  ;;  %v9676_v1 = vpop.f32.mrf.mxu1 }
 0x419   : > { %7486 = vst.msk [vmem:[%s13318_s6 + $0x48] sm:$0xff] %vm7476_vm1, %v7453_v57  ;;  %v7458_v11 = vadd.f32 %v13305_v40, %v7419_v53  ;;  %v7417_v44 = vadd.f32 %v7327_v38, %v13157_v4  ;;  %v7338_v39 = vadd.f32 %v10034_v55, %v9660_v15  ;;  %v13633_v15 = vld [vmem:[#allocation15_spill] sm:$0xff] }
 0x41a   : > { %v7329_v14 = vpop.f32.mrf.mxu0  ;;  %v9677_v49 = vpop.f32.mrf.mxu1 }
 0x41b   : > { %7491 = vst.msk [vmem:[%s13318_s6 + $0x70] sm:$0xff] %vm7476_vm1, %v7458_v11  ;;  %v7456_v51 = vadd.f32 %v13305_v40, %v7417_v44  ;;  %v7420_v8 = vadd.f32 %v7338_v39, %v13178_v33  ;;  %v7330_v2 = vadd.f32 %v9654_v30, %v7329_v14  ;;  %v9678_v37 = vadd.f32 %v9677_v49, %v9676_v1 }
 0x41c   : > { %v10037_v5 = vpop.f32.mrf.mxu0  ;;  %v9679_v63 = vpop.f32.mrf.mxu1 }
 0x41d   : > { %7489 = vst.msk [vmem:[%s13318_s6 + $0x60] sm:$0xff] %vm7476_vm1, %v7456_v51  ;;  %v7459_v4 = vadd.f32 %v13305_v40, %v7420_v8  ;;  %v7418_v13 = vadd.f32 %v7330_v2, %v13164_v34  ;;  %v7351_v52 = vadd.f32 %v10037_v5, %v9669_v0  ;;  %v13635_v0 = vld [vmem:[#allocation11_spill] sm:$0xff] }
 0x41e   : > { %v7342_v10 = vpop.f32.mrf.mxu0  ;;  %v9680_v23 = vpop.f32.mrf.mxu1 }
 0x41f   : > { %7492 = vst.msk [vmem:[%s13318_s6 + $0x78] sm:$0xff] %vm7476_vm1, %v7459_v4  ;;  %v7457_v33 = vadd.f32 %v13305_v40, %v7418_v13  ;;  %v7423_v22 = vadd.f32 %v7351_v52, %v13199_v26  ;;  %v7343_v3 = vadd.f32 %v9663_v59, %v7342_v10  ;;  %v9681_v26 = vadd.f32 %v9680_v23, %v9679_v63  ;;  %v13636_v52 = vld [vmem:[#allocation19_spill] sm:$0xff] }
 0x420   : > { %v10038_v6 = vpop.f32.mrf.mxu0  ;;  %v9682_v18 = vpop.f32.mrf.mxu1 }
 0x421   : > { %7490 = vst.msk [vmem:[%s13318_s6 + $0x68] sm:$0xff] %vm7476_vm1, %v7457_v33  ;;  %v7462_v34 = vadd.f32 %v13305_v40, %v7423_v22  ;;  %v7421_v32 = vadd.f32 %v7343_v3, %v13631_v35  ;;  %v7354_v31 = vadd.f32 %v10038_v6, %v9672_v9 }
 0x422   : > { %v7345_v46 = vpop.f32.mrf.mxu0  ;;  %v9683_v54 = vpop.f32.mrf.mxu1 }
 0x423   : > { %7495 = vst.msk [vmem:[%s13318_s6 + $0x90] sm:$0xff] %vm7476_vm1, %v7462_v34  ;;  %v7460_v41 = vadd.f32 %v13305_v40, %v7421_v32  ;;  %v7424_v21 = vadd.f32 %v7354_v31, %v13206_v29  ;;  %v7346_v24 = vadd.f32 %v9666_v61, %v7345_v46  ;;  %v9684_v62 = vadd.f32 %v9683_v54, %v9682_v18  ;;  %v13637_v61 = vld [vmem:[#allocation14_spill] sm:$0xff]  ;;  %v13638_v18 = vld [vmem:[#allocation12_spill] sm:$0xff] }
 0x424   : > { %v10041_v50 = vpop.f32.mrf.mxu0  ;;  %v9685_v45 = vpop.f32.mrf.mxu1 }
 0x425   : > { %7493 = vst.msk [vmem:[%s13318_s6 + $0x80] sm:$0xff] %vm7476_vm1, %v7460_v41  ;;  %v7463_v16 = vadd.f32 %v13305_v40, %v7424_v21  ;;  %v7422_v12 = vadd.f32 %v7346_v24, %v13632_v48  ;;  %v7367_v7 = vadd.f32 %v10041_v50, %v9681_v26 }
 0x426   : > { %v7358_v43 = vpop.f32.mrf.mxu0  ;;  %v9686_v27 = vpop.f32.mrf.mxu1 }
 0x427   : > { %7496 = vst.msk [vmem:[%s13318_s6 + $0x98] sm:$0xff] %vm7476_vm1, %v7463_v16  ;;  %v7461_v29 = vadd.f32 %v13305_v40, %v7422_v12  ;;  %v7427_v47 = vadd.f32 %v7367_v7, %v13228_v19  ;;  %v7359_v20 = vadd.f32 %v9675_v17, %v7358_v43  ;;  %v13634_v19 = vld [vmem:[#allocation13_spill] sm:$0xff]  ;;  %v9687_v39 = vadd.f32 %v9686_v27, %v9685_v45 }
 0x428   : > { %v10042_v28 = vpop.f32.mrf.mxu0  ;;  %v9688_v53 = vpop.f32.mrf.mxu1 }
 0x429   : > { %7494 = vst.msk [vmem:[%s13318_s6 + $0x88] sm:$0xff] %vm7476_vm1, %v7461_v29  ;;  %v7466_v60 = vadd.f32 %v13305_v40, %v7427_v47  ;;  %v7425_v57 = vadd.f32 %v7359_v20, %v13633_v15  ;;  %v7370_v36 = vadd.f32 %v10042_v28, %v9684_v62  ;;  %v13639_v62 = vld [vmem:[#allocation7_spill] sm:$0xff] }
 0x42a   : > { %v7361_v38 = vpop.f32.mrf.mxu0  ;;  %v9689_v11 = vpop.f32.mrf.mxu1 }
 0x42b   : > { %7499 = vst.msk [vmem:[%s13318_s6 + $0xb0] sm:$0xff] %vm7476_vm1, %v7466_v60  ;;  %v7464_v55 = vadd.f32 %v13305_v40, %v7425_v57  ;;  %v7428_v30 = vadd.f32 %v7370_v36, %v13634_v19  ;;  %v7362_v44 = vadd.f32 %v9678_v37, %v7361_v38  ;;  %v9690_v63 = vadd.f32 %v9689_v11, %v9688_v53 }
 0x42c   : > { %v10045_v1 = vpop.f32.mrf.mxu0  ;;  %v9691_v8 = vpop.f32.mrf.mxu1 }
 0x42d   : > { %7497 = vst.msk [vmem:[%s13318_s6 + $0xa0] sm:$0xff] %vm7476_vm1, %v7464_v55  ;;  %v7467_v14 = vadd.f32 %v13305_v40, %v7428_v30  ;;  %v7426_v51 = vadd.f32 %v7362_v44, %v13635_v0 }
 0x42e   : > { %v7374_v49 = vpop.f32.mrf.mxu0  ;;  %v9692_v5 = vpop.f32.mrf.mxu1 }
 0x42f   : > { %7500 = vst.msk [vmem:[%s13318_s6 + $0xb8] sm:$0xff] %vm7476_vm1, %v7467_v14  ;;  %v7465_v2 = vadd.f32 %v13305_v40, %v7426_v51  ;;  %v7375_v59 = vadd.f32 %v9687_v39, %v7374_v49  ;;  %v9693_v4 = vadd.f32 %v9692_v5, %v9691_v8 }
 0x430   : > { %v10046_v13 = vpop.f32.mrf.mxu0  ;;  %v9694_v9 = vpop.f32.mrf.mxu1 }
 0x431   : > { %7498 = vst.msk [vmem:[%s13318_s6 + $0xa8] sm:$0xff] %vm7476_vm1, %v7465_v2  ;;  %v7429_v10 = vadd.f32 %v7375_v59, %v13636_v52  ;;  %v7383_v33 = vadd.f32 %v10045_v1, %v9693_v4 }
 0x432   : > { %v7377_v22 = vpop.f32.mrf.mxu0  ;;  %v9695_v3 = vpop.f32.mrf.mxu1 }
 0x433   : > { %v7468_v23 = vadd.f32 %v13305_v40, %v7429_v10  ;;  %v7378_v6 = vadd.f32 %v9690_v63, %v7377_v22  ;;  %v7431_v34 = vadd.f32 %v7383_v33, %v13637_v61  ;;  %v9696_v35 = vadd.f32 %v9695_v3, %v9694_v9 }
 0x434   : > { %v10049_v32 = vpop.f32.mrf.mxu0  ;;  %v9697_v46 = vpop.f32.mrf.mxu1 }
 0x435   : > { %7501 = vst.msk [vmem:[%s13318_s6 + $0xc0] sm:$0xff] %vm7476_vm1, %v7468_v23  ;;  %v7430_v31 = vadd.f32 %v7378_v6, %v13638_v18  ;;  %v7470_v26 = vadd.f32 %v13305_v40, %v7431_v34  ;;  %v7386_v41 = vadd.f32 %v10046_v13, %v9696_v35 }
 0x436   : > { %v7390_v21 = vpop.f32.mrf.mxu0  ;;  %v9698_v24 = vpop.f32.mrf.mxu1 }
 0x437   : > { %v7469_v54 = vadd.f32 %v13305_v40, %v7430_v31  ;;  %7503 = vst.msk [vmem:[%s13318_s6 + $0xd0] sm:$0xff] %vm7476_vm1, %v7470_v26  ;;  %v7432_v50 = vadd.f32 %v7386_v41, %v13266_v42  ;;  %v9699_v17 = vadd.f32 %v9698_v24, %v9697_v46 }
 0x438   : > { %v10050_v16 = vpop.f32.mrf.mxu0  ;;  %v9700_v48 = vpop.f32.mrf.mxu1 }
 0x439   : > { %7502 = vst.msk [vmem:[%s13318_s6 + $0xc8] sm:$0xff] %vm7476_vm1, %v7469_v54  ;;  %v7471_v12 = vadd.f32 %v13305_v40, %v7432_v50  ;;  %v7391_v45 = vadd.f32 %v9699_v17, %v7390_v21 }
 0x43a   : > { %v9701_v7 = vpop.f32.mrf.mxu1  ;;  %v7393_v43 = vpop.f32.mrf.mxu0 }
 0x43b   : > { %7504 = vst.msk [vmem:[%s13318_s6 + $0xd8] sm:$0xff] %vm7476_vm1, %v7471_v12  ;;  %v7433_v29 = vadd.f32 %v7391_v45, %v13639_v62  ;;  %v9702_v47 = vadd.f32 %v9701_v7, %v9700_v48 }
 0x43c   : > { %v9703_v27 = vpop.f32.mrf.mxu1 }
 0x43d   : > { %v7472_v42 = vadd.f32 %v13305_v40, %v7433_v29  ;;  %v7394_v20 = vadd.f32 %v9702_v47, %v7393_v43 }
 0x43e   : > { %v9704_v28 = vpop.f32.mrf.mxu1 }
 0x43f   : > { %7505 = vst.msk [vmem:[%s13318_s6 + $0xe0] sm:$0xff] %vm7476_vm1, %v7472_v42  ;;  %v7434_v37 = vadd.f32 %v7394_v20, %v13284_v58  ;;  %v9705_v60 = vadd.f32 %v9704_v28, %v9703_v27 }
 0x440   : > { %v9706_v15 = vpop.f32.mrf.mxu1 }
 0x441   : > { %v7473_v57 = vadd.f32 %v13305_v40, %v7434_v37  ;;  %v7399_v53 = vadd.f32 %v10049_v32, %v9705_v60 }
 0x442   : > { %v9707_v36 = vpop.f32.mrf.mxu1 }
 0x443   : > { %7506 = vst.msk [vmem:[%s13318_s6 + $0xe8] sm:$0xff] %vm7476_vm1, %v7473_v57  ;;  %v7435_v38 = vadd.f32 %v7399_v53, %v13292_v25  ;;  %v9708_v55 = vadd.f32 %v9707_v36, %v9706_v15 }
 0x445   : > { %v7474_v19 = vadd.f32 %v13305_v40, %v7435_v38  ;;  %v7402_v30 = vadd.f32 %v10050_v16, %v9708_v55 }
 0x447   : > { %7507 = vst.msk [vmem:[%s13318_s6 + $0xf0] sm:$0xff] %vm7476_vm1, %v7474_v19  ;;  %v7436_v11 = vadd.f32 %v7402_v30, %v13310_v56 }
 0x449   : > { %v7475_v58 = vadd.f32 %v13305_v40, %v7436_v11 }
 0x44b   : > { %7508 = vst.msk [vmem:[%s13318_s6 + $0xf8] sm:$0xff] %vm7476_vm1, %v7475_v58 }
 0x44c PF: > { %s13_s12 = sadd.s32 1, %s10597_s12  }
 0x44d   : > { %p10_p4 = scmp.ge.s32.totalorder %s13_s12, 4  }
 0x44f   :  { %12 = sbr.rel (!%p10_p4) target bundleno = 1 (0x1), region = 70 }

</bundles_post_ra>
